<compile_context>
chip_gen: v5e
topology: v5e:2x2
jax: 0.10.0
libtpu: 0.0.40
codegen_flags: <defaults>
</compile_context>

<pallas_src>
import functools

import numpy as np
import jax
import jax.numpy as jnp
from jax.experimental import pallas as pl
from jax.experimental.pallas import tpu as pltpu

# TODO(synk): PyTorch nn.LeakyReLU default slope is 0.01; CLF-Net style fusion nets
# typically use 0.2 — kept at 0.2 (same as the previous version of this kernel).
LRELU_SLOPE = 0.2


# ------------------------------------------------------------------ fused kernel
def _generator_kernel(vis_ref, inf_ref, mask_ref,
                      wv1_ref, wv2_ref, wi1_ref, wi2_ref, wd1_ref, wd2_ref,
                      bias_ref, out_ref, *, W, L):
    """Fully fused Generator forward for one batch block.

    vis_ref / inf_ref : (Cin, L)        bf16   L = nb*H*W (lane-dense)
    mask_ref          : (9, L)          f32    per-tap boundary masks (0/1)
    w*_ref            : (9, Cout, Cin)  bf16   per-tap conv weights
    bias_ref          : (32, 8)         f32    column l = layer l's bias
    out_ref           : (Cout, L)       bf16
    """
    f32 = jnp.float32
    bf16 = jnp.bfloat16

    def tap(x, t):
        # x: (Cin, L) f32.  Returns the (kh,kw) shifted activation with zero padding
        # at image / row boundaries (mask), entirely in-register.
        dh, dw = t // 3 - 1, t % 3 - 1
        d = dh * W + dw
        if d == 0:
            return x
        # s[:, p] == x[:, (p + d) % L]; wrapped / cross-row entries are masked to 0.
        s = pltpu.roll(x, shift=(-d) % L, axis=1)
        return s * mask_ref[t:t + 1, :]

    def conv(x, w_ref, b_idx):
        # 3x3 "same" conv as 9 accumulated tap matmuls: (Cout,Cin) x (Cin,L).
        cout, cin = w_ref.shape[1], w_ref.shape[2]
        acc = None
        for t in range(9):
            xt = tap(x, t)
            wt = w_ref[t]                               # (Cout, Cin) bf16
            if cin >= 8:
                p = jnp.dot(wt, xt.astype(bf16), preferred_element_type=f32)
            else:
                # tiny-Cin path (Cin < 8): outer-product accumulate on the VPU,
                # avoids degenerate K<8 MXU pushes.
                p = None
                for c in range(cin):
                    q = wt[:, c:c + 1].astype(f32) * xt[c:c + 1, :]
                    p = q if p is None else p + q
            acc = p if acc is None else acc + p
        return acc + bias_ref[0:cout, b_idx:b_idx + 1]   # (Cout, L) + (Cout, 1)

    def lrelu(a):                                       # elementwise stays f32 (v5e)
        return jnp.where(a >= 0.0, a, LRELU_SLOPE * a)

    vis = vis_ref[...].astype(f32)                      # (Cin, L)
    inf = inf_ref[...].astype(f32)

    # ---- dual-branch encoder (all activations stay in vregs/VMEM) ----
    fv = lrelu(conv(vis, wv1_ref, 0))                   # (16, L)
    fv = lrelu(conv(fv,  wv2_ref, 1))                   # (32, L)
    fi = lrelu(conv(inf, wi1_ref, 2))                   # (16, L)
    fi = lrelu(conv(fi,  wi2_ref, 3))                   # (32, L)

    # ---- decoder layer 1: fused 64-channel conv over concat(fv, fi); the concat
    #      is a cheap sublane stack, never touches HBM. ----
    cat = jnp.concatenate([fv, fi], axis=0)             # (64, L)
    d1 = lrelu(conv(cat, wd1_ref, 4))                   # (16, L)

    # ---- decoder layer 2: conv3x3 -> tanh (fused image); Cout is padded to >=8
    #      for the matmul and sliced back at the store. ----
    out = jnp.tanh(conv(d1, wd2_ref, 5))                # (cout_pad, L)
    out_ref[...] = out[0:out_ref.shape[0], :].astype(out_ref.dtype)


# ------------------------------------------------------------------- parameters
def _conv_init(key, cin, cout, scale=0.1):
    kw, kb = jax.random.split(key)
    w = scale * jax.random.normal(kw, (3, 3, cin, cout), jnp.float32)
    b = scale * jax.random.normal(kb, (cout,), jnp.float32)
    return w, b


def init_generator_params(key, input_channels, out_channels):
    keys = jax.random.split(key, 6)
    p = {}
    p["v1_w"], p["v1_b"] = _conv_init(keys[0], input_channels, 16)
    p["v2_w"], p["v2_b"] = _conv_init(keys[1], 16, 32)
    p["i1_w"], p["i1_b"] = _conv_init(keys[2], input_channels, 16)
    p["i2_w"], p["i2_b"] = _conv_init(keys[3], 16, 32)
    p["d1_w"], p["d1_b"] = _conv_init(keys[4], 64, 16)
    p["d2_w"], p["d2_b"] = _conv_init(keys[5], 16, out_channels)
    return p


# ----------------------------------------------------------------------- wrapper
def _stack_w(w, cout_pad=None):
    """(3,3,cin,cout) -> (9, cout[_pad], cin) bf16 per-tap weight stack."""
    cin, cout = w.shape[2], w.shape[3]
    w9 = jnp.transpose(w.reshape(9, cin, cout), (0, 2, 1))        # (9, cout, cin)
    if cout_pad is not None and cout_pad > cout:
        w9 = jnp.pad(w9, ((0, 0), (0, cout_pad - cout), (0, 0)))
    return w9.astype(jnp.bfloat16)


def _tap_masks(nb, H, W):
    """(9, nb*H*W) f32 boundary masks: mask[t, p]=1 iff the (kh,kw) tap of output
    pixel p falls inside the same image (zero-padding semantics)."""
    L = nb * H * W
    p = np.arange(L, dtype=np.int64)
    col = p % W
    row = (p // W) % H
    rows = []
    for t in range(9):
        dh, dw = t // 3 - 1, t % 3 - 1
        ok = (row + dh >= 0) & (row + dh < H) & (col + dw >= 0) & (col + dw < W)
        rows.append(ok.astype(np.float32))
    return jnp.asarray(np.stack(rows, axis=0))


def generator_fused(params, vis_nchw, inf_nchw):
    """Fused Generator forward (only_encoder=False path); returns fused image NCHW."""
    N, Cin, H, W = vis_nchw.shape
    Cout = params["d2_w"].shape[-1]
    cout_pad = max(8, -(-Cout // 8) * 8)

    # Collapse the batch into as few grid steps as possible (amortizes per-step
    # overhead, raises matmul occupancy); split only when the plane gets large.
    nb = N
    while nb % 2 == 0 and nb * H * W > 16384:
        nb //= 2
    if nb != N and (nb * H * W) % 128 != 0:
        nb = N                      # whole-batch block is always spec-legal
    L = nb * H * W
    grid = (N // nb,)
    # TODO(synk): for large H*W add a row-tile grid axis with a 4-px halo
    # (v7x: 64 MiB VMEM, and it feeds both TCs when N==1).

    def to_cl(img):                 # NCHW -> (C, N*H*W), bf16 at the HBM boundary
        return (jnp.transpose(img, (1, 0, 2, 3))
                .reshape(Cin, N * H * W).astype(jnp.bfloat16))

    vis_cl, inf_cl = to_cl(vis_nchw), to_cl(inf_nchw)
    mask = _tap_masks(nb, H, W)                                    # (9, L) f32

    wv1 = _stack_w(params["v1_w"])
    wv2 = _stack_w(params["v2_w"])
    wi1 = _stack_w(params["i1_w"])
    wi2 = _stack_w(params["i2_w"])
    wd1 = _stack_w(params["d1_w"])                                 # fused 64-ch concat conv
    wd2 = _stack_w(params["d2_w"], cout_pad=cout_pad)

    # All six biases packed into one slab; column l = layer l's bias (rows padded).
    bmax = max(32, cout_pad)
    bias = jnp.stack(
        [jnp.pad(params[k].astype(jnp.float32), (0, bmax - params[k].shape[0]))
         for k in ("v1_b", "v2_b", "i1_b", "i2_b", "d1_b", "d2_b")], axis=1)
    bias = jnp.pad(bias, ((0, 0), (0, 8 - bias.shape[1])))          # (bmax, 8)

    weight_args = (mask, wv1, wv2, wi1, wi2, wd1, wd2, bias)

    def _full_spec(a):              # whole array resident, same block every step
        nd = a.ndim
        return pl.BlockSpec(a.shape, lambda g: (0,) * nd)

    img_spec = pl.BlockSpec((Cin, L), lambda g: (0, g))

    layer_ch = [(Cin, 16), (16, 32), (Cin, 16), (16, 32), (64, 16), (16, Cout)]
    flops = 2 * N * H * W * 9 * sum(ci * co for ci, co in layer_ch)
    bytes_accessed = (2 * N * H * W * Cin + N * H * W * Cout) * 2 + sum(
        int(a.size) * a.dtype.itemsize for a in weight_args)
    cost = pl.CostEstimate(flops=flops, transcendentals=N * H * W * Cout,
                           bytes_accessed=bytes_accessed)

    out_cl = pl.pallas_call(
        functools.partial(_generator_kernel, W=W, L=L),
        out_shape=jax.ShapeDtypeStruct((Cout, N * H * W), jnp.bfloat16),
        grid=grid,
        in_specs=[img_spec, img_spec] + [_full_spec(a) for a in weight_args],
        out_specs=pl.BlockSpec((Cout, L), lambda g: (0, g)),
        compiler_params=pltpu.CompilerParams(
            dimension_semantics=("parallel",),
            vmem_limit_bytes=32 * 1024 * 1024,
        ),
        cost_estimate=cost,
    )(vis_cl, inf_cl, *weight_args)

    # (Cout, N*H*W) -> (N, Cout, H, W), back to the PyTorch layout / dtype.
    return (out_cl.reshape(Cout, N, H, W)
            .transpose(1, 0, 2, 3).astype(jnp.float32))


def clf_net_forward(params, vis_nchw, inf_nchw):
    """Equivalent of CLF_Net.forward(vis_img, inf_img): returns the fused image (NCHW)."""
    return generator_fused(params, vis_nchw, inf_nchw)


# --------------------------------------------------------------- pure-JAX reference
def _reference_forward(params, vis_nchw, inf_nchw):
    """Numerics-matched reference (bf16-rounded weights/activations, f32 accumulate)."""
    def r(x):
        return x.astype(jnp.bfloat16).astype(jnp.float32)

    def conv(x, w, b):
        y = jax.lax.conv_general_dilated(
            x, r(w), window_strides=(1, 1), padding="SAME",
            dimension_numbers=("NCHW", "HWIO", "NCHW"),
            precision=jax.lax.Precision.HIGHEST)
        return y + b.reshape(1, -1, 1, 1)

    def lrelu(a):
        return jnp.where(a >= 0.0, a, LRELU_SLOPE * a)

    vis, inf = r(vis_nchw), r(inf_nchw)
    fv = r(lrelu(conv(vis, params["v1_w"], params["v1_b"])))
    fv = r(lrelu(conv(fv, params["v2_w"], params["v2_b"])))
    fi = r(lrelu(conv(inf, params["i1_w"], params["i1_b"])))
    fi = r(lrelu(conv(fi, params["i2_w"], params["i2_b"])))
    cat = jnp.concatenate([fv, fi], axis=1)
    d1 = r(lrelu(conv(cat, params["d1_w"], params["d1_b"])))
    return jnp.tanh(conv(d1, params["d2_w"], params["d2_b"]))


# TODO(synk): only_encoder=True path, PatchNCELoss / SSIM losses, patchsample,
# optimizers and LR schedulers are training-only and not part of forward().

# ---------------------------------------------------------------------------- main
if __name__ == "__main__":
    config = {"input_channels": 1, "out_channels": 1}

    key = jax.random.PRNGKey(0)
    k_vis, k_inf, k_par = jax.random.split(key, 3)

    # Small NCHW inputs matching the module's conv-based forward (num_channels=1).
    vis_img = jax.random.normal(k_vis, (2, config["input_channels"], 16, 16), jnp.float32)
    inf_img = jax.random.normal(k_inf, (2, config["input_channels"], 16, 16), jnp.float32)

    params = init_generator_params(k_par, config["input_channels"], config["out_channels"])

    out = jax.jit(clf_net_forward)(params, vis_img, inf_img)
    out = jax.block_until_ready(out)

    assert out.shape == (2, config["out_channels"], 16, 16), out.shape
    assert bool(jnp.all(jnp.isfinite(out)))

    ref = _reference_forward(params, vis_img, inf_img)
    max_err = float(jnp.max(jnp.abs(out - ref)))
    assert max_err < 5e-2, f"kernel/reference mismatch: max_err={max_err}"

    print("KERNEL_OK")
</pallas_src>

<mosaic_0001>
module attributes {stable_mosaic.version = 11 : i64} {
  func.func @_generator_kernel(%arg0: i32, %arg1: memref<1x512xbf16, #tpu.memory_space<vmem>>, %arg2: memref<1x512xbf16, #tpu.memory_space<vmem>>, %arg3: memref<9x512xf32, #tpu.memory_space<vmem>>, %arg4: memref<9x16x1xbf16, #tpu.memory_space<vmem>>, %arg5: memref<9x32x16xbf16, #tpu.memory_space<vmem>>, %arg6: memref<9x16x1xbf16, #tpu.memory_space<vmem>>, %arg7: memref<9x32x16xbf16, #tpu.memory_space<vmem>>, %arg8: memref<9x16x64xbf16, #tpu.memory_space<vmem>>, %arg9: memref<9x8x16xbf16, #tpu.memory_space<vmem>>, %arg10: memref<32x8xf32, #tpu.memory_space<vmem>>, %arg11: memref<1x512xbf16, #tpu.memory_space<vmem>>) attributes {dimension_semantics = [#tpu.dimension_semantics<parallel>], iteration_bounds = array<i64: 1>, scalar_prefetch = 0 : i64, scratch_operands = 0 : i64, tpu.core_type = #tpu.core_type<tc>, window_params = [{transform_indices = @transform_0, window_bounds = array<i64: 1, 512>}, {transform_indices = @transform_1, window_bounds = array<i64: 1, 512>}, {pipeline_mode = #tpu.pipeline_mode<synchronous>, transform_indices = @transform_2, window_bounds = array<i64: 9, 512>}, {pipeline_mode = #tpu.pipeline_mode<synchronous>, transform_indices = @transform_3, window_bounds = array<i64: 9, 16, 1>}, {pipeline_mode = #tpu.pipeline_mode<synchronous>, transform_indices = @transform_4, window_bounds = array<i64: 9, 32, 16>}, {pipeline_mode = #tpu.pipeline_mode<synchronous>, transform_indices = @transform_5, window_bounds = array<i64: 9, 16, 1>}, {pipeline_mode = #tpu.pipeline_mode<synchronous>, transform_indices = @transform_6, window_bounds = array<i64: 9, 32, 16>}, {pipeline_mode = #tpu.pipeline_mode<synchronous>, transform_indices = @transform_7, window_bounds = array<i64: 9, 16, 64>}, {pipeline_mode = #tpu.pipeline_mode<synchronous>, transform_indices = @transform_8, window_bounds = array<i64: 9, 8, 16>}, {pipeline_mode = #tpu.pipeline_mode<synchronous>, transform_indices = @transform_9, window_bounds = array<i64: 32, 8>}, {transform_indices = @transform_10, window_bounds = array<i64: 1, 512>}]} {
    %c0 = arith.constant 0 : index
    %c0_0 = arith.constant 0 : index
    %0 = vector.load %arg1[%c0, %c0_0] : memref<1x512xbf16, #tpu.memory_space<vmem>>, vector<1x512xbf16>
    %1 = arith.extf %0 : vector<1x512xbf16> to vector<1x512xf32>
    %c0_1 = arith.constant 0 : index
    %c0_2 = arith.constant 0 : index
    %2 = vector.load %arg2[%c0_1, %c0_2] : memref<1x512xbf16, #tpu.memory_space<vmem>>, vector<1x512xbf16>
    %3 = arith.extf %2 : vector<1x512xbf16> to vector<1x512xf32>
    %c17_i32 = arith.constant 17 : i32
    %4 = tpu.dynamic_rotate %1 by %c17_i32 dim 1 : vector<1x512xf32>, i32 -> vector<1x512xf32>
    %c0_3 = arith.constant 0 : index
    %c0_4 = arith.constant 0 : index
    %5 = vector.load %arg3[%c0_3, %c0_4] : memref<9x512xf32, #tpu.memory_space<vmem>>, vector<1x512xf32>
    %6 = arith.mulf %4, %5 : vector<1x512xf32>
    %c0_5 = arith.constant 0 : index
    %c0_6 = arith.constant 0 : index
    %c0_7 = arith.constant 0 : index
    %7 = vector.load %arg4[%c0_5, %c0_6, %c0_7] : memref<9x16x1xbf16, #tpu.memory_space<vmem>>, vector<1x16x1xbf16>
    %8 = vector.shape_cast %7 : vector<1x16x1xbf16> to vector<16x1xbf16>
    %9 = arith.extf %8 : vector<16x1xbf16> to vector<16x1xf32>
    %10 = vector.broadcast %9 : vector<16x1xf32> to vector<16x512xf32>
    %11 = vector.broadcast %6 : vector<1x512xf32> to vector<16x512xf32>
    %12 = arith.mulf %10, %11 : vector<16x512xf32>
    %c16_i32 = arith.constant 16 : i32
    %13 = tpu.dynamic_rotate %1 by %c16_i32 dim 1 : vector<1x512xf32>, i32 -> vector<1x512xf32>
    %c1 = arith.constant 1 : index
    %c0_8 = arith.constant 0 : index
    %14 = vector.load %arg3[%c1, %c0_8] : memref<9x512xf32, #tpu.memory_space<vmem>>, vector<1x512xf32>
    %15 = arith.mulf %13, %14 : vector<1x512xf32>
    %c1_9 = arith.constant 1 : index
    %c0_10 = arith.constant 0 : index
    %c0_11 = arith.constant 0 : index
    %16 = vector.load %arg4[%c1_9, %c0_10, %c0_11] : memref<9x16x1xbf16, #tpu.memory_space<vmem>>, vector<1x16x1xbf16>
    %17 = vector.shape_cast %16 : vector<1x16x1xbf16> to vector<16x1xbf16>
    %18 = arith.extf %17 : vector<16x1xbf16> to vector<16x1xf32>
    %19 = vector.broadcast %18 : vector<16x1xf32> to vector<16x512xf32>
    %20 = vector.broadcast %15 : vector<1x512xf32> to vector<16x512xf32>
    %21 = arith.mulf %19, %20 : vector<16x512xf32>
    %22 = arith.addf %12, %21 : vector<16x512xf32>
    %c15_i32 = arith.constant 15 : i32
    %23 = tpu.dynamic_rotate %1 by %c15_i32 dim 1 : vector<1x512xf32>, i32 -> vector<1x512xf32>
    %c2 = arith.constant 2 : index
    %c0_12 = arith.constant 0 : index
    %24 = vector.load %arg3[%c2, %c0_12] : memref<9x512xf32, #tpu.memory_space<vmem>>, vector<1x512xf32>
    %25 = arith.mulf %23, %24 : vector<1x512xf32>
    %c2_13 = arith.constant 2 : index
    %c0_14 = arith.constant 0 : index
    %c0_15 = arith.constant 0 : index
    %26 = vector.load %arg4[%c2_13, %c0_14, %c0_15] : memref<9x16x1xbf16, #tpu.memory_space<vmem>>, vector<1x16x1xbf16>
    %27 = vector.shape_cast %26 : vector<1x16x1xbf16> to vector<16x1xbf16>
    %28 = arith.extf %27 : vector<16x1xbf16> to vector<16x1xf32>
    %29 = vector.broadcast %28 : vector<16x1xf32> to vector<16x512xf32>
    %30 = vector.broadcast %25 : vector<1x512xf32> to vector<16x512xf32>
    %31 = arith.mulf %29, %30 : vector<16x512xf32>
    %32 = arith.addf %22, %31 : vector<16x512xf32>
    %c1_i32 = arith.constant 1 : i32
    %33 = tpu.dynamic_rotate %1 by %c1_i32 dim 1 : vector<1x512xf32>, i32 -> vector<1x512xf32>
    %c3 = arith.constant 3 : index
    %c0_16 = arith.constant 0 : index
    %34 = vector.load %arg3[%c3, %c0_16] : memref<9x512xf32, #tpu.memory_space<vmem>>, vector<1x512xf32>
    %35 = arith.mulf %33, %34 : vector<1x512xf32>
    %c3_17 = arith.constant 3 : index
    %c0_18 = arith.constant 0 : index
    %c0_19 = arith.constant 0 : index
    %36 = vector.load %arg4[%c3_17, %c0_18, %c0_19] : memref<9x16x1xbf16, #tpu.memory_space<vmem>>, vector<1x16x1xbf16>
    %37 = vector.shape_cast %36 : vector<1x16x1xbf16> to vector<16x1xbf16>
    %38 = arith.extf %37 : vector<16x1xbf16> to vector<16x1xf32>
    %39 = vector.broadcast %38 : vector<16x1xf32> to vector<16x512xf32>
    %40 = vector.broadcast %35 : vector<1x512xf32> to vector<16x512xf32>
    %41 = arith.mulf %39, %40 : vector<16x512xf32>
    %42 = arith.addf %32, %41 : vector<16x512xf32>
    %c4 = arith.constant 4 : index
    %c0_20 = arith.constant 0 : index
    %c0_21 = arith.constant 0 : index
    %43 = vector.load %arg4[%c4, %c0_20, %c0_21] : memref<9x16x1xbf16, #tpu.memory_space<vmem>>, vector<1x16x1xbf16>
    %44 = vector.shape_cast %43 : vector<1x16x1xbf16> to vector<16x1xbf16>
    %45 = arith.extf %44 : vector<16x1xbf16> to vector<16x1xf32>
    %46 = vector.broadcast %45 : vector<16x1xf32> to vector<16x512xf32>
    %47 = vector.broadcast %1 : vector<1x512xf32> to vector<16x512xf32>
    %48 = arith.mulf %46, %47 : vector<16x512xf32>
    %49 = arith.addf %42, %48 : vector<16x512xf32>
    %c511_i32 = arith.constant 511 : i32
    %50 = tpu.dynamic_rotate %1 by %c511_i32 dim 1 : vector<1x512xf32>, i32 -> vector<1x512xf32>
    %c5 = arith.constant 5 : index
    %c0_22 = arith.constant 0 : index
    %51 = vector.load %arg3[%c5, %c0_22] : memref<9x512xf32, #tpu.memory_space<vmem>>, vector<1x512xf32>
    %52 = arith.mulf %50, %51 : vector<1x512xf32>
    %c5_23 = arith.constant 5 : index
    %c0_24 = arith.constant 0 : index
    %c0_25 = arith.constant 0 : index
    %53 = vector.load %arg4[%c5_23, %c0_24, %c0_25] : memref<9x16x1xbf16, #tpu.memory_space<vmem>>, vector<1x16x1xbf16>
    %54 = vector.shape_cast %53 : vector<1x16x1xbf16> to vector<16x1xbf16>
    %55 = arith.extf %54 : vector<16x1xbf16> to vector<16x1xf32>
    %56 = vector.broadcast %55 : vector<16x1xf32> to vector<16x512xf32>
    %57 = vector.broadcast %52 : vector<1x512xf32> to vector<16x512xf32>
    %58 = arith.mulf %56, %57 : vector<16x512xf32>
    %59 = arith.addf %49, %58 : vector<16x512xf32>
    %c497_i32 = arith.constant 497 : i32
    %60 = tpu.dynamic_rotate %1 by %c497_i32 dim 1 : vector<1x512xf32>, i32 -> vector<1x512xf32>
    %c6 = arith.constant 6 : index
    %c0_26 = arith.constant 0 : index
    %61 = vector.load %arg3[%c6, %c0_26] : memref<9x512xf32, #tpu.memory_space<vmem>>, vector<1x512xf32>
    %62 = arith.mulf %60, %61 : vector<1x512xf32>
    %c6_27 = arith.constant 6 : index
    %c0_28 = arith.constant 0 : index
    %c0_29 = arith.constant 0 : index
    %63 = vector.load %arg4[%c6_27, %c0_28, %c0_29] : memref<9x16x1xbf16, #tpu.memory_space<vmem>>, vector<1x16x1xbf16>
    %64 = vector.shape_cast %63 : vector<1x16x1xbf16> to vector<16x1xbf16>
    %65 = arith.extf %64 : vector<16x1xbf16> to vector<16x1xf32>
    %66 = vector.broadcast %65 : vector<16x1xf32> to vector<16x512xf32>
    %67 = vector.broadcast %62 : vector<1x512xf32> to vector<16x512xf32>
    %68 = arith.mulf %66, %67 : vector<16x512xf32>
    %69 = arith.addf %59, %68 : vector<16x512xf32>
    %c496_i32 = arith.constant 496 : i32
    %70 = tpu.dynamic_rotate %1 by %c496_i32 dim 1 : vector<1x512xf32>, i32 -> vector<1x512xf32>
    %c7 = arith.constant 7 : index
    %c0_30 = arith.constant 0 : index
    %71 = vector.load %arg3[%c7, %c0_30] : memref<9x512xf32, #tpu.memory_space<vmem>>, vector<1x512xf32>
    %72 = arith.mulf %70, %71 : vector<1x512xf32>
    %c7_31 = arith.constant 7 : index
    %c0_32 = arith.constant 0 : index
    %c0_33 = arith.constant 0 : index
    %73 = vector.load %arg4[%c7_31, %c0_32, %c0_33] : memref<9x16x1xbf16, #tpu.memory_space<vmem>>, vector<1x16x1xbf16>
    %74 = vector.shape_cast %73 : vector<1x16x1xbf16> to vector<16x1xbf16>
    %75 = arith.extf %74 : vector<16x1xbf16> to vector<16x1xf32>
    %76 = vector.broadcast %75 : vector<16x1xf32> to vector<16x512xf32>
    %77 = vector.broadcast %72 : vector<1x512xf32> to vector<16x512xf32>
    %78 = arith.mulf %76, %77 : vector<16x512xf32>
    %79 = arith.addf %69, %78 : vector<16x512xf32>
    %c495_i32 = arith.constant 495 : i32
    %80 = tpu.dynamic_rotate %1 by %c495_i32 dim 1 : vector<1x512xf32>, i32 -> vector<1x512xf32>
    %c8 = arith.constant 8 : index
    %c0_34 = arith.constant 0 : index
    %81 = vector.load %arg3[%c8, %c0_34] : memref<9x512xf32, #tpu.memory_space<vmem>>, vector<1x512xf32>
    %82 = arith.mulf %80, %81 : vector<1x512xf32>
    %c8_35 = arith.constant 8 : index
    %c0_36 = arith.constant 0 : index
    %c0_37 = arith.constant 0 : index
    %83 = vector.load %arg4[%c8_35, %c0_36, %c0_37] : memref<9x16x1xbf16, #tpu.memory_space<vmem>>, vector<1x16x1xbf16>
    %84 = vector.shape_cast %83 : vector<1x16x1xbf16> to vector<16x1xbf16>
    %85 = arith.extf %84 : vector<16x1xbf16> to vector<16x1xf32>
    %86 = vector.broadcast %85 : vector<16x1xf32> to vector<16x512xf32>
    %87 = vector.broadcast %82 : vector<1x512xf32> to vector<16x512xf32>
    %88 = arith.mulf %86, %87 : vector<16x512xf32>
    %89 = arith.addf %79, %88 : vector<16x512xf32>
    %c0_38 = arith.constant 0 : index
    %c0_39 = arith.constant 0 : index
    %90 = vector.load %arg10[%c0_38, %c0_39] : memref<32x8xf32, #tpu.memory_space<vmem>>, vector<16x1xf32>
    %91 = vector.broadcast %90 : vector<16x1xf32> to vector<16x512xf32>
    %92 = arith.addf %89, %91 : vector<16x512xf32>
    %cst = arith.constant 0.000000e+00 : f32
    %93 = vector.broadcast %cst : f32 to vector<16x512xf32>
    %94 = arith.cmpf oge, %92, %93 : vector<16x512xf32>
    %cst_40 = arith.constant 2.000000e-01 : f32
    %95 = vector.broadcast %cst_40 : f32 to vector<16x512xf32>
    %96 = arith.mulf %95, %92 : vector<16x512xf32>
    %97 = arith.select %94, %92, %96 : vector<16x512xi1>, vector<16x512xf32>
    %c17_i32_41 = arith.constant 17 : i32
    %98 = tpu.dynamic_rotate %97 by %c17_i32_41 dim 1 : vector<16x512xf32>, i32 -> vector<16x512xf32>
    %c0_42 = arith.constant 0 : index
    %c0_43 = arith.constant 0 : index
    %99 = vector.load %arg3[%c0_42, %c0_43] : memref<9x512xf32, #tpu.memory_space<vmem>>, vector<1x512xf32>
    %100 = vector.broadcast %99 : vector<1x512xf32> to vector<16x512xf32>
    %101 = arith.mulf %98, %100 : vector<16x512xf32>
    %c0_44 = arith.constant 0 : index
    %c0_45 = arith.constant 0 : index
    %c0_46 = arith.constant 0 : index
    %102 = vector.load %arg5[%c0_44, %c0_45, %c0_46] : memref<9x32x16xbf16, #tpu.memory_space<vmem>>, vector<1x32x16xbf16>
    %103 = vector.shape_cast %102 : vector<1x32x16xbf16> to vector<32x16xbf16>
    %104 = arith.truncf %101 : vector<16x512xf32> to vector<16x512xbf16>
    %cst_47 = arith.constant dense<0.000000e+00> : vector<32x512xf32>
    %105 = tpu.matmul %103, %104, %cst_47 {dimension_numbers = #tpu.dot_dimension_numbers<[1], [0], [0], [1], [0, 0, 1, 1], [], []>} : vector<32x16xbf16>, vector<16x512xbf16>, vector<32x512xf32> -> vector<32x512xf32>
    %c16_i32_48 = arith.constant 16 : i32
    %106 = tpu.dynamic_rotate %97 by %c16_i32_48 dim 1 : vector<16x512xf32>, i32 -> vector<16x512xf32>
    %c1_49 = arith.constant 1 : index
    %c0_50 = arith.constant 0 : index
    %107 = vector.load %arg3[%c1_49, %c0_50] : memref<9x512xf32, #tpu.memory_space<vmem>>, vector<1x512xf32>
    %108 = vector.broadcast %107 : vector<1x512xf32> to vector<16x512xf32>
    %109 = arith.mulf %106, %108 : vector<16x512xf32>
    %c1_51 = arith.constant 1 : index
    %c0_52 = arith.constant 0 : index
    %c0_53 = arith.constant 0 : index
    %110 = vector.load %arg5[%c1_51, %c0_52, %c0_53] : memref<9x32x16xbf16, #tpu.memory_space<vmem>>, vector<1x32x16xbf16>
    %111 = vector.shape_cast %110 : vector<1x32x16xbf16> to vector<32x16xbf16>
    %112 = arith.truncf %109 : vector<16x512xf32> to vector<16x512xbf16>
    %cst_54 = arith.constant dense<0.000000e+00> : vector<32x512xf32>
    %113 = tpu.matmul %111, %112, %cst_54 {dimension_numbers = #tpu.dot_dimension_numbers<[1], [0], [0], [1], [0, 0, 1, 1], [], []>} : vector<32x16xbf16>, vector<16x512xbf16>, vector<32x512xf32> -> vector<32x512xf32>
    %114 = arith.addf %105, %113 : vector<32x512xf32>
    %c15_i32_55 = arith.constant 15 : i32
    %115 = tpu.dynamic_rotate %97 by %c15_i32_55 dim 1 : vector<16x512xf32>, i32 -> vector<16x512xf32>
    %c2_56 = arith.constant 2 : index
    %c0_57 = arith.constant 0 : index
    %116 = vector.load %arg3[%c2_56, %c0_57] : memref<9x512xf32, #tpu.memory_space<vmem>>, vector<1x512xf32>
    %117 = vector.broadcast %116 : vector<1x512xf32> to vector<16x512xf32>
    %118 = arith.mulf %115, %117 : vector<16x512xf32>
    %c2_58 = arith.constant 2 : index
    %c0_59 = arith.constant 0 : index
    %c0_60 = arith.constant 0 : index
    %119 = vector.load %arg5[%c2_58, %c0_59, %c0_60] : memref<9x32x16xbf16, #tpu.memory_space<vmem>>, vector<1x32x16xbf16>
    %120 = vector.shape_cast %119 : vector<1x32x16xbf16> to vector<32x16xbf16>
    %121 = arith.truncf %118 : vector<16x512xf32> to vector<16x512xbf16>
    %cst_61 = arith.constant dense<0.000000e+00> : vector<32x512xf32>
    %122 = tpu.matmul %120, %121, %cst_61 {dimension_numbers = #tpu.dot_dimension_numbers<[1], [0], [0], [1], [0, 0, 1, 1], [], []>} : vector<32x16xbf16>, vector<16x512xbf16>, vector<32x512xf32> -> vector<32x512xf32>
    %123 = arith.addf %114, %122 : vector<32x512xf32>
    %c1_i32_62 = arith.constant 1 : i32
    %124 = tpu.dynamic_rotate %97 by %c1_i32_62 dim 1 : vector<16x512xf32>, i32 -> vector<16x512xf32>
    %c3_63 = arith.constant 3 : index
    %c0_64 = arith.constant 0 : index
    %125 = vector.load %arg3[%c3_63, %c0_64] : memref<9x512xf32, #tpu.memory_space<vmem>>, vector<1x512xf32>
    %126 = vector.broadcast %125 : vector<1x512xf32> to vector<16x512xf32>
    %127 = arith.mulf %124, %126 : vector<16x512xf32>
    %c3_65 = arith.constant 3 : index
    %c0_66 = arith.constant 0 : index
    %c0_67 = arith.constant 0 : index
    %128 = vector.load %arg5[%c3_65, %c0_66, %c0_67] : memref<9x32x16xbf16, #tpu.memory_space<vmem>>, vector<1x32x16xbf16>
    %129 = vector.shape_cast %128 : vector<1x32x16xbf16> to vector<32x16xbf16>
    %130 = arith.truncf %127 : vector<16x512xf32> to vector<16x512xbf16>
    %cst_68 = arith.constant dense<0.000000e+00> : vector<32x512xf32>
    %131 = tpu.matmul %129, %130, %cst_68 {dimension_numbers = #tpu.dot_dimension_numbers<[1], [0], [0], [1], [0, 0, 1, 1], [], []>} : vector<32x16xbf16>, vector<16x512xbf16>, vector<32x512xf32> -> vector<32x512xf32>
    %132 = arith.addf %123, %131 : vector<32x512xf32>
    %c4_69 = arith.constant 4 : index
    %c0_70 = arith.constant 0 : index
    %c0_71 = arith.constant 0 : index
    %133 = vector.load %arg5[%c4_69, %c0_70, %c0_71] : memref<9x32x16xbf16, #tpu.memory_space<vmem>>, vector<1x32x16xbf16>
    %134 = vector.shape_cast %133 : vector<1x32x16xbf16> to vector<32x16xbf16>
    %135 = arith.truncf %97 : vector<16x512xf32> to vector<16x512xbf16>
    %cst_72 = arith.constant dense<0.000000e+00> : vector<32x512xf32>
    %136 = tpu.matmul %134, %135, %cst_72 {dimension_numbers = #tpu.dot_dimension_numbers<[1], [0], [0], [1], [0, 0, 1, 1], [], []>} : vector<32x16xbf16>, vector<16x512xbf16>, vector<32x512xf32> -> vector<32x512xf32>
    %137 = arith.addf %132, %136 : vector<32x512xf32>
    %c511_i32_73 = arith.constant 511 : i32
    %138 = tpu.dynamic_rotate %97 by %c511_i32_73 dim 1 : vector<16x512xf32>, i32 -> vector<16x512xf32>
    %c5_74 = arith.constant 5 : index
    %c0_75 = arith.constant 0 : index
    %139 = vector.load %arg3[%c5_74, %c0_75] : memref<9x512xf32, #tpu.memory_space<vmem>>, vector<1x512xf32>
    %140 = vector.broadcast %139 : vector<1x512xf32> to vector<16x512xf32>
    %141 = arith.mulf %138, %140 : vector<16x512xf32>
    %c5_76 = arith.constant 5 : index
    %c0_77 = arith.constant 0 : index
    %c0_78 = arith.constant 0 : index
    %142 = vector.load %arg5[%c5_76, %c0_77, %c0_78] : memref<9x32x16xbf16, #tpu.memory_space<vmem>>, vector<1x32x16xbf16>
    %143 = vector.shape_cast %142 : vector<1x32x16xbf16> to vector<32x16xbf16>
    %144 = arith.truncf %141 : vector<16x512xf32> to vector<16x512xbf16>
    %cst_79 = arith.constant dense<0.000000e+00> : vector<32x512xf32>
    %145 = tpu.matmul %143, %144, %cst_79 {dimension_numbers = #tpu.dot_dimension_numbers<[1], [0], [0], [1], [0, 0, 1, 1], [], []>} : vector<32x16xbf16>, vector<16x512xbf16>, vector<32x512xf32> -> vector<32x512xf32>
    %146 = arith.addf %137, %145 : vector<32x512xf32>
    %c497_i32_80 = arith.constant 497 : i32
    %147 = tpu.dynamic_rotate %97 by %c497_i32_80 dim 1 : vector<16x512xf32>, i32 -> vector<16x512xf32>
    %c6_81 = arith.constant 6 : index
    %c0_82 = arith.constant 0 : index
    %148 = vector.load %arg3[%c6_81, %c0_82] : memref<9x512xf32, #tpu.memory_space<vmem>>, vector<1x512xf32>
    %149 = vector.broadcast %148 : vector<1x512xf32> to vector<16x512xf32>
    %150 = arith.mulf %147, %149 : vector<16x512xf32>
    %c6_83 = arith.constant 6 : index
    %c0_84 = arith.constant 0 : index
    %c0_85 = arith.constant 0 : index
    %151 = vector.load %arg5[%c6_83, %c0_84, %c0_85] : memref<9x32x16xbf16, #tpu.memory_space<vmem>>, vector<1x32x16xbf16>
    %152 = vector.shape_cast %151 : vector<1x32x16xbf16> to vector<32x16xbf16>
    %153 = arith.truncf %150 : vector<16x512xf32> to vector<16x512xbf16>
    %cst_86 = arith.constant dense<0.000000e+00> : vector<32x512xf32>
    %154 = tpu.matmul %152, %153, %cst_86 {dimension_numbers = #tpu.dot_dimension_numbers<[1], [0], [0], [1], [0, 0, 1, 1], [], []>} : vector<32x16xbf16>, vector<16x512xbf16>, vector<32x512xf32> -> vector<32x512xf32>
    %155 = arith.addf %146, %154 : vector<32x512xf32>
    %c496_i32_87 = arith.constant 496 : i32
    %156 = tpu.dynamic_rotate %97 by %c496_i32_87 dim 1 : vector<16x512xf32>, i32 -> vector<16x512xf32>
    %c7_88 = arith.constant 7 : index
    %c0_89 = arith.constant 0 : index
    %157 = vector.load %arg3[%c7_88, %c0_89] : memref<9x512xf32, #tpu.memory_space<vmem>>, vector<1x512xf32>
    %158 = vector.broadcast %157 : vector<1x512xf32> to vector<16x512xf32>
    %159 = arith.mulf %156, %158 : vector<16x512xf32>
    %c7_90 = arith.constant 7 : index
    %c0_91 = arith.constant 0 : index
    %c0_92 = arith.constant 0 : index
    %160 = vector.load %arg5[%c7_90, %c0_91, %c0_92] : memref<9x32x16xbf16, #tpu.memory_space<vmem>>, vector<1x32x16xbf16>
    %161 = vector.shape_cast %160 : vector<1x32x16xbf16> to vector<32x16xbf16>
    %162 = arith.truncf %159 : vector<16x512xf32> to vector<16x512xbf16>
    %cst_93 = arith.constant dense<0.000000e+00> : vector<32x512xf32>
    %163 = tpu.matmul %161, %162, %cst_93 {dimension_numbers = #tpu.dot_dimension_numbers<[1], [0], [0], [1], [0, 0, 1, 1], [], []>} : vector<32x16xbf16>, vector<16x512xbf16>, vector<32x512xf32> -> vector<32x512xf32>
    %164 = arith.addf %155, %163 : vector<32x512xf32>
    %c495_i32_94 = arith.constant 495 : i32
    %165 = tpu.dynamic_rotate %97 by %c495_i32_94 dim 1 : vector<16x512xf32>, i32 -> vector<16x512xf32>
    %c8_95 = arith.constant 8 : index
    %c0_96 = arith.constant 0 : index
    %166 = vector.load %arg3[%c8_95, %c0_96] : memref<9x512xf32, #tpu.memory_space<vmem>>, vector<1x512xf32>
    %167 = vector.broadcast %166 : vector<1x512xf32> to vector<16x512xf32>
    %168 = arith.mulf %165, %167 : vector<16x512xf32>
    %c8_97 = arith.constant 8 : index
    %c0_98 = arith.constant 0 : index
    %c0_99 = arith.constant 0 : index
    %169 = vector.load %arg5[%c8_97, %c0_98, %c0_99] : memref<9x32x16xbf16, #tpu.memory_space<vmem>>, vector<1x32x16xbf16>
    %170 = vector.shape_cast %169 : vector<1x32x16xbf16> to vector<32x16xbf16>
    %171 = arith.truncf %168 : vector<16x512xf32> to vector<16x512xbf16>
    %cst_100 = arith.constant dense<0.000000e+00> : vector<32x512xf32>
    %172 = tpu.matmul %170, %171, %cst_100 {dimension_numbers = #tpu.dot_dimension_numbers<[1], [0], [0], [1], [0, 0, 1, 1], [], []>} : vector<32x16xbf16>, vector<16x512xbf16>, vector<32x512xf32> -> vector<32x512xf32>
    %173 = arith.addf %164, %172 : vector<32x512xf32>
    %c0_101 = arith.constant 0 : index
    %c1_102 = arith.constant 1 : index
    %174 = vector.load %arg10[%c0_101, %c1_102] : memref<32x8xf32, #tpu.memory_space<vmem>>, vector<32x1xf32>
    %175 = vector.broadcast %174 : vector<32x1xf32> to vector<32x512xf32>
    %176 = arith.addf %173, %175 : vector<32x512xf32>
    %cst_103 = arith.constant 0.000000e+00 : f32
    %177 = vector.broadcast %cst_103 : f32 to vector<32x512xf32>
    %178 = arith.cmpf oge, %176, %177 : vector<32x512xf32>
    %cst_104 = arith.constant 2.000000e-01 : f32
    %179 = vector.broadcast %cst_104 : f32 to vector<32x512xf32>
    %180 = arith.mulf %179, %176 : vector<32x512xf32>
    %181 = arith.select %178, %176, %180 : vector<32x512xi1>, vector<32x512xf32>
    %c17_i32_105 = arith.constant 17 : i32
    %182 = tpu.dynamic_rotate %3 by %c17_i32_105 dim 1 : vector<1x512xf32>, i32 -> vector<1x512xf32>
    %c0_106 = arith.constant 0 : index
    %c0_107 = arith.constant 0 : index
    %183 = vector.load %arg3[%c0_106, %c0_107] : memref<9x512xf32, #tpu.memory_space<vmem>>, vector<1x512xf32>
    %184 = arith.mulf %182, %183 : vector<1x512xf32>
    %c0_108 = arith.constant 0 : index
    %c0_109 = arith.constant 0 : index
    %c0_110 = arith.constant 0 : index
    %185 = vector.load %arg6[%c0_108, %c0_109, %c0_110] : memref<9x16x1xbf16, #tpu.memory_space<vmem>>, vector<1x16x1xbf16>
    %186 = vector.shape_cast %185 : vector<1x16x1xbf16> to vector<16x1xbf16>
    %187 = arith.extf %186 : vector<16x1xbf16> to vector<16x1xf32>
    %188 = vector.broadcast %187 : vector<16x1xf32> to vector<16x512xf32>
    %189 = vector.broadcast %184 : vector<1x512xf32> to vector<16x512xf32>
    %190 = arith.mulf %188, %189 : vector<16x512xf32>
    %c16_i32_111 = arith.constant 16 : i32
    %191 = tpu.dynamic_rotate %3 by %c16_i32_111 dim 1 : vector<1x512xf32>, i32 -> vector<1x512xf32>
    %c1_112 = arith.constant 1 : index
    %c0_113 = arith.constant 0 : index
    %192 = vector.load %arg3[%c1_112, %c0_113] : memref<9x512xf32, #tpu.memory_space<vmem>>, vector<1x512xf32>
    %193 = arith.mulf %191, %192 : vector<1x512xf32>
    %c1_114 = arith.constant 1 : index
    %c0_115 = arith.constant 0 : index
    %c0_116 = arith.constant 0 : index
    %194 = vector.load %arg6[%c1_114, %c0_115, %c0_116] : memref<9x16x1xbf16, #tpu.memory_space<vmem>>, vector<1x16x1xbf16>
    %195 = vector.shape_cast %194 : vector<1x16x1xbf16> to vector<16x1xbf16>
    %196 = arith.extf %195 : vector<16x1xbf16> to vector<16x1xf32>
    %197 = vector.broadcast %196 : vector<16x1xf32> to vector<16x512xf32>
    %198 = vector.broadcast %193 : vector<1x512xf32> to vector<16x512xf32>
    %199 = arith.mulf %197, %198 : vector<16x512xf32>
    %200 = arith.addf %190, %199 : vector<16x512xf32>
    %c15_i32_117 = arith.constant 15 : i32
    %201 = tpu.dynamic_rotate %3 by %c15_i32_117 dim 1 : vector<1x512xf32>, i32 -> vector<1x512xf32>
    %c2_118 = arith.constant 2 : index
    %c0_119 = arith.constant 0 : index
    %202 = vector.load %arg3[%c2_118, %c0_119] : memref<9x512xf32, #tpu.memory_space<vmem>>, vector<1x512xf32>
    %203 = arith.mulf %201, %202 : vector<1x512xf32>
    %c2_120 = arith.constant 2 : index
    %c0_121 = arith.constant 0 : index
    %c0_122 = arith.constant 0 : index
    %204 = vector.load %arg6[%c2_120, %c0_121, %c0_122] : memref<9x16x1xbf16, #tpu.memory_space<vmem>>, vector<1x16x1xbf16>
    %205 = vector.shape_cast %204 : vector<1x16x1xbf16> to vector<16x1xbf16>
    %206 = arith.extf %205 : vector<16x1xbf16> to vector<16x1xf32>
    %207 = vector.broadcast %206 : vector<16x1xf32> to vector<16x512xf32>
    %208 = vector.broadcast %203 : vector<1x512xf32> to vector<16x512xf32>
    %209 = arith.mulf %207, %208 : vector<16x512xf32>
    %210 = arith.addf %200, %209 : vector<16x512xf32>
    %c1_i32_123 = arith.constant 1 : i32
    %211 = tpu.dynamic_rotate %3 by %c1_i32_123 dim 1 : vector<1x512xf32>, i32 -> vector<1x512xf32>
    %c3_124 = arith.constant 3 : index
    %c0_125 = arith.constant 0 : index
    %212 = vector.load %arg3[%c3_124, %c0_125] : memref<9x512xf32, #tpu.memory_space<vmem>>, vector<1x512xf32>
    %213 = arith.mulf %211, %212 : vector<1x512xf32>
    %c3_126 = arith.constant 3 : index
    %c0_127 = arith.constant 0 : index
    %c0_128 = arith.constant 0 : index
    %214 = vector.load %arg6[%c3_126, %c0_127, %c0_128] : memref<9x16x1xbf16, #tpu.memory_space<vmem>>, vector<1x16x1xbf16>
    %215 = vector.shape_cast %214 : vector<1x16x1xbf16> to vector<16x1xbf16>
    %216 = arith.extf %215 : vector<16x1xbf16> to vector<16x1xf32>
    %217 = vector.broadcast %216 : vector<16x1xf32> to vector<16x512xf32>
    %218 = vector.broadcast %213 : vector<1x512xf32> to vector<16x512xf32>
    %219 = arith.mulf %217, %218 : vector<16x512xf32>
    %220 = arith.addf %210, %219 : vector<16x512xf32>
    %c4_129 = arith.constant 4 : index
    %c0_130 = arith.constant 0 : index
    %c0_131 = arith.constant 0 : index
    %221 = vector.load %arg6[%c4_129, %c0_130, %c0_131] : memref<9x16x1xbf16, #tpu.memory_space<vmem>>, vector<1x16x1xbf16>
    %222 = vector.shape_cast %221 : vector<1x16x1xbf16> to vector<16x1xbf16>
    %223 = arith.extf %222 : vector<16x1xbf16> to vector<16x1xf32>
    %224 = vector.broadcast %223 : vector<16x1xf32> to vector<16x512xf32>
    %225 = vector.broadcast %3 : vector<1x512xf32> to vector<16x512xf32>
    %226 = arith.mulf %224, %225 : vector<16x512xf32>
    %227 = arith.addf %220, %226 : vector<16x512xf32>
    %c511_i32_132 = arith.constant 511 : i32
    %228 = tpu.dynamic_rotate %3 by %c511_i32_132 dim 1 : vector<1x512xf32>, i32 -> vector<1x512xf32>
    %c5_133 = arith.constant 5 : index
    %c0_134 = arith.constant 0 : index
    %229 = vector.load %arg3[%c5_133, %c0_134] : memref<9x512xf32, #tpu.memory_space<vmem>>, vector<1x512xf32>
    %230 = arith.mulf %228, %229 : vector<1x512xf32>
    %c5_135 = arith.constant 5 : index
    %c0_136 = arith.constant 0 : index
    %c0_137 = arith.constant 0 : index
    %231 = vector.load %arg6[%c5_135, %c0_136, %c0_137] : memref<9x16x1xbf16, #tpu.memory_space<vmem>>, vector<1x16x1xbf16>
    %232 = vector.shape_cast %231 : vector<1x16x1xbf16> to vector<16x1xbf16>
    %233 = arith.extf %232 : vector<16x1xbf16> to vector<16x1xf32>
    %234 = vector.broadcast %233 : vector<16x1xf32> to vector<16x512xf32>
    %235 = vector.broadcast %230 : vector<1x512xf32> to vector<16x512xf32>
    %236 = arith.mulf %234, %235 : vector<16x512xf32>
    %237 = arith.addf %227, %236 : vector<16x512xf32>
    %c497_i32_138 = arith.constant 497 : i32
    %238 = tpu.dynamic_rotate %3 by %c497_i32_138 dim 1 : vector<1x512xf32>, i32 -> vector<1x512xf32>
    %c6_139 = arith.constant 6 : index
    %c0_140 = arith.constant 0 : index
    %239 = vector.load %arg3[%c6_139, %c0_140] : memref<9x512xf32, #tpu.memory_space<vmem>>, vector<1x512xf32>
    %240 = arith.mulf %238, %239 : vector<1x512xf32>
    %c6_141 = arith.constant 6 : index
    %c0_142 = arith.constant 0 : index
    %c0_143 = arith.constant 0 : index
    %241 = vector.load %arg6[%c6_141, %c0_142, %c0_143] : memref<9x16x1xbf16, #tpu.memory_space<vmem>>, vector<1x16x1xbf16>
    %242 = vector.shape_cast %241 : vector<1x16x1xbf16> to vector<16x1xbf16>
    %243 = arith.extf %242 : vector<16x1xbf16> to vector<16x1xf32>
    %244 = vector.broadcast %243 : vector<16x1xf32> to vector<16x512xf32>
    %245 = vector.broadcast %240 : vector<1x512xf32> to vector<16x512xf32>
    %246 = arith.mulf %244, %245 : vector<16x512xf32>
    %247 = arith.addf %237, %246 : vector<16x512xf32>
    %c496_i32_144 = arith.constant 496 : i32
    %248 = tpu.dynamic_rotate %3 by %c496_i32_144 dim 1 : vector<1x512xf32>, i32 -> vector<1x512xf32>
    %c7_145 = arith.constant 7 : index
    %c0_146 = arith.constant 0 : index
    %249 = vector.load %arg3[%c7_145, %c0_146] : memref<9x512xf32, #tpu.memory_space<vmem>>, vector<1x512xf32>
    %250 = arith.mulf %248, %249 : vector<1x512xf32>
    %c7_147 = arith.constant 7 : index
    %c0_148 = arith.constant 0 : index
    %c0_149 = arith.constant 0 : index
    %251 = vector.load %arg6[%c7_147, %c0_148, %c0_149] : memref<9x16x1xbf16, #tpu.memory_space<vmem>>, vector<1x16x1xbf16>
    %252 = vector.shape_cast %251 : vector<1x16x1xbf16> to vector<16x1xbf16>
    %253 = arith.extf %252 : vector<16x1xbf16> to vector<16x1xf32>
    %254 = vector.broadcast %253 : vector<16x1xf32> to vector<16x512xf32>
    %255 = vector.broadcast %250 : vector<1x512xf32> to vector<16x512xf32>
    %256 = arith.mulf %254, %255 : vector<16x512xf32>
    %257 = arith.addf %247, %256 : vector<16x512xf32>
    %c495_i32_150 = arith.constant 495 : i32
    %258 = tpu.dynamic_rotate %3 by %c495_i32_150 dim 1 : vector<1x512xf32>, i32 -> vector<1x512xf32>
    %c8_151 = arith.constant 8 : index
    %c0_152 = arith.constant 0 : index
    %259 = vector.load %arg3[%c8_151, %c0_152] : memref<9x512xf32, #tpu.memory_space<vmem>>, vector<1x512xf32>
    %260 = arith.mulf %258, %259 : vector<1x512xf32>
    %c8_153 = arith.constant 8 : index
    %c0_154 = arith.constant 0 : index
    %c0_155 = arith.constant 0 : index
    %261 = vector.load %arg6[%c8_153, %c0_154, %c0_155] : memref<9x16x1xbf16, #tpu.memory_space<vmem>>, vector<1x16x1xbf16>
    %262 = vector.shape_cast %261 : vector<1x16x1xbf16> to vector<16x1xbf16>
    %263 = arith.extf %262 : vector<16x1xbf16> to vector<16x1xf32>
    %264 = vector.broadcast %263 : vector<16x1xf32> to vector<16x512xf32>
    %265 = vector.broadcast %260 : vector<1x512xf32> to vector<16x512xf32>
    %266 = arith.mulf %264, %265 : vector<16x512xf32>
    %267 = arith.addf %257, %266 : vector<16x512xf32>
    %c0_156 = arith.constant 0 : index
    %c2_157 = arith.constant 2 : index
    %268 = vector.load %arg10[%c0_156, %c2_157] : memref<32x8xf32, #tpu.memory_space<vmem>>, vector<16x1xf32>
    %269 = vector.broadcast %268 : vector<16x1xf32> to vector<16x512xf32>
    %270 = arith.addf %267, %269 : vector<16x512xf32>
    %cst_158 = arith.constant 0.000000e+00 : f32
    %271 = vector.broadcast %cst_158 : f32 to vector<16x512xf32>
    %272 = arith.cmpf oge, %270, %271 : vector<16x512xf32>
    %cst_159 = arith.constant 2.000000e-01 : f32
    %273 = vector.broadcast %cst_159 : f32 to vector<16x512xf32>
    %274 = arith.mulf %273, %270 : vector<16x512xf32>
    %275 = arith.select %272, %270, %274 : vector<16x512xi1>, vector<16x512xf32>
    %c17_i32_160 = arith.constant 17 : i32
    %276 = tpu.dynamic_rotate %275 by %c17_i32_160 dim 1 : vector<16x512xf32>, i32 -> vector<16x512xf32>
    %c0_161 = arith.constant 0 : index
    %c0_162 = arith.constant 0 : index
    %277 = vector.load %arg3[%c0_161, %c0_162] : memref<9x512xf32, #tpu.memory_space<vmem>>, vector<1x512xf32>
    %278 = vector.broadcast %277 : vector<1x512xf32> to vector<16x512xf32>
    %279 = arith.mulf %276, %278 : vector<16x512xf32>
    %c0_163 = arith.constant 0 : index
    %c0_164 = arith.constant 0 : index
    %c0_165 = arith.constant 0 : index
    %280 = vector.load %arg7[%c0_163, %c0_164, %c0_165] : memref<9x32x16xbf16, #tpu.memory_space<vmem>>, vector<1x32x16xbf16>
    %281 = vector.shape_cast %280 : vector<1x32x16xbf16> to vector<32x16xbf16>
    %282 = arith.truncf %279 : vector<16x512xf32> to vector<16x512xbf16>
    %cst_166 = arith.constant dense<0.000000e+00> : vector<32x512xf32>
    %283 = tpu.matmul %281, %282, %cst_166 {dimension_numbers = #tpu.dot_dimension_numbers<[1], [0], [0], [1], [0, 0, 1, 1], [], []>} : vector<32x16xbf16>, vector<16x512xbf16>, vector<32x512xf32> -> vector<32x512xf32>
    %c16_i32_167 = arith.constant 16 : i32
    %284 = tpu.dynamic_rotate %275 by %c16_i32_167 dim 1 : vector<16x512xf32>, i32 -> vector<16x512xf32>
    %c1_168 = arith.constant 1 : index
    %c0_169 = arith.constant 0 : index
    %285 = vector.load %arg3[%c1_168, %c0_169] : memref<9x512xf32, #tpu.memory_space<vmem>>, vector<1x512xf32>
    %286 = vector.broadcast %285 : vector<1x512xf32> to vector<16x512xf32>
    %287 = arith.mulf %284, %286 : vector<16x512xf32>
    %c1_170 = arith.constant 1 : index
    %c0_171 = arith.constant 0 : index
    %c0_172 = arith.constant 0 : index
    %288 = vector.load %arg7[%c1_170, %c0_171, %c0_172] : memref<9x32x16xbf16, #tpu.memory_space<vmem>>, vector<1x32x16xbf16>
    %289 = vector.shape_cast %288 : vector<1x32x16xbf16> to vector<32x16xbf16>
    %290 = arith.truncf %287 : vector<16x512xf32> to vector<16x512xbf16>
    %cst_173 = arith.constant dense<0.000000e+00> : vector<32x512xf32>
    %291 = tpu.matmul %289, %290, %cst_173 {dimension_numbers = #tpu.dot_dimension_numbers<[1], [0], [0], [1], [0, 0, 1, 1], [], []>} : vector<32x16xbf16>, vector<16x512xbf16>, vector<32x512xf32> -> vector<32x512xf32>
    %292 = arith.addf %283, %291 : vector<32x512xf32>
    %c15_i32_174 = arith.constant 15 : i32
    %293 = tpu.dynamic_rotate %275 by %c15_i32_174 dim 1 : vector<16x512xf32>, i32 -> vector<16x512xf32>
    %c2_175 = arith.constant 2 : index
    %c0_176 = arith.constant 0 : index
    %294 = vector.load %arg3[%c2_175, %c0_176] : memref<9x512xf32, #tpu.memory_space<vmem>>, vector<1x512xf32>
    %295 = vector.broadcast %294 : vector<1x512xf32> to vector<16x512xf32>
    %296 = arith.mulf %293, %295 : vector<16x512xf32>
    %c2_177 = arith.constant 2 : index
    %c0_178 = arith.constant 0 : index
    %c0_179 = arith.constant 0 : index
    %297 = vector.load %arg7[%c2_177, %c0_178, %c0_179] : memref<9x32x16xbf16, #tpu.memory_space<vmem>>, vector<1x32x16xbf16>
    %298 = vector.shape_cast %297 : vector<1x32x16xbf16> to vector<32x16xbf16>
    %299 = arith.truncf %296 : vector<16x512xf32> to vector<16x512xbf16>
    %cst_180 = arith.constant dense<0.000000e+00> : vector<32x512xf32>
    %300 = tpu.matmul %298, %299, %cst_180 {dimension_numbers = #tpu.dot_dimension_numbers<[1], [0], [0], [1], [0, 0, 1, 1], [], []>} : vector<32x16xbf16>, vector<16x512xbf16>, vector<32x512xf32> -> vector<32x512xf32>
    %301 = arith.addf %292, %300 : vector<32x512xf32>
    %c1_i32_181 = arith.constant 1 : i32
    %302 = tpu.dynamic_rotate %275 by %c1_i32_181 dim 1 : vector<16x512xf32>, i32 -> vector<16x512xf32>
    %c3_182 = arith.constant 3 : index
    %c0_183 = arith.constant 0 : index
    %303 = vector.load %arg3[%c3_182, %c0_183] : memref<9x512xf32, #tpu.memory_space<vmem>>, vector<1x512xf32>
    %304 = vector.broadcast %303 : vector<1x512xf32> to vector<16x512xf32>
    %305 = arith.mulf %302, %304 : vector<16x512xf32>
    %c3_184 = arith.constant 3 : index
    %c0_185 = arith.constant 0 : index
    %c0_186 = arith.constant 0 : index
    %306 = vector.load %arg7[%c3_184, %c0_185, %c0_186] : memref<9x32x16xbf16, #tpu.memory_space<vmem>>, vector<1x32x16xbf16>
    %307 = vector.shape_cast %306 : vector<1x32x16xbf16> to vector<32x16xbf16>
    %308 = arith.truncf %305 : vector<16x512xf32> to vector<16x512xbf16>
    %cst_187 = arith.constant dense<0.000000e+00> : vector<32x512xf32>
    %309 = tpu.matmul %307, %308, %cst_187 {dimension_numbers = #tpu.dot_dimension_numbers<[1], [0], [0], [1], [0, 0, 1, 1], [], []>} : vector<32x16xbf16>, vector<16x512xbf16>, vector<32x512xf32> -> vector<32x512xf32>
    %310 = arith.addf %301, %309 : vector<32x512xf32>
    %c4_188 = arith.constant 4 : index
    %c0_189 = arith.constant 0 : index
    %c0_190 = arith.constant 0 : index
    %311 = vector.load %arg7[%c4_188, %c0_189, %c0_190] : memref<9x32x16xbf16, #tpu.memory_space<vmem>>, vector<1x32x16xbf16>
    %312 = vector.shape_cast %311 : vector<1x32x16xbf16> to vector<32x16xbf16>
    %313 = arith.truncf %275 : vector<16x512xf32> to vector<16x512xbf16>
    %cst_191 = arith.constant dense<0.000000e+00> : vector<32x512xf32>
    %314 = tpu.matmul %312, %313, %cst_191 {dimension_numbers = #tpu.dot_dimension_numbers<[1], [0], [0], [1], [0, 0, 1, 1], [], []>} : vector<32x16xbf16>, vector<16x512xbf16>, vector<32x512xf32> -> vector<32x512xf32>
    %315 = arith.addf %310, %314 : vector<32x512xf32>
    %c511_i32_192 = arith.constant 511 : i32
    %316 = tpu.dynamic_rotate %275 by %c511_i32_192 dim 1 : vector<16x512xf32>, i32 -> vector<16x512xf32>
    %c5_193 = arith.constant 5 : index
    %c0_194 = arith.constant 0 : index
    %317 = vector.load %arg3[%c5_193, %c0_194] : memref<9x512xf32, #tpu.memory_space<vmem>>, vector<1x512xf32>
    %318 = vector.broadcast %317 : vector<1x512xf32> to vector<16x512xf32>
    %319 = arith.mulf %316, %318 : vector<16x512xf32>
    %c5_195 = arith.constant 5 : index
    %c0_196 = arith.constant 0 : index
    %c0_197 = arith.constant 0 : index
    %320 = vector.load %arg7[%c5_195, %c0_196, %c0_197] : memref<9x32x16xbf16, #tpu.memory_space<vmem>>, vector<1x32x16xbf16>
    %321 = vector.shape_cast %320 : vector<1x32x16xbf16> to vector<32x16xbf16>
    %322 = arith.truncf %319 : vector<16x512xf32> to vector<16x512xbf16>
    %cst_198 = arith.constant dense<0.000000e+00> : vector<32x512xf32>
    %323 = tpu.matmul %321, %322, %cst_198 {dimension_numbers = #tpu.dot_dimension_numbers<[1], [0], [0], [1], [0, 0, 1, 1], [], []>} : vector<32x16xbf16>, vector<16x512xbf16>, vector<32x512xf32> -> vector<32x512xf32>
    %324 = arith.addf %315, %323 : vector<32x512xf32>
    %c497_i32_199 = arith.constant 497 : i32
    %325 = tpu.dynamic_rotate %275 by %c497_i32_199 dim 1 : vector<16x512xf32>, i32 -> vector<16x512xf32>
    %c6_200 = arith.constant 6 : index
    %c0_201 = arith.constant 0 : index
    %326 = vector.load %arg3[%c6_200, %c0_201] : memref<9x512xf32, #tpu.memory_space<vmem>>, vector<1x512xf32>
    %327 = vector.broadcast %326 : vector<1x512xf32> to vector<16x512xf32>
    %328 = arith.mulf %325, %327 : vector<16x512xf32>
    %c6_202 = arith.constant 6 : index
    %c0_203 = arith.constant 0 : index
    %c0_204 = arith.constant 0 : index
    %329 = vector.load %arg7[%c6_202, %c0_203, %c0_204] : memref<9x32x16xbf16, #tpu.memory_space<vmem>>, vector<1x32x16xbf16>
    %330 = vector.shape_cast %329 : vector<1x32x16xbf16> to vector<32x16xbf16>
    %331 = arith.truncf %328 : vector<16x512xf32> to vector<16x512xbf16>
    %cst_205 = arith.constant dense<0.000000e+00> : vector<32x512xf32>
    %332 = tpu.matmul %330, %331, %cst_205 {dimension_numbers = #tpu.dot_dimension_numbers<[1], [0], [0], [1], [0, 0, 1, 1], [], []>} : vector<32x16xbf16>, vector<16x512xbf16>, vector<32x512xf32> -> vector<32x512xf32>
    %333 = arith.addf %324, %332 : vector<32x512xf32>
    %c496_i32_206 = arith.constant 496 : i32
    %334 = tpu.dynamic_rotate %275 by %c496_i32_206 dim 1 : vector<16x512xf32>, i32 -> vector<16x512xf32>
    %c7_207 = arith.constant 7 : index
    %c0_208 = arith.constant 0 : index
    %335 = vector.load %arg3[%c7_207, %c0_208] : memref<9x512xf32, #tpu.memory_space<vmem>>, vector<1x512xf32>
    %336 = vector.broadcast %335 : vector<1x512xf32> to vector<16x512xf32>
    %337 = arith.mulf %334, %336 : vector<16x512xf32>
    %c7_209 = arith.constant 7 : index
    %c0_210 = arith.constant 0 : index
    %c0_211 = arith.constant 0 : index
    %338 = vector.load %arg7[%c7_209, %c0_210, %c0_211] : memref<9x32x16xbf16, #tpu.memory_space<vmem>>, vector<1x32x16xbf16>
    %339 = vector.shape_cast %338 : vector<1x32x16xbf16> to vector<32x16xbf16>
    %340 = arith.truncf %337 : vector<16x512xf32> to vector<16x512xbf16>
    %cst_212 = arith.constant dense<0.000000e+00> : vector<32x512xf32>
    %341 = tpu.matmul %339, %340, %cst_212 {dimension_numbers = #tpu.dot_dimension_numbers<[1], [0], [0], [1], [0, 0, 1, 1], [], []>} : vector<32x16xbf16>, vector<16x512xbf16>, vector<32x512xf32> -> vector<32x512xf32>
    %342 = arith.addf %333, %341 : vector<32x512xf32>
    %c495_i32_213 = arith.constant 495 : i32
    %343 = tpu.dynamic_rotate %275 by %c495_i32_213 dim 1 : vector<16x512xf32>, i32 -> vector<16x512xf32>
    %c8_214 = arith.constant 8 : index
    %c0_215 = arith.constant 0 : index
    %344 = vector.load %arg3[%c8_214, %c0_215] : memref<9x512xf32, #tpu.memory_space<vmem>>, vector<1x512xf32>
    %345 = vector.broadcast %344 : vector<1x512xf32> to vector<16x512xf32>
    %346 = arith.mulf %343, %345 : vector<16x512xf32>
    %c8_216 = arith.constant 8 : index
    %c0_217 = arith.constant 0 : index
    %c0_218 = arith.constant 0 : index
    %347 = vector.load %arg7[%c8_216, %c0_217, %c0_218] : memref<9x32x16xbf16, #tpu.memory_space<vmem>>, vector<1x32x16xbf16>
    %348 = vector.shape_cast %347 : vector<1x32x16xbf16> to vector<32x16xbf16>
    %349 = arith.truncf %346 : vector<16x512xf32> to vector<16x512xbf16>
    %cst_219 = arith.constant dense<0.000000e+00> : vector<32x512xf32>
    %350 = tpu.matmul %348, %349, %cst_219 {dimension_numbers = #tpu.dot_dimension_numbers<[1], [0], [0], [1], [0, 0, 1, 1], [], []>} : vector<32x16xbf16>, vector<16x512xbf16>, vector<32x512xf32> -> vector<32x512xf32>
    %351 = arith.addf %342, %350 : vector<32x512xf32>
    %c0_220 = arith.constant 0 : index
    %c3_221 = arith.constant 3 : index
    %352 = vector.load %arg10[%c0_220, %c3_221] : memref<32x8xf32, #tpu.memory_space<vmem>>, vector<32x1xf32>
    %353 = vector.broadcast %352 : vector<32x1xf32> to vector<32x512xf32>
    %354 = arith.addf %351, %353 : vector<32x512xf32>
    %cst_222 = arith.constant 0.000000e+00 : f32
    %355 = vector.broadcast %cst_222 : f32 to vector<32x512xf32>
    %356 = arith.cmpf oge, %354, %355 : vector<32x512xf32>
    %cst_223 = arith.constant 2.000000e-01 : f32
    %357 = vector.broadcast %cst_223 : f32 to vector<32x512xf32>
    %358 = arith.mulf %357, %354 : vector<32x512xf32>
    %359 = arith.select %356, %354, %358 : vector<32x512xi1>, vector<32x512xf32>
    %360 = tpu.concatenate %181, %359 in 0 : vector<32x512xf32>, vector<32x512xf32> -> vector<64x512xf32>
    %c17_i32_224 = arith.constant 17 : i32
    %361 = tpu.dynamic_rotate %360 by %c17_i32_224 dim 1 : vector<64x512xf32>, i32 -> vector<64x512xf32>
    %c0_225 = arith.constant 0 : index
    %c0_226 = arith.constant 0 : index
    %362 = vector.load %arg3[%c0_225, %c0_226] : memref<9x512xf32, #tpu.memory_space<vmem>>, vector<1x512xf32>
    %363 = vector.broadcast %362 : vector<1x512xf32> to vector<64x512xf32>
    %364 = arith.mulf %361, %363 : vector<64x512xf32>
    %c0_227 = arith.constant 0 : index
    %c0_228 = arith.constant 0 : index
    %c0_229 = arith.constant 0 : index
    %365 = vector.load %arg8[%c0_227, %c0_228, %c0_229] : memref<9x16x64xbf16, #tpu.memory_space<vmem>>, vector<1x16x64xbf16>
    %366 = vector.shape_cast %365 : vector<1x16x64xbf16> to vector<16x64xbf16>
    %367 = arith.truncf %364 : vector<64x512xf32> to vector<64x512xbf16>
    %cst_230 = arith.constant dense<0.000000e+00> : vector<16x512xf32>
    %368 = tpu.matmul %366, %367, %cst_230 {dimension_numbers = #tpu.dot_dimension_numbers<[1], [0], [0], [1], [0, 0, 1, 1], [], []>} : vector<16x64xbf16>, vector<64x512xbf16>, vector<16x512xf32> -> vector<16x512xf32>
    %c16_i32_231 = arith.constant 16 : i32
    %369 = tpu.dynamic_rotate %360 by %c16_i32_231 dim 1 : vector<64x512xf32>, i32 -> vector<64x512xf32>
    %c1_232 = arith.constant 1 : index
    %c0_233 = arith.constant 0 : index
    %370 = vector.load %arg3[%c1_232, %c0_233] : memref<9x512xf32, #tpu.memory_space<vmem>>, vector<1x512xf32>
    %371 = vector.broadcast %370 : vector<1x512xf32> to vector<64x512xf32>
    %372 = arith.mulf %369, %371 : vector<64x512xf32>
    %c1_234 = arith.constant 1 : index
    %c0_235 = arith.constant 0 : index
    %c0_236 = arith.constant 0 : index
    %373 = vector.load %arg8[%c1_234, %c0_235, %c0_236] : memref<9x16x64xbf16, #tpu.memory_space<vmem>>, vector<1x16x64xbf16>
    %374 = vector.shape_cast %373 : vector<1x16x64xbf16> to vector<16x64xbf16>
    %375 = arith.truncf %372 : vector<64x512xf32> to vector<64x512xbf16>
    %cst_237 = arith.constant dense<0.000000e+00> : vector<16x512xf32>
    %376 = tpu.matmul %374, %375, %cst_237 {dimension_numbers = #tpu.dot_dimension_numbers<[1], [0], [0], [1], [0, 0, 1, 1], [], []>} : vector<16x64xbf16>, vector<64x512xbf16>, vector<16x512xf32> -> vector<16x512xf32>
    %377 = arith.addf %368, %376 : vector<16x512xf32>
    %c15_i32_238 = arith.constant 15 : i32
    %378 = tpu.dynamic_rotate %360 by %c15_i32_238 dim 1 : vector<64x512xf32>, i32 -> vector<64x512xf32>
    %c2_239 = arith.constant 2 : index
    %c0_240 = arith.constant 0 : index
    %379 = vector.load %arg3[%c2_239, %c0_240] : memref<9x512xf32, #tpu.memory_space<vmem>>, vector<1x512xf32>
    %380 = vector.broadcast %379 : vector<1x512xf32> to vector<64x512xf32>
    %381 = arith.mulf %378, %380 : vector<64x512xf32>
    %c2_241 = arith.constant 2 : index
    %c0_242 = arith.constant 0 : index
    %c0_243 = arith.constant 0 : index
    %382 = vector.load %arg8[%c2_241, %c0_242, %c0_243] : memref<9x16x64xbf16, #tpu.memory_space<vmem>>, vector<1x16x64xbf16>
    %383 = vector.shape_cast %382 : vector<1x16x64xbf16> to vector<16x64xbf16>
    %384 = arith.truncf %381 : vector<64x512xf32> to vector<64x512xbf16>
    %cst_244 = arith.constant dense<0.000000e+00> : vector<16x512xf32>
    %385 = tpu.matmul %383, %384, %cst_244 {dimension_numbers = #tpu.dot_dimension_numbers<[1], [0], [0], [1], [0, 0, 1, 1], [], []>} : vector<16x64xbf16>, vector<64x512xbf16>, vector<16x512xf32> -> vector<16x512xf32>
    %386 = arith.addf %377, %385 : vector<16x512xf32>
    %c1_i32_245 = arith.constant 1 : i32
    %387 = tpu.dynamic_rotate %360 by %c1_i32_245 dim 1 : vector<64x512xf32>, i32 -> vector<64x512xf32>
    %c3_246 = arith.constant 3 : index
    %c0_247 = arith.constant 0 : index
    %388 = vector.load %arg3[%c3_246, %c0_247] : memref<9x512xf32, #tpu.memory_space<vmem>>, vector<1x512xf32>
    %389 = vector.broadcast %388 : vector<1x512xf32> to vector<64x512xf32>
    %390 = arith.mulf %387, %389 : vector<64x512xf32>
    %c3_248 = arith.constant 3 : index
    %c0_249 = arith.constant 0 : index
    %c0_250 = arith.constant 0 : index
    %391 = vector.load %arg8[%c3_248, %c0_249, %c0_250] : memref<9x16x64xbf16, #tpu.memory_space<vmem>>, vector<1x16x64xbf16>
    %392 = vector.shape_cast %391 : vector<1x16x64xbf16> to vector<16x64xbf16>
    %393 = arith.truncf %390 : vector<64x512xf32> to vector<64x512xbf16>
    %cst_251 = arith.constant dense<0.000000e+00> : vector<16x512xf32>
    %394 = tpu.matmul %392, %393, %cst_251 {dimension_numbers = #tpu.dot_dimension_numbers<[1], [0], [0], [1], [0, 0, 1, 1], [], []>} : vector<16x64xbf16>, vector<64x512xbf16>, vector<16x512xf32> -> vector<16x512xf32>
    %395 = arith.addf %386, %394 : vector<16x512xf32>
    %c4_252 = arith.constant 4 : index
    %c0_253 = arith.constant 0 : index
    %c0_254 = arith.constant 0 : index
    %396 = vector.load %arg8[%c4_252, %c0_253, %c0_254] : memref<9x16x64xbf16, #tpu.memory_space<vmem>>, vector<1x16x64xbf16>
    %397 = vector.shape_cast %396 : vector<1x16x64xbf16> to vector<16x64xbf16>
    %398 = arith.truncf %360 : vector<64x512xf32> to vector<64x512xbf16>
    %cst_255 = arith.constant dense<0.000000e+00> : vector<16x512xf32>
    %399 = tpu.matmul %397, %398, %cst_255 {dimension_numbers = #tpu.dot_dimension_numbers<[1], [0], [0], [1], [0, 0, 1, 1], [], []>} : vector<16x64xbf16>, vector<64x512xbf16>, vector<16x512xf32> -> vector<16x512xf32>
    %400 = arith.addf %395, %399 : vector<16x512xf32>
    %c511_i32_256 = arith.constant 511 : i32
    %401 = tpu.dynamic_rotate %360 by %c511_i32_256 dim 1 : vector<64x512xf32>, i32 -> vector<64x512xf32>
    %c5_257 = arith.constant 5 : index
    %c0_258 = arith.constant 0 : index
    %402 = vector.load %arg3[%c5_257, %c0_258] : memref<9x512xf32, #tpu.memory_space<vmem>>, vector<1x512xf32>
    %403 = vector.broadcast %402 : vector<1x512xf32> to vector<64x512xf32>
    %404 = arith.mulf %401, %403 : vector<64x512xf32>
    %c5_259 = arith.constant 5 : index
    %c0_260 = arith.constant 0 : index
    %c0_261 = arith.constant 0 : index
    %405 = vector.load %arg8[%c5_259, %c0_260, %c0_261] : memref<9x16x64xbf16, #tpu.memory_space<vmem>>, vector<1x16x64xbf16>
    %406 = vector.shape_cast %405 : vector<1x16x64xbf16> to vector<16x64xbf16>
    %407 = arith.truncf %404 : vector<64x512xf32> to vector<64x512xbf16>
    %cst_262 = arith.constant dense<0.000000e+00> : vector<16x512xf32>
    %408 = tpu.matmul %406, %407, %cst_262 {dimension_numbers = #tpu.dot_dimension_numbers<[1], [0], [0], [1], [0, 0, 1, 1], [], []>} : vector<16x64xbf16>, vector<64x512xbf16>, vector<16x512xf32> -> vector<16x512xf32>
    %409 = arith.addf %400, %408 : vector<16x512xf32>
    %c497_i32_263 = arith.constant 497 : i32
    %410 = tpu.dynamic_rotate %360 by %c497_i32_263 dim 1 : vector<64x512xf32>, i32 -> vector<64x512xf32>
    %c6_264 = arith.constant 6 : index
    %c0_265 = arith.constant 0 : index
    %411 = vector.load %arg3[%c6_264, %c0_265] : memref<9x512xf32, #tpu.memory_space<vmem>>, vector<1x512xf32>
    %412 = vector.broadcast %411 : vector<1x512xf32> to vector<64x512xf32>
    %413 = arith.mulf %410, %412 : vector<64x512xf32>
    %c6_266 = arith.constant 6 : index
    %c0_267 = arith.constant 0 : index
    %c0_268 = arith.constant 0 : index
    %414 = vector.load %arg8[%c6_266, %c0_267, %c0_268] : memref<9x16x64xbf16, #tpu.memory_space<vmem>>, vector<1x16x64xbf16>
    %415 = vector.shape_cast %414 : vector<1x16x64xbf16> to vector<16x64xbf16>
    %416 = arith.truncf %413 : vector<64x512xf32> to vector<64x512xbf16>
    %cst_269 = arith.constant dense<0.000000e+00> : vector<16x512xf32>
    %417 = tpu.matmul %415, %416, %cst_269 {dimension_numbers = #tpu.dot_dimension_numbers<[1], [0], [0], [1], [0, 0, 1, 1], [], []>} : vector<16x64xbf16>, vector<64x512xbf16>, vector<16x512xf32> -> vector<16x512xf32>
    %418 = arith.addf %409, %417 : vector<16x512xf32>
    %c496_i32_270 = arith.constant 496 : i32
    %419 = tpu.dynamic_rotate %360 by %c496_i32_270 dim 1 : vector<64x512xf32>, i32 -> vector<64x512xf32>
    %c7_271 = arith.constant 7 : index
    %c0_272 = arith.constant 0 : index
    %420 = vector.load %arg3[%c7_271, %c0_272] : memref<9x512xf32, #tpu.memory_space<vmem>>, vector<1x512xf32>
    %421 = vector.broadcast %420 : vector<1x512xf32> to vector<64x512xf32>
    %422 = arith.mulf %419, %421 : vector<64x512xf32>
    %c7_273 = arith.constant 7 : index
    %c0_274 = arith.constant 0 : index
    %c0_275 = arith.constant 0 : index
    %423 = vector.load %arg8[%c7_273, %c0_274, %c0_275] : memref<9x16x64xbf16, #tpu.memory_space<vmem>>, vector<1x16x64xbf16>
    %424 = vector.shape_cast %423 : vector<1x16x64xbf16> to vector<16x64xbf16>
    %425 = arith.truncf %422 : vector<64x512xf32> to vector<64x512xbf16>
    %cst_276 = arith.constant dense<0.000000e+00> : vector<16x512xf32>
    %426 = tpu.matmul %424, %425, %cst_276 {dimension_numbers = #tpu.dot_dimension_numbers<[1], [0], [0], [1], [0, 0, 1, 1], [], []>} : vector<16x64xbf16>, vector<64x512xbf16>, vector<16x512xf32> -> vector<16x512xf32>
    %427 = arith.addf %418, %426 : vector<16x512xf32>
    %c495_i32_277 = arith.constant 495 : i32
    %428 = tpu.dynamic_rotate %360 by %c495_i32_277 dim 1 : vector<64x512xf32>, i32 -> vector<64x512xf32>
    %c8_278 = arith.constant 8 : index
    %c0_279 = arith.constant 0 : index
    %429 = vector.load %arg3[%c8_278, %c0_279] : memref<9x512xf32, #tpu.memory_space<vmem>>, vector<1x512xf32>
    %430 = vector.broadcast %429 : vector<1x512xf32> to vector<64x512xf32>
    %431 = arith.mulf %428, %430 : vector<64x512xf32>
    %c8_280 = arith.constant 8 : index
    %c0_281 = arith.constant 0 : index
    %c0_282 = arith.constant 0 : index
    %432 = vector.load %arg8[%c8_280, %c0_281, %c0_282] : memref<9x16x64xbf16, #tpu.memory_space<vmem>>, vector<1x16x64xbf16>
    %433 = vector.shape_cast %432 : vector<1x16x64xbf16> to vector<16x64xbf16>
    %434 = arith.truncf %431 : vector<64x512xf32> to vector<64x512xbf16>
    %cst_283 = arith.constant dense<0.000000e+00> : vector<16x512xf32>
    %435 = tpu.matmul %433, %434, %cst_283 {dimension_numbers = #tpu.dot_dimension_numbers<[1], [0], [0], [1], [0, 0, 1, 1], [], []>} : vector<16x64xbf16>, vector<64x512xbf16>, vector<16x512xf32> -> vector<16x512xf32>
    %436 = arith.addf %427, %435 : vector<16x512xf32>
    %c0_284 = arith.constant 0 : index
    %c4_285 = arith.constant 4 : index
    %437 = vector.load %arg10[%c0_284, %c4_285] : memref<32x8xf32, #tpu.memory_space<vmem>>, vector<16x1xf32>
    %438 = vector.broadcast %437 : vector<16x1xf32> to vector<16x512xf32>
    %439 = arith.addf %436, %438 : vector<16x512xf32>
    %cst_286 = arith.constant 0.000000e+00 : f32
    %440 = vector.broadcast %cst_286 : f32 to vector<16x512xf32>
    %441 = arith.cmpf oge, %439, %440 : vector<16x512xf32>
    %cst_287 = arith.constant 2.000000e-01 : f32
    %442 = vector.broadcast %cst_287 : f32 to vector<16x512xf32>
    %443 = arith.mulf %442, %439 : vector<16x512xf32>
    %444 = arith.select %441, %439, %443 : vector<16x512xi1>, vector<16x512xf32>
    %c17_i32_288 = arith.constant 17 : i32
    %445 = tpu.dynamic_rotate %444 by %c17_i32_288 dim 1 : vector<16x512xf32>, i32 -> vector<16x512xf32>
    %c0_289 = arith.constant 0 : index
    %c0_290 = arith.constant 0 : index
    %446 = vector.load %arg3[%c0_289, %c0_290] : memref<9x512xf32, #tpu.memory_space<vmem>>, vector<1x512xf32>
    %447 = vector.broadcast %446 : vector<1x512xf32> to vector<16x512xf32>
    %448 = arith.mulf %445, %447 : vector<16x512xf32>
    %c0_291 = arith.constant 0 : index
    %c0_292 = arith.constant 0 : index
    %c0_293 = arith.constant 0 : index
    %449 = vector.load %arg9[%c0_291, %c0_292, %c0_293] : memref<9x8x16xbf16, #tpu.memory_space<vmem>>, vector<1x8x16xbf16>
    %450 = vector.shape_cast %449 : vector<1x8x16xbf16> to vector<8x16xbf16>
    %451 = arith.truncf %448 : vector<16x512xf32> to vector<16x512xbf16>
    %cst_294 = arith.constant dense<0.000000e+00> : vector<8x512xf32>
    %452 = tpu.matmul %450, %451, %cst_294 {dimension_numbers = #tpu.dot_dimension_numbers<[1], [0], [0], [1], [0, 0, 1, 1], [], []>} : vector<8x16xbf16>, vector<16x512xbf16>, vector<8x512xf32> -> vector<8x512xf32>
    %c16_i32_295 = arith.constant 16 : i32
    %453 = tpu.dynamic_rotate %444 by %c16_i32_295 dim 1 : vector<16x512xf32>, i32 -> vector<16x512xf32>
    %c1_296 = arith.constant 1 : index
    %c0_297 = arith.constant 0 : index
    %454 = vector.load %arg3[%c1_296, %c0_297] : memref<9x512xf32, #tpu.memory_space<vmem>>, vector<1x512xf32>
    %455 = vector.broadcast %454 : vector<1x512xf32> to vector<16x512xf32>
    %456 = arith.mulf %453, %455 : vector<16x512xf32>
    %c1_298 = arith.constant 1 : index
    %c0_299 = arith.constant 0 : index
    %c0_300 = arith.constant 0 : index
    %457 = vector.load %arg9[%c1_298, %c0_299, %c0_300] : memref<9x8x16xbf16, #tpu.memory_space<vmem>>, vector<1x8x16xbf16>
    %458 = vector.shape_cast %457 : vector<1x8x16xbf16> to vector<8x16xbf16>
    %459 = arith.truncf %456 : vector<16x512xf32> to vector<16x512xbf16>
    %cst_301 = arith.constant dense<0.000000e+00> : vector<8x512xf32>
    %460 = tpu.matmul %458, %459, %cst_301 {dimension_numbers = #tpu.dot_dimension_numbers<[1], [0], [0], [1], [0, 0, 1, 1], [], []>} : vector<8x16xbf16>, vector<16x512xbf16>, vector<8x512xf32> -> vector<8x512xf32>
    %461 = arith.addf %452, %460 : vector<8x512xf32>
    %c15_i32_302 = arith.constant 15 : i32
    %462 = tpu.dynamic_rotate %444 by %c15_i32_302 dim 1 : vector<16x512xf32>, i32 -> vector<16x512xf32>
    %c2_303 = arith.constant 2 : index
    %c0_304 = arith.constant 0 : index
    %463 = vector.load %arg3[%c2_303, %c0_304] : memref<9x512xf32, #tpu.memory_space<vmem>>, vector<1x512xf32>
    %464 = vector.broadcast %463 : vector<1x512xf32> to vector<16x512xf32>
    %465 = arith.mulf %462, %464 : vector<16x512xf32>
    %c2_305 = arith.constant 2 : index
    %c0_306 = arith.constant 0 : index
    %c0_307 = arith.constant 0 : index
    %466 = vector.load %arg9[%c2_305, %c0_306, %c0_307] : memref<9x8x16xbf16, #tpu.memory_space<vmem>>, vector<1x8x16xbf16>
    %467 = vector.shape_cast %466 : vector<1x8x16xbf16> to vector<8x16xbf16>
    %468 = arith.truncf %465 : vector<16x512xf32> to vector<16x512xbf16>
    %cst_308 = arith.constant dense<0.000000e+00> : vector<8x512xf32>
    %469 = tpu.matmul %467, %468, %cst_308 {dimension_numbers = #tpu.dot_dimension_numbers<[1], [0], [0], [1], [0, 0, 1, 1], [], []>} : vector<8x16xbf16>, vector<16x512xbf16>, vector<8x512xf32> -> vector<8x512xf32>
    %470 = arith.addf %461, %469 : vector<8x512xf32>
    %c1_i32_309 = arith.constant 1 : i32
    %471 = tpu.dynamic_rotate %444 by %c1_i32_309 dim 1 : vector<16x512xf32>, i32 -> vector<16x512xf32>
    %c3_310 = arith.constant 3 : index
    %c0_311 = arith.constant 0 : index
    %472 = vector.load %arg3[%c3_310, %c0_311] : memref<9x512xf32, #tpu.memory_space<vmem>>, vector<1x512xf32>
    %473 = vector.broadcast %472 : vector<1x512xf32> to vector<16x512xf32>
    %474 = arith.mulf %471, %473 : vector<16x512xf32>
    %c3_312 = arith.constant 3 : index
    %c0_313 = arith.constant 0 : index
    %c0_314 = arith.constant 0 : index
    %475 = vector.load %arg9[%c3_312, %c0_313, %c0_314] : memref<9x8x16xbf16, #tpu.memory_space<vmem>>, vector<1x8x16xbf16>
    %476 = vector.shape_cast %475 : vector<1x8x16xbf16> to vector<8x16xbf16>
    %477 = arith.truncf %474 : vector<16x512xf32> to vector<16x512xbf16>
    %cst_315 = arith.constant dense<0.000000e+00> : vector<8x512xf32>
    %478 = tpu.matmul %476, %477, %cst_315 {dimension_numbers = #tpu.dot_dimension_numbers<[1], [0], [0], [1], [0, 0, 1, 1], [], []>} : vector<8x16xbf16>, vector<16x512xbf16>, vector<8x512xf32> -> vector<8x512xf32>
    %479 = arith.addf %470, %478 : vector<8x512xf32>
    %c4_316 = arith.constant 4 : index
    %c0_317 = arith.constant 0 : index
    %c0_318 = arith.constant 0 : index
    %480 = vector.load %arg9[%c4_316, %c0_317, %c0_318] : memref<9x8x16xbf16, #tpu.memory_space<vmem>>, vector<1x8x16xbf16>
    %481 = vector.shape_cast %480 : vector<1x8x16xbf16> to vector<8x16xbf16>
    %482 = arith.truncf %444 : vector<16x512xf32> to vector<16x512xbf16>
    %cst_319 = arith.constant dense<0.000000e+00> : vector<8x512xf32>
    %483 = tpu.matmul %481, %482, %cst_319 {dimension_numbers = #tpu.dot_dimension_numbers<[1], [0], [0], [1], [0, 0, 1, 1], [], []>} : vector<8x16xbf16>, vector<16x512xbf16>, vector<8x512xf32> -> vector<8x512xf32>
    %484 = arith.addf %479, %483 : vector<8x512xf32>
    %c511_i32_320 = arith.constant 511 : i32
    %485 = tpu.dynamic_rotate %444 by %c511_i32_320 dim 1 : vector<16x512xf32>, i32 -> vector<16x512xf32>
    %c5_321 = arith.constant 5 : index
    %c0_322 = arith.constant 0 : index
    %486 = vector.load %arg3[%c5_321, %c0_322] : memref<9x512xf32, #tpu.memory_space<vmem>>, vector<1x512xf32>
    %487 = vector.broadcast %486 : vector<1x512xf32> to vector<16x512xf32>
    %488 = arith.mulf %485, %487 : vector<16x512xf32>
    %c5_323 = arith.constant 5 : index
    %c0_324 = arith.constant 0 : index
    %c0_325 = arith.constant 0 : index
    %489 = vector.load %arg9[%c5_323, %c0_324, %c0_325] : memref<9x8x16xbf16, #tpu.memory_space<vmem>>, vector<1x8x16xbf16>
    %490 = vector.shape_cast %489 : vector<1x8x16xbf16> to vector<8x16xbf16>
    %491 = arith.truncf %488 : vector<16x512xf32> to vector<16x512xbf16>
    %cst_326 = arith.constant dense<0.000000e+00> : vector<8x512xf32>
    %492 = tpu.matmul %490, %491, %cst_326 {dimension_numbers = #tpu.dot_dimension_numbers<[1], [0], [0], [1], [0, 0, 1, 1], [], []>} : vector<8x16xbf16>, vector<16x512xbf16>, vector<8x512xf32> -> vector<8x512xf32>
    %493 = arith.addf %484, %492 : vector<8x512xf32>
    %c497_i32_327 = arith.constant 497 : i32
    %494 = tpu.dynamic_rotate %444 by %c497_i32_327 dim 1 : vector<16x512xf32>, i32 -> vector<16x512xf32>
    %c6_328 = arith.constant 6 : index
    %c0_329 = arith.constant 0 : index
    %495 = vector.load %arg3[%c6_328, %c0_329] : memref<9x512xf32, #tpu.memory_space<vmem>>, vector<1x512xf32>
    %496 = vector.broadcast %495 : vector<1x512xf32> to vector<16x512xf32>
    %497 = arith.mulf %494, %496 : vector<16x512xf32>
    %c6_330 = arith.constant 6 : index
    %c0_331 = arith.constant 0 : index
    %c0_332 = arith.constant 0 : index
    %498 = vector.load %arg9[%c6_330, %c0_331, %c0_332] : memref<9x8x16xbf16, #tpu.memory_space<vmem>>, vector<1x8x16xbf16>
    %499 = vector.shape_cast %498 : vector<1x8x16xbf16> to vector<8x16xbf16>
    %500 = arith.truncf %497 : vector<16x512xf32> to vector<16x512xbf16>
    %cst_333 = arith.constant dense<0.000000e+00> : vector<8x512xf32>
    %501 = tpu.matmul %499, %500, %cst_333 {dimension_numbers = #tpu.dot_dimension_numbers<[1], [0], [0], [1], [0, 0, 1, 1], [], []>} : vector<8x16xbf16>, vector<16x512xbf16>, vector<8x512xf32> -> vector<8x512xf32>
    %502 = arith.addf %493, %501 : vector<8x512xf32>
    %c496_i32_334 = arith.constant 496 : i32
    %503 = tpu.dynamic_rotate %444 by %c496_i32_334 dim 1 : vector<16x512xf32>, i32 -> vector<16x512xf32>
    %c7_335 = arith.constant 7 : index
    %c0_336 = arith.constant 0 : index
    %504 = vector.load %arg3[%c7_335, %c0_336] : memref<9x512xf32, #tpu.memory_space<vmem>>, vector<1x512xf32>
    %505 = vector.broadcast %504 : vector<1x512xf32> to vector<16x512xf32>
    %506 = arith.mulf %503, %505 : vector<16x512xf32>
    %c7_337 = arith.constant 7 : index
    %c0_338 = arith.constant 0 : index
    %c0_339 = arith.constant 0 : index
    %507 = vector.load %arg9[%c7_337, %c0_338, %c0_339] : memref<9x8x16xbf16, #tpu.memory_space<vmem>>, vector<1x8x16xbf16>
    %508 = vector.shape_cast %507 : vector<1x8x16xbf16> to vector<8x16xbf16>
    %509 = arith.truncf %506 : vector<16x512xf32> to vector<16x512xbf16>
    %cst_340 = arith.constant dense<0.000000e+00> : vector<8x512xf32>
    %510 = tpu.matmul %508, %509, %cst_340 {dimension_numbers = #tpu.dot_dimension_numbers<[1], [0], [0], [1], [0, 0, 1, 1], [], []>} : vector<8x16xbf16>, vector<16x512xbf16>, vector<8x512xf32> -> vector<8x512xf32>
    %511 = arith.addf %502, %510 : vector<8x512xf32>
    %c495_i32_341 = arith.constant 495 : i32
    %512 = tpu.dynamic_rotate %444 by %c495_i32_341 dim 1 : vector<16x512xf32>, i32 -> vector<16x512xf32>
    %c8_342 = arith.constant 8 : index
    %c0_343 = arith.constant 0 : index
    %513 = vector.load %arg3[%c8_342, %c0_343] : memref<9x512xf32, #tpu.memory_space<vmem>>, vector<1x512xf32>
    %514 = vector.broadcast %513 : vector<1x512xf32> to vector<16x512xf32>
    %515 = arith.mulf %512, %514 : vector<16x512xf32>
    %c8_344 = arith.constant 8 : index
    %c0_345 = arith.constant 0 : index
    %c0_346 = arith.constant 0 : index
    %516 = vector.load %arg9[%c8_344, %c0_345, %c0_346] : memref<9x8x16xbf16, #tpu.memory_space<vmem>>, vector<1x8x16xbf16>
    %517 = vector.shape_cast %516 : vector<1x8x16xbf16> to vector<8x16xbf16>
    %518 = arith.truncf %515 : vector<16x512xf32> to vector<16x512xbf16>
    %cst_347 = arith.constant dense<0.000000e+00> : vector<8x512xf32>
    %519 = tpu.matmul %517, %518, %cst_347 {dimension_numbers = #tpu.dot_dimension_numbers<[1], [0], [0], [1], [0, 0, 1, 1], [], []>} : vector<8x16xbf16>, vector<16x512xbf16>, vector<8x512xf32> -> vector<8x512xf32>
    %520 = arith.addf %511, %519 : vector<8x512xf32>
    %c0_348 = arith.constant 0 : index
    %c5_349 = arith.constant 5 : index
    %521 = vector.load %arg10[%c0_348, %c5_349] : memref<32x8xf32, #tpu.memory_space<vmem>>, vector<8x1xf32>
    %522 = vector.broadcast %521 : vector<8x1xf32> to vector<8x512xf32>
    %523 = arith.addf %520, %522 : vector<8x512xf32>
    %524 = math.tanh %523 : vector<8x512xf32>
    %525 = vector.extract_strided_slice %524 {offsets = [0, 0], sizes = [1, 512], strides = [1, 1]} : vector<8x512xf32> to vector<1x512xf32>
    %526 = arith.truncf %525 : vector<1x512xf32> to vector<1x512xbf16>
    %c0_350 = arith.constant 0 : index
    %c0_351 = arith.constant 0 : index
    %527 = vector.load %arg11[%c0_350, %c0_351] : memref<1x512xbf16, #tpu.memory_space<vmem>>, vector<1x512xbf16>
    tpu.vector_store %arg11[%c0_350, %c0_351], %526 {strides = array<i32>} : memref<1x512xbf16, #tpu.memory_space<vmem>>, vector<1x512xbf16>,
    return
  }
  func.func @transform_0(%arg0: i32) -> (i32, i32) {
    %c0_i32 = arith.constant 0 : i32
    %c0_i32_0 = arith.constant 0 : i32
    return %c0_i32, %arg0 : i32, i32
  }
  func.func @transform_1(%arg0: i32) -> (i32, i32) {
    %c0_i32 = arith.constant 0 : i32
    %c0_i32_0 = arith.constant 0 : i32
    return %c0_i32, %arg0 : i32, i32
  }
  func.func @transform_2(%arg0: i32) -> (i32, i32) {
    %c0_i32 = arith.constant 0 : i32
    %c0_i32_0 = arith.constant 0 : i32
    %c0_i32_1 = arith.constant 0 : i32
    return %c0_i32, %c0_i32_0 : i32, i32
  }
  func.func @transform_3(%arg0: i32) -> (i32, i32, i32) {
    %c0_i32 = arith.constant 0 : i32
    %c0_i32_0 = arith.constant 0 : i32
    %c0_i32_1 = arith.constant 0 : i32
    %c0_i32_2 = arith.constant 0 : i32
    return %c0_i32, %c0_i32_0, %c0_i32_1 : i32, i32, i32
  }
  func.func @transform_4(%arg0: i32) -> (i32, i32, i32) {
    %c0_i32 = arith.constant 0 : i32
    %c0_i32_0 = arith.constant 0 : i32
    %c0_i32_1 = arith.constant 0 : i32
    %c0_i32_2 = arith.constant 0 : i32
    return %c0_i32, %c0_i32_0, %c0_i32_1 : i32, i32, i32
  }
  func.func @transform_5(%arg0: i32) -> (i32, i32, i32) {
    %c0_i32 = arith.constant 0 : i32
    %c0_i32_0 = arith.constant 0 : i32
    %c0_i32_1 = arith.constant 0 : i32
    %c0_i32_2 = arith.constant 0 : i32
    return %c0_i32, %c0_i32_0, %c0_i32_1 : i32, i32, i32
  }
  func.func @transform_6(%arg0: i32) -> (i32, i32, i32) {
    %c0_i32 = arith.constant 0 : i32
    %c0_i32_0 = arith.constant 0 : i32
    %c0_i32_1 = arith.constant 0 : i32
    %c0_i32_2 = arith.constant 0 : i32
    return %c0_i32, %c0_i32_0, %c0_i32_1 : i32, i32, i32
  }
  func.func @transform_7(%arg0: i32) -> (i32, i32, i32) {
    %c0_i32 = arith.constant 0 : i32
    %c0_i32_0 = arith.constant 0 : i32
    %c0_i32_1 = arith.constant 0 : i32
    %c0_i32_2 = arith.constant 0 : i32
    return %c0_i32, %c0_i32_0, %c0_i32_1 : i32, i32, i32
  }
  func.func @transform_8(%arg0: i32) -> (i32, i32, i32) {
    %c0_i32 = arith.constant 0 : i32
    %c0_i32_0 = arith.constant 0 : i32
    %c0_i32_1 = arith.constant 0 : i32
    %c0_i32_2 = arith.constant 0 : i32
    return %c0_i32, %c0_i32_0, %c0_i32_1 : i32, i32, i32
  }
  func.func @transform_9(%arg0: i32) -> (i32, i32) {
    %c0_i32 = arith.constant 0 : i32
    %c0_i32_0 = arith.constant 0 : i32
    %c0_i32_1 = arith.constant 0 : i32
    return %c0_i32, %c0_i32_0 : i32, i32
  }
  func.func @transform_10(%arg0: i32) -> (i32, i32) {
    %c0_i32 = arith.constant 0 : i32
    %c0_i32_0 = arith.constant 0 : i32
    return %c0_i32, %arg0 : i32, i32
  }
}

</mosaic_0001>

<bundles_post_ra>
// kernel: clf_net_forward.1
= control target key start
LH: loop header
LB: loop body
LE: loop exit
PB: predicated region body
PF: predicated region fallthrough
CT: control target
= control target key end

     0   :  { %v13814_v0 = vmov 0   ;;  %s7537_s19 = smov 17   ;;  %s7538_s24 = smov 15   ;;  %v57_v49 = vlaneseq  ;;  %s13803_s3 = inlined_call_operand.vmem [shape: bf16[9,16,1], index: 3, kind: input, shape index: {}]   ;;  %s13804_s0 = inlined_call_operand.vmem [shape: bf16[1,512], index: 0, kind: input, shape index: {}]   ;;  %s13805_s9 = inlined_call_operand.vmem [shape: f32[32,8], index: 9, kind: input, shape index: {}]   ;;  %s13806_s2 = inlined_call_operand.vmem [shape: f32[9,512], index: 2, kind: input, shape index: {}]   ;;  %s13807_s4 = inlined_call_operand.vmem [shape: bf16[9,32,16], index: 4, kind: input, shape index: {}]   ;;  %s13808_s5 = inlined_call_operand.vmem [shape: bf16[9,16,1], index: 5, kind: input, shape index: {}]   ;;  %s13809_s1 = inlined_call_operand.vmem [shape: bf16[1,512], index: 1, kind: input, shape index: {}]   ;;  %s13810_s6 = inlined_call_operand.vmem [shape: bf16[9,32,16], index: 6, kind: input, shape index: {}]   ;;  %s13811_s7 = inlined_call_operand.vmem [shape: bf16[9,16,64], index: 7, kind: input, shape index: {}]   ;;  %s13812_s8 = inlined_call_operand.vmem [shape: bf16[9,8,16], index: 8, kind: input, shape index: {}]   ;;  %s13813_s10 = inlined_call_operand.vmem [shape: bf16[1,512], index: 10, kind: output, shape index: {}]  }
   0x1   :  { %7261 = vset.pattern.permute.xlu1 %v13814_v0  ;;  %v7150_v1 = vld [vmem:[%s13803_s3] sm:$0xff]   ;;  %7277 = vset.pattern.permute.xlu2 %v13814_v0  ;;  %v7221_v11 = vld [vmem:[%s13803_s3 + $0x8] sm:$0xff]   ;;  %v7222_v17 = vld [vmem:[%s13803_s3 + $0x10] sm:$0xff]   ;;  %s7539_s25 = smov 1   ;;  %s7540_s30 = smov 127  }
   0x2   :  { %v36_v2 = vld [vmem:[%s13804_s0] sm:$0xf]  ;;  %v7151_v3 = vunpack.c.l.bf16 %v7150_v1  ;;  %v7152_v4 = vunpack.c.h.bf16 %v7150_v1  ;;  %7313 = vset.pattern.permute.xlu0 %v13814_v0  ;;  %s7536_s0 = smov 16   ;;  %v7155_v14 = vunpack.c.l.bf16 %v7221_v11  ;;  %v7156_v15 = vunpack.c.h.bf16 %v7221_v11  ;;  %v7223_v21 = vld [vmem:[%s13803_s3 + $0x18] sm:$0xff]   ;;  %v7225_v28 = vld [vmem:[%s13803_s3 + $0x28] sm:$0xff]   ;;  %s7541_s13 = smov 113  }
   0x3   :  { %v7612_v5 = vunpack.c.l.bf16 %v36_v2  ;;  %v7159_v18 = vunpack.c.l.bf16 %v7222_v17  ;;  %v7160_v19 = vunpack.c.h.bf16 %v7222_v17  ;;  %v7163_v22 = vunpack.c.l.bf16 %v7223_v21  ;;  %v7224_v25 = vld [vmem:[%s13803_s3 + $0x20] sm:$0xff]   ;;  %v7226_v33 = vld [vmem:[%s13803_s3 + $0x30] sm:$0xff]   ;;  %v7227_v37 = vld [vmem:[%s13803_s3 + $0x38] sm:$0xff]   ;;  %s7542_s16 = smov 112   ;;  %s7543_s20 = smov 111  }
   0x4   :  { %v7262_v6 = vpack.i.bf16 %v7152_v4, %v7151_v3  ;;  %v7278_v16 = vpack.i.bf16 %v7156_v15, %v7155_v14  ;;  %v7164_v23 = vunpack.c.h.bf16 %v7223_v21  ;;  %v7167_v26 = vunpack.c.l.bf16 %v7224_v25  ;;  %v7228_v41 = vld [vmem:[%s13803_s3 + $0x40] sm:$0xff]   ;;  %v581_v46 = vld [vmem:[%s13805_s9 + $0x8] sm:$0xff] }
   0x5   :  { %v13818_v7 = vperm.slane %v7612_v5, 4  ;;  %v13816_v8 = vperm.slane %v7612_v5, 6  ;;  %v13817_v9 = vperm.slane %v7612_v5, 0  ;;  %v13819_v10 = vperm.slane %v7612_v5, 2  ;;  %v580_v45 = vld [vmem:[%s13805_s9] sm:$0xff] }
   0x6   :  { %7263 = vperm.xlu1 %7261, %v7262_v6   ;;  %v7293_v20 = vpack.i.bf16 %v7160_v19, %v7159_v18  ;;  %v7308_v24 = vpack.i.bf16 %v7164_v23, %v7163_v22  ;;  %v7168_v27 = vunpack.c.h.bf16 %v7224_v25  ;;  %v7171_v30 = vunpack.c.l.bf16 %v7225_v28  ;;  %v6581_v52 = vld [vmem:[%s13806_s2 + $0x1] ss:$8 sm:$0xf]  ;;  %v64_v60 = vld [vmem:[%s13806_s2] ss:$8 sm:$0xf] }
   0x7   :  { %v7272_v12 = vpack.i.bf16 %v13816_v8, %v13818_v7  ;;  %v7251_v13 = vpack.i.bf16 %v13819_v10, %v13817_v9  ;;  %v7172_v31 = vunpack.c.h.bf16 %v7225_v28  ;;  %v7175_v34 = vunpack.c.l.bf16 %v7226_v33  ;;  %v6584_v11 = vld [vmem:[%s13806_s2 + $0x2] ss:$8 sm:$0xf]  ;;  %v7710_v19 = vld [vmem:[%s13806_s2 + $0x5] ss:$8 sm:$0xf] }
   0x8   :  { %v7314_v29 = vpack.i.bf16 %v7168_v27, %v7167_v26  ;;  %v7176_v35 = vunpack.c.h.bf16 %v7226_v33  ;;  %v7179_v38 = vunpack.c.l.bf16 %v7227_v37  ;;  %v7180_v39 = vunpack.c.h.bf16 %v7227_v37 }
   0x9   :  { %7273 = vrot.lane.b32.xlu2 %v7272_v12, %s7536_s0  ;;  %7252 = vrot.lane.b32.xlu0 %v7251_v13, %s7537_s19  ;;  %v7329_v32 = vpack.i.bf16 %v7172_v31, %v7171_v30  ;;  %v7183_v42 = vunpack.c.l.bf16 %v7228_v41  ;;  %v7184_v43 = vunpack.c.h.bf16 %v7228_v41  ;;  %v7673_v50 = vand.u32 127, %v57_v49  ;;  %v7736_v30 = vld [vmem:[%s13806_s2 + $0x6] ss:$8 sm:$0xf] }
   0xa   :  { %v7344_v36 = vpack.i.bf16 %v7176_v35, %v7175_v34  ;;  %v7359_v40 = vpack.i.bf16 %v7180_v39, %v7179_v38  ;;  %v7679_v55 = vperm.slane %v6581_v52, 3  ;;  %v7688_v1 = vperm.slane %v64_v60, 1  ;;  %v6587_v31 = vld [vmem:[%s13806_s2 + $0x3] ss:$8 sm:$0xf] }
   0xb   :  { %v7374_v44 = vpack.i.bf16 %v7184_v43, %v7183_v42  ;;  %14285 = vst [vmem:[#allocation2_spill] sm:$0xff] %v7673_v50  ;;  %vm112_vm0 = vcmp.lt.s32.totalorder %v7673_v50, 16  ;;  %vm59_vm1 = vcmp.lt.s32.totalorder %v7673_v50, 17  ;;  %v7703_v14 = vperm.slane %v6581_v52, 2 }
   0xc   :  { %14286 = vst [vmem:[#allocation3_spill] sm:$0xff] %v7679_v55  ;;  %v7714_v21 = vperm.slane %v64_v60, 3  ;;  %v7718_v23 = vperm.slane %v7710_v19, 2  ;;  %v7722_v25 = vperm.slane %v6584_v11, 0  ;;  %vm175_vm2 = vcmp.lt.s32.totalorder %v7673_v50, 15 }
   0xd   :  { %14287 = vst [vmem:[#allocation4_spill] sm:$0xff] %v7688_v1  ;;  %v7745_v34 = vperm.slane %v6584_v11, 1  ;;  %v7747_v35 = vperm.slane %v6584_v11, 2  ;;  %vm336_vm3 = vcmp.lt.s32.totalorder %v7673_v50, 127  ;;  %v7757_v42 = vperm.slane %v7736_v30, 0 }
   0xe   :  { %7268 = vrot.lane.b32.xlu1 %v7251_v13, %s7536_s0  ;;  %14290 = vst [vmem:[#allocation7_spill] sm:$0xff] %v7703_v14  ;;  %v7759_v43 = vperm.slane %v6587_v31, 3  ;;  %vm399_vm4 = vcmp.lt.s32.totalorder %v7673_v50, 113  ;;  %vm238_vm5 = vcmp.lt.s32.totalorder %v7673_v50, 1  ;;  %vm462_vm6 = vcmp.lt.s32.totalorder %v7673_v50, 112 }
   0xf   :  { %14293 = vst [vmem:[#allocation10_spill] sm:$0xff] %v7714_v21  ;;  %vm525_vm7 = vcmp.lt.s32.totalorder %v7673_v50, 111 }
  0x10   :  { %14294 = vst [vmem:[#allocation11_spill] sm:$0xff] %v7718_v23 }
  0x11   :  { %7279 = vperm.xlu2 %7277, %v7278_v16   ;;  %7257 = vrot.lane.b32.xlu0 %v7272_v12, %s7537_s19  ;;  %v7705_v16 = vperm.slane %v64_v60, 0  ;;  %14296 = vst [vmem:[#allocation13_spill] sm:$0xff] %v7722_v25 }
  0x12   :  { %14297 = vst [vmem:[#allocation14_spill] sm:$0xff] %v7745_v34 }
  0x13   :  { %14291 = vst [vmem:[#allocation8_spill] sm:$0xff] %v7705_v16 }
  0x14   :  { %14298 = vst [vmem:[#allocation15_spill] sm:$0xff] %v7747_v35 }
  0x15   :  { %14299 = vst [vmem:[#allocation16_spill] sm:$0xff] %v7757_v42 }
  0x16   :  { %7289 = vrot.lane.b32.xlu1 %v7272_v12, %s7538_s24  ;;  %14300 = vst [vmem:[#allocation17_spill] sm:$0xff] %v7759_v43 }
  0x19   :  { %7294 = vperm.xlu2 %7277, %v7293_v20   ;;  %7284 = vrot.lane.b32.xlu0 %v7251_v13, %s7538_s24  ;;  %v7712_v20 = vperm.slane %v64_v60, 2 }
  0x1b   :  { %14292 = vst [vmem:[#allocation9_spill] sm:$0xff] %v7712_v20 }
  0x1e   :  { %7304 = vrot.lane.b32.xlu1 %v7272_v12, %s7539_s25 }
  0x21   :  { %7309 = vperm.xlu2 %7277, %v7308_v24   ;;  %7299 = vrot.lane.b32.xlu0 %v7251_v13, %s7539_s25  ;;  %v7720_v24 = vperm.slane %v6584_v11, 3 }
  0x23   :  { %14295 = vst [vmem:[#allocation12_spill] sm:$0xff] %v7720_v24 }
  0x26   :  { %7320 = vrot.lane.b32.xlu1 %v7251_v13, %s7540_s30 }
  0x29   :  { %7325 = vrot.lane.b32.xlu2 %v7272_v12, %s7540_s30  ;;  %7315 = vperm.xlu0 %7313, %v7314_v29  }
  0x2e   :  { %7330 = vperm.xlu1 %7261, %v7329_v32  }
  0x31   :  { %7335 = vrot.lane.b32.xlu2 %v7251_v13, %s7541_s13  ;;  %7340 = vrot.lane.b32.xlu0 %v7272_v12, %s7541_s13 }
  0x36   :  { %7345 = vperm.xlu1 %7261, %v7344_v36  }
  0x39   :  { %7350 = vrot.lane.b32.xlu2 %v7251_v13, %s7542_s16  ;;  %7355 = vrot.lane.b32.xlu0 %v7272_v12, %s7542_s16 }
  0x3e   :  { %7360 = vperm.xlu1 %7261, %v7359_v40  }
  0x41   :  { %7365 = vrot.lane.b32.xlu2 %v7251_v13, %s7543_s20  ;;  %7370 = vrot.lane.b32.xlu0 %v7272_v12, %s7543_s20  ;;  %v7699_v12 = vperm.slane %v6581_v52, 0  ;;  %v7701_v13 = vperm.slane %v6581_v52, 1  ;;  %v7774_v52 = vperm.slane %v6587_v31, 0 }
  0x43   :  { %14288 = vst [vmem:[#allocation5_spill] sm:$0xff] %v7699_v12 }
  0x44   :  { %14289 = vst [vmem:[#allocation6_spill] sm:$0xff] %v7701_v13 }
  0x45   :  { %14301 = vst [vmem:[#allocation18_spill] sm:$0xff] %v7774_v52 }
  0x46   :  { %7375 = vperm.xlu1 %7261, %v7374_v44  }
  0x49   :  { %584 = vperm.xlu2 %7277, %v580_v45   ;;  %589 = vperm.xlu0 %7313, %v581_v46  }
  0x63   :  { %v7274_v47 = vpop.permute.xlu2 %7273 }
  0x64   :  { %v7276_v53 = vunpack.i.h.bf16 %v7274_v47  ;;  %v7275_v54 = vunpack.i.l.bf16 %v7274_v47 }
  0x66   :  { %v113_v56 = vsel %vm112_vm0, %v7275_v54, %v7276_v53 }
  0x67   :  { %v131_v59 = vmul.f32 %v7679_v55, %v113_v56 }
  0x69   :  { %v150_v2 = vperm.slane %v131_v59, 0 }
  0x6b   :  { %v7280_v48 = vpop.permute.xlu2 %7279 }
  0x6c   :  { %v7690_v3 = vunpack.i.h.bf16 %v7280_v48  ;;  %v7692_v4 = vunpack.i.l.bf16 %v7280_v48  ;;  %v7770_v48 = vld [vmem:[%s13806_s2 + $0x7] ss:$8 sm:$0xf] }
  0x6e   :  { %v7725_v26 = vmul.f32 %v7692_v4, %v150_v2  ;;  %v7728_v27 = vmul.f32 %v7690_v3, %v150_v2 }
  0x73   :  { %v7295_v51 = vpop.permute.xlu2 %7294 }
  0x74   :  { %v7749_v36 = vunpack.i.h.bf16 %v7295_v51  ;;  %v7751_v37 = vunpack.i.l.bf16 %v7295_v51 }
  0x78   :  { %v7264_v57 = vpop.permute.xlu1 %7263 }
  0x79   :  { %v7761_v44 = vunpack.i.h.bf16 %v7264_v57  ;;  %v7763_v45 = vunpack.i.l.bf16 %v7264_v57 }
  0x7b   :  { %v7310_v58 = vpop.permute.xlu2 %7309  ;;  %v7253_v61 = vpop.permute.xlu0 %7252 }
  0x7c   :  { %v7255_v62 = vunpack.i.h.bf16 %v7253_v61  ;;  %v7254_v63 = vunpack.i.l.bf16 %v7253_v61  ;;  %v7772_v49 = vunpack.i.h.bf16 %v7310_v58  ;;  %v7780_v56 = vunpack.i.l.bf16 %v7310_v58 }
  0x7d   :  { %v7793_v58 = vperm.slane %v7770_v48, 0 }
  0x7e   :  { %v62_v6 = vsel %vm59_vm1, %v7254_v63, %v7255_v62 }
  0x7f   :  { %v75_v22 = vmul.f32 %v7688_v1, %v62_v6  ;;  %14304 = vst [vmem:[#allocation21_spill] sm:$0xff] %v7793_v58 }
  0x80   :  { %v7269_v15 = vpop.permute.xlu1 %7268 }
  0x81   :  { %v7271_v17 = vunpack.i.h.bf16 %v7269_v15  ;;  %v7270_v18 = vunpack.i.l.bf16 %v7269_v15  ;;  %v93_v40 = vperm.slane %v75_v22, 0 }
  0x83   :  { %v7730_v28 = vpop.permute.xlu2 %7325  ;;  %v7258_v29 = vpop.permute.xlu0 %7257  ;;  %v114_v32 = vsel %vm112_vm0, %v7271_v17, %v7275_v54  ;;  %v115_v33 = vsel %vm112_vm0, %v7270_v18, %v7271_v17  ;;  %v116_v41 = vsel %vm112_vm0, %v7276_v53, %v7270_v18  ;;  %v7776_v53 = vperm.slane %v6587_v31, 1 }
  0x84   :  { %v7260_v38 = vunpack.i.h.bf16 %v7258_v29  ;;  %v7259_v39 = vunpack.i.l.bf16 %v7258_v29  ;;  %v130_v46 = vmul.f32 %v7703_v14, %v114_v32  ;;  %v129_v47 = vmul.f32 %v7701_v13, %v115_v33 }
  0x85   :  { %14302 = vst [vmem:[#allocation19_spill] sm:$0xff] %v7776_v53  ;;  %v7778_v54 = vperm.slane %v6587_v31, 2  ;;  %v128_v57 = vmul.f32 %v7699_v12, %v116_v41  ;;  %v97_v61 = vmul.f32 %v7763_v45, %v93_v40  ;;  %v101_v2 = vmul.f32 %v7761_v44, %v93_v40 }
  0x86   :  { %v61_v59 = vsel %vm59_vm1, %v7255_v62, %v7259_v39  ;;  %v63_v60 = vsel %vm59_vm1, %v7260_v38, %v7254_v63  ;;  %v60_v6 = vsel %vm59_vm1, %v7259_v39, %v7260_v38  ;;  %v149_v11 = vperm.slane %v130_v46, 0 }
  0x87   :  { %14303 = vst [vmem:[#allocation20_spill] sm:$0xff] %v7778_v54  ;;  %v148_v15 = vperm.slane %v129_v47, 0  ;;  %v13820_v63 = vunpack.i.h.bf16 %v7730_v28  ;;  %v13821_v22 = vunpack.i.l.bf16 %v7730_v28  ;;  %v74_v29 = vmul.f32 %v7705_v16, %v63_v60 }
  0x88   :  { %v7290_v51 = vpop.permute.xlu1 %7289  ;;  %v76_v31 = vmul.f32 %v7712_v20, %v61_v59  ;;  %v147_v32 = vperm.slane %v128_v57, 0  ;;  %v77_v33 = vmul.f32 %v7714_v21, %v60_v6  ;;  %v7804_v39 = vperm.slane %v7710_v19, 0 }
  0x89   :  { %v7292_v17 = vunpack.i.h.bf16 %v7290_v51  ;;  %v7291_v18 = vunpack.i.l.bf16 %v7290_v51  ;;  %v7807_v40 = vperm.slane %v7710_v19, 1  ;;  %v337_v41 = vsel %vm336_vm3, %v13821_v22, %v13820_v63 }
  0x8a   :  { %14305 = vst [vmem:[#allocation22_spill] sm:$0xff] %v7804_v39  ;;  %v153_v57 = vmul.f32 %v7692_v4, %v149_v11  ;;  %v157_v59 = vmul.f32 %v7690_v3, %v149_v11  ;;  %v152_v60 = vmul.f32 %v7692_v4, %v148_v15  ;;  %v156_v6 = vmul.f32 %v7690_v3, %v148_v15 }
  0x8b   :  { %v7285_v62 = vpop.permute.xlu0 %7284  ;;  %v7801_v38 = vpop.permute.xlu2 %7335  ;;  %14306 = vst [vmem:[#allocation23_spill] sm:$0xff] %v7807_v40  ;;  %v176_v46 = vsel %vm175_vm2, %v7291_v18, %v7292_v17  ;;  %v92_v0 = vperm.slane %v74_v29, 0  ;;  %v94_v8 = vperm.slane %v76_v31, 0  ;;  %v151_v63 = vmul.f32 %v7692_v4, %v147_v32 }
  0x8c   :  { %v7287_v47 = vunpack.i.h.bf16 %v7285_v62  ;;  %v7286_v51 = vunpack.i.l.bf16 %v7285_v62  ;;  %v155_v22 = vmul.f32 %v7690_v3, %v147_v32  ;;  %v95_v62 = vperm.slane %v77_v33, 0 }
  0x8d   :  { %v194_v55 = vmul.f32 %v7720_v24, %v176_v46  ;;  %v160_v7 = vadd.f32 %v152_v60, %v97_v61  ;;  %v7833_v9 = vadd.f32 %v156_v6, %v101_v2  ;;  %v7836_v3 = vmul.f32 %v7718_v23, %v337_v41 }
  0x8e   :  { %v177_v11 = vsel %vm175_vm2, %v7287_v47, %v7291_v18  ;;  %v178_v15 = vsel %vm175_vm2, %v7286_v51, %v7287_v47  ;;  %v179_v29 = vsel %vm175_vm2, %v7292_v17, %v7286_v51  ;;  %v96_v33 = vmul.f32 %v7763_v45, %v92_v0 }
  0x8f   :  { %v193_v4 = vmul.f32 %v7747_v35, %v177_v11  ;;  %v98_v18 = vmul.f32 %v7763_v45, %v94_v8  ;;  %v14307_v46 = vunpack.i.h.bf16 %v7801_v38  ;;  %v14308_v47 = vunpack.i.l.bf16 %v7801_v38 }
  0x90   :  { %v7305_v10 = vpop.permute.xlu1 %7304  ;;  %v100_v2 = vmul.f32 %v7761_v44, %v92_v0  ;;  %v213_v51 = vperm.slane %v194_v55, 0  ;;  %v191_v41 = vmul.f32 %v7722_v25, %v179_v29  ;;  %v192_v60 = vmul.f32 %v7745_v34, %v178_v15 }
  0x91   :  { %v7307_v31 = vunpack.i.h.bf16 %v7305_v10  ;;  %v402_v17 = vsel %vm399_vm4, %v14308_v47, %v14307_v46  ;;  %v7306_v61 = vunpack.i.l.bf16 %v7305_v10  ;;  %v99_v6 = vmul.f32 %v7763_v45, %v95_v62 }
  0x92   :  { %v102_v11 = vmul.f32 %v7761_v44, %v94_v8  ;;  %v103_v23 = vmul.f32 %v7761_v44, %v95_v62  ;;  %v7857_v10 = vmul.f32 %v7757_v42, %v402_v17  ;;  %v212_v0 = vperm.slane %v193_v4, 0 }
  0x93   :  { %v7300_v32 = vpop.permute.xlu0 %7299  ;;  %v239_v35 = vsel %vm238_vm5, %v7306_v61, %v7307_v31  ;;  %v7859_v55 = vpop.permute.xlu2 %7350  ;;  %v159_v46 = vadd.f32 %v151_v63, %v96_v33  ;;  %v161_v62 = vadd.f32 %v153_v57, %v98_v18  ;;  %v217_v47 = vmul.f32 %v7751_v37, %v213_v51 }
  0x94   :  { %v7302_v29 = vunpack.i.h.bf16 %v7300_v32  ;;  %v257_v15 = vmul.f32 %v7759_v43, %v239_v35  ;;  %v13836_v45 = vunpack.i.h.bf16 %v7859_v55  ;;  %v210_v25 = vperm.slane %v191_v41, 0 }
  0x95   :  { %v211_v24 = vperm.slane %v192_v60, 0  ;;  %v162_v17 = vadd.f32 %v7725_v26, %v99_v6  ;;  %v163_v42 = vadd.f32 %v155_v22, %v100_v2  ;;  %v165_v4 = vadd.f32 %v157_v59, %v102_v11 }
  0x96   :  { %v166_v34 = vadd.f32 %v7728_v27, %v103_v23  ;;  %v221_v63 = vmul.f32 %v7749_v36, %v213_v51  ;;  %v216_v33 = vmul.f32 %v7751_v37, %v212_v0  ;;  %v240_v8 = vsel %vm238_vm5, %v7302_v29, %v7306_v61 }
  0x97   :  { %v220_v57 = vmul.f32 %v7749_v36, %v212_v0  ;;  %v276_v18 = vperm.slane %v257_v15, 0  ;;  %v14309_v26 = vunpack.i.l.bf16 %v7859_v55  ;;  %v7301_v23 = vunpack.i.l.bf16 %v7300_v32 }
  0x98   :  { %v7321_v44 = vpop.permute.xlu1 %7320  ;;  %v225_v59 = vadd.f32 %v217_v47, %v162_v17  ;;  %v214_v2 = vmul.f32 %v7751_v37, %v210_v25  ;;  %v215_v51 = vmul.f32 %v7751_v37, %v211_v24  ;;  %v256_v41 = vmul.f32 %v7778_v54, %v240_v8 }
  0x99   :  { %v465_v22 = vsel %vm462_vm6, %v14309_v26, %v13836_v45  ;;  %v218_v61 = vmul.f32 %v7749_v36, %v210_v25  ;;  %v241_v60 = vsel %vm238_vm5, %v7301_v23, %v7302_v29  ;;  %v242_v6 = vsel %vm238_vm5, %v7307_v31, %v7301_v23 }
  0x9a   :  { %v7323_v11 = vunpack.i.h.bf16 %v7321_v44  ;;  %v219_v0 = vmul.f32 %v7749_v36, %v211_v24  ;;  %v7889_v32 = vmul.f32 %v7793_v58, %v465_v22  ;;  %v254_v15 = vmul.f32 %v7774_v52, %v242_v6 }
  0x9b   :  { %v7316_v27 = vpop.permute.xlu0 %7315  ;;  %v255_v37 = vmul.f32 %v7776_v53, %v241_v60  ;;  %v229_v47 = vadd.f32 %v221_v63, %v166_v34  ;;  %v224_v8 = vadd.f32 %v216_v33, %v161_v62  ;;  %v228_v17 = vadd.f32 %v220_v57, %v165_v4 }
  0x9c   :  { %v280_v25 = vmul.f32 %v7780_v56, %v276_v18  ;;  %v222_v29 = vadd.f32 %v214_v2, %v159_v46  ;;  %v223_v45 = vadd.f32 %v215_v51, %v160_v7  ;;  %v275_v35 = vperm.slane %v256_v41, 0  ;;  %v7907_v7 = vld [vmem:[%s13806_s2 + $0x20] ss:$8 sm:$0xf] }
  0x9d   :  { %v7322_v31 = vunpack.i.l.bf16 %v7321_v44  ;;  %v226_v23 = vadd.f32 %v218_v61, %v163_v42  ;;  %v273_v43 = vperm.slane %v254_v15, 0  ;;  %v274_v24 = vperm.slane %v255_v37, 0  ;;  %v7909_v42 = vpop.permute.xlu2 %7365 }
  0x9e   :  { %v14310_v36 = vunpack.i.l.bf16 %v7730_v28  ;;  %v227_v60 = vadd.f32 %v219_v0, %v7833_v9  ;;  %v284_v34 = vmul.f32 %v7772_v49, %v276_v18  ;;  %v7902_v4 = vperm.slane %v7710_v19, 3 }
  0x9f   :  { %v288_v46 = vadd.f32 %v280_v25, %v225_v59  ;;  %v13844_v44 = vunpack.i.h.bf16 %v7909_v42  ;;  %v13843_v9 = vunpack.i.l.bf16 %v7909_v42  ;;  %v283_v63 = vmul.f32 %v7772_v49, %v275_v35 }
  0xa0   :  { %v7331_v26 = vpop.permute.xlu1 %7330  ;;  %v338_v22 = vsel %vm336_vm3, %v7323_v11, %v14310_v36  ;;  %14311 = vst [vmem:[#allocation24_spill] sm:$0xff] %v7902_v4  ;;  %v339_v19 = vsel %vm336_vm3, %v7322_v31, %v7323_v11  ;;  %v14312_v57 = vunpack.i.h.bf16 %v7730_v28  ;;  %v277_v59 = vmul.f32 %v7780_v56, %v273_v43 }
  0xa1   :  { %v7916_v33 = vmul.f32 %v7807_v40, %v338_v22  ;;  %v282_v2 = vmul.f32 %v7772_v49, %v274_v24  ;;  %v7927_v51 = vperm.slane %v7907_v7, 0  ;;  %v14314_v41 = vperm.slane %v7612_v5, 2 }
  0xa2   :  { %v340_v18 = vsel %vm336_vm3, %v14312_v57, %v7322_v31  ;;  %v14315_v0 = vperm.slane %v7612_v5, 4  ;;  %v7318_v15 = vunpack.i.h.bf16 %v7316_v27  ;;  %v7317_v28 = vunpack.i.l.bf16 %v7316_v27 }
  0xa3   :  { %14313 = vst [vmem:[#allocation25_spill] sm:$0xff] %v7927_v51  ;;  %v309_v61 = vperm.slane %v14314_v41, 0  ;;  %v7931_v6 = vpop.permute.xlu0 %7340  ;;  %v14316_v37 = vperm.slane %v7612_v5, 0  ;;  %v292_v31 = vadd.f32 %v284_v34, %v229_v47  ;;  %v279_v36 = vmul.f32 %v7780_v56, %v275_v35 }
  0xa4   :  { %v310_v11 = vperm.slane %v14315_v0, 0  ;;  %v278_v22 = vmul.f32 %v7780_v56, %v274_v24  ;;  %v528_v57 = vsel %vm525_vm7, %v13843_v9, %v13844_v44  ;;  %v372_v41 = vperm.slane %v7916_v33, 0 }
  0xa5   :  { %v308_v25 = vperm.slane %v14316_v37, 0  ;;  %v352_v0 = vmul.f32 %v7804_v39, %v339_v19  ;;  %v355_v27 = vmul.f32 %v7902_v4, %v340_v18  ;;  %v14317_v37 = vperm.slane %v7612_v5, 6 }
  0xa6   :  { %v281_v35 = vmul.f32 %v7772_v49, %v273_v43  ;;  %v285_v34 = vadd.f32 %v277_v59, %v222_v29  ;;  %v290_v56 = vadd.f32 %v282_v2, %v227_v60  ;;  %v291_v24 = vadd.f32 %v283_v63, %v228_v17 }
  0xa7   :  { %v311_v47 = vperm.slane %v14317_v37, 0  ;;  %v7952_v58 = vmul.f32 %v7927_v51, %v528_v57  ;;  %v317_v40 = vmul.f32 %v7318_v15, %v309_v61  ;;  %v318_v9 = vmul.f32 %v7318_v15, %v310_v11 }
  0xa8   :  { %v7346_v62 = vpop.permute.xlu1 %7345  ;;  %v312_v44 = vmul.f32 %v7317_v28, %v308_v25  ;;  %v286_v33 = vadd.f32 %v278_v22, %v223_v45  ;;  %v287_v52 = vadd.f32 %v279_v36, %v224_v8  ;;  %v313_v19 = vmul.f32 %v7317_v28, %v309_v61 }
  0xa9   :  { %v314_v39 = vmul.f32 %v7317_v28, %v310_v11  ;;  %v371_v18 = vperm.slane %v352_v0, 0  ;;  %v374_v4 = vperm.slane %v355_v27, 0  ;;  %v319_v5 = vmul.f32 %v7318_v15, %v311_v47 }
  0xaa   :  { %v315_v37 = vmul.f32 %v7317_v28, %v311_v47  ;;  %v289_v53 = vadd.f32 %v281_v35, %v226_v23  ;;  %v316_v43 = vmul.f32 %v7318_v15, %v308_v25  ;;  %v7333_v49 = vunpack.i.h.bf16 %v7331_v26 }
  0xab   :  { %v7332_v29 = vunpack.i.l.bf16 %v7331_v26  ;;  %v560_v17 = vperm.slane %v7952_v58, 0  ;;  %v320_v60 = vadd.f32 %v312_v44, %v285_v34  ;;  %v325_v63 = vadd.f32 %v317_v40, %v290_v56  ;;  %v7356_v61 = vpop.permute.xlu0 %7355 }
  0xac   :  { %v326_v59 = vadd.f32 %v318_v9, %v291_v24  ;;  %v321_v2 = vadd.f32 %v313_v19, %v286_v33  ;;  %v322_v57 = vadd.f32 %v314_v39, %v287_v52  ;;  %v7956_v45 = vperm.slane %v7736_v30, 1 }
  0xad   :  { %v7959_v8 = vperm.slane %v7736_v30, 2  ;;  %v323_v11 = vadd.f32 %v315_v37, %v288_v46  ;;  %v7961_v28 = vadd.f32 %v319_v5, %v292_v31  ;;  %v7343_v23 = vunpack.i.h.bf16 %v7931_v6 }
  0xae   :  { %14318 = vst [vmem:[#allocation26_spill] sm:$0xff] %v7956_v45  ;;  %v7342_v26 = vunpack.i.l.bf16 %v7931_v6  ;;  %v324_v15 = vadd.f32 %v316_v43, %v289_v53  ;;  %v14320_v40 = vperm.slane %v7836_v3, 0  ;;  %v375_v9 = vmul.f32 %v7332_v29, %v371_v18 }
  0xaf   :  { %14319 = vst [vmem:[#allocation27_spill] sm:$0xff] %v7959_v8  ;;  %v376_v52 = vmul.f32 %v7332_v29, %v372_v41  ;;  %v14322_v46 = vunpack.i.h.bf16 %v7801_v38  ;;  %v7975_v22 = vunpack.i.h.bf16 %v7346_v62  ;;  %v378_v6 = vmul.f32 %v7332_v29, %v374_v4 }
  0xb0   :  { %v381_v44 = vmul.f32 %v7333_v49, %v14320_v40  ;;  %v14321_v39 = vmov %v14320_v40  ;;  %v400_v36 = vsel %vm399_vm4, %v7342_v26, %v7343_v23  ;;  %v379_v53 = vmul.f32 %v7333_v49, %v371_v18  ;;  %v7361_v47 = vpop.permute.xlu1 %7360 }
  0xb1   :  { %v377_v25 = vmul.f32 %v7332_v29, %v14321_v39  ;;  %v401_v31 = vsel %vm399_vm4, %v14322_v46, %v7342_v26  ;;  %v417_v27 = vmul.f32 %v7959_v8, %v400_v36  ;;  %v7980_v3 = vperm.slane %v7736_v30, 3 }
  0xb2   :  { %v416_v0 = vmul.f32 %v7956_v45, %v401_v31  ;;  %v7982_v35 = vunpack.i.l.bf16 %v7346_v62  ;;  %v7358_v34 = vunpack.i.h.bf16 %v7356_v61  ;;  %v7357_v56 = vunpack.i.l.bf16 %v7356_v61 }
  0xb3   :  { %14323 = vst [vmem:[#allocation28_spill] sm:$0xff] %v7980_v3  ;;  %v380_v24 = vmul.f32 %v7333_v49, %v372_v41  ;;  %v7984_v33 = vmul.f32 %v7333_v49, %v374_v4  ;;  %v14324_v19 = vunpack.i.l.bf16 %v7801_v38  ;;  %v7991_v5 = vperm.slane %v7770_v48, 1 }
  0xb4   :  { %v383_v37 = vadd.f32 %v375_v9, %v320_v60  ;;  %v435_v43 = vperm.slane %v416_v0, 0  ;;  %v14326_v30 = vperm.slane %v7857_v10, 0  ;;  %v14327_v29 = vunpack.i.h.bf16 %v7859_v55 }
  0xb5   :  { %v403_v18 = vsel %vm399_vm4, %v7343_v23, %v14324_v19  ;;  %14325 = vst [vmem:[#allocation29_spill] sm:$0xff] %v7991_v5  ;;  %v384_v41 = vadd.f32 %v376_v52, %v321_v2  ;;  %v389_v49 = vadd.f32 %v381_v44, %v326_v59  ;;  %v436_v38 = vperm.slane %v417_v27, 0  ;;  %v7371_v44 = vpop.permute.xlu0 %7370 }
  0xb6   :  { %v442_v62 = vmul.f32 %v7975_v22, %v14326_v30  ;;  %v464_v4 = vsel %vm462_vm6, %v14327_v29, %v7357_v56  ;;  %v8001_v61 = vperm.slane %v7770_v48, 2  ;;  %v387_v23 = vadd.f32 %v379_v53, %v324_v15 }
  0xb7   :  { %v8004_v26 = vmul.f32 %v7980_v3, %v403_v18  ;;  %v14329_v60 = vmov %v14326_v30  ;;  %v463_v9 = vsel %vm462_vm6, %v7357_v56, %v7358_v34  ;;  %v385_v39 = vadd.f32 %v377_v25, %v322_v57 }
  0xb8   :  { %14328 = vst [vmem:[#allocation30_spill] sm:$0xff] %v8001_v61  ;;  %v438_v40 = vmul.f32 %v7982_v35, %v14329_v60  ;;  %v8011_v36 = vadd.f32 %v378_v6, %v323_v11  ;;  %v479_v59 = vmul.f32 %v7991_v5, %v464_v4  ;;  %v8014_v2 = vunpack.i.h.bf16 %v7361_v47  ;;  %v7376_v18 = vpop.permute.xlu1 %7375 }
  0xb9   :  { %v388_v52 = vadd.f32 %v380_v24, %v325_v63  ;;  %v439_v15 = vmul.f32 %v7982_v35, %v435_v43  ;;  %v450_v46 = vadd.f32 %v442_v62, %v387_v23  ;;  %v8018_v31 = vperm.slane %v7770_v48, 3 }
  0xba   :  { %v440_v10 = vmul.f32 %v7982_v35, %v436_v38  ;;  %v443_v53 = vmul.f32 %v7975_v22, %v435_v43  ;;  %v14331_v57 = vunpack.i.l.bf16 %v7859_v55  ;;  %v480_v25 = vmul.f32 %v8001_v61, %v463_v9 }
  0xbb   :  { %14330 = vst [vmem:[#allocation31_spill] sm:$0xff] %v8018_v31  ;;  %v437_v6 = vperm.slane %v8004_v26, 0  ;;  %v446_v63 = vadd.f32 %v438_v40, %v383_v37  ;;  %v7362_v0 = vunpack.i.l.bf16 %v7361_v47  ;;  %v7373_v27 = vunpack.i.h.bf16 %v7371_v44 }
  0xbc   :  { %v466_v11 = vsel %vm462_vm6, %v7358_v34, %v14331_v57  ;;  %v498_v56 = vperm.slane %v479_v59, 0  ;;  %v14332_v48 = vperm.slane %v7889_v32, 0  ;;  %v8032_v19 = vperm.slane %v7907_v7, 1 }
  0xbd   :  { %v8035_v55 = vperm.slane %v7907_v7, 2  ;;  %v444_v34 = vmul.f32 %v7975_v22, %v436_v38  ;;  %v447_v43 = vadd.f32 %v439_v15, %v384_v41  ;;  %v481_v30 = vmul.f32 %v8018_v31, %v466_v11 }
  0xbe   :  { %v505_v24 = vmul.f32 %v8014_v2, %v14332_v48  ;;  %14333 = vst [vmem:[#allocation32_spill] sm:$0xff] %v8032_v19  ;;  %v7372_v37 = vunpack.i.l.bf16 %v7371_v44  ;;  %v448_v47 = vadd.f32 %v440_v10, %v385_v39  ;;  %v451_v62 = vadd.f32 %v443_v53, %v388_v52 }
  0xbf   :  { %14334 = vst [vmem:[#allocation33_spill] sm:$0xff] %v8035_v55  ;;  %v499_v29 = vperm.slane %v480_v25, 0  ;;  %v8040_v4 = vperm.slane %v7907_v7, 3  ;;  %v14336_v23 = vmov %v14332_v48  ;;  %v14337_v40 = vunpack.i.h.bf16 %v7909_v42 }
  0xc0   :  { %v501_v26 = vmul.f32 %v7362_v0, %v14336_v23  ;;  %v526_v60 = vsel %vm525_vm7, %v7372_v37, %v7373_v27  ;;  %v7378_v38 = vunpack.i.h.bf16 %v7376_v18  ;;  %v502_v9 = vmul.f32 %v7362_v0, %v498_v56 }
  0xc1   :  { %14335 = vst [vmem:[#allocation34_spill] sm:$0xff] %v8040_v4  ;;  %v527_v41 = vsel %vm525_vm7, %v14337_v40, %v7372_v37  ;;  %v543_v59 = vmul.f32 %v8035_v55, %v526_v60  ;;  %v7377_v44 = vunpack.i.l.bf16 %v7376_v18  ;;  %v452_v7 = vadd.f32 %v444_v34, %v389_v49 }
  0xc2   :  { %v542_v39 = vmul.f32 %v8032_v19, %v527_v41  ;;  %v14338_v52 = vunpack.i.l.bf16 %v7909_v42  ;;  %v568_v15 = vmul.f32 %v7378_v38, %v560_v17  ;;  %v513_v10 = vadd.f32 %v505_v24, %v450_v46  ;;  %v590_v41 = vpop.permute.xlu0 %589 }
  0xc3   :  { %v507_v53 = vmul.f32 %v8014_v2, %v499_v29  ;;  %v562_v11 = vperm.slane %v543_v59, 0  ;;  %v564_v25 = vmul.f32 %v7377_v44, %v560_v17  ;;  %v503_v48 = vmul.f32 %v7362_v0, %v499_v29 }
  0xc4   :  { %v529_v32 = vsel %vm525_vm7, %v7373_v27, %v14338_v52  ;;  %v561_v57 = vperm.slane %v542_v39, 0  ;;  %v506_v18 = vmul.f32 %v8014_v2, %v498_v56  ;;  %v509_v49 = vadd.f32 %v501_v26, %v446_v63  ;;  %v585_v39 = vpop.permute.xlu2 %584 }
  0xc5   :  { %v576_v34 = vadd.f32 %v568_v15, %v513_v10  ;;  %v510_v42 = vadd.f32 %v502_v9, %v447_v43  ;;  %v544_v37 = vmul.f32 %v8040_v4, %v529_v32  ;;  %v570_v23 = vmul.f32 %v7378_v38, %v562_v11 }
  0xc6   :  { %v565_v27 = vmul.f32 %v7377_v44, %v561_v57  ;;  %v500_v60 = vperm.slane %v481_v30, 0  ;;  %v566_v40 = vmul.f32 %v7377_v44, %v562_v11  ;;  %v569_v46 = vmul.f32 %v7378_v38, %v561_v57 }
  0xc7   :  { %v572_v24 = vadd.f32 %v564_v25, %v509_v49  ;;  %v441_v59 = vmul.f32 %v7982_v35, %v437_v6  ;;  %v515_v17 = vadd.f32 %v507_v53, %v452_v7  ;;  %v596_v29 = vadd.f32 %v590_v41, %v576_v34 }
  0xc8   :  { %v573_v58 = vadd.f32 %v565_v27, %v510_v42  ;;  %v445_v56 = vmul.f32 %v7975_v22, %v437_v6  ;;  %v511_v63 = vadd.f32 %v503_v48, %v448_v47  ;;  %v514_v43 = vadd.f32 %v506_v18, %v451_v62 }
  0xc9   :  { %v592_v26 = vadd.f32 %v585_v39, %v572_v24  ;;  %v390_v9 = vadd.f32 %v7984_v33, %v7961_v28  ;;  %v563_v52 = vperm.slane %v544_v37, 0  ;;  %v578_v32 = vadd.f32 %v570_v23, %v515_v17 }
  0xca   :  { %v593_v30 = vadd.f32 %v585_v39, %v573_v58  ;;  %v504_v15 = vmul.f32 %v7362_v0, %v500_v60  ;;  %v574_v10 = vadd.f32 %v566_v40, %v511_v63  ;;  %v577_v11 = vadd.f32 %v569_v46, %v514_v43 }
  0xcb   :  { %v608_v57 = vmul.f32 0.2, %v592_v26  ;;  %vm600_vm8 = vcmp.ge.f32.partialorder %v592_v26, 0.0  ;;  %vm604_vm10 = vcmp.ge.f32.partialorder %v596_v29, 0.0  ;;  %v449_v7 = vadd.f32 %v441_v59, %v8011_v36 }
  0xcc   :  { %vm601_vm9 = vcmp.ge.f32.partialorder %v593_v30, 0.0  ;;  %v609_v35 = vmul.f32 0.2, %v593_v30  ;;  %v453_v22 = vadd.f32 %v445_v56, %v390_v9  ;;  %v508_v6 = vmul.f32 %v8014_v2, %v500_v60 }
  0xcd   :  { %v612_v47 = vmul.f32 0.2, %v596_v29  ;;  %v567_v62 = vmul.f32 %v7377_v44, %v563_v52  ;;  %v571_v53 = vmul.f32 %v7378_v38, %v563_v52  ;;  %v598_v28 = vadd.f32 %v590_v41, %v578_v32 }
  0xce   :  { %v8069_v33 = vsel %vm601_vm9, %v593_v30, %v609_v35  ;;  %v594_v25 = vadd.f32 %v585_v39, %v574_v10  ;;  %v597_v0 = vadd.f32 %v590_v41, %v577_v11  ;;  %v8076_v18 = vsel %vm600_vm8, %v592_v26, %v608_v57 }
  0xcf   :  { %v8071_v48 = vsel %vm604_vm10, %v596_v29, %v612_v47  ;;  %628 = vrot.lane.b32.xlu0 %v8069_v33, %s7537_s19  ;;  %v512_v36 = vadd.f32 %v504_v15, %v449_v7  ;;  %624 = vrot.lane.b32.xlu1 %v8076_v18, %s7537_s19  ;;  %v516_v2 = vadd.f32 %v508_v6, %v453_v22  ;;  %v614_v44 = vmul.f32 0.2, %v598_v28 }
  0xd0   :  { %626 = vrot.lane.b32.xlu2 %v8071_v48, %s7537_s19  ;;  %v610_v49 = vmul.f32 0.2, %v594_v25  ;;  %vm606_vm11 = vcmp.ge.f32.partialorder %v598_v28, 0.0  ;;  %v613_v42 = vmul.f32 0.2, %v597_v0  ;;  %vm602_vm12 = vcmp.ge.f32.partialorder %v594_v25, 0.0 }
  0xd1   :  { %v575_v38 = vadd.f32 %v567_v62, %v512_v36  ;;  %v579_v34 = vadd.f32 %v571_v53, %v516_v2  ;;  %vm605_vm13 = vcmp.ge.f32.partialorder %v597_v0, 0.0  ;;  %v8082_v37 = vsel %vm606_vm11, %v598_v28, %v614_v44  ;;  %v8228_v36 = vld [vmem:[%s13807_s4 + $0x10] sm:$0xff] }
  0xd2   :  { %v8084_v60 = vsel %vm605_vm13, %v597_v0, %v613_v42  ;;  %v8088_v40 = vsel %vm602_vm12, %v594_v25, %v610_v49  ;;  %v7544_v15 = vmov 1   ;;  %vm715_vm8 = vcmask 130048  }
  0xd3   :  { %v595_v27 = vadd.f32 %v585_v39, %v575_v38  ;;  %v599_v23 = vadd.f32 %v590_v41, %v579_v34  ;;  %7379 = vset.pattern.permute.xlu2 %v7544_v15  ;;  %7380 = vset.pattern.permute.xlu0 %v7544_v15 }
  0xd4   :  { %7381 = vset.pattern.permute.xlu1 %v7544_v15 }
  0xd5   :  { %v611_v46 = vmul.f32 0.2, %v595_v27  ;;  %v615_v24 = vmul.f32 0.2, %v599_v23  ;;  %vm603_vm14 = vcmp.ge.f32.partialorder %v595_v27, 0.0  ;;  %vm607_vm15 = vcmp.ge.f32.partialorder %v599_v23, 0.0 }
  0xd7   :  { %634 = vrot.lane.b32.xlu0 %v8082_v37, %s7537_s19  ;;  %630 = vrot.lane.b32.xlu1 %v8084_v60, %s7537_s19  ;;  %v8094_v59 = vsel %vm607_vm15, %v599_v23, %v615_v24  ;;  %v8098_v41 = vsel %vm603_vm14, %v595_v27, %v611_v46 }
  0xd8   :  { %632 = vrot.lane.b32.xlu2 %v8088_v40, %s7537_s19 }
  0xdf   :  { %664 = vrot.lane.b32.xlu0 %v8076_v18, %s7536_s0  ;;  %636 = vrot.lane.b32.xlu1 %v8098_v41, %s7537_s19 }
  0xe0   :  { %638 = vrot.lane.b32.xlu2 %v8094_v59, %s7537_s19 }
  0xe7   :  { %670 = vrot.lane.b32.xlu0 %v8084_v60, %s7536_s0  ;;  %666 = vrot.lane.b32.xlu1 %v8071_v48, %s7536_s0 }
  0xe8   :  { %668 = vrot.lane.b32.xlu2 %v8069_v33, %s7536_s0 }
  0xef   :  { %676 = vrot.lane.b32.xlu0 %v8098_v41, %s7536_s0  ;;  %672 = vrot.lane.b32.xlu1 %v8088_v40, %s7536_s0 }
  0xf0   :  { %674 = vrot.lane.b32.xlu2 %v8082_v37, %s7536_s0 }
  0xf7   :  { %892 = vrot.lane.b32.xlu0 %v8071_v48, %s7538_s24  ;;  %678 = vrot.lane.b32.xlu1 %v8094_v59, %s7536_s0 }
  0xf8   :  { %890 = vrot.lane.b32.xlu2 %v8076_v18, %s7538_s24 }
  0xff   :  { %898 = vrot.lane.b32.xlu0 %v8088_v40, %s7538_s24  ;;  %894 = vrot.lane.b32.xlu1 %v8069_v33, %s7538_s24 }
 0x100   :  { %896 = vrot.lane.b32.xlu2 %v8084_v60, %s7538_s24 }
 0x107   :  { %904 = vrot.lane.b32.xlu0 %v8094_v59, %s7538_s24  ;;  %900 = vrot.lane.b32.xlu1 %v8082_v37, %s7538_s24 }
 0x108   :  { %902 = vrot.lane.b32.xlu2 %v8098_v41, %s7538_s24 }
 0x10f   :  { %1043 = vrot.lane.b32.xlu0 %v8069_v33, %s7539_s25  ;;  %1039 = vrot.lane.b32.xlu1 %v8076_v18, %s7539_s25 }
 0x110   :  { %1041 = vrot.lane.b32.xlu2 %v8071_v48, %s7539_s25 }
 0x117   :  { %1049 = vrot.lane.b32.xlu0 %v8082_v37, %s7539_s25  ;;  %1045 = vrot.lane.b32.xlu1 %v8084_v60, %s7539_s25 }
 0x118   :  { %1047 = vrot.lane.b32.xlu2 %v8088_v40, %s7539_s25 }
 0x11f   :  { %1305 = vrot.lane.b32.xlu0 %v8076_v18, %s7540_s30  ;;  %1051 = vrot.lane.b32.xlu1 %v8098_v41, %s7539_s25 }
 0x120   :  { %1053 = vrot.lane.b32.xlu2 %v8094_v59, %s7539_s25 }
 0x127   :  { %1311 = vrot.lane.b32.xlu0 %v8084_v60, %s7540_s30  ;;  %1307 = vrot.lane.b32.xlu1 %v8071_v48, %s7540_s30 }
 0x128   :  { %1309 = vrot.lane.b32.xlu2 %v8069_v33, %s7540_s30 }
 0x12a   :  { %v8158_v39 = vpop.permute.xlu2 %626 }
 0x12f   :  { %1317 = vrot.lane.b32.xlu0 %v8098_v41, %s7540_s30  ;;  %1313 = vrot.lane.b32.xlu1 %v8088_v40, %s7540_s30 }
 0x130   :  { %1315 = vrot.lane.b32.xlu2 %v8082_v37, %s7540_s30 }
 0x132   :  { %v8166_v58 = vpop.permute.xlu2 %632 }
 0x137   :  { %1456 = vrot.lane.b32.xlu0 %v8071_v48, %s7541_s13  ;;  %1319 = vrot.lane.b32.xlu1 %v8094_v59, %s7540_s30 }
 0x138   :  { %1454 = vrot.lane.b32.xlu2 %v8076_v18, %s7541_s13 }
 0x13a   :  { %v8174_v17 = vpop.permute.xlu2 %638 }
 0x13f   :  { %1462 = vrot.lane.b32.xlu0 %v8088_v40, %s7541_s13  ;;  %1458 = vrot.lane.b32.xlu1 %v8069_v33, %s7541_s13 }
 0x140   :  { %1460 = vrot.lane.b32.xlu2 %v8084_v60, %s7541_s13 }
 0x141   :  { %v629_v29 = vpop.permute.xlu0 %628  ;;  %v625_v63 = vpop.permute.xlu1 %624 }
 0x142   :  { %v669_v56 = vpop.permute.xlu2 %668  ;;  %v644_v22 = vsel %vm59_vm1, %v625_v63, %v629_v29  ;;  %v642_v42 = vsel %vm59_vm1, %v629_v29, %v8166_v58 }
 0x143   :  { %v649_v25 = vmul.f32 %v644_v22, %v7688_v1  ;;  %v650_v15 = vmul.f32 %v642_v42, %v7712_v20 }
 0x147   :  { %1468 = vrot.lane.b32.xlu0 %v8094_v59, %s7541_s13  ;;  %1464 = vrot.lane.b32.xlu1 %v8082_v37, %s7541_s13 }
 0x148   :  { %1466 = vrot.lane.b32.xlu2 %v8098_v41, %s7541_s13 }
 0x149   :  { %v635_v26 = vpop.permute.xlu0 %634  ;;  %v631_v9 = vpop.permute.xlu1 %630 }
 0x14a   :  { %v8188_v43 = vpop.permute.xlu2 %674  ;;  %v645_v10 = vsel %vm59_vm1, %v8158_v39, %v631_v9  ;;  %v643_v2 = vsel %vm59_vm1, %v631_v9, %v635_v26 }
 0x14b   :  { %v653_v53 = vmul.f32 %v645_v10, %v7688_v1  ;;  %v654_v24 = vmul.f32 %v643_v2, %v7712_v20 }
 0x14d   :  { %v661_v0 = vpack.c.bf16 %v653_v53, %v649_v25  ;;  %v662_v10 = vpack.c.bf16 %v654_v24, %v650_v15 }
 0x14f   :  { %1607 = vrot.lane.b32.xlu0 %v8069_v33, %s7542_s16  ;;  %1603 = vrot.lane.b32.xlu1 %v8076_v18, %s7542_s16 }
 0x150   :  { %1605 = vrot.lane.b32.xlu2 %v8071_v48, %s7542_s16 }
 0x151   :  { %v665_v52 = vpop.permute.xlu0 %664  ;;  %v637_v32 = vpop.permute.xlu1 %636 }
 0x152   :  { %v8196_v30 = vpop.permute.xlu2 %890  ;;  %v684_v11 = vsel %vm112_vm0, %v665_v52, %v669_v56  ;;  %v640_v29 = vsel %vm59_vm1, %v8166_v58, %v637_v32  ;;  %v647_v58 = vsel %vm59_vm1, %v8174_v17, %v8158_v39 }
 0x153   :  { %v689_v47 = vmul.f32 %v684_v11, %v7701_v13  ;;  %v651_v53 = vmul.f32 %v640_v29, %v7714_v21  ;;  %v652_v2 = vmul.f32 %v647_v58, %v7705_v16  ;;  %v7186_v58 = vld [vmem:[%s13808_s5] sm:$0xff]  }
 0x157   :  { %1613 = vrot.lane.b32.xlu0 %v8082_v37, %s7542_s16  ;;  %1609 = vrot.lane.b32.xlu1 %v8084_v60, %s7542_s16 }
 0x158   :  { %1611 = vrot.lane.b32.xlu2 %v8088_v40, %s7542_s16 }
 0x159   :  { %v671_v57 = vpop.permute.xlu0 %670  ;;  %v667_v7 = vpop.permute.xlu1 %666 }
 0x15a   :  { %v8209_v35 = vpop.permute.xlu2 %896  ;;  %v685_v6 = vsel %vm112_vm0, %v667_v7, %v671_v57  ;;  %v683_v44 = vsel %vm112_vm0, %v671_v57, %v8188_v43 }
 0x15b   :  { %v693_v62 = vmul.f32 %v685_v6, %v7701_v13  ;;  %v694_v46 = vmul.f32 %v683_v44, %v7703_v14 }
 0x15d   :  { %v702_v28 = vpack.c.bf16 %v693_v62, %v689_v47 }
 0x15f   :  { %1752 = vrot.lane.b32.xlu0 %v8076_v18, %s7543_s20  ;;  %1615 = vrot.lane.b32.xlu1 %v8098_v41, %s7542_s16 }
 0x160   :  { %1617 = vrot.lane.b32.xlu2 %v8094_v59, %s7542_s16  ;;  %748 = vmatpush.bf16.msra.mxu1 %v702_v28 }
 0x161   :  { %v677_v38 = vpop.permute.xlu0 %676  ;;  %v673_v34 = vpop.permute.xlu1 %672 }
 0x162   :  { %v8235_v49 = vpop.permute.xlu2 %902  ;;  %v682_v27 = vsel %vm112_vm0, %v669_v56, %v673_v34  ;;  %v646_v56 = vsel %vm59_vm1, %v637_v32, %v625_v63  ;;  %v686_v11 = vsel %vm112_vm0, %v677_v38, %v665_v52  ;;  %v680_v22 = vsel %vm112_vm0, %v673_v34, %v677_v38  ;;  %v8296_v34 = vld [vmem:[%s13807_s4 + $0x18] sm:$0xff] }
 0x163   :  { %6618 = vmatmul.msk.bf16.vlgmr.msra.gmra.mxu1 %vm715_vm8, %v8228_v36  ;;  %v690_v23 = vmul.f32 %v682_v27, %v7703_v14  ;;  %v641_v63 = vsel %vm59_vm1, %v635_v26, %v8174_v17  ;;  %v648_v62 = vmul.f32 %v646_v56, %v7705_v16  ;;  %v688_v39 = vmul.f32 %v686_v11, %v7699_v12  ;;  %v14339_v26 = vld [vmem:[#allocation3_spill] sm:$0xff] }
 0x164   :  { %840 = vmatpush.bf16.msrb.mxu1 %v661_v0  ;;  %v691_v28 = vmul.f32 %v680_v22, %v14339_v26  ;;  %v1902_v56 = vld [vmem:[%s13805_s9 + $0x8] sm:$0xff]  ;;  %v912_v22 = vsel %vm175_vm2, %v8235_v49, %v8196_v30 }
 0x165   :  { %v703_v9 = vpack.c.bf16 %v694_v46, %v690_v23  ;;  %v660_v38 = vpack.c.bf16 %v652_v2, %v648_v62  ;;  %v14342_v2 = vld [vmem:[#allocation12_spill] sm:$0xff] }
 0x167   :  { %1758 = vrot.lane.b32.xlu0 %v8084_v60, %s7543_s20  ;;  %1754 = vrot.lane.b32.xlu1 %v8071_v48, %s7543_s20 }
 0x168   :  { %1756 = vrot.lane.b32.xlu2 %v8069_v33, %s7543_s20  ;;  %767 = vmatpush.bf16.msra.mxu2 %v703_v9  ;;  %v14340_v9 = vld [vmem:[#allocation14_spill] sm:$0xff] }
 0x169   :  { %v893_v57 = vpop.permute.xlu0 %892  ;;  %v679_v6 = vpop.permute.xlu1 %678 }
 0x16a   :  { %v8270_v32 = vpop.permute.xlu2 %1041  ;;  %v687_v47 = vsel %vm112_vm0, %v679_v6, %v667_v7  ;;  %v681_v52 = vsel %vm112_vm0, %v8188_v43, %v679_v6  ;;  %v655_v43 = vmul.f32 %v641_v63, %v7714_v21  ;;  %v911_v42 = vsel %vm175_vm2, %v893_v57, %v8209_v35 }
 0x16b   :  { %6620 = vmatmul.msk.bf16.vlgmr.msra.gmra.mxu2 %vm715_vm8, %v8228_v36  ;;  %v692_v17 = vmul.f32 %v687_v47, %v7699_v12  ;;  %v695_v25 = vmul.f32 %v681_v52, %v14339_v26  ;;  %v919_v15 = vmul.f32 %v911_v42, %v14340_v9  ;;  %v14341_v47 = vld [vmem:[#allocation13_spill] sm:$0xff] }
 0x16c   :  { %859 = vmatpush.bf16.msrb.mxu2 %v662_v10  ;;  %v663_v44 = vpack.c.bf16 %v655_v43, %v651_v53  ;;  %v1901_v10 = vld [vmem:[%s13805_s9] sm:$0xff]  ;;  %v914_v52 = vmul.f32 %v912_v22, %v14341_v47 }
 0x16d   :  { %v701_v7 = vpack.c.bf16 %v692_v17, %v688_v39  ;;  %v704_v0 = vpack.c.bf16 %v695_v25, %v691_v28  ;;  %v7187_v17 = vunpack.c.l.bf16 %v7186_v58  ;;  %v7188_v28 = vunpack.c.h.bf16 %v7186_v58 }
 0x16f   :  { %1764 = vrot.lane.b32.xlu0 %v8098_v41, %s7543_s20  ;;  %1760 = vrot.lane.b32.xlu1 %v8088_v40, %s7543_s20 }
 0x170   :  { %1762 = vrot.lane.b32.xlu2 %v8082_v37, %s7543_s20  ;;  %729 = vmatpush.bf16.msra.mxu0 %v701_v7 }
 0x171   :  { %786 = vmatpush.bf16.msra.mxu3 %v704_v0  ;;  %v899_v27 = vpop.permute.xlu0 %898  ;;  %v895_v46 = vpop.permute.xlu1 %894 }
 0x172   :  { %v8301_v23 = vpop.permute.xlu2 %1047  ;;  %v910_v24 = vsel %vm175_vm2, %v8196_v30, %v895_v46  ;;  %v906_v63 = vsel %vm175_vm2, %v899_v27, %v8235_v49  ;;  %v908_v30 = vsel %vm175_vm2, %v895_v46, %v899_v27  ;;  %v1904_v46 = vld [vmem:[%s13805_s9 + $0x18] sm:$0xff] }
 0x173   :  { %v915_v29 = vmul.f32 %v910_v24, %v14340_v9  ;;  %6616 = vmatmul.msk.bf16.vlgmr.msra.gmra.mxu0 %vm715_vm8, %v8228_v36  ;;  %6619 = vmatmul.msk.bf16.gmra.mxu1 %vm715_vm8, %v8296_v34  ;;  %v917_v43 = vmul.f32 %v906_v63, %v14342_v2 }
 0x174   :  { %821 = vmatpush.bf16.msrb.mxu0 %v660_v38  ;;  %6622 = vmatmul.msk.bf16.vlgmr.msra.gmra.mxu3 %vm715_vm8, %v8228_v36  ;;  %v38_v36 = vld [vmem:[%s13809_s1] sm:$0xf]  ;;  %v14343_v38 = vld [vmem:[#allocation15_spill] sm:$0xff] }
 0x175   :  { %878 = vmatpush.bf16.msrb.mxu3 %v663_v44  ;;  %v928_v11 = vpack.c.bf16 %v919_v15, %v915_v29  ;;  %v8348_v0 = vunpack.c.l.bf16 %v38_v36  ;;  %v916_v44 = vmul.f32 %v908_v30, %v14343_v38  ;;  %v7393_v29 = vpack.i.bf16 %v7188_v28, %v7187_v17 }
 0x177   :  { %1912 = vperm.xlu0 %7380, %v1902_v56   ;;  %1766 = vrot.lane.b32.xlu1 %v8094_v59, %s7543_s20  ;;  %v14344_v56 = vmov 0   ;;  %v13853_v22 = vperm.slane %v8348_v0, 6  ;;  %v13856_v58 = vperm.slane %v8348_v0, 0  ;;  %v13855_v36 = vperm.slane %v8348_v0, 2 }
 0x178   :  { %1907 = vperm.xlu2 %7379, %v1901_v10   ;;  %973 = vmatpush.bf16.msra.mxu1 %v928_v11  ;;  %v7104_v10 = vld [vmem:[%s13807_s4] sm:$0xff]  ;;  %v13854_v11 = vperm.slane %v8348_v0, 4 }
 0x179   :  { %v905_v6 = vpop.permute.xlu0 %904  ;;  %v901_v39 = vpop.permute.xlu1 %900 }
 0x17a   :  { %v8338_v62 = vpop.permute.xlu2 %1053  ;;  %v913_v53 = vsel %vm175_vm2, %v905_v6, %v893_v57  ;;  %v907_v49 = vsel %vm175_vm2, %v901_v39, %v905_v6  ;;  %v909_v7 = vsel %vm175_vm2, %v8209_v35, %v901_v39  ;;  %v1903_v35 = vld [vmem:[%s13805_s9 + $0x10] sm:$0xff] }
 0x17b   :  { %v918_v25 = vmul.f32 %v913_v53, %v14341_v47  ;;  %v920_v57 = vmul.f32 %v909_v7, %v14343_v38  ;;  %v921_v42 = vmul.f32 %v907_v49, %v14342_v2  ;;  %6621 = vmatmul.msk.bf16.gmra.mxu2 %vm715_vm8, %v8296_v34  ;;  %v8385_v53 = vpack.i.bf16 %v13855_v36, %v13856_v58 }
 0x17d   :  { %v927_v27 = vpack.c.bf16 %v918_v25, %v914_v52  ;;  %v929_v24 = vpack.c.bf16 %v920_v57, %v916_v44  ;;  %v930_v15 = vpack.c.bf16 %v921_v42, %v917_v43  ;;  %v8379_v52 = vpack.i.bf16 %v13853_v22, %v13854_v11  ;;  %v14345_v44 = vld [vmem:[#allocation19_spill] sm:$0xff] }
 0x17f   :  { %7392 = vset.pattern.permute.xlu0 %v14344_v56  ;;  %954 = vmatpush.bf16.msra.mxu0 %v927_v27 }
 0x180   :  { %1922 = vperm.xlu2 %7379, %v1904_v46   ;;  %1917 = vperm.xlu1 %7381, %v1903_v35   ;;  %v7229_v46 = vld [vmem:[%s13808_s5 + $0x8] sm:$0xff]  }
 0x181   :  { %992 = vmatpush.bf16.msra.mxu2 %v929_v24  ;;  %1011 = vmatpush.bf16.msra.mxu3 %v930_v15  ;;  %v1044_v63 = vpop.permute.xlu0 %1043  ;;  %v1040_v6 = vpop.permute.xlu1 %1039  ;;  %v7191_v15 = vunpack.c.l.bf16 %v7229_v46 }
 0x182   :  { %7394 = vperm.xlu0 %7392, %v7393_v29   ;;  %v8370_v30 = vpop.permute.xlu2 %1309  ;;  %v1057_v39 = vsel %vm238_vm5, %v1044_v63, %v8301_v23  ;;  %v1059_v17 = vsel %vm238_vm5, %v1040_v6, %v1044_v63  ;;  %v7192_v29 = vunpack.c.h.bf16 %v7229_v46  ;;  %v7105_v63 = vld [vmem:[%s13807_s4 + $0x8] sm:$0xff] }
 0x183   :  { %6617 = vmatmul.msk.bf16.gmra.mxu0 %vm715_vm8, %v8296_v34  ;;  %6634 = vmatmul.msk.bf16.vlgmr.msrb.gmra.mxu1 %vm715_vm8, %v7104_v10  ;;  %v1065_v43 = vmul.f32 %v1057_v39, %v7778_v54  ;;  %v1064_v57 = vmul.f32 %v1059_v17, %v14345_v44 }
 0x184   :  { %6623 = vmatmul.msk.bf16.gmra.mxu3 %vm715_vm8, %v8296_v34 }
 0x188   :  { %7388 = vrot.lane.b32.xlu2 %v8379_v52, %s7537_s19  ;;  %7383 = vrot.lane.b32.xlu1 %v8385_v53, %s7537_s19 }
 0x189   :  { %v1050_v28 = vpop.permute.xlu0 %1049  ;;  %7408 = vset.pattern.permute.xlu1 %v14344_v56  ;;  %7444 = vset.pattern.permute.xlu2 %v14344_v56  ;;  %v1046_v25 = vpop.permute.xlu1 %1045  ;;  %v1062_v56 = vsel %vm238_vm5, %v8338_v62, %v8270_v32 }
 0x18a   :  { %7420 = vrot.lane.b32.xlu0 %v8379_v52, %s7538_s24  ;;  %v8402_v34 = vpop.permute.xlu2 %1315  ;;  %v1058_v49 = vsel %vm238_vm5, %v1046_v25, %v1050_v28  ;;  %v1060_v7 = vsel %vm238_vm5, %v8270_v32, %v1046_v25  ;;  %v1056_v39 = vsel %vm238_vm5, %v1050_v28, %v8338_v62  ;;  %v7409_v62 = vpack.i.bf16 %v7192_v29, %v7191_v15  ;;  %v14347_v28 = vld [vmem:[#allocation17_spill] sm:$0xff] }
 0x18b   :  { %v1068_v42 = vmul.f32 %v1060_v7, %v14345_v44  ;;  %v1069_v27 = vmul.f32 %v1058_v49, %v7778_v54  ;;  %6636 = vmatmul.msk.bf16.vlgmr.msrb.gmra.mxu2 %vm715_vm8, %v7104_v10  ;;  %v14346_v49 = vld [vmem:[#allocation18_spill] sm:$0xff] }
 0x18c   :  { %v1067_v7 = vmul.f32 %v1062_v56, %v14346_v49 }
 0x18d   :  { %v1077_v35 = vpack.c.bf16 %v1068_v42, %v1064_v57  ;;  %v1078_v24 = vpack.c.bf16 %v1069_v27, %v1065_v43  ;;  %v1070_v42 = vmul.f32 %v1056_v39, %v14347_v28 }
 0x18f   :  { %1122 = vmatpush.bf16.msrb.mxu1 %v1077_v35  ;;  %1141 = vmatpush.bf16.msrb.mxu2 %v1078_v24 }
 0x190   :  { %7404 = vrot.lane.b32.xlu2 %v8379_v52, %s7536_s0  ;;  %7399 = vrot.lane.b32.xlu1 %v8385_v53, %s7536_s0 }
 0x191   :  { %v8431_v17 = vpop.permute.xlu0 %1305  ;;  %v1052_v25 = vpop.permute.xlu1 %1051 }
 0x192   :  { %7435 = vrot.lane.b32.xlu0 %v8379_v52, %s7539_s25  ;;  %v8435_v32 = vpop.permute.xlu2 %1454  ;;  %v1055_v43 = vsel %vm238_vm5, %v8301_v23, %v1052_v25  ;;  %v1061_v57 = vsel %vm238_vm5, %v1052_v25, %v1040_v6  ;;  %v7230_v23 = vld [vmem:[%s13808_s5 + $0x10] sm:$0xff]   ;;  %v7232_v25 = vld [vmem:[%s13808_s5 + $0x20] sm:$0xff]  }
 0x193   :  { %v1063_v27 = vmul.f32 %v1061_v57, %v14346_v49  ;;  %v1066_v46 = vmul.f32 %v1055_v43, %v14347_v28  ;;  %6632 = vmatmul.msk.bf16.vlgmr.msrb.gmra.mxu0 %vm715_vm8, %v7104_v10  ;;  %6635 = vmatmul.msk.bf16.gmra.mxu1 %vm715_vm8, %v7105_v63  ;;  %v7195_v6 = vunpack.c.l.bf16 %v7230_v23  ;;  %v7196_v15 = vunpack.c.h.bf16 %v7230_v23  ;;  %v7108_v57 = vld [vmem:[%s13807_s4 + $0x20] sm:$0xff] }
 0x194   :  { %6638 = vmatmul.msk.bf16.vlgmr.msrb.gmra.mxu3 %vm715_vm8, %v7104_v10  ;;  %v7545_v43 = vmov 2  }
 0x195   :  { %v1076_v35 = vpack.c.bf16 %v1067_v7, %v1063_v27  ;;  %v1079_v24 = vpack.c.bf16 %v1070_v42, %v1066_v46  ;;  %v7424_v39 = vpack.i.bf16 %v7196_v15, %v7195_v6  ;;  %v7231_v7 = vld [vmem:[%s13808_s5 + $0x18] sm:$0xff]   ;;  %7510 = vset.pattern.permute.xlu0 %v7545_v43  ;;  %v7204_v42 = vunpack.c.h.bf16 %v7232_v25 }
 0x196   :  { %v7199_v27 = vunpack.c.l.bf16 %v7231_v7  ;;  %v7200_v46 = vunpack.c.h.bf16 %v7231_v7  ;;  %v1194_v6 = vpack.c.bf16 %v8084_v60, %v8069_v33 }
 0x197   :  { %1103 = vmatpush.bf16.msrb.mxu0 %v1076_v35  ;;  %1160 = vmatpush.bf16.msrb.mxu3 %v1079_v24 }
 0x198   :  { %7415 = vrot.lane.b32.xlu2 %v8385_v53, %s7538_s24  ;;  %7410 = vperm.xlu1 %7408, %v7409_v62   ;;  %v7203_v62 = vunpack.c.l.bf16 %v7232_v25  ;;  %v7233_v25 = vld [vmem:[%s13808_s5 + $0x28] sm:$0xff]  }
 0x199   :  { %v8454_v29 = vpop.permute.xlu0 %1311  ;;  %v8460_v56 = vpop.permute.xlu1 %1307  ;;  %v7207_v7 = vunpack.c.l.bf16 %v7233_v25  ;;  %v7208_v22 = vunpack.c.h.bf16 %v7233_v25 }
 0x19a   :  { %7451 = vrot.lane.b32.xlu0 %v8385_v53, %s7540_s30  ;;  %v8458_v10 = vpop.permute.xlu2 %1460  ;;  %v7445_v15 = vpack.i.bf16 %v7204_v42, %v7203_v62  ;;  %v7234_v42 = vld [vmem:[%s13808_s5 + $0x30] sm:$0xff]  }
 0x19b   :  { %6637 = vmatmul.msk.bf16.gmra.mxu2 %vm715_vm8, %v7105_v63  ;;  %v7460_v62 = vpack.i.bf16 %v7208_v22, %v7207_v7  ;;  %v1193_v22 = vpack.c.bf16 %v8071_v48, %v8076_v18 }
 0x1a0   :  { %7430 = vrot.lane.b32.xlu2 %v8385_v53, %s7539_s25  ;;  %7425 = vperm.xlu1 %7408, %v7424_v39   ;;  %v7439_v39 = vpack.i.bf16 %v7200_v46, %v7199_v27  ;;  %v7109_v27 = vld [vmem:[%s13807_s4 + $0x28] sm:$0xff]  ;;  %v7211_v46 = vunpack.c.l.bf16 %v7234_v42 }
 0x1a1   :  { %v8474_v23 = vpop.permute.xlu0 %1317  ;;  %v8480_v24 = vpop.permute.xlu1 %1313 }
 0x1a2   :  { %7466 = vrot.lane.b32.xlu0 %v8385_v53, %s7541_s13  ;;  %v8478_v35 = vpop.permute.xlu2 %1466 }
 0x1a3   :  { %6633 = vmatmul.msk.bf16.gmra.mxu0 %vm715_vm8, %v7105_v63  ;;  %6654 = vmatmul.msk.bf16.vlgmr.msra.gmra.mxu1 %vm715_vm8, %v7108_v57 }
 0x1a4   :  { %6639 = vmatmul.msk.bf16.gmra.mxu3 %vm715_vm8, %v7105_v63  ;;  %1239 = vmatpush.bf16.msra.mxu1 %v1194_v6  ;;  %v1195_v63 = vpack.c.bf16 %v8082_v37, %v8088_v40  ;;  %v7212_v6 = vunpack.c.h.bf16 %v7234_v42  ;;  %v1324_v42 = vsel %vm336_vm3, %v8454_v29, %v8402_v34 }
 0x1a6   :  { %v7475_v25 = vpack.i.bf16 %v7212_v6, %v7211_v46  ;;  %v14348_v46 = vld [vmem:[#allocation23_spill] sm:$0xff] }
 0x1a8   :  { %7446 = vperm.xlu2 %7444, %v7445_v15   ;;  %7440 = vperm.xlu1 %7408, %v7439_v39   ;;  %v1196_v39 = vpack.c.bf16 %v8094_v59, %v8098_v41  ;;  %v7527_v41 = vld [vmem:[%s13805_s9] sm:$0xff] }
 0x1a9   :  { %v8490_v11 = vpop.permute.xlu0 %1456  ;;  %v8496_v60 = vpop.permute.xlu1 %1319 }
 0x1aa   :  { %7481 = vrot.lane.b32.xlu0 %v8385_v53, %s7542_s16  ;;  %v8494_v33 = vpop.permute.xlu2 %1605 }
 0x1ab   :  { %6656 = vmatmul.msk.bf16.vlgmr.msra.gmra.mxu2 %vm715_vm8, %v7108_v57 }
 0x1ac   :  { %1258 = vmatpush.bf16.msra.mxu2 %v1195_v63 }
 0x1b0   :  { %7461 = vperm.xlu2 %7444, %v7460_v62   ;;  %7456 = vrot.lane.b32.xlu1 %v8379_v52, %s7540_s30  ;;  %v7236_v62 = vld [vmem:[%s13808_s5 + $0x40] sm:$0xff]  }
 0x1b1   :  { %v8509_v15 = vpop.permute.xlu0 %1462  ;;  %7511 = vset.pattern.permute.xlu1 %v7545_v43  ;;  %v8515_v40 = vpop.permute.xlu1 %1458 }
 0x1b2   :  { %7496 = vrot.lane.b32.xlu0 %v8385_v53, %s7543_s20  ;;  %v8513_v37 = vpop.permute.xlu2 %1611  ;;  %v7235_v53 = vld [vmem:[%s13808_s5 + $0x38] sm:$0xff]  }
 0x1b3   :  { %6652 = vmatmul.msk.bf16.vlgmr.msra.gmra.mxu0 %vm715_vm8, %v7108_v57  ;;  %6655 = vmatmul.msk.bf16.gmra.mxu1 %vm715_vm8, %v7109_v27  ;;  %v7215_v48 = vunpack.c.l.bf16 %v7235_v53  ;;  %v7216_v18 = vunpack.c.h.bf16 %v7235_v53  ;;  %v1334_v53 = vmul.f32 %v1324_v42, %v14348_v46  ;;  %v14349_v42 = vld [vmem:[#allocation11_spill] sm:$0xff] }
 0x1b4   :  { %6658 = vmatmul.msk.bf16.vlgmr.msra.gmra.mxu3 %vm715_vm8, %v7108_v57  ;;  %1220 = vmatpush.bf16.msra.mxu0 %v1193_v22  ;;  %v1323_v57 = vsel %vm336_vm3, %v8370_v30, %v8480_v24  ;;  %v7110_v22 = vld [vmem:[%s13807_s4 + $0x30] sm:$0xff] }
 0x1b5   :  { %1277 = vmatpush.bf16.msra.mxu3 %v1196_v39  ;;  %v7490_v63 = vpack.i.bf16 %v7216_v18, %v7215_v48  ;;  %v1330_v6 = vmul.f32 %v1323_v57, %v14348_v46  ;;  %v7219_v39 = vunpack.c.l.bf16 %v7236_v62  ;;  %v1322_v57 = vsel %vm336_vm3, %v8402_v34, %v8496_v60 }
 0x1b7   :  { %v1343_v36 = vpack.c.bf16 %v1334_v53, %v1330_v6  ;;  %v1335_v6 = vmul.f32 %v1322_v57, %v14349_v42 }
 0x1b8   :  { %7476 = vperm.xlu2 %7444, %v7475_v25   ;;  %7471 = vrot.lane.b32.xlu1 %v8379_v52, %s7541_s13  ;;  %v7220_v25 = vunpack.c.h.bf16 %v7236_v62  ;;  %v1321_v62 = vsel %vm336_vm3, %v8480_v24, %v8474_v23  ;;  %v1326_v24 = vsel %vm336_vm3, %v8460_v56, %v8454_v29  ;;  %v1327_v29 = vsel %vm336_vm3, %v8474_v23, %v8431_v17 }
 0x1b9   :  { %v8529_v43 = vpop.permute.xlu0 %1468  ;;  %v8533_v59 = vpop.permute.xlu1 %1464  ;;  %v1331_v34 = vmul.f32 %v1321_v62, %v14349_v42 }
 0x1ba   :  { %v8531_v7 = vpop.permute.xlu2 %1617  ;;  %2433 = vperm.xlu0 %7510, %v7527_v41  }
 0x1bb   :  { %6657 = vmatmul.msk.bf16.gmra.mxu2 %vm715_vm8, %v7109_v27 }
 0x1c0   :  { %7491 = vperm.xlu2 %7444, %v7490_v63   ;;  %7486 = vrot.lane.b32.xlu1 %v8379_v52, %s7542_s16  ;;  %v7505_v63 = vpack.i.bf16 %v7220_v25, %v7219_v39  ;;  %v14350_v25 = vld [vmem:[#allocation22_spill] sm:$0xff] }
 0x1c1   :  { %v8557_v48 = vpop.permute.xlu0 %1607  ;;  %v8561_v41 = vpop.permute.xlu1 %1603  ;;  %v1333_v57 = vmul.f32 %v1326_v24, %v14350_v25 }
 0x1c2   :  { %v8559_v18 = vpop.permute.xlu2 %1756 }
 0x1c3   :  { %6653 = vmatmul.msk.bf16.gmra.mxu0 %vm715_vm8, %v7109_v27  ;;  %6674 = vmatmul.msk.bf16.vlgmr.msrb.gmra.mxu1 %vm715_vm8, %v7110_v22 }
 0x1c4   :  { %6659 = vmatmul.msk.bf16.gmra.mxu3 %vm715_vm8, %v7109_v27  ;;  %1388 = vmatpush.bf16.msrb.mxu1 %v1343_v36  ;;  %v1344_v36 = vpack.c.bf16 %v1335_v6, %v1331_v34  ;;  %v1325_v27 = vsel %vm336_vm3, %v8431_v17, %v8370_v30  ;;  %v7528_v6 = vld [vmem:[%s13805_s9 + $0x8] sm:$0xff] }
 0x1c5   :  { %v1329_v30 = vmul.f32 %v1325_v27, %v14350_v25 }
 0x1c7   :  { %v1342_v23 = vpack.c.bf16 %v1333_v57, %v1329_v30  ;;  %v1473_v57 = vsel %vm399_vm4, %v8458_v10, %v8533_v59 }
 0x1c8   :  { %7506 = vperm.xlu2 %7444, %v7505_v63   ;;  %7501 = vrot.lane.b32.xlu1 %v8379_v52, %s7543_s20  ;;  %v1328_v52 = vsel %vm336_vm3, %v8496_v60, %v8460_v56  ;;  %v14351_v63 = vld [vmem:[#allocation24_spill] sm:$0xff]  ;;  %v7111_v56 = vld [vmem:[%s13807_s4 + $0x38] sm:$0xff] }
 0x1c9   :  { %v8578_v53 = vpop.permute.xlu0 %1613  ;;  %v8582_v39 = vpop.permute.xlu1 %1609  ;;  %v1336_v62 = vmul.f32 %v1328_v52, %v14351_v63  ;;  %v1332_v34 = vmul.f32 %v1327_v29, %v14351_v63  ;;  %v1483_v29 = vmul.f32 %v1473_v57, %v7956_v45  ;;  %v1471_v57 = vsel %vm399_vm4, %v8533_v59, %v8529_v43 }
 0x1ca   :  { %v8580_v58 = vpop.permute.xlu2 %1762 }
 0x1cb   :  { %6676 = vmatmul.msk.bf16.vlgmr.msrb.gmra.mxu2 %vm715_vm8, %v7110_v22  ;;  %v1345_v24 = vpack.c.bf16 %v1336_v62, %v1332_v34  ;;  %v7112_v62 = vld [vmem:[%s13807_s4 + $0x40] sm:$0xff] }
 0x1cc   :  { %1407 = vmatpush.bf16.msrb.mxu2 %v1344_v36 }
 0x1d0   :  { %2437 = vperm.xlu1 %7511, %v7528_v6  }
 0x1d1   :  { %v8610_v60 = vpop.permute.xlu0 %1752  ;;  %v1616_v17 = vpop.permute.xlu1 %1615 }
 0x1d2   :  { %v8613_v36 = vpop.permute.xlu2 %1907 }
 0x1d3   :  { %14352 = vst [vmem:[#allocation35_spill] sm:$0xff] %v8613_v36  ;;  %6672 = vmatmul.msk.bf16.vlgmr.msrb.gmra.mxu0 %vm715_vm8, %v7110_v22  ;;  %6675 = vmatmul.msk.bf16.gmra.mxu1 %vm715_vm8, %v7111_v56 }
 0x1d4   :  { %6678 = vmatmul.msk.bf16.vlgmr.msrb.gmra.mxu3 %vm715_vm8, %v7110_v22  ;;  %1369 = vmatpush.bf16.msrb.mxu0 %v1342_v23  ;;  %v1472_v22 = vsel %vm399_vm4, %v8515_v40, %v8509_v15 }
 0x1d5   :  { %1426 = vmatpush.bf16.msrb.mxu3 %v1345_v24  ;;  %v1479_v30 = vmul.f32 %v1472_v22, %v7956_v45  ;;  %v1470_v22 = vsel %vm399_vm4, %v8509_v15, %v8478_v35  ;;  %v1484_v45 = vmul.f32 %v1471_v57, %v7959_v8  ;;  %v1477_v15 = vsel %vm399_vm4, %v8529_v43, %v8490_v11 }
 0x1d6   :  { %v1475_v57 = vsel %vm399_vm4, %v8490_v11, %v8458_v10  ;;  %v1626_v43 = vsel %vm462_vm6, %v8531_v7, %v8494_v33  ;;  %v8696_v11 = vld [vmem:[%s13807_s4 + $0x48] sm:$0xff]  ;;  %v1622_v10 = vsel %vm462_vm6, %v8582_v39, %v8578_v53 }
 0x1d7   :  { %v1492_v36 = vpack.c.bf16 %v1483_v29, %v1479_v30  ;;  %v1480_v29 = vmul.f32 %v1470_v22, %v7959_v8  ;;  %v1476_v22 = vsel %vm399_vm4, %v8478_v35, %v8435_v32  ;;  %v1624_v35 = vsel %vm462_vm6, %v8494_v33, %v8582_v39 }
 0x1d8   :  { %v1625_v33 = vsel %vm462_vm6, %v1616_v17, %v8561_v41 }
 0x1d9   :  { %v8618_v52 = vpop.permute.xlu0 %1758  ;;  %v8622_v6 = vpop.permute.xlu1 %1754 }
 0x1da   :  { %v8620_v27 = vpop.permute.xlu2 %1922 }
 0x1db   :  { %14353 = vst [vmem:[#allocation36_spill] sm:$0xff] %v8620_v27  ;;  %6677 = vmatmul.msk.bf16.gmra.mxu2 %vm715_vm8, %v7111_v56 }
 0x1e0   :  { %v8638_v34 = vpop.f32.mrf.mxu1 }
 0x1e1   :  { %v8640_v23 = vpop.permute.xlu0 %1764  ;;  %v8644_v27 = vpop.permute.xlu1 %1760 }
 0x1e2   :  { %v8642_v24 = vpop.permute.xlu2 %7388 }
 0x1e3   :  { %6673 = vmatmul.msk.bf16.gmra.mxu0 %vm715_vm8, %v7111_v56  ;;  %6694 = vmatmul.msk.bf16.vlgmr.msra.gmra.mxu1 %vm715_vm8, %v7112_v62 }
 0x1e4   :  { %6679 = vmatmul.msk.bf16.gmra.mxu3 %vm715_vm8, %v7111_v56  ;;  %1537 = vmatpush.bf16.msra.mxu1 %v1492_v36  ;;  %v1474_v56 = vsel %vm399_vm4, %v8435_v32, %v8515_v40  ;;  %v1493_v36 = vpack.c.bf16 %v1484_v45, %v1480_v29  ;;  %v14355_v40 = vld [vmem:[#allocation16_spill] sm:$0xff]  ;;  %v1485_v29 = vmul.f32 %v1477_v15, %v7980_v3 }
 0x1e5   :  { %v1478_v45 = vmul.f32 %v1474_v56, %v14355_v40  ;;  %v1482_v8 = vmul.f32 %v1475_v57, %v14355_v40  ;;  %v1481_v32 = vmul.f32 %v1476_v22, %v7980_v3  ;;  %v1619_v56 = vsel %vm462_vm6, %v8513_v37, %v1616_v17  ;;  %v14358_v17 = vld [vmem:[#allocation21_spill] sm:$0xff] }
 0x1e6   :  { %v8715_v22 = vmul.f32 %v1626_v43, %v8018_v31  ;;  %v1621_v3 = vsel %vm462_vm6, %v8557_v48, %v8513_v37  ;;  %v1773_v37 = vsel %vm525_vm7, %v8622_v6, %v8618_v52  ;;  %v8741_v43 = vmul.f32 %v1624_v35, %v14358_v17 }
 0x1e7   :  { %v1491_v57 = vpack.c.bf16 %v1482_v8, %v1478_v45  ;;  %v1494_v40 = vpack.c.bf16 %v1485_v29, %v1481_v32  ;;  %v1623_v8 = vsel %vm462_vm6, %v8561_v41, %v8557_v48  ;;  %v1620_v45 = vsel %vm462_vm6, %v8578_v53, %v8531_v7 }
 0x1e8   :  { %v8659_v30 = vpop.f32.mrf.mxu1  ;;  %14356 = vst [vmem:[#allocation38_spill] sm:$0xff] %v8715_v22  ;;  %v8744_v29 = vmul.f32 %v1622_v10, %v7991_v5  ;;  %v8747_v32 = vmul.f32 %v1619_v56, %v8001_v61  ;;  %v8755_v7 = vmul.f32 %v1621_v3, %v7991_v5  ;;  %v1772_v41 = vsel %vm525_vm7, %v8610_v60, %v8559_v18 }
 0x1e9   :  { %v8661_v42 = vpop.permute.xlu0 %1912  ;;  %v8665_v46 = vpop.permute.xlu1 %1766  ;;  %v8762_v53 = vmul.f32 %v1625_v33, %v8018_v31  ;;  %v8766_v10 = vmul.f32 %v1623_v8, %v14358_v17  ;;  %v8769_v35 = vmul.f32 %v1620_v45, %v8001_v61  ;;  %v1771_v3 = vsel %vm525_vm7, %v8618_v52, %v8580_v58 }
 0x1ea   :  { %14354 = vst [vmem:[#allocation37_spill] sm:$0xff] %v8661_v42  ;;  %v8663_v59 = vpop.permute.xlu2 %7404  ;;  %v8776_v56 = vmul.f32 %v1773_v37, %v7927_v51  ;;  %v7391_v33 = vunpack.i.h.bf16 %v8642_v24  ;;  %v1768_v8 = vsel %vm525_vm7, %v8644_v27, %v8640_v23  ;;  %v1769_v5 = vsel %vm525_vm7, %v8580_v58, %v8665_v46 }
 0x1eb   :  { %6696 = vmatmul.msk.bf16.vlgmr.msra.gmra.mxu2 %vm715_vm8, %v7112_v62  ;;  %14359 = vst [vmem:[#allocation40_spill] sm:$0xff] %v8762_v53  ;;  %v14372_v58 = vperm.slane %v8348_v0, 4 }
 0x1ec   :  { %1556 = vmatpush.bf16.msra.mxu2 %v1493_v36  ;;  %14360 = vst [vmem:[#allocation41_spill] sm:$0xff] %v8776_v56 }
 0x1ee   :  { %v8690_v42 = vpop.f32.mrf.mxu2 }
 0x1f0   :  { %v8710_v36 = vpop.f32.mrf.mxu0  ;;  %v8712_v15 = vpop.f32.mrf.mxu1 }
 0x1f2   :  { %v8724_v39 = vpop.permute.xlu2 %7415  ;;  %v8726_v63 = vpop.permute.xlu1 %1917 }
 0x1f3   :  { %14357 = vst [vmem:[#allocation39_spill] sm:$0xff] %v8726_v63  ;;  %6692 = vmatmul.msk.bf16.vlgmr.msra.gmra.mxu0 %vm715_vm8, %v7112_v62  ;;  %6695 = vmatmul.msk.bf16.gmra.mxu1 %vm715_vm8, %v8696_v11 }
 0x1f4   :  { %v8749_v48 = vpop.permute.xlu0 %7394  ;;  %6698 = vmatmul.msk.bf16.vlgmr.msra.gmra.mxu3 %vm715_vm8, %v7112_v62  ;;  %1518 = vmatpush.bf16.msra.mxu0 %v1491_v57  ;;  %v7390_v62 = vunpack.i.l.bf16 %v8642_v24  ;;  %v1774_v57 = vsel %vm525_vm7, %v8640_v23, %v8610_v60  ;;  %v8795_v24 = vmul.f32 %v1772_v41, %v7927_v51  ;;  %v8804_v23 = vmul.f32 %v1771_v3, %v8032_v19 }
 0x1f5   :  { %1575 = vmatpush.bf16.msra.mxu3 %v1494_v40  ;;  %v1770_v41 = vsel %vm525_vm7, %v8559_v18, %v8644_v27  ;;  %v8819_v63 = vmul.f32 %v1774_v57, %v8040_v4  ;;  %v8822_v3 = vmul.f32 %v1768_v8, %v8035_v55  ;;  %v7418_v27 = vunpack.i.h.bf16 %v8724_v39 }
 0x1f6   :  { %v8788_v45 = vpop.f32.mrf.mxu2  ;;  %14362 = vst [vmem:[#allocation43_spill] sm:$0xff] %v8795_v24  ;;  %v2006_v52 = vsel %vm59_vm1, %v7390_v62, %v7391_v33  ;;  %v7417_v51 = vunpack.i.l.bf16 %v8724_v39  ;;  %v8834_v24 = vmul.f32 %v1770_v41, %v8032_v19  ;;  %v8847_v41 = vmul.f32 %v1769_v5, %v8035_v55 }
 0x1f7   :  { %14361 = vst [vmem:[#allocation42_spill] sm:$0xff] %v8788_v45  ;;  %v8799_v60 = vpop.f32.mrf.mxu3  ;;  %v2013_v57 = vmul.f32 %v2006_v52, %v7714_v21  ;;  %v14371_v8 = vperm.slane %v8348_v0, 2  ;;  %v14374_v19 = vunpack.i.l.bf16 %v8663_v59 }
 0x1f8   :  { %14363 = vst [vmem:[#allocation44_spill] sm:$0xff] %v8799_v60  ;;  %v8812_v40 = vpop.f32.mrf.mxu0  ;;  %v8814_v61 = vpop.f32.mrf.mxu1 }
 0x1f9   :  { %14364 = vst [vmem:[#allocation45_spill] sm:$0xff] %v8812_v40  ;;  %v8855_v21 = vperm.slane %v14371_v8, 0  ;;  %v8859_v40 = vperm.slane %v14372_v58, 0  ;;  %v2101_v8 = vsel %vm175_vm2, %v7417_v51, %v7418_v27 }
 0x1fa   :  { %14365 = vst [vmem:[#allocation46_spill] sm:$0xff] %v8814_v61  ;;  %v8828_v31 = vpop.permute.xlu2 %7430  ;;  %v7384_v18 = vpop.permute.xlu1 %7383 }
 0x1fb   :  { %14366 = vst [vmem:[#allocation47_spill] sm:$0xff] %v8819_v63  ;;  %v7386_v17 = vunpack.i.h.bf16 %v7384_v18  ;;  %v7385_v37 = vunpack.i.l.bf16 %v7384_v18  ;;  %6697 = vmatmul.msk.bf16.gmra.mxu2 %vm715_vm8, %v8696_v11  ;;  %v14370_v18 = vperm.slane %v8348_v0, 0  ;;  %v14376_v58 = vunpack.i.h.bf16 %v8828_v31 }
 0x1fc   :  { %14367 = vst [vmem:[#allocation48_spill] sm:$0xff] %v8822_v3  ;;  %v7421_v61 = vpop.permute.xlu0 %7420  ;;  %v14377_v60 = vunpack.i.l.bf16 %v8828_v31 }
 0x1fd   :  { %14368 = vst [vmem:[#allocation49_spill] sm:$0xff] %v8834_v24  ;;  %v2007_v39 = vsel %vm59_vm1, %v7386_v17, %v7390_v62  ;;  %v2009_v52 = vsel %vm59_vm1, %v7391_v33, %v7385_v37  ;;  %v8851_v56 = vperm.slane %v14370_v18, 0  ;;  %v14373_v62 = vunpack.i.h.bf16 %v8663_v59 }
 0x1fe   :  { %14369 = vst [vmem:[#allocation50_spill] sm:$0xff] %v8847_v41  ;;  %v1775_v33 = vsel %vm525_vm7, %v8665_v46, %v8622_v6  ;;  %v2012_v18 = vmul.f32 %v2007_v39, %v7712_v20  ;;  %v8874_v55 = vpop.f32.mrf.mxu2  ;;  %v2152_v45 = vsel %vm238_vm5, %v14377_v60, %v14376_v58  ;;  %v7423_v46 = vunpack.i.h.bf16 %v7421_v61  ;;  %v8890_v39 = vld [vmem:[%s13807_s4 + $0x50] sm:$0xff] }
 0x1ff   :  { %v2048_v5 = vsel %vm112_vm0, %v14374_v19, %v14373_v62  ;;  %14375 = vst [vmem:[#allocation51_spill] sm:$0xff] %v8874_v55  ;;  %v2008_v19 = vsel %vm59_vm1, %v7385_v37, %v7386_v17  ;;  %v2010_v62 = vmul.f32 %v2009_v52, %v7705_v16  ;;  %v8885_v6 = vpop.f32.mrf.mxu3  ;;  %v2031_v20 = vperm.slane %v2013_v57, 0 }
 0x200   :  { %v7422_v53 = vunpack.i.l.bf16 %v7421_v61  ;;  %v8894_v22 = vpop.f32.mrf.mxu0  ;;  %v842_v60 = vpop.f32.mrf.mxu1  ;;  %v14378_v17 = vperm.slane %v8348_v0, 6  ;;  %v8901_v52 = vmul.f32 %v2048_v5, %v14339_v26  ;;  %v8904_v58 = vmul.f32 %v1775_v33, %v8040_v4 }
 0x201   :  { %v7396_v16 = vunpack.i.l.bf16 %v8749_v48  ;;  %v8910_v24 = vmul.f32 %v2101_v8, %v14340_v9  ;;  %v8913_v0 = vmul.f32 %v2152_v45, %v14345_v44  ;;  %v2011_v5 = vmul.f32 %v2008_v19, %v7688_v1 }
 0x202   :  { %v8898_v37 = vperm.slane %v14378_v17, 0  ;;  %14379 = vst [vmem:[#allocation52_spill] sm:$0xff] %v8904_v58  ;;  %v7447_v55 = vpop.permute.xlu2 %7446  ;;  %v7400_v61 = vpop.permute.xlu1 %7399  ;;  %v2030_v17 = vperm.slane %v2012_v18, 0  ;;  %v7397_v26 = vunpack.i.h.bf16 %v8749_v48  ;;  %v2028_v33 = vperm.slane %v2010_v62, 0 }
 0x203   :  { %v2102_v4 = vsel %vm175_vm2, %v7423_v46, %v7417_v51  ;;  %v8920_v57 = vadd.f32 %v842_v60, %v8638_v34  ;;  %6693 = vmatmul.msk.bf16.gmra.mxu0 %vm715_vm8, %v8696_v11  ;;  %6714 = vmatmul.msk.bf16.vlgmr.msrb.gmra.mxu1 %vm715_vm8, %v8890_v39  ;;  %v2099_v45 = vsel %vm175_vm2, %v7422_v53, %v7423_v46  ;;  %v7402_v8 = vunpack.i.h.bf16 %v7400_v61 }
 0x204   :  { %v7436_v3 = vpop.permute.xlu0 %7435  ;;  %v2100_v48 = vsel %vm175_vm2, %v7418_v27, %v7422_v53  ;;  %v7401_v18 = vunpack.i.l.bf16 %v7400_v61  ;;  %6699 = vmatmul.msk.bf16.gmra.mxu3 %vm715_vm8, %v8696_v11  ;;  %v14380_v51 = vpack.c.bf16 %v8744_v29, %v8755_v7  ;;  %v8938_v62 = vmul.f32 %v7397_v26, %v2031_v20 }
 0x205   :  { %v8940_v46 = vmul.f32 %v7396_v16, %v2031_v20  ;;  %v8944_v60 = vmul.f32 %v7396_v16, %v2030_v17  ;;  %v2029_v11 = vperm.slane %v2011_v5, 0  ;;  %v8949_v29 = vmul.f32 %v2102_v4, %v14341_v47 }
 0x206   :  { %1686 = vmatpush.bf16.msrb.mxu1 %v14380_v51  ;;  %v8946_v61 = vpop.f32.mrf.mxu2  ;;  %v8952_v7 = vmul.f32 %v2100_v48, %v14343_v38  ;;  %v8955_v51 = vmul.f32 %v2099_v45, %v14342_v2  ;;  %v7449_v20 = vunpack.i.h.bf16 %v7447_v55  ;;  %v8959_v53 = vmul.f32 %v7397_v26, %v2030_v17 }
 0x207   :  { %v8957_v19 = vpop.f32.mrf.mxu3  ;;  %v8961_v27 = vmul.f32 %v7396_v16, %v2028_v33  ;;  %v14381_v5 = vunpack.i.l.bf16 %v8663_v59  ;;  %v2050_v4 = vsel %vm112_vm0, %v7401_v18, %v7402_v8  ;;  %v14382_v45 = vunpack.i.h.bf16 %v8663_v59 }
 0x208   :  { %v8969_v48 = vpop.f32.mrf.mxu0  ;;  %v844_v44 = vpop.f32.mrf.mxu1  ;;  %v7438_v17 = vunpack.i.h.bf16 %v7436_v3  ;;  %v7437_v47 = vunpack.i.l.bf16 %v7436_v3  ;;  %v8978_v1 = vmul.f32 %v7396_v16, %v2029_v11  ;;  %v8982_v63 = vmul.f32 %v7397_v26, %v2029_v11 }
 0x209   :  { %v2049_v34 = vsel %vm112_vm0, %v7402_v8, %v14381_v5  ;;  %v2051_v2 = vsel %vm112_vm0, %v14382_v45, %v7401_v18  ;;  %v8976_v38 = vadd.f32 %v844_v44, %v8659_v30  ;;  %v8980_v5 = vmul.f32 %v7397_v26, %v2028_v33 }
 0x20a   :  { %v7411_v9 = vpop.permute.xlu1 %7410  ;;  %v7448_v8 = vunpack.i.l.bf16 %v7447_v55  ;;  %v8988_v18 = vmul.f32 %v7449_v20, %v8851_v56  ;;  %v7462_v3 = vpop.permute.xlu2 %7461  ;;  %v8995_v16 = vmul.f32 %v7449_v20, %v8855_v21  ;;  %v2054_v55 = vmul.f32 %v2049_v34, %v7703_v14 }
 0x20b   :  { %6716 = vmatmul.msk.bf16.vlgmr.msrb.gmra.mxu2 %vm715_vm8, %v8890_v39  ;;  %v2052_v26 = vmul.f32 %v2051_v2, %v7699_v12  ;;  %v2053_v30 = vmul.f32 %v2050_v4, %v7701_v13  ;;  %v14383_v33 = vpack.c.bf16 %v8769_v35, %v8747_v32  ;;  %v9004_v11 = vmul.f32 %v7449_v20, %v8859_v40 }
 0x20c   :  { %v8990_v44 = vpop.permute.xlu0 %7451  ;;  %v14385_v45 = vunpack.i.l.bf16 %v8828_v31  ;;  %v2150_v59 = vsel %vm238_vm5, %v7437_v47, %v7438_v17  ;;  %v7413_v34 = vunpack.i.h.bf16 %v7411_v9  ;;  %v14386_v2 = vunpack.i.h.bf16 %v8828_v31 }
 0x20d   :  { %1705 = vmatpush.bf16.msrb.mxu2 %v14383_v33  ;;  %14384 = vst [vmem:[#allocation53_spill] sm:$0xff] %v9004_v11  ;;  %v7412_v58 = vunpack.i.l.bf16 %v7411_v9  ;;  %v9019_v14 = vmul.f32 %v7449_v20, %v8898_v37  ;;  %v9028_v31 = vmul.f32 %v7448_v8, %v8859_v40  ;;  %v9035_v9 = vld [vmem:[%s13807_s4 + $0x58] sm:$0xff]  ;;  %v2073_v20 = vperm.slane %v2054_v55, 0 }
 0x20e   :  { %v2153_v41 = vsel %vm238_vm5, %v7438_v17, %v14385_v45  ;;  %v2151_v4 = vsel %vm238_vm5, %v14386_v2, %v7437_v47  ;;  %v861_v33 = vpop.f32.mrf.mxu2  ;;  %v9022_v45 = vmul.f32 %v7448_v8, %v8851_v56  ;;  %v9025_v17 = vmul.f32 %v7448_v8, %v8855_v21 }
 0x20f   :  { %14387 = vst [vmem:[#allocation54_spill] sm:$0xff] %v9019_v14  ;;  %v9030_v12 = vpop.f32.mrf.mxu3  ;;  %v9038_v47 = vmul.f32 %v7448_v8, %v8898_v37  ;;  %v2071_v2 = vperm.slane %v2052_v26, 0  ;;  %v2072_v56 = vperm.slane %v2053_v30, 0  ;;  %v9041_v21 = vmul.f32 %v2153_v41, %v14346_v49 }
 0x210   :  { %14388 = vst [vmem:[#allocation55_spill] sm:$0xff] %v9030_v12  ;;  %v823_v35 = vpop.f32.mrf.mxu0  ;;  %v847_v32 = vpop.f32.mrf.mxu1  ;;  %v9044_v40 = vmul.f32 %v2151_v4, %v7778_v54  ;;  %v9047_v13 = vmul.f32 %v2150_v59, %v14347_v28  ;;  %v14389_v14 = vperm.slane %v8901_v52, 0  ;;  %v14390_v55 = vunpack.i.h.bf16 %v8990_v44 }
 0x211   :  { %v2075_v37 = vmul.f32 %v7412_v58, %v2071_v2  ;;  %v2079_v8 = vmul.f32 %v7413_v34, %v2071_v2  ;;  %v14391_v26 = vunpack.i.l.bf16 %v8990_v44  ;;  %v9058_v30 = vadd.f32 %v861_v33, %v8690_v42 }
 0x212   :  { %v2082_v11 = vmul.f32 %v7413_v34, %v14389_v14  ;;  %v7426_v12 = vpop.permute.xlu1 %7425  ;;  %v9060_v4 = vunpack.i.h.bf16 %v7462_v3  ;;  %v2076_v59 = vmul.f32 %v7412_v58, %v2072_v56  ;;  %v9063_v28 = vadd.f32 %v823_v35, %v8710_v36 }
 0x213   :  { %v2238_v41 = vsel %vm336_vm3, %v14391_v26, %v14390_v55  ;;  %14392 = vst [vmem:[#allocation56_spill] sm:$0xff] %v9058_v30  ;;  %v9066_v14 = vadd.f32 %v847_v32, %v8712_v15  ;;  %6712 = vmatmul.msk.bf16.vlgmr.msrb.gmra.mxu0 %vm715_vm8, %v8890_v39  ;;  %6715 = vmatmul.msk.bf16.gmra.mxu1 %vm715_vm8, %v9035_v9  ;;  %v9074_v55 = vunpack.i.l.bf16 %v7462_v3  ;;  %v14395_v33 = vperm.slane %v8901_v52, 0  ;;  %v7477_v3 = vpop.permute.xlu2 %7476 }
 0x214   :  { %14393 = vst [vmem:[#allocation57_spill] sm:$0xff] %v9063_v28  ;;  %v9068_v2 = vpop.permute.xlu0 %7466  ;;  %v2077_v42 = vmul.f32 %v7412_v58, %v2073_v20  ;;  %v2080_v49 = vmul.f32 %v7413_v34, %v2072_v56  ;;  %6718 = vmatmul.msk.bf16.vlgmr.msrb.gmra.mxu3 %vm715_vm8, %v8890_v39  ;;  %v14396_v36 = vpack.c.bf16 %v8741_v43, %v8766_v10  ;;  %v7428_v54 = vunpack.i.h.bf16 %v7426_v12  ;;  %v14398_v28 = vld [vmem:[#allocation40_spill] sm:$0xff] }
 0x215   :  { %14394 = vst [vmem:[#allocation58_spill] sm:$0xff] %v9066_v14  ;;  %v2078_v26 = vmul.f32 %v7412_v58, %v14395_v33  ;;  %v2240_v35 = vmul.f32 %v2238_v41, %v14350_v25  ;;  %v14397_v14 = vld [vmem:[#allocation38_spill] sm:$0xff]  ;;  %v7427_v56 = vunpack.i.l.bf16 %v7426_v12  ;;  %v2090_v33 = vadd.f32 %v2082_v11, %v8938_v62 }
 0x216   :  { %1667 = vmatpush.bf16.msrb.mxu0 %v14396_v36  ;;  %v14399_v52 = vpack.c.bf16 %v14397_v14, %v14398_v28  ;;  %v863_v10 = vpop.f32.mrf.mxu2  ;;  %v2081_v36 = vmul.f32 %v7413_v34, %v2073_v20  ;;  %v2083_v32 = vadd.f32 %v2075_v37, %v8961_v27  ;;  %v2087_v41 = vadd.f32 %v2079_v8, %v8980_v5 }
 0x217   :  { %v880_v15 = vpop.f32.mrf.mxu3  ;;  %v2084_v25 = vadd.f32 %v2076_v59, %v8978_v1  ;;  %v2085_v28 = vadd.f32 %v2077_v42, %v8944_v60  ;;  %v2086_v14 = vadd.f32 %v2078_v26, %v8940_v46  ;;  %v2088_v12 = vadd.f32 %v2080_v49, %v8982_v63  ;;  %v14407_v59 = vld [vmem:[#allocation42_spill] sm:$0xff]  ;;  %v14409_v26 = vld [vmem:[#allocation16_spill] sm:$0xff] }
 0x218   :  { %1724 = vmatpush.bf16.msrb.mxu3 %v14399_v52  ;;  %v825_v52 = vpop.f32.mrf.mxu0  ;;  %v849_v58 = vpop.f32.mrf.mxu1  ;;  %v2259_v43 = vperm.slane %v2240_v35, 0  ;;  %v14400_v39 = vperm.slane %v8949_v29, 0  ;;  %v14401_v11 = vperm.slane %v8910_v24, 0  ;;  %v14402_v5 = vperm.slane %v8952_v7, 0  ;;  %v14412_v29 = vld [vmem:[#allocation45_spill] sm:$0xff]  ;;  %v14414_v24 = vld [vmem:[#allocation46_spill] sm:$0xff] }
 0x219   :  { %v14405_v49 = vunpack.i.h.bf16 %v9068_v2  ;;  %v14406_v63 = vunpack.i.l.bf16 %v9068_v2  ;;  %v9116_v42 = vadd.f32 %v863_v10, %v14407_v59  ;;  %v9133_v10 = vunpack.i.h.bf16 %v7477_v3 }
 0x21a   :  { %v2130_v62 = vmul.f32 %v7428_v54, %v14400_v39  ;;  %v2131_v27 = vmul.f32 %v7428_v54, %v14401_v11  ;;  %v2132_v34 = vmul.f32 %v7428_v54, %v14402_v5  ;;  %v7441_v20 = vpop.permute.xlu1 %7440  ;;  %v14403_v1 = vmov %v14400_v39  ;;  %v14410_v39 = vld [vmem:[#allocation44_spill] sm:$0xff] }
 0x21b   :  { %v2126_v60 = vmul.f32 %v7427_v56, %v14403_v1  ;;  %v14404_v46 = vmov %v14401_v11  ;;  %v2289_v8 = vsel %vm399_vm4, %v14406_v63, %v14405_v49  ;;  %14408 = vst [vmem:[#allocation38_spill] sm:$0xff] %v9116_v42  ;;  %v9120_v11 = vadd.f32 %v880_v15, %v14410_v39  ;;  %6717 = vmatmul.msk.bf16.gmra.mxu2 %vm715_vm8, %v9035_v9 }
 0x21c   :  { %v2127_v37 = vmul.f32 %v7427_v56, %v14404_v46  ;;  %v2291_v35 = vmul.f32 %v2289_v8, %v14409_v26  ;;  %v9123_v5 = vadd.f32 %v825_v52, %v14412_v29  ;;  %v9126_v1 = vadd.f32 %v849_v58, %v14414_v24  ;;  %v9128_v46 = vpop.permute.xlu0 %7481 }
 0x21d   :  { %14411 = vst [vmem:[#allocation40_spill] sm:$0xff] %v9120_v11  ;;  %v2089_v49 = vadd.f32 %v2081_v36, %v8959_v53  ;;  %v14416_v63 = vperm.slane %v8955_v51, 0  ;;  %v14417_v15 = vperm.slane %v8952_v7, 0  ;;  %v9140_v52 = vmul.f32 %v9074_v55, %v2259_v43  ;;  %v7492_v11 = vpop.permute.xlu2 %7491 }
 0x21e   :  { %14413 = vst [vmem:[#allocation42_spill] sm:$0xff] %v9123_v5  ;;  %v9142_v58 = vunpack.i.l.bf16 %v7477_v3  ;;  %v7443_v24 = vunpack.i.h.bf16 %v7441_v20  ;;  %v9147_v26 = vmul.f32 %v9060_v4, %v2259_v43  ;;  %v2138_v53 = vadd.f32 %v2130_v62, %v2087_v41  ;;  %v866_v5 = vpop.f32.mrf.mxu2  ;;  %v9154_v43 = vld [vmem:[%s13807_s4 + $0x60] sm:$0xff] }
 0x21f   :  { %14415 = vst [vmem:[#allocation44_spill] sm:$0xff] %v9126_v1  ;;  %v2133_v8 = vmul.f32 %v7428_v54, %v14416_v63  ;;  %v2128_v59 = vmul.f32 %v7427_v56, %v14417_v15  ;;  %v14419_v39 = vmov %v14416_v63  ;;  %v2139_v36 = vadd.f32 %v2131_v27, %v2088_v12  ;;  %v882_v42 = vpop.f32.mrf.mxu3 }
 0x220   :  { %14418 = vst [vmem:[#allocation45_spill] sm:$0xff] %v9140_v52  ;;  %v2129_v29 = vmul.f32 %v7427_v56, %v14419_v39  ;;  %v7442_v1 = vunpack.i.l.bf16 %v7441_v20  ;;  %v2134_v54 = vadd.f32 %v2126_v60, %v2083_v32  ;;  %v2135_v63 = vadd.f32 %v2127_v37, %v2084_v25  ;;  %v828_v56 = vpop.f32.mrf.mxu0  ;;  %v975_v39 = vpop.f32.mrf.mxu1 }
 0x221   :  { %v2140_v7 = vadd.f32 %v2132_v34, %v2089_v49  ;;  %v2310_v15 = vperm.slane %v2291_v35, 0  ;;  %v2136_v30 = vadd.f32 %v2128_v59, %v2085_v28  ;;  %v2141_v3 = vadd.f32 %v2133_v8, %v2090_v33 }
 0x222   :  { %v13920_v52 = vunpack.i.h.bf16 %v9128_v46  ;;  %v13923_v51 = vunpack.i.l.bf16 %v9128_v46  ;;  %v2137_v41 = vadd.f32 %v2129_v29, %v2086_v14  ;;  %v9156_v32 = vunpack.i.h.bf16 %v7492_v11  ;;  %v7457_v62 = vpop.permute.xlu1 %7456  ;;  %v14426_v29 = vld [vmem:[#allocation51_spill] sm:$0xff] }
 0x223   :  { %v14420_v25 = vperm.slane %v9041_v21, 0  ;;  %v14421_v28 = vperm.slane %v8913_v0, 0  ;;  %v14422_v27 = vperm.slane %v9044_v40, 0  ;;  %v14423_v20 = vperm.slane %v9047_v13, 0  ;;  %6713 = vmatmul.msk.bf16.gmra.mxu0 %vm715_vm8, %v9035_v9  ;;  %6734 = vmatmul.msk.bf16.vlgmr.msra.gmra.mxu1 %vm715_vm8, %v9154_v43 }
 0x224   :  { %v9171_v8 = vmul.f32 %v9142_v58, %v2310_v15  ;;  %v9174_v59 = vmul.f32 %v9133_v10, %v2310_v15  ;;  %v9184_v21 = vunpack.i.l.bf16 %v7492_v11  ;;  %v2340_v0 = vsel %vm462_vm6, %v13923_v51, %v13920_v52  ;;  %6719 = vmatmul.msk.bf16.gmra.mxu3 %vm715_vm8, %v9035_v9  ;;  %v14445_v51 = vld [vmem:[#allocation26_spill] sm:$0xff] }
 0x225   :  { %v2181_v12 = vmul.f32 %v7443_v24, %v14420_v25  ;;  %v2182_v33 = vmul.f32 %v7443_v24, %v14421_v28  ;;  %v2183_v34 = vmul.f32 %v7443_v24, %v14422_v27  ;;  %v2184_v60 = vmul.f32 %v7443_v24, %v14423_v20 }
 0x226   :  { %v14424_v37 = vmov %v14420_v25  ;;  %v14425_v14 = vmov %v14421_v28  ;;  %v9177_v25 = vadd.f32 %v866_v5, %v14426_v29  ;;  %v9180_v28 = vadd.f32 %v882_v42, %v8885_v6  ;;  %v868_v29 = vpop.f32.mrf.mxu2 }
 0x227   :  { %v2177_v35 = vmul.f32 %v7442_v1, %v14424_v37  ;;  %v2178_v49 = vmul.f32 %v7442_v1, %v14425_v14  ;;  %v9193_v24 = vadd.f32 %v828_v56, %v8894_v22  ;;  %v9196_v5 = vadd.f32 %v975_v39, %v8920_v57  ;;  %v9206_v37 = vpop.permute.xlu0 %7496  ;;  %v14429_v22 = vld [vmem:[#allocation49_spill] sm:$0xff] }
 0x228   :  { %v14427_v6 = vmov %v14422_v27  ;;  %v14428_v11 = vmov %v14423_v20  ;;  %v7459_v27 = vunpack.i.h.bf16 %v7457_v62  ;;  %v7458_v20 = vunpack.i.l.bf16 %v7457_v62 }
 0x229   :  { %v2179_v42 = vmul.f32 %v7442_v1, %v14427_v6  ;;  %v2180_v15 = vmul.f32 %v7442_v1, %v14428_v11  ;;  %v14430_v57 = vpack.c.bf16 %v8804_v23, %v14429_v22  ;;  %v2185_v56 = vadd.f32 %v2177_v35, %v2134_v54  ;;  %v14431_v6 = vld [vmem:[#allocation21_spill] sm:$0xff]  ;;  %v885_v11 = vpop.f32.mrf.mxu3  ;;  %v14433_v23 = vld [vmem:[#allocation24_spill] sm:$0xff] }
 0x22a   :  { %v2186_v39 = vadd.f32 %v2178_v49, %v2135_v63  ;;  %v2189_v9 = vadd.f32 %v2181_v12, %v2138_v53  ;;  %v2190_v14 = vadd.f32 %v2182_v33, %v2139_v36  ;;  %v9211_v52 = vadd.f32 %v2183_v34, %v2140_v7  ;;  %v830_v7 = vpop.f32.mrf.mxu0  ;;  %v14435_v12 = vld [vmem:[#allocation23_spill] sm:$0xff] }
 0x22b   :  { %1835 = vmatpush.bf16.msra.mxu1 %v14430_v57  ;;  %v9213_v40 = vadd.f32 %v2184_v60, %v2141_v3  ;;  %v9216_v13 = vmul.f32 %v2340_v0, %v14431_v6  ;;  %v14432_v1 = vunpack.i.l.bf16 %v8990_v44  ;;  %v2236_v53 = vsel %vm336_vm3, %v7458_v20, %v7459_v27  ;;  %v977_v3 = vpop.f32.mrf.mxu1  ;;  %v14436_v34 = vld [vmem:[#allocation11_spill] sm:$0xff]  ;;  %v7472_v0 = vpop.permute.xlu1 %7471  ;;  %6736 = vmatmul.msk.bf16.vlgmr.msra.gmra.mxu2 %vm715_vm8, %v9154_v43  ;;  %v14446_v6 = vld [vmem:[#allocation56_spill] sm:$0xff] }
 0x22c   :  { %v14434_v36 = vunpack.i.h.bf16 %v8990_v44  ;;  %v13921_v63 = vunpack.i.h.bf16 %v9206_v37  ;;  %v9234_v60 = vmul.f32 %v2236_v53, %v14436_v34  ;;  %v13922_v35 = vunpack.i.l.bf16 %v9206_v37  ;;  %v7507_v44 = vpop.permute.xlu2 %7506  ;;  %v14448_v34 = vld [vmem:[#allocation28_spill] sm:$0xff] }
 0x22d   :  { %v2239_v62 = vsel %vm336_vm3, %v7459_v27, %v14432_v1  ;;  %v9238_v49 = vadd.f32 %v868_v29, %v8946_v61  ;;  %v2187_v27 = vadd.f32 %v2179_v42, %v2136_v30  ;;  %v9241_v57 = vadd.f32 %v885_v11, %v8957_v19  ;;  %v14438_v42 = vld [vmem:[#allocation50_spill] sm:$0xff] }
 0x22e   :  { %v9223_v22 = vmul.f32 %v2239_v62, %v14433_v23  ;;  %v2237_v54 = vsel %vm336_vm3, %v14434_v36, %v7458_v20  ;;  %v9244_v20 = vadd.f32 %v830_v7, %v8969_v48  ;;  %v9247_v1 = vadd.f32 %v977_v3, %v8976_v38  ;;  %v14437_v38 = vld [vmem:[#allocation25_spill] sm:$0xff] }
 0x22f   :  { %v2241_v33 = vmul.f32 %v2237_v54, %v14435_v12  ;;  %v2188_v62 = vadd.f32 %v2180_v15, %v2137_v41  ;;  %v2361_v53 = vperm.slane %v9216_v13, 0  ;;  %v2391_v61 = vsel %vm525_vm7, %v13922_v35, %v13921_v63  ;;  %v14439_v15 = vld [vmem:[#allocation48_spill] sm:$0xff] }
 0x230   :  { %v2262_v36 = vperm.slane %v9223_v22, 0  ;;  %v2261_v48 = vperm.slane %v9234_v60, 0  ;;  %v9261_v30 = vmul.f32 %v2391_v61, %v14437_v38  ;;  %v7474_v41 = vunpack.i.h.bf16 %v7472_v0  ;;  %v994_v61 = vpop.f32.mrf.mxu2 }
 0x231   :  { %v2260_v19 = vperm.slane %v2241_v33, 0  ;;  %v14440_v29 = vpack.c.bf16 %v14438_v42, %v14439_v15  ;;  %v2220_v13 = vadd.f32 %v9022_v45, %v2185_v56  ;;  %v9268_v11 = vadd.f32 %v8988_v18, %v2189_v9  ;;  %v887_v56 = vpop.f32.mrf.mxu3 }
 0x232   :  { %v9270_v22 = vunpack.i.h.bf16 %v7507_v44  ;;  %v7473_v54 = vunpack.i.l.bf16 %v7472_v0  ;;  %v9272_v7 = vunpack.i.l.bf16 %v7507_v44  ;;  %v2221_v3 = vadd.f32 %v9025_v17, %v2186_v39 }
 0x233   :  { %1854 = vmatpush.bf16.msra.mxu2 %v14440_v29  ;;  %v2222_v33 = vadd.f32 %v9028_v31, %v2187_v27  ;;  %v13924_v60 = vperm.slane %v9261_v30, 0  ;;  %v2365_v42 = vmul.f32 %v9184_v21, %v2361_v53  ;;  %v2266_v15 = vmul.f32 %v9074_v55, %v2262_v36  ;;  %v956_v27 = vpop.f32.mrf.mxu0  ;;  %v980_v44 = vpop.f32.mrf.mxu1  ;;  %v14444_v29 = vld [vmem:[#allocation55_spill] sm:$0xff]  ;;  %6732 = vmatmul.msk.bf16.vlgmr.msra.gmra.mxu0 %vm715_vm8, %v9154_v43 }
 0x234   :  { %v2223_v45 = vadd.f32 %v9038_v47, %v2188_v62  ;;  %v2225_v18 = vadd.f32 %v8995_v16, %v2190_v14  ;;  %v2264_v9 = vmul.f32 %v9074_v55, %v2260_v19  ;;  %v2265_v0 = vmul.f32 %v9074_v55, %v2261_v48  ;;  %v9291_v47 = vld [vmem:[%s13807_s4 + $0x68] sm:$0xff]  ;;  %v14443_v62 = vld [vmem:[#allocation45_spill] sm:$0xff]  ;;  %6738 = vmatmul.msk.bf16.vlgmr.msra.gmra.mxu3 %vm715_vm8, %v9154_v43  ;;  %v9345_v43 = vpop.permute.xlu0 %2433 }
 0x235   :  { %v2268_v17 = vmul.f32 %v9060_v4, %v2260_v19  ;;  %v14441_v31 = vunpack.i.l.bf16 %v9068_v2  ;;  %v2287_v16 = vsel %vm399_vm4, %v7473_v54, %v7474_v41  ;;  %v14442_v14 = vunpack.i.h.bf16 %v9068_v2  ;;  %6735 = vmatmul.msk.bf16.gmra.mxu1 %vm715_vm8, %v9291_v47 }
 0x236   :  { %v2271_v19 = vadd.f32 %v14443_v62, %v2220_v13  ;;  %v9301_v63 = vadd.f32 %v887_v56, %v14444_v29  ;;  %v2416_v35 = vmul.f32 %v9272_v7, %v13924_v60  ;;  %v9308_v23 = vadd.f32 %v994_v61, %v14446_v6  ;;  %v14449_v56 = vld [vmem:[#allocation58_spill] sm:$0xff]  ;;  %v14451_v6 = vld [vmem:[#allocation27_spill] sm:$0xff] }
 0x237   :  { %v2290_v39 = vsel %vm399_vm4, %v7474_v41, %v14441_v31  ;;  %v2288_v55 = vsel %vm399_vm4, %v14442_v14, %v7473_v54  ;;  %v7487_v31 = vpop.permute.xlu1 %7486  ;;  %v14447_v41 = vld [vmem:[#allocation57_spill] sm:$0xff]  ;;  %v9318_v14 = vadd.f32 %v980_v44, %v14449_v56  ;;  %v2293_v61 = vmul.f32 %v2287_v16, %v14451_v6  ;;  %v14452_v44 = vld [vmem:[#allocation54_spill] sm:$0xff] }
 0x238   :  { %v2292_v38 = vmul.f32 %v2288_v55, %v14445_v51  ;;  %v9311_v2 = vadd.f32 %v956_v27, %v14447_v41  ;;  %v9314_v54 = vmul.f32 %v2290_v39, %v14448_v34  ;;  %v2322_v13 = vadd.f32 %v9171_v8, %v2271_v19  ;;  %v14450_v55 = vld [vmem:[#allocation53_spill] sm:$0xff]  ;;  %v14457_v34 = vld [vmem:[#allocation52_spill] sm:$0xff]  ;;  %v14467_v6 = vld [vmem:[#allocation42_spill] sm:$0xff] }
 0x239   :  { %v7489_v62 = vunpack.i.h.bf16 %v7487_v31  ;;  %v2226_v29 = vadd.f32 %v14450_v55, %v9211_v52  ;;  %v7488_v27 = vunpack.i.l.bf16 %v7487_v31  ;;  %v9330_v8 = vmul.f32 %v9156_v32, %v2361_v53  ;;  %v14453_v16 = vld [vmem:[#allocation41_spill] sm:$0xff] }
 0x23a   :  { %v2311_v60 = vperm.slane %v2292_v38, 0  ;;  %v9333_v39 = vmul.f32 %v9060_v4, %v2262_v36  ;;  %v9337_v19 = vadd.f32 %v14452_v44, %v9213_v40  ;;  %v2373_v52 = vadd.f32 %v2365_v42, %v2322_v13  ;;  %v14454_v38 = vld [vmem:[#allocation43_spill] sm:$0xff]  ;;  %v996_v42 = vpop.f32.mrf.mxu2 }
 0x23b   :  { %v14455_v31 = vpack.c.bf16 %v14453_v16, %v14454_v38  ;;  %v2269_v41 = vmul.f32 %v9060_v4, %v2261_v48  ;;  %v2272_v56 = vadd.f32 %v2264_v9, %v2221_v3  ;;  %v9343_v55 = vadd.f32 %v2266_v15, %v2223_v45  ;;  %v14458_v40 = vld [vmem:[#allocation47_spill] sm:$0xff]  ;;  %v1013_v3 = vpop.f32.mrf.mxu3  ;;  %6737 = vmatmul.msk.bf16.gmra.mxu2 %vm715_vm8, %v9291_v47 }
 0x23c   :  { %v14456_v53 = vunpack.i.l.bf16 %v9128_v46  ;;  %v14459_v44 = vpack.c.bf16 %v14457_v34, %v14458_v40  ;;  %v9354_v13 = vadd.f32 %v2265_v0, %v2222_v33  ;;  %v2276_v16 = vadd.f32 %v2268_v17, %v2225_v18  ;;  %v14461_v18 = vld [vmem:[#allocation31_spill] sm:$0xff] }
 0x23d   :  { %1816 = vmatpush.bf16.msra.mxu0 %v14455_v31  ;;  %v2424_v48 = vadd.f32 %v2416_v35, %v2373_v52  ;;  %v2312_v15 = vperm.slane %v2293_v61, 0  ;;  %v2315_v45 = vmul.f32 %v9142_v58, %v2311_v60  ;;  %v2338_v9 = vsel %vm462_vm6, %v7488_v27, %v7489_v62  ;;  %v958_v31 = vpop.f32.mrf.mxu0  ;;  %v14462_v35 = vld [vmem:[#allocation29_spill] sm:$0xff]  ;;  %v14463_v61 = vld [vmem:[#allocation30_spill] sm:$0xff] }
 0x23e   :  { %v2341_v36 = vsel %vm462_vm6, %v7489_v62, %v14456_v53  ;;  %1873 = vmatpush.bf16.msra.mxu3 %v14459_v44  ;;  %v14460_v38 = vunpack.i.h.bf16 %v9128_v46  ;;  %v982_v53 = vpop.f32.mrf.mxu1  ;;  %v2344_v52 = vmul.f32 %v2338_v9, %v14463_v61  ;;  %v14464_v44 = vld [vmem:[#allocation38_spill] sm:$0xff]  ;;  %v14466_v62 = vld [vmem:[#allocation40_spill] sm:$0xff] }
 0x23f   :  { %v2440_v33 = vadd.f32 %v9345_v43, %v2424_v48  ;;  %v9366_v0 = vmul.f32 %v2341_v36, %v14461_v18  ;;  %v7502_v40 = vpop.permute.xlu1 %7501  ;;  %v9371_v4 = vadd.f32 %v996_v42, %v14464_v44  ;;  %v9374_v46 = vadd.f32 %v1013_v3, %v14466_v62 }
 0x240   :  { %v2339_v34 = vsel %vm462_vm6, %v14460_v38, %v7488_v27  ;;  %v9377_v27 = vadd.f32 %v958_v31, %v14467_v6  ;;  %v14468_v38 = vld [vmem:[#allocation44_spill] sm:$0xff]  ;;  %v2277_v48 = vadd.f32 %v2269_v41, %v2226_v29  ;;  %v14470_v36 = vperm.slane %v9261_v30, 0 }
 0x241   :  { %v2343_v17 = vmul.f32 %v2339_v34, %v14462_v35  ;;  %14465 = vst [vmem:[#allocation46_spill] sm:$0xff] %v9371_v4  ;;  %v9380_v51 = vadd.f32 %v982_v53, %v14468_v38  ;;  %vm2448_vm9 = vcmp.ge.f32.partialorder %v2440_v33, 0.0  ;;  %v2456_v9 = vmul.f32 0.2, %v2440_v33 }
 0x242   :  { %v2420_v34 = vmul.f32 %v9270_v22, %v14470_v36  ;;  %v14471_v42 = vperm.slane %v9314_v54, 0  ;;  %v7504_v6 = vunpack.i.h.bf16 %v7502_v40  ;;  %v7503_v31 = vunpack.i.l.bf16 %v7502_v40  ;;  %v999_v18 = vpop.f32.mrf.mxu2 }
 0x243   :  { %14469 = vst [vmem:[#allocation51_spill] sm:$0xff] %v9380_v51  ;;  %v2362_v44 = vperm.slane %v2343_v17, 0  ;;  %v2316_v53 = vmul.f32 %v9142_v58, %v2312_v15  ;;  %v2319_v29 = vmul.f32 %v9133_v10, %v2311_v60  ;;  %v2320_v30 = vmul.f32 %v9133_v10, %v2312_v15  ;;  %6733 = vmatmul.msk.bf16.gmra.mxu0 %vm715_vm8, %v9291_v47 }
 0x244   :  { %v2317_v3 = vmul.f32 %v9142_v58, %v14471_v42  ;;  %v9393_v41 = vsel %vm2448_vm9, %v2440_v33, %v2456_v9  ;;  %v2323_v62 = vadd.f32 %v2315_v45, %v2272_v56  ;;  %v2363_v36 = vperm.slane %v2344_v52, 0  ;;  %v1015_v33 = vpop.f32.mrf.mxu3  ;;  %v14476_v42 = vld [vmem:[#allocation32_spill] sm:$0xff]  ;;  %6739 = vmatmul.msk.bf16.gmra.mxu3 %vm715_vm8, %v9291_v47 }
 0x245   :  { %14472 = vst [vmem:[#allocation49_spill] sm:$0xff] %v9393_v41  ;;  %2472 = vrot.lane.b32.xlu2 %v9393_v41, %s7537_s19  ;;  %v2275_v17 = vadd.f32 %v9147_v26, %v9268_v11  ;;  %v14473_v40 = vunpack.i.l.bf16 %v9206_v37  ;;  %v2389_v60 = vsel %vm525_vm7, %v7503_v31, %v7504_v6  ;;  %v14474_v56 = vunpack.i.h.bf16 %v9206_v37  ;;  %v14475_v11 = vld [vmem:[#allocation34_spill] sm:$0xff]  ;;  %v961_v38 = vpop.f32.mrf.mxu0 }
 0x246   :  { %v9411_v45 = vadd.f32 %v999_v18, %v9177_v25  ;;  %v2366_v52 = vmul.f32 %v9184_v21, %v2362_v44  ;;  %v2370_v26 = vmul.f32 %v9156_v32, %v2362_v44  ;;  %v1124_v61 = vpop.f32.mrf.mxu1  ;;  %v9419_v37 = vadd.f32 %v1015_v33, %v9180_v28  ;;  %v9430_v18 = vld [vmem:[%s13807_s4 + $0x70] sm:$0xff] }
 0x247   :  { %v2392_v58 = vsel %vm525_vm7, %v7504_v6, %v14473_v40  ;;  %v2390_v15 = vsel %vm525_vm7, %v14474_v56, %v7503_v31  ;;  %v14477_v6 = vld [vmem:[#allocation33_spill] sm:$0xff]  ;;  %v9422_v31 = vadd.f32 %v961_v38, %v9193_v24  ;;  %v9425_v25 = vadd.f32 %v1124_v61, %v9196_v5  ;;  %6754 = vmatmul.msk.bf16.vlgmr.msrb.gmra.mxu1 %vm715_vm8, %v9430_v18 }
 0x248   :  { %v2396_v9 = vmul.f32 %v2392_v58, %v14475_v11  ;;  %v2394_v40 = vmul.f32 %v2390_v15, %v14476_v42  ;;  %v2395_v35 = vmul.f32 %v2389_v60, %v14477_v6  ;;  %14478 = vst [vmem:[#allocation50_spill] sm:$0xff] %v9419_v37  ;;  %v2327_v44 = vadd.f32 %v2319_v29, %v2276_v16 }
 0x249   :  { %v2326_v15 = vadd.f32 %v9174_v59, %v2275_v17  ;;  %v2325_v60 = vadd.f32 %v2317_v3, %v9343_v55  ;;  %v14479_v28 = vperm.slane %v9366_v0, 0  ;;  %v2367_v38 = vmul.f32 %v9184_v21, %v2363_v36 }
 0x24a   :  { %v2415_v58 = vperm.slane %v2396_v9, 0  ;;  %v2413_v56 = vperm.slane %v2394_v40, 0  ;;  %v2414_v5 = vperm.slane %v2395_v35, 0  ;;  %v2374_v61 = vadd.f32 %v2366_v52, %v2323_v62  ;;  %v2438_v52 = vpop.permute.xlu1 %2437  ;;  %v1001_v9 = vpop.f32.mrf.mxu2 }
 0x24b   :  { %v2368_v24 = vmul.f32 %v9184_v21, %v14479_v28  ;;  %v2378_v29 = vadd.f32 %v2370_v26, %v2327_v44  ;;  %v2324_v59 = vadd.f32 %v2316_v53, %v9354_v13  ;;  %v2371_v55 = vmul.f32 %v9156_v32, %v2363_v36  ;;  %6756 = vmatmul.msk.bf16.vlgmr.msrb.gmra.mxu2 %vm715_vm8, %v9430_v18 }
 0x24c   :  { %v2417_v33 = vmul.f32 %v9272_v7, %v2413_v56  ;;  %v2421_v16 = vmul.f32 %v9270_v22, %v2413_v56  ;;  %v2419_v3 = vmul.f32 %v9272_v7, %v2415_v58  ;;  %v2377_v21 = vadd.f32 %v9330_v8, %v2326_v15  ;;  %v1018_v36 = vpop.f32.mrf.mxu3 }
 0x24d   :  { %v2328_v35 = vadd.f32 %v2320_v30, %v2277_v48  ;;  %v2418_v62 = vmul.f32 %v9272_v7, %v2414_v5  ;;  %v2376_v40 = vadd.f32 %v2368_v24, %v2325_v60  ;;  %v2422_v47 = vmul.f32 %v9270_v22, %v2414_v5  ;;  %v963_v30 = vpop.f32.mrf.mxu0 }
 0x24e   :  { %v2425_v17 = vadd.f32 %v2417_v33, %v2374_v61  ;;  %v2429_v26 = vadd.f32 %v2421_v16, %v2378_v29  ;;  %v2428_v13 = vadd.f32 %v2420_v34, %v2377_v21  ;;  %v9453_v53 = vadd.f32 %v1001_v9, %v9238_v49  ;;  %v9459_v15 = vpop.f32.mrf.mxu1  ;;  %v7119_v9 = vld [vmem:[%s13807_s4 + $0x78] sm:$0xff] }
 0x24f   :  { %v14481_v8 = vperm.slane %v9314_v54, 0  ;;  %v2375_v56 = vadd.f32 %v2367_v38, %v2324_v59  ;;  %v2427_v28 = vadd.f32 %v2419_v3, %v2376_v40  ;;  %v2379_v60 = vadd.f32 %v2371_v55, %v2328_v35 }
 0x250   :  { %14480 = vst [vmem:[#allocation48_spill] sm:$0xff] %v9453_v53  ;;  %v2441_v48 = vadd.f32 %v9345_v43, %v2425_v17  ;;  %v2445_v7 = vadd.f32 %v2438_v52, %v2429_v26  ;;  %v2444_v24 = vadd.f32 %v2438_v52, %v2428_v13  ;;  %v9462_v34 = vadd.f32 %v1018_v36, %v9241_v57 }
 0x251   :  { %v2321_v44 = vmul.f32 %v9133_v10, %v14481_v8  ;;  %v2278_v49 = vadd.f32 %v9333_v39, %v9337_v19  ;;  %v2426_v5 = vadd.f32 %v2418_v62, %v2375_v56  ;;  %v2430_v10 = vadd.f32 %v2422_v47, %v2379_v60 }
 0x252   :  { %v2457_v54 = vmul.f32 0.2, %v2441_v48  ;;  %vm2449_vm10 = vcmp.ge.f32.partialorder %v2441_v48, 0.0  ;;  %vm2452_vm11 = vcmp.ge.f32.partialorder %v2444_v24, 0.0  ;;  %vm2453_vm12 = vcmp.ge.f32.partialorder %v2445_v7, 0.0 }
 0x253   :  { %v14482_v38 = vperm.slane %v9366_v0, 0  ;;  %v2460_v33 = vmul.f32 0.2, %v2444_v24  ;;  %v2461_v16 = vmul.f32 0.2, %v2445_v7  ;;  %v2329_v57 = vadd.f32 %v2321_v44, %v2278_v49  ;;  %v1143_v0 = vpop.f32.mrf.mxu2  ;;  %6752 = vmatmul.msk.bf16.vlgmr.msrb.gmra.mxu0 %vm715_vm8, %v9430_v18 }
 0x254   :  { %v2423_v29 = vmul.f32 %v9270_v22, %v2415_v58  ;;  %v2443_v39 = vadd.f32 %v9345_v43, %v2427_v28  ;;  %v9474_v19 = vadd.f32 %v963_v30, %v9244_v20  ;;  %v2442_v59 = vadd.f32 %v9345_v43, %v2426_v5  ;;  %v1020_v22 = vpop.f32.mrf.mxu3  ;;  %6758 = vmatmul.msk.bf16.vlgmr.msrb.gmra.mxu3 %vm715_vm8, %v9430_v18 }
 0x255   :  { %v2372_v61 = vmul.f32 %v9156_v32, %v14482_v38  ;;  %v9477_v55 = vsel %vm2452_vm11, %v2444_v24, %v2460_v33  ;;  %v9479_v3 = vsel %vm2453_vm12, %v2445_v7, %v2461_v16  ;;  %v9481_v21 = vsel %vm2449_vm10, %v2441_v48, %v2457_v54  ;;  %v1105_v35 = vpop.f32.mrf.mxu0  ;;  %v7120_v54 = vld [vmem:[%s13807_s4 + $0x80] sm:$0xff] }
 0x256   :  { %14483 = vst [vmem:[#allocation45_spill] sm:$0xff] %v9474_v19  ;;  %v2446_v32 = vadd.f32 %v2438_v52, %v2430_v10  ;;  %2474 = vrot.lane.b32.xlu1 %v9477_v55, %s7537_s19  ;;  %2478 = vrot.lane.b32.xlu0 %v9479_v3, %s7537_s19  ;;  %v1174_v20 = vadd.f32 %v1143_v0, %v9308_v23  ;;  %v1129_v62 = vpop.f32.mrf.mxu1  ;;  %v2458_v40 = vmul.f32 0.2, %v2442_v59  ;;  %v2459_v47 = vmul.f32 0.2, %v2443_v39 }
 0x257   :  { %14484 = vst [vmem:[#allocation55_spill] sm:$0xff] %v9477_v55  ;;  %v2380_v58 = vadd.f32 %v2372_v61, %v2329_v57  ;;  %2476 = vrot.lane.b32.xlu2 %v9481_v21, %s7537_s19  ;;  %v9491_v43 = vadd.f32 %v1020_v22, %v9301_v63  ;;  %v1172_v17 = vadd.f32 %v1105_v35, %v9311_v2  ;;  %vm2450_vm13 = vcmp.ge.f32.partialorder %v2442_v59, 0.0 }
 0x258   :  { %v1181_v26 = vadd.f32 %v1129_v62, %v9318_v14  ;;  %vm2451_vm14 = vcmp.ge.f32.partialorder %v2443_v39, 0.0  ;;  %v2462_v13 = vmul.f32 0.2, %v2446_v32  ;;  %vm2454_vm15 = vcmp.ge.f32.partialorder %v2446_v32, 0.0  ;;  %6755 = vmatmul.msk.bf16.gmra.mxu1 %vm715_vm8, %v7119_v9 }
 0x259   :  { %14485 = vst [vmem:[#allocation56_spill] sm:$0xff] %v9491_v43  ;;  %v2431_v23 = vadd.f32 %v2423_v29, %v2380_v58  ;;  %v9503_v2 = vsel %vm2450_vm13, %v2442_v59, %v2458_v40  ;;  %v9505_v14 = vsel %vm2451_vm14, %v2443_v39, %v2459_v47  ;;  %v7121_v59 = vld [vmem:[%s13807_s4 + $0x88] sm:$0xff] }
 0x25a   :  { %v9509_v8 = vsel %vm2454_vm15, %v2446_v32, %v2462_v13 }
 0x25b   :  { %v2447_v63 = vadd.f32 %v2438_v52, %v2431_v23  ;;  %v9507_v36 = vpop.f32.mrf.mxu2  ;;  %6757 = vmatmul.msk.bf16.gmra.mxu2 %vm715_vm8, %v7119_v9 }
 0x25c   :  { %14486 = vst [vmem:[#allocation57_spill] sm:$0xff] %v9507_v36  ;;  %v1162_v44 = vpop.f32.mrf.mxu3 }
 0x25d   :  { %v1175_v18 = vadd.f32 %v1162_v44, %v9374_v46  ;;  %v9518_v52 = vpop.f32.mrf.mxu0  ;;  %v2463_v48 = vmul.f32 0.2, %v2447_v63  ;;  %vm2455_vm9 = vcmp.ge.f32.partialorder %v2447_v63, 0.0 }
 0x25e   :  { %2480 = vrot.lane.b32.xlu1 %v9503_v2, %s7537_s19  ;;  %2484 = vrot.lane.b32.xlu0 %v9505_v14, %s7537_s19  ;;  %v9520_v56 = vpop.f32.mrf.mxu1 }
 0x25f   :  { %2482 = vrot.lane.b32.xlu2 %v9509_v8, %s7537_s19  ;;  %14487 = vst [vmem:[#allocation58_spill] sm:$0xff] %v9520_v56  ;;  %v9523_v7 = vsel %vm2455_vm9, %v2447_v63, %v2463_v48 }
 0x263   :  { %v1148_v30 = vpop.f32.mrf.mxu2  ;;  %6753 = vmatmul.msk.bf16.gmra.mxu0 %vm715_vm8, %v7119_v9 }
 0x264   :  { %v1182_v28 = vadd.f32 %v1148_v30, %v9411_v45  ;;  %v9530_v46 = vpop.f32.mrf.mxu3  ;;  %6759 = vmatmul.msk.bf16.gmra.mxu3 %vm715_vm8, %v7119_v9 }
 0x265   :  { %14488 = vst [vmem:[#allocation53_spill] sm:$0xff] %v9530_v46  ;;  %v1110_v60 = vpop.f32.mrf.mxu0 }
 0x266   :  { %2486 = vrot.lane.b32.xlu1 %v9523_v7, %s7537_s19  ;;  %2514 = vrot.lane.b32.xlu0 %v9477_v55, %s7536_s0  ;;  %v1241_v24 = vpop.f32.mrf.mxu1  ;;  %v1180_v49 = vadd.f32 %v1110_v60, %v9422_v31 }
 0x267   :  { %2512 = vrot.lane.b32.xlu2 %v9393_v41, %s7536_s0  ;;  %v1290_v5 = vadd.f32 %v1241_v24, %v9425_v25 }
 0x268   :  { %6774 = vmatmul.msk.bf16.vlgmr.msra.gmra.mxu1 %vm715_vm8, %v7120_v54 }
 0x26b   :  { %v9542_v45 = vpop.f32.mrf.mxu2  ;;  %6776 = vmatmul.msk.bf16.vlgmr.msra.gmra.mxu2 %vm715_vm8, %v7120_v54 }
 0x26c   :  { %14489 = vst [vmem:[#allocation54_spill] sm:$0xff] %v9542_v45  ;;  %v1167_v31 = vpop.f32.mrf.mxu3 }
 0x26d   :  { %v1183_v25 = vadd.f32 %v1167_v31, %v9462_v34  ;;  %v9551_v10 = vpop.f32.mrf.mxu0 }
 0x26e   :  { %2516 = vrot.lane.b32.xlu1 %v9481_v21, %s7536_s0  ;;  %2520 = vrot.lane.b32.xlu0 %v9503_v2, %s7536_s0  ;;  %14490 = vst [vmem:[#allocation41_spill] sm:$0xff] %v9551_v10  ;;  %v9553_v38 = vpop.f32.mrf.mxu1 }
 0x26f   :  { %2518 = vrot.lane.b32.xlu2 %v9479_v3, %s7536_s0 }
 0x273   :  { %v1260_v61 = vpop.f32.mrf.mxu2  ;;  %6772 = vmatmul.msk.bf16.vlgmr.msra.gmra.mxu0 %vm715_vm8, %v7120_v54 }
 0x274   :  { %v9560_v33 = vpop.f32.mrf.mxu3  ;;  %v1291_v16 = vadd.f32 %v1260_v61, %v1174_v20  ;;  %6778 = vmatmul.msk.bf16.vlgmr.msra.gmra.mxu3 %vm715_vm8, %v7120_v54 }
 0x275   :  { %14491 = vst [vmem:[#allocation43_spill] sm:$0xff] %v9560_v33  ;;  %v1222_v57 = vpop.f32.mrf.mxu0 }
 0x276   :  { %2522 = vrot.lane.b32.xlu1 %v9509_v8, %s7536_s0  ;;  %2526 = vrot.lane.b32.xlu0 %v9523_v7, %s7536_s0  ;;  %v1246_v34 = vpop.f32.mrf.mxu1  ;;  %v1289_v39 = vadd.f32 %v1222_v57, %v1172_v17 }
 0x277   :  { %2524 = vrot.lane.b32.xlu2 %v9505_v14, %s7536_s0  ;;  %v1298_v29 = vadd.f32 %v1246_v34, %v1181_v26 }
 0x278   :  { %6775 = vmatmul.msk.bf16.gmra.mxu1 %vm715_vm8, %v7121_v59 }
 0x27b   :  { %v9570_v0 = vpop.f32.mrf.mxu2  ;;  %6777 = vmatmul.msk.bf16.gmra.mxu2 %vm715_vm8, %v7121_v59 }
 0x27c   :  { %14492 = vst [vmem:[#allocation52_spill] sm:$0xff] %v9570_v0  ;;  %v1279_v32 = vpop.f32.mrf.mxu3 }
 0x27d   :  { %v1292_v22 = vadd.f32 %v1279_v32, %v1175_v18  ;;  %v9580_v58 = vpop.f32.mrf.mxu0 }
 0x27e   :  { %2737 = vrot.lane.b32.xlu1 %v9393_v41, %s7538_s24  ;;  %2741 = vrot.lane.b32.xlu0 %v9481_v21, %s7538_s24  ;;  %v9578_v20 = vpop.f32.mrf.mxu1 }
 0x27f   :  { %2739 = vrot.lane.b32.xlu2 %v9477_v55, %s7538_s24  ;;  %14493 = vst [vmem:[#allocation47_spill] sm:$0xff] %v9578_v20 }
 0x283   :  { %v1265_v35 = vpop.f32.mrf.mxu2  ;;  %6773 = vmatmul.msk.bf16.gmra.mxu0 %vm715_vm8, %v7121_v59 }
 0x284   :  { %v1299_v62 = vadd.f32 %v1265_v35, %v1182_v28  ;;  %v9587_v17 = vpop.f32.mrf.mxu3  ;;  %6779 = vmatmul.msk.bf16.gmra.mxu3 %vm715_vm8, %v7121_v59 }
 0x285   :  { %14494 = vst [vmem:[#allocation38_spill] sm:$0xff] %v9587_v17  ;;  %v1227_v9 = vpop.f32.mrf.mxu0 }
 0x286   :  { %2743 = vrot.lane.b32.xlu1 %v9479_v3, %s7538_s24  ;;  %2747 = vrot.lane.b32.xlu0 %v9509_v8, %s7538_s24  ;;  %v1390_v26 = vpop.f32.mrf.mxu1  ;;  %v1297_v47 = vadd.f32 %v1227_v9, %v1180_v49 }
 0x287   :  { %2745 = vrot.lane.b32.xlu2 %v9503_v2, %s7538_s24  ;;  %v9591_v40 = vadd.f32 %v1390_v26, %v1290_v5 }
 0x28b   :  { %v9595_v23 = vpop.f32.mrf.mxu2 }
 0x28c   :  { %14495 = vst [vmem:[#allocation40_spill] sm:$0xff] %v9595_v23  ;;  %v1284_v13 = vpop.f32.mrf.mxu3 }
 0x28d   :  { %v1300_v63 = vadd.f32 %v1284_v13, %v1183_v25  ;;  %v9605_v18 = vpop.f32.mrf.mxu0 }
 0x28e   :  { %2749 = vrot.lane.b32.xlu1 %v9505_v14, %s7538_s24  ;;  %2886 = vrot.lane.b32.xlu0 %v9393_v41, %s7539_s25  ;;  %v9603_v44 = vpop.f32.mrf.mxu1  ;;  %14496 = vst [vmem:[#allocation42_spill] sm:$0xff] %v9605_v18 }
 0x28f   :  { %2751 = vrot.lane.b32.xlu2 %v9523_v7, %s7538_s24 }
 0x293   :  { %v1409_v48 = vpop.f32.mrf.mxu2 }
 0x294   :  { %v9611_v30 = vpop.f32.mrf.mxu3  ;;  %v9613_v28 = vadd.f32 %v1409_v48, %v1291_v16 }
 0x295   :  { %14497 = vst [vmem:[#allocation44_spill] sm:$0xff] %v9611_v30  ;;  %v1371_v24 = vpop.f32.mrf.mxu0 }
 0x296   :  { %2888 = vrot.lane.b32.xlu1 %v9477_v55, %s7539_s25  ;;  %2892 = vrot.lane.b32.xlu0 %v9479_v3, %s7539_s25  ;;  %v1395_v60 = vpop.f32.mrf.mxu1  ;;  %v9617_v5 = vadd.f32 %v1371_v24, %v1289_v39 }
 0x297   :  { %2890 = vrot.lane.b32.xlu2 %v9481_v21, %s7539_s25  ;;  %v1447_v49 = vadd.f32 %v1395_v60, %v1298_v29 }
 0x29b   :  { %v9619_v54 = vpop.f32.mrf.mxu2 }
 0x29c   :  { %14498 = vst [vmem:[#allocation59_spill] sm:$0xff] %v9619_v54  ;;  %v1428_v31 = vpop.f32.mrf.mxu3  ;;  %v14513_v54 = vld [vmem:[#allocation6_spill] sm:$0xff] }
 0x29d   :  { %v9627_v25 = vadd.f32 %v1428_v31, %v1292_v22  ;;  %v9631_v16 = vpop.f32.mrf.mxu0 }
 0x29e   :  { %2894 = vrot.lane.b32.xlu1 %v9503_v2, %s7539_s25  ;;  %2898 = vrot.lane.b32.xlu0 %v9505_v14, %s7539_s25  ;;  %v9629_v61 = vpop.f32.mrf.mxu1 }
 0x29f   :  { %2896 = vrot.lane.b32.xlu2 %v9509_v8, %s7539_s25  ;;  %14499 = vst [vmem:[#allocation60_spill] sm:$0xff] %v9629_v61  ;;  %v9643_v22 = vpop.permute.xlu2 %2472 }
 0x2a3   :  { %v1414_v34 = vpop.f32.mrf.mxu2 }
 0x2a4   :  { %v1448_v57 = vadd.f32 %v1414_v34, %v1299_v62  ;;  %v9637_v29 = vpop.f32.mrf.mxu3 }
 0x2a5   :  { %14500 = vst [vmem:[#allocation61_spill] sm:$0xff] %v9637_v29  ;;  %v1376_v59 = vpop.f32.mrf.mxu0 }
 0x2a6   :  { %2900 = vrot.lane.b32.xlu1 %v9523_v7, %s7539_s25  ;;  %3154 = vrot.lane.b32.xlu0 %v9477_v55, %s7540_s30  ;;  %v9641_v39 = vpop.f32.mrf.mxu1  ;;  %v1446_v32 = vadd.f32 %v1376_v59, %v1297_v47 }
 0x2a7   :  { %3152 = vrot.lane.b32.xlu2 %v9393_v41, %s7540_s30 }
 0x2ab   :  { %v9645_v35 = vpop.f32.mrf.mxu2 }
 0x2ac   :  { %14501 = vst [vmem:[#allocation62_spill] sm:$0xff] %v9645_v35  ;;  %v1433_v62 = vpop.f32.mrf.mxu3 }
 0x2ad   :  { %v1449_v26 = vadd.f32 %v1433_v62, %v1300_v63  ;;  %v9655_v13 = vpop.f32.mrf.mxu0 }
 0x2ae   :  { %3156 = vrot.lane.b32.xlu1 %v9481_v21, %s7540_s30  ;;  %3160 = vrot.lane.b32.xlu0 %v9503_v2, %s7540_s30  ;;  %v9653_v9 = vpop.f32.mrf.mxu1  ;;  %14502 = vst [vmem:[#allocation63_spill] sm:$0xff] %v9655_v13 }
 0x2af   :  { %3158 = vrot.lane.b32.xlu2 %v9479_v3, %s7540_s30 }
 0x2b1   :  { %v9657_v47 = vpop.permute.xlu2 %2476 }
 0x2b2   :  { %v2492_v19 = vsel %vm59_vm1, %v9643_v22, %v9657_v47 }
 0x2b3   :  { %v9659_v48 = vpop.f32.mrf.mxu2 }
 0x2b4   :  { %v9665_v60 = vpop.f32.mrf.mxu3 }
 0x2b5   :  { %14503 = vst [vmem:[#allocation64_spill] sm:$0xff] %v9665_v60  ;;  %v9669_v24 = vpop.f32.mrf.mxu0 }
 0x2b6   :  { %3162 = vrot.lane.b32.xlu1 %v9509_v8, %s7540_s30  ;;  %3166 = vrot.lane.b32.xlu0 %v9523_v7, %s7540_s30  ;;  %v1544_v63 = vpop.f32.mrf.mxu1 }
 0x2b7   :  { %3164 = vrot.lane.b32.xlu2 %v9505_v14, %s7540_s30  ;;  %v1596_v31 = vadd.f32 %v1544_v63, %v1447_v49 }
 0x2b9   :  { %v9671_v34 = vpop.permute.xlu2 %2482 }
 0x2bb   :  { %v9673_v59 = vpop.f32.mrf.mxu2 }
 0x2bc   :  { %14504 = vst [vmem:[#allocation65_spill] sm:$0xff] %v9673_v59  ;;  %v9679_v62 = vpop.f32.mrf.mxu3 }
 0x2bd   :  { %v9685_v6 = vpop.f32.mrf.mxu0 }
 0x2be   :  { %3301 = vrot.lane.b32.xlu1 %v9393_v41, %s7541_s13  ;;  %3305 = vrot.lane.b32.xlu0 %v9481_v21, %s7541_s13  ;;  %v9683_v11 = vpop.f32.mrf.mxu1 }
 0x2bf   :  { %3303 = vrot.lane.b32.xlu2 %v9477_v55, %s7541_s13  ;;  %14505 = vst [vmem:[#allocation66_spill] sm:$0xff] %v9683_v11 }
 0x2c1   :  { %v2513_v60 = vpop.permute.xlu2 %2512 }
 0x2c3   :  { %v1563_v49 = vpop.f32.mrf.mxu2 }
 0x2c4   :  { %v1597_v63 = vadd.f32 %v1563_v49, %v1448_v57  ;;  %v9691_v42 = vpop.f32.mrf.mxu3 }
 0x2c5   :  { %14506 = vst [vmem:[#allocation67_spill] sm:$0xff] %v9691_v42  ;;  %v1525_v33 = vpop.f32.mrf.mxu0 }
 0x2c6   :  { %3307 = vrot.lane.b32.xlu1 %v9479_v3, %s7541_s13  ;;  %3311 = vrot.lane.b32.xlu0 %v9509_v8, %s7541_s13  ;;  %v9697_v23 = vpop.f32.mrf.mxu1  ;;  %v9699_v43 = vadd.f32 %v1525_v33, %v1446_v32 }
 0x2c7   :  { %3309 = vrot.lane.b32.xlu2 %v9503_v2, %s7541_s13 }
 0x2c8   :  { %v9695_v35 = vpop.permute.xlu1 %2474  ;;  %v2479_v30 = vpop.permute.xlu0 %2478 }
 0x2c9   :  { %v2519_v33 = vpop.permute.xlu2 %2518  ;;  %v2493_v10 = vsel %vm59_vm1, %v9695_v35, %v2479_v30  ;;  %v2491_v4 = vsel %vm59_vm1, %v2479_v30, %v9671_v34  ;;  %v14516_v30 = vld [vmem:[#allocation9_spill] sm:$0xff] }
 0x2cb   :  { %v9701_v45 = vpop.f32.mrf.mxu2 }
 0x2cc   :  { %14507 = vst [vmem:[#allocation68_spill] sm:$0xff] %v9701_v45  ;;  %v1582_v57 = vpop.f32.mrf.mxu3 }
 0x2cd   :  { %v9709_v49 = vadd.f32 %v1582_v57, %v1449_v26  ;;  %v9717_v45 = vpop.f32.mrf.mxu0 }
 0x2ce   :  { %3313 = vrot.lane.b32.xlu1 %v9505_v14, %s7541_s13  ;;  %3450 = vrot.lane.b32.xlu0 %v9393_v41, %s7542_s16  ;;  %v9715_v32 = vpop.f32.mrf.mxu1  ;;  %14508 = vst [vmem:[#allocation69_spill] sm:$0xff] %v9717_v45 }
 0x2cf   :  { %3315 = vrot.lane.b32.xlu2 %v9523_v7, %s7541_s13 }
 0x2d0   :  { %v9711_v53 = vpop.permute.xlu1 %2480  ;;  %v9713_v11 = vpop.permute.xlu0 %2484 }
 0x2d1   :  { %v2525_v45 = vpop.permute.xlu2 %2524 }
 0x2d3   :  { %v9719_v61 = vpop.f32.mrf.mxu2 }
 0x2d4   :  { %v9725_v20 = vpop.f32.mrf.mxu3 }
 0x2d5   :  { %14509 = vst [vmem:[#allocation70_spill] sm:$0xff] %v9725_v20  ;;  %v9731_v13 = vpop.f32.mrf.mxu0 }
 0x2d6   :  { %3452 = vrot.lane.b32.xlu1 %v9477_v55, %s7542_s16  ;;  %3456 = vrot.lane.b32.xlu0 %v9479_v3, %s7542_s16  ;;  %v1693_v56 = vpop.f32.mrf.mxu1 }
 0x2d7   :  { %3454 = vrot.lane.b32.xlu2 %v9481_v21, %s7542_s16  ;;  %v9729_v51 = vadd.f32 %v1693_v56, %v1596_v31  ;;  %v7546_v31 = vmov 3  }
 0x2d8   :  { %v2487_v26 = vpop.permute.xlu1 %2486  ;;  %v2515_v57 = vpop.permute.xlu0 %2514  ;;  %7512 = vset.pattern.permute.xlu1 %v7546_v31  ;;  %7513 = vset.pattern.permute.xlu2 %v7546_v31 }
 0x2d9   :  { %14510 = vst [vmem:[#allocation71_spill] sm:$0xff] %v9729_v51  ;;  %v2533_v56 = vsel %vm112_vm0, %v2515_v57, %v2519_v33  ;;  %7514 = vset.pattern.permute.xlu0 %v7546_v31  ;;  %v9769_v31 = vpop.permute.xlu2 %2739 }
 0x2da   :  { %v2541_v29 = vmul.f32 %v2533_v56, %v14513_v54  ;;  %v2534_v56 = vsel %vm112_vm0, %v2525_v45, %v2513_v60 }
 0x2db   :  { %v9733_v18 = vpop.f32.mrf.mxu2 }
 0x2dc   :  { %14511 = vst [vmem:[#allocation72_spill] sm:$0xff] %v9733_v18  ;;  %v9742_v20 = vpop.f32.mrf.mxu3  ;;  %v14512_v18 = vld [vmem:[#allocation4_spill] sm:$0xff] }
 0x2dd   :  { %v2501_v59 = vmul.f32 %v2493_v10, %v14512_v18  ;;  %v9757_v17 = vpop.f32.mrf.mxu0  ;;  %v2497_v36 = vmul.f32 %v2492_v19, %v14512_v18  ;;  %v2490_v10 = vsel %vm59_vm1, %v9657_v47, %v9711_v53  ;;  %v14519_v18 = vld [vmem:[#allocation3_spill] sm:$0xff] }
 0x2de   :  { %3458 = vrot.lane.b32.xlu1 %v9503_v2, %s7542_s16  ;;  %3462 = vrot.lane.b32.xlu0 %v9505_v14, %s7542_s16 }
 0x2df   :  { %3460 = vrot.lane.b32.xlu2 %v9509_v8, %s7542_s16  ;;  %v2509_v37 = vpack.c.bf16 %v2501_v59, %v2497_v36  ;;  %v14517_v59 = vld [vmem:[#allocation5_spill] sm:$0xff] }
 0x2e0   :  { %v2517_v51 = vpop.permute.xlu1 %2516  ;;  %v2521_v12 = vpop.permute.xlu0 %2520 }
 0x2e1   :  { %v2532_v42 = vsel %vm112_vm0, %v2513_v60, %v2517_v51  ;;  %v2530_v47 = vsel %vm112_vm0, %v2517_v51, %v2521_v12  ;;  %v2498_v60 = vmul.f32 %v2490_v10, %v14516_v30 }
 0x2e2   :  { %v2537_v0 = vmul.f32 %v2532_v42, %v14513_v54  ;;  %v7124_v42 = vld [vmem:[%s13810_s6 + $0x10] sm:$0xff]  ;;  %v2536_v54 = vmul.f32 %v2534_v56, %v14517_v59 }
 0x2e3   :  { %v1712_v19 = vpop.f32.mrf.mxu2 }
 0x2e4   :  { %v2550_v46 = vpack.c.bf16 %v2541_v29, %v2537_v0  ;;  %v9776_v36 = vadd.f32 %v1712_v19, %v1597_v63  ;;  %v9778_v0 = vpop.f32.mrf.mxu3  ;;  %v2502_v29 = vmul.f32 %v2491_v4, %v14516_v30  ;;  %v2528_v63 = vsel %vm112_vm0, %v2521_v12, %v2525_v45  ;;  %v14518_v45 = vld [vmem:[#allocation7_spill] sm:$0xff] }
 0x2e5   :  { %14515 = vst [vmem:[#allocation74_spill] sm:$0xff] %v9778_v0  ;;  %v2495_v4 = vsel %vm59_vm1, %v2487_v26, %v9695_v35  ;;  %v2538_v10 = vmul.f32 %v2530_v47, %v14518_v45  ;;  %v1674_v35 = vpop.f32.mrf.mxu0 }
 0x2e6   :  { %3464 = vrot.lane.b32.xlu1 %v9523_v7, %s7542_s16  ;;  %2595 = vmatpush.bf16.msrb.mxu1 %v2550_v46  ;;  %14514 = vst [vmem:[#allocation73_spill] sm:$0xff] %v9776_v36  ;;  %v2489_v46 = vsel %vm59_vm1, %v9671_v34, %v2487_v26  ;;  %v2494_v26 = vsel %vm59_vm1, %v9713_v11, %v9643_v22 }
 0x2e7   :  { %3601 = vrot.lane.b32.xlu0 %v9477_v55, %s7543_s20  ;;  %3599 = vrot.lane.b32.xlu2 %v9393_v41, %s7543_s20  ;;  %v9818_v47 = vadd.f32 %v1674_v35, %v9699_v43  ;;  %v2510_v0 = vpack.c.bf16 %v2502_v29, %v2498_v60  ;;  %v2746_v43 = vpop.permute.xlu2 %2745  ;;  %v1587_v60 = vadd.f32 %v9669_v24, %v9617_v5 }
 0x2e8   :  { %v2523_v19 = vpop.permute.xlu1 %2522  ;;  %v2527_v51 = vpop.permute.xlu0 %2526 }
 0x2e9   :  { %6810 = vmatmul.msk.bf16.vlgmr.msrb.gmra.mxu1 %vm715_vm8, %v7124_v42  ;;  %v2529_v34 = vsel %vm112_vm0, %v2523_v19, %v2527_v51  ;;  %v2535_v12 = vsel %vm112_vm0, %v2527_v51, %v2515_v57  ;;  %v2539_v57 = vmul.f32 %v2528_v63, %v14519_v18  ;;  %v1736_v63 = vadd.f32 %v9731_v13, %v1587_v60  ;;  %v7530_v60 = vld [vmem:[%s13805_s9 + $0x10] sm:$0xff] }
 0x2ea   :  { %2687 = vmatpush.bf16.msra.mxu1 %v2509_v37  ;;  %v2531_v37 = vsel %vm112_vm0, %v2519_v33, %v2523_v19  ;;  %v2540_v30 = vmul.f32 %v2535_v12, %v14517_v59  ;;  %v2543_v36 = vmul.f32 %v2529_v34, %v14519_v18  ;;  %v2488_v33 = vsel %vm59_vm1, %v9711_v53, %v9713_v11  ;;  %v14520_v19 = vld [vmem:[#allocation8_spill] sm:$0xff]  ;;  %v9822_v12 = vpop.f32.mrf.mxu1 }
 0x2eb   :  { %v2542_v56 = vmul.f32 %v2531_v37, %v14518_v45  ;;  %v2500_v51 = vmul.f32 %v2495_v4, %v14520_v19  ;;  %v14521_v37 = vld [vmem:[#allocation10_spill] sm:$0xff]  ;;  %v2496_v55 = vmul.f32 %v2494_v26, %v14520_v19  ;;  %v7139_v19 = vld [vmem:[%s13810_s6 + $0x88] sm:$0xff] }
 0x2ec   :  { %v2503_v34 = vmul.f32 %v2489_v46, %v14521_v37  ;;  %v2549_v59 = vpack.c.bf16 %v2540_v30, %v2536_v54  ;;  %v2552_v53 = vpack.c.bf16 %v2543_v36, %v2539_v57  ;;  %v2499_v41 = vmul.f32 %v2488_v33, %v14521_v37  ;;  %v1731_v11 = vpop.f32.mrf.mxu3  ;;  %v14595_v37 = vld [vmem:[#allocation31_spill] sm:$0xff] }
 0x2ed   :  { %v2551_v45 = vpack.c.bf16 %v2542_v56, %v2538_v10  ;;  %v9831_v22 = vadd.f32 %v1731_v11, %v9709_v49  ;;  %v2508_v54 = vpack.c.bf16 %v2500_v51, %v2496_v55  ;;  %v7125_v55 = vld [vmem:[%s13810_s6 + $0x18] sm:$0xff]  ;;  %v14523_v56 = vld [vmem:[#allocation15_spill] sm:$0xff] }
 0x2ee   :  { %3603 = vrot.lane.b32.xlu1 %v9481_v21, %s7543_s20  ;;  %v2511_v30 = vpack.c.bf16 %v2503_v34, %v2499_v41  ;;  %2576 = vmatpush.bf16.msrb.mxu0 %v2549_v59  ;;  %v1588_v41 = vadd.f32 %v9641_v39, %v9591_v40 }
 0x2ef   :  { %2614 = vmatpush.bf16.msrb.mxu2 %v2551_v45  ;;  %3607 = vrot.lane.b32.xlu0 %v9503_v2, %s7543_s20  ;;  %v2752_v24 = vpop.permute.xlu2 %2751  ;;  %v14522_v45 = vld [vmem:[#allocation14_spill] sm:$0xff] }
 0x2f0   :  { %v2738_v36 = vpop.permute.xlu1 %2737  ;;  %3605 = vrot.lane.b32.xlu2 %v9479_v3, %s7543_s20  ;;  %v2742_v29 = vpop.permute.xlu0 %2741  ;;  %2633 = vmatpush.bf16.msrb.mxu3 %v2552_v53  ;;  %v1737_v59 = vadd.f32 %v9697_v23, %v1588_v41  ;;  %v2760_v11 = vsel %vm175_vm2, %v2752_v24, %v9769_v31 }
 0x2f1   :  { %6808 = vmatmul.msk.bf16.vlgmr.msrb.gmra.mxu0 %vm715_vm8, %v7124_v42  ;;  %v2755_v46 = vsel %vm175_vm2, %v2742_v29, %v2746_v43 }
 0x2f2   :  { %6812 = vmatmul.msk.bf16.vlgmr.msrb.gmra.mxu2 %vm715_vm8, %v7124_v42  ;;  %2668 = vmatpush.bf16.msra.mxu0 %v2508_v54  ;;  %v1837_v49 = vpop.f32.mrf.mxu1  ;;  %v2763_v35 = vmul.f32 %v2755_v46, %v14523_v56  ;;  %v14524_v54 = vld [vmem:[#allocation35_spill] sm:$0xff] }
 0x2f3   :  { %2706 = vmatpush.bf16.msra.mxu2 %v2510_v0  ;;  %v9836_v0 = vpop.f32.mrf.mxu0  ;;  %6814 = vmatmul.msk.bf16.vlgmr.msrb.gmra.mxu3 %vm715_vm8, %v7124_v42  ;;  %v2757_v42 = vsel %vm175_vm2, %v2738_v36, %v2742_v29  ;;  %v1886_v4 = vadd.f32 %v1837_v49, %v1737_v59  ;;  %v7529_v29 = vld [vmem:[%s13805_s9] sm:$0xff]  ;;  %v7531_v59 = vld [vmem:[%s13805_s9 + $0x8] sm:$0xff] }
 0x2f4   :  { %2725 = vmatpush.bf16.msra.mxu3 %v2511_v30  ;;  %v2762_v10 = vmul.f32 %v2757_v42, %v14522_v45  ;;  %v9869_v53 = vpop.f32.mrf.mxu3  ;;  %v14525_v42 = vld [vmem:[#allocation13_spill] sm:$0xff] }
 0x2f5   :  { %v1926_v30 = vadd.f32 %v14524_v54, %v1886_v4 }
 0x2f6   :  { %3609 = vrot.lane.b32.xlu1 %v9509_v8, %s7543_s20 }
 0x2f7   :  { %3613 = vrot.lane.b32.xlu0 %v9523_v7, %s7543_s20  ;;  %v1958_v4 = vmul.f32 0.2, %v1926_v30  ;;  %vm1942_vm10 = vcmp.ge.f32.partialorder %v1926_v30, 0.0 }
 0x2f8   :  { %v2744_v40 = vpop.permute.xlu1 %2743  ;;  %3611 = vrot.lane.b32.xlu2 %v9505_v14, %s7543_s20  ;;  %v2748_v39 = vpop.permute.xlu0 %2747 }
 0x2f9   :  { %v2758_v23 = vsel %vm175_vm2, %v9769_v31, %v2744_v40  ;;  %6811 = vmatmul.msk.bf16.gmra.mxu1 %vm715_vm8, %v7125_v55  ;;  %v2756_v5 = vsel %vm175_vm2, %v2744_v40, %v2748_v39  ;;  %v2754_v41 = vsel %vm175_vm2, %v2748_v39, %v2752_v24  ;;  %v2765_v40 = vmul.f32 %v2760_v11, %v14525_v42 }
 0x2fa   :  { %v2766_v33 = vmul.f32 %v2758_v23, %v14522_v45  ;;  %v2767_v26 = vmul.f32 %v2756_v5, %v14523_v56  ;;  %v14526_v23 = vld [vmem:[#allocation12_spill] sm:$0xff]  ;;  %v14594_v56 = vld [vmem:[#allocation21_spill] sm:$0xff] }
 0x2fb   :  { %v1818_v13 = vpop.f32.mrf.mxu0  ;;  %v2768_v5 = vmul.f32 %v2754_v41, %v14526_v23 }
 0x2fc   :  { %v1885_v57 = vadd.f32 %v1818_v13, %v1736_v63  ;;  %v2775_v51 = vpack.c.bf16 %v2766_v33, %v2762_v10  ;;  %v2776_v34 = vpack.c.bf16 %v2767_v26, %v2763_v35  ;;  %v2891_v33 = vpop.permute.xlu2 %2890  ;;  %v9899_v26 = vpop.f32.mrf.mxu2 }
 0x2fe   :  { %3749 = vperm.xlu1 %7512, %v7529_v29   ;;  %2820 = vmatpush.bf16.msrb.mxu1 %v2775_v51  ;;  %v1925_v49 = vadd.f32 %v14524_v54, %v1885_v57  ;;  %v1590_v57 = vadd.f32 %v9679_v62, %v9627_v25  ;;  %v9907_v51 = vsel %vm1942_vm10, %v1926_v30, %v1958_v4  ;;  %v1875_v29 = vpop.f32.mrf.mxu3 }
 0x2ff   :  { %3757 = vperm.xlu0 %7514, %v7530_v60   ;;  %2839 = vmatpush.bf16.msrb.mxu2 %v2776_v34  ;;  %14527 = vst [vmem:[#allocation35_spill] sm:$0xff] %v9907_v51  ;;  %v7532_v34 = vld [vmem:[%s13805_s9 + $0x18] sm:$0xff] }
 0x300   :  { %v2750_v31 = vpop.permute.xlu1 %2749  ;;  %3753 = vperm.xlu2 %7513, %v7531_v59   ;;  %v9887_v46 = vpop.permute.xlu0 %2886  ;;  %v1957_v35 = vmul.f32 0.2, %v1925_v49  ;;  %vm1941_vm11 = vcmp.ge.f32.partialorder %v1925_v49, 0.0  ;;  %v1739_v25 = vadd.f32 %v9742_v20, %v1590_v57 }
 0x301   :  { %v2753_v39 = vsel %vm175_vm2, %v2746_v43, %v2750_v31  ;;  %v2759_v63 = vsel %vm175_vm2, %v2750_v31, %v2738_v36  ;;  %6809 = vmatmul.msk.bf16.gmra.mxu0 %vm715_vm8, %v7125_v55  ;;  %v7122_v36 = vld [vmem:[%s13810_s6] sm:$0xff] }
 0x302   :  { %6813 = vmatmul.msk.bf16.gmra.mxu2 %vm715_vm8, %v7125_v55  ;;  %v2761_v24 = vmul.f32 %v2759_v63, %v14525_v42  ;;  %v2764_v10 = vmul.f32 %v2753_v39, %v14526_v23  ;;  %v9912_v11 = vsel %vm1941_vm11, %v1925_v49, %v1957_v35  ;;  %v14529_v49 = vld [vmem:[#allocation19_spill] sm:$0xff]  ;;  %v1888_v31 = vadd.f32 %v1875_v29, %v1739_v25  ;;  %v14589_v42 = vld [vmem:[#allocation64_spill] sm:$0xff] }
 0x303   :  { %6815 = vmatmul.msk.bf16.gmra.mxu3 %vm715_vm8, %v7125_v55  ;;  %14528 = vst [vmem:[#allocation75_spill] sm:$0xff] %v9912_v11  ;;  %v2906_v55 = vsel %vm238_vm5, %v9887_v46, %v2891_v33  ;;  %v1589_v39 = vadd.f32 %v9659_v48, %v9613_v28  ;;  %v1177_v25 = vadd.f32 %v9459_v15, %v9247_v1 }
 0x304   :  { %v2774_v43 = vpack.c.bf16 %v2765_v40, %v2761_v24  ;;  %v2777_v13 = vpack.c.bf16 %v2768_v5, %v2764_v10  ;;  %v2911_v60 = vmul.f32 %v2906_v55, %v14529_v49  ;;  %v2897_v20 = vpop.permute.xlu2 %2896  ;;  %v1856_v63 = vpop.f32.mrf.mxu2  ;;  %v1928_v4 = vadd.f32 %v14524_v54, %v1888_v31  ;;  %v14532_v31 = vld [vmem:[#allocation18_spill] sm:$0xff] }
 0x305   :  { %v1738_v5 = vadd.f32 %v9719_v61, %v1589_v39 }
 0x306   :  { %3761 = vperm.xlu1 %7512, %v7532_v34   ;;  %2801 = vmatpush.bf16.msrb.mxu0 %v2774_v43  ;;  %v1960_v35 = vmul.f32 0.2, %v1928_v4  ;;  %v14530_v43 = vld [vmem:[#allocation20_spill] sm:$0xff]  ;;  %vm1944_vm12 = vcmp.ge.f32.partialorder %v1928_v4, 0.0 }
 0x307   :  { %2858 = vmatpush.bf16.msrb.mxu3 %v2777_v13  ;;  %4266 = vrot.lane.b32.xlu0 %v9907_v51, %s7538_s24  ;;  %v1887_v28 = vadd.f32 %v1856_v63, %v1738_v5 }
 0x308   :  { %v2889_v62 = vpop.permute.xlu1 %2888  ;;  %3828 = vrot.lane.b32.xlu2 %v9912_v11, %s7537_s19  ;;  %v2893_v30 = vpop.permute.xlu0 %2892  ;;  %v9950_v29 = vsel %vm1944_vm12, %v1928_v4, %v1960_v35 }
 0x309   :  { %6826 = vmatmul.msk.bf16.vlgmr.msra.gmra.mxu1 %vm715_vm8, %v7122_v36  ;;  %v2907_v41 = vsel %vm238_vm5, %v2889_v62, %v2893_v30  ;;  %v2905_v24 = vsel %vm238_vm5, %v2893_v30, %v2897_v20  ;;  %v1927_v55 = vadd.f32 %v14524_v54, %v1887_v28  ;;  %14531 = vst [vmem:[#allocation76_spill] sm:$0xff] %v9950_v29 }
 0x30a   :  { %v2915_v59 = vmul.f32 %v2907_v41, %v14529_v49  ;;  %v2916_v13 = vmul.f32 %v2905_v24, %v14530_v43  ;;  %v1294_v41 = vadd.f32 %v9553_v38, %v1177_v25  ;;  %v14538_v25 = vld [vmem:[#allocation55_spill] sm:$0xff] }
 0x30b   :  { %vm1943_vm13 = vcmp.ge.f32.partialorder %v1927_v55, 0.0 }
 0x30c   :  { %v2924_v40 = vpack.c.bf16 %v2915_v59, %v2911_v60  ;;  %v1959_v60 = vmul.f32 0.2, %v1927_v55  ;;  %v14533_v59 = vld [vmem:[#allocation17_spill] sm:$0xff]  ;;  %v1443_v38 = vadd.f32 %v9603_v44, %v1294_v41  ;;  %v14540_v41 = vld [vmem:[#allocation50_spill] sm:$0xff] }
 0x30e   :  { %3990 = vrot.lane.b32.xlu1 %v9907_v51, %s7536_s0  ;;  %2969 = vmatpush.bf16.msra.mxu1 %v2924_v40  ;;  %v9977_v24 = vsel %vm1943_vm13, %v1927_v55, %v1959_v60  ;;  %v14541_v60 = vld [vmem:[#allocation53_spill] sm:$0xff] }
 0x30f   :  { %4469 = vrot.lane.b32.xlu0 %v9912_v11, %s7539_s25  ;;  %14534 = vst [vmem:[#allocation77_spill] sm:$0xff] %v9977_v24 }
 0x310   :  { %v2895_v10 = vpop.permute.xlu1 %2894  ;;  %3844 = vrot.lane.b32.xlu2 %v9907_v51, %s7537_s19  ;;  %v2899_v34 = vpop.permute.xlu0 %2898 }
 0x311   :  { %v2904_v48 = vsel %vm238_vm5, %v2891_v33, %v2895_v10  ;;  %6824 = vmatmul.msk.bf16.vlgmr.msra.gmra.mxu0 %vm715_vm8, %v7122_v36  ;;  %v7123_v33 = vld [vmem:[%s13810_s6 + $0x8] sm:$0xff]  ;;  %v2902_v30 = vsel %vm238_vm5, %v2895_v10, %v2899_v34  ;;  %v2908_v54 = vsel %vm238_vm5, %v2899_v34, %v9887_v46  ;;  %v1176_v10 = vadd.f32 %v9518_v52, %v9377_v27  ;;  %v7126_v27 = vld [vmem:[%s13810_s6 + $0x20] sm:$0xff] }
 0x312   :  { %6828 = vmatmul.msk.bf16.vlgmr.msra.gmra.mxu2 %vm715_vm8, %v7122_v36  ;;  %v2912_v61 = vmul.f32 %v2904_v48, %v14530_v43  ;;  %v2910_v46 = vmul.f32 %v2908_v54, %v14532_v31  ;;  %v2913_v40 = vmul.f32 %v2902_v30, %v14533_v59  ;;  %v7127_v54 = vld [vmem:[%s13810_s6 + $0x28] sm:$0xff] }
 0x313   :  { %6830 = vmatmul.msk.bf16.vlgmr.msra.gmra.mxu3 %vm715_vm8, %v7122_v36  ;;  %v14585_v43 = vld [vmem:[#allocation43_spill] sm:$0xff] }
 0x314   :  { %v2925_v57 = vpack.c.bf16 %v2916_v13, %v2912_v61  ;;  %v1820_v13 = vpop.f32.mrf.mxu0 }
 0x316   :  { %2988 = vmatpush.bf16.msra.mxu2 %v2925_v57  ;;  %4250 = vrot.lane.b32.xlu1 %v9912_v11, %s7538_s24 }
 0x317   :  { %3876 = vrot.lane.b32.xlu0 %v9950_v29, %s7537_s19 }
 0x318   :  { %v2901_v36 = vpop.permute.xlu1 %2900  ;;  %3974 = vrot.lane.b32.xlu2 %v9912_v11, %s7536_s0  ;;  %v10022_v55 = vpop.permute.xlu0 %3154 }
 0x319   :  { %v2903_v1 = vsel %vm238_vm5, %v2897_v20, %v2901_v36  ;;  %v2909_v15 = vsel %vm238_vm5, %v2901_v36, %v2889_v62  ;;  %6827 = vmatmul.msk.bf16.gmra.mxu1 %vm715_vm8, %v7123_v33  ;;  %v1592_v20 = vadd.f32 %v9653_v9, %v1443_v38  ;;  %v1839_v62 = vpop.f32.mrf.mxu1  ;;  %v1293_v9 = vadd.f32 %v9580_v58, %v1176_v10  ;;  %v14546_v38 = vld [vmem:[#allocation61_spill] sm:$0xff] }
 0x31a   :  { %v2914_v39 = vmul.f32 %v2909_v15, %v14532_v31  ;;  %v2917_v63 = vmul.f32 %v2903_v1, %v14533_v59  ;;  %v14543_v1 = vld [vmem:[#allocation57_spill] sm:$0xff] }
 0x31b   :  { %v1741_v44 = vadd.f32 %v9715_v32, %v1592_v20  ;;  %v1442_v48 = vadd.f32 %v9631_v16, %v1293_v9  ;;  %v14535_v32 = vld [vmem:[#allocation37_spill] sm:$0xff]  ;;  %v3041_v16 = vpack.c.bf16 %v9479_v3, %v9481_v21  ;;  %v3042_v3 = vpack.c.bf16 %v9509_v8, %v9503_v2  ;;  %v10020_v21 = vpop.permute.xlu2 %3152 }
 0x31c   :  { %v2923_v4 = vpack.c.bf16 %v2914_v39, %v2910_v46  ;;  %v2926_v5 = vpack.c.bf16 %v2917_v63, %v2913_v40  ;;  %v3043_v2 = vpack.c.bf16 %v9523_v7, %v9505_v14  ;;  %v1179_v14 = vadd.f32 %v14541_v60, %v14540_v41  ;;  %v14542_v7 = vld [vmem:[#allocation46_spill] sm:$0xff]  ;;  %v14545_v39 = vld [vmem:[#allocation52_spill] sm:$0xff] }
 0x31d   :  { %v1890_v28 = vadd.f32 %v1839_v62, %v1741_v44  ;;  %v1591_v52 = vadd.f32 %v9685_v6, %v1442_v48  ;;  %v1178_v15 = vadd.f32 %v14543_v1, %v14542_v7  ;;  %v14544_v46 = vld [vmem:[#allocation38_spill] sm:$0xff]  ;;  %v14547_v62 = vld [vmem:[#allocation59_spill] sm:$0xff]  ;;  %v14549_v48 = vld [vmem:[#allocation65_spill] sm:$0xff] }
 0x31e   :  { %2950 = vmatpush.bf16.msra.mxu0 %v2923_v4  ;;  %3007 = vmatpush.bf16.msra.mxu3 %v2926_v5  ;;  %v1296_v40 = vadd.f32 %v14544_v46, %v1179_v14  ;;  %v14548_v44 = vld [vmem:[#allocation67_spill] sm:$0xff] }
 0x31f   :  { %3860 = vrot.lane.b32.xlu1 %v9977_v24, %s7537_s19  ;;  %4006 = vrot.lane.b32.xlu0 %v9977_v24, %s7536_s0  ;;  %v1930_v35 = vadd.f32 %v14535_v32, %v1890_v28  ;;  %v1740_v58 = vadd.f32 %v9757_v17, %v1591_v52  ;;  %v1295_v63 = vadd.f32 %v14545_v39, %v1178_v15  ;;  %v1877_v52 = vpop.f32.mrf.mxu3 }
 0x320   :  { %4485 = vrot.lane.b32.xlu2 %v9907_v51, %s7539_s25  ;;  %v3157_v8 = vpop.permute.xlu1 %3156  ;;  %v1445_v4 = vadd.f32 %v14546_v38, %v1296_v40  ;;  %v3161_v20 = vpop.permute.xlu0 %3160 }
 0x321   :  { %6825 = vmatmul.msk.bf16.gmra.mxu0 %vm715_vm8, %v7123_v33  ;;  %v1962_v6 = vmul.f32 0.2, %v1930_v35  ;;  %v1889_v61 = vadd.f32 %v1820_v13, %v1740_v58  ;;  %vm1946_vm14 = vcmp.ge.f32.partialorder %v1930_v35, 0.0  ;;  %v1444_v10 = vadd.f32 %v14547_v62, %v1295_v63  ;;  %v1858_v58 = vpop.f32.mrf.mxu2  ;;  %v14553_v63 = vld [vmem:[#allocation11_spill] sm:$0xff] }
 0x322   :  { %6829 = vmatmul.msk.bf16.gmra.mxu2 %vm715_vm8, %v7123_v33  ;;  %v1594_v9 = vadd.f32 %v14548_v44, %v1445_v4 }
 0x323   :  { %6831 = vmatmul.msk.bf16.gmra.mxu3 %vm715_vm8, %v7123_v33  ;;  %v10008_v57 = vsel %vm1946_vm14, %v1930_v35, %v1962_v6  ;;  %v1929_v34 = vadd.f32 %v14535_v32, %v1889_v61  ;;  %v14537_v33 = vld [vmem:[#allocation49_spill] sm:$0xff]  ;;  %v3159_v5 = vpop.permute.xlu2 %3158  ;;  %v14550_v35 = vld [vmem:[#allocation74_spill] sm:$0xff] }
 0x324   :  { %14536 = vst [vmem:[#allocation37_spill] sm:$0xff] %v10008_v57  ;;  %v3040_v30 = vpack.c.bf16 %v14538_v25, %v14537_v33  ;;  %v1743_v13 = vadd.f32 %v14550_v35, %v1594_v9  ;;  %v14552_v33 = vld [vmem:[#allocation23_spill] sm:$0xff]  ;;  %v3173_v4 = vsel %vm336_vm3, %v10022_v55, %v3159_v5  ;;  %v1842_v9 = vpop.f32.mrf.mxu1 }
 0x325   :  { %v1961_v17 = vmul.f32 0.2, %v1929_v34  ;;  %vm1945_vm15 = vcmp.ge.f32.partialorder %v1929_v34, 0.0  ;;  %v14558_v35 = vld [vmem:[#allocation71_spill] sm:$0xff] }
 0x327   :  { %4298 = vrot.lane.b32.xlu1 %v9950_v29, %s7538_s24  ;;  %4517 = vrot.lane.b32.xlu0 %v9950_v29, %s7539_s25  ;;  %v10033_v36 = vsel %vm1945_vm15, %v1929_v34, %v1961_v17  ;;  %v1892_v34 = vadd.f32 %v1877_v52, %v1743_v13  ;;  %v3170_v17 = vsel %vm336_vm3, %v3157_v8, %v3161_v20 }
 0x328   :  { %4779 = vrot.lane.b32.xlu2 %v9912_v11, %s7540_s30  ;;  %14539 = vst [vmem:[#allocation49_spill] sm:$0xff] %v10033_v36  ;;  %v3163_v28 = vpop.permute.xlu1 %3162  ;;  %v3177_v60 = vmul.f32 %v3170_v17, %v14552_v33  ;;  %v3167_v14 = vpop.permute.xlu0 %3166  ;;  %v1894_v13 = vadd.f32 %v1842_v9, %v14558_v35  ;;  %v7130_v9 = vld [vmem:[%s13810_s6 + $0x40] sm:$0xff] }
 0x329   :  { %6846 = vmatmul.msk.bf16.vlgmr.msrb.gmra.mxu1 %vm715_vm8, %v7126_v27  ;;  %v3171_v61 = vsel %vm336_vm3, %v3159_v5, %v3163_v28  ;;  %v3175_v39 = vsel %vm336_vm3, %v3167_v14, %v10022_v55 }
 0x32a   :  { %3086 = vmatpush.bf16.msrb.mxu1 %v3041_v16  ;;  %v14551_v16 = vld [vmem:[#allocation72_spill] sm:$0xff]  ;;  %v3181_v25 = vmul.f32 %v3171_v61, %v14552_v33 }
 0x32b   :  { %v3165_v41 = vpop.permute.xlu2 %3164 }
 0x32c   :  { %v3190_v1 = vpack.c.bf16 %v3181_v25, %v3177_v60  ;;  %v3168_v40 = vsel %vm336_vm3, %v3161_v20, %v3165_v41  ;;  %v1823_v25 = vpop.f32.mrf.mxu0 }
 0x32d   :  { %v3178_v20 = vmul.f32 %v3168_v40, %v14553_v63 }
 0x32f   :  { %4501 = vrot.lane.b32.xlu1 %v9977_v24, %s7539_s25  ;;  %3846 = vrot.lane.b32.xlu0 %v10008_v57, %s7537_s19 }
 0x330   :  { %4022 = vrot.lane.b32.xlu2 %v9950_v29, %s7536_s0  ;;  %v3306_v61 = vpop.permute.xlu0 %3305 }
 0x331   :  { %6844 = vmatmul.msk.bf16.vlgmr.msrb.gmra.mxu0 %vm715_vm8, %v7126_v27 }
 0x332   :  { %6848 = vmatmul.msk.bf16.vlgmr.msrb.gmra.mxu2 %vm715_vm8, %v7126_v27  ;;  %3067 = vmatpush.bf16.msrb.mxu0 %v3040_v30  ;;  %v7128_v30 = vld [vmem:[%s13810_s6 + $0x30] sm:$0xff] }
 0x333   :  { %3105 = vmatpush.bf16.msrb.mxu2 %v3042_v3  ;;  %6850 = vmatmul.msk.bf16.vlgmr.msrb.gmra.mxu3 %vm715_vm8, %v7126_v27  ;;  %v1593_v27 = vadd.f32 %v14549_v48, %v1444_v10  ;;  %v14555_v10 = vld [vmem:[#allocation22_spill] sm:$0xff]  ;;  %v14557_v48 = vld [vmem:[#allocation24_spill] sm:$0xff]  ;;  %v10110_v5 = vpop.permute.xlu2 %3303 }
 0x334   :  { %3124 = vmatpush.bf16.msrb.mxu3 %v3043_v2  ;;  %v1932_v2 = vadd.f32 %v14535_v32, %v1892_v34  ;;  %v3180_v55 = vmul.f32 %v3173_v4, %v14555_v10  ;;  %v7129_v34 = vld [vmem:[%s13810_s6 + $0x38] sm:$0xff]  ;;  %v14562_v4 = vld [vmem:[#allocation26_spill] sm:$0xff]  ;;  %v1825_v35 = vpop.f32.mrf.mxu0 }
 0x335   :  { %v1742_v6 = vadd.f32 %v14551_v16, %v1593_v27  ;;  %v3183_v27 = vmul.f32 %v3175_v39, %v14557_v48  ;;  %v10117_v16 = vpop.permute.xlu1 %3301 }
 0x336   :  { %v1964_v15 = vmul.f32 0.2, %v1932_v2  ;;  %vm1948_vm9 = vcmp.ge.f32.partialorder %v1932_v2, 0.0 }
 0x337   :  { %3830 = vrot.lane.b32.xlu1 %v10033_v36, %s7537_s19  ;;  %3976 = vrot.lane.b32.xlu0 %v10033_v36, %s7536_s0  ;;  %v1891_v3 = vadd.f32 %v1858_v58, %v1742_v6 }
 0x338   :  { %4282 = vrot.lane.b32.xlu2 %v9977_v24, %s7538_s24  ;;  %v10095_v62 = vsel %vm1948_vm9, %v1932_v2, %v1964_v15  ;;  %v1893_v2 = vadd.f32 %v1823_v25, %v9818_v47  ;;  %v3312_v15 = vpop.permute.xlu0 %3311  ;;  %v14561_v47 = vld [vmem:[#allocation73_spill] sm:$0xff] }
 0x339   :  { %6847 = vmatmul.msk.bf16.gmra.mxu1 %vm715_vm8, %v7127_v54  ;;  %v1931_v7 = vadd.f32 %v14535_v32, %v1891_v3  ;;  %v3172_v32 = vsel %vm336_vm3, %v10020_v21, %v3157_v8  ;;  %14554 = vst [vmem:[#allocation55_spill] sm:$0xff] %v10095_v62  ;;  %v3174_v8 = vsel %vm336_vm3, %v3165_v41, %v10020_v21  ;;  %v14559_v3 = vld [vmem:[#allocation39_spill] sm:$0xff] }
 0x33a   :  { %v3176_v44 = vmul.f32 %v3172_v32, %v14555_v10  ;;  %v3179_v52 = vmul.f32 %v3174_v8, %v14557_v48  ;;  %v1934_v17 = vadd.f32 %v14559_v3, %v1894_v13 }
 0x33b   :  { %v1963_v46 = vmul.f32 0.2, %v1931_v7  ;;  %vm1947_vm10 = vcmp.ge.f32.partialorder %v1931_v7, 0.0  ;;  %v3310_v41 = vpop.permute.xlu2 %3309 }
 0x33c   :  { %v3189_v58 = vpack.c.bf16 %v3180_v55, %v3176_v44  ;;  %v3192_v6 = vpack.c.bf16 %v3183_v27, %v3179_v52  ;;  %vm1950_vm11 = vcmp.ge.f32.partialorder %v1934_v17, 0.0  ;;  %v3319_v39 = vsel %vm399_vm4, %v3306_v61, %v3310_v41 }
 0x33d   :  { %v3308_v60 = vpop.permute.xlu1 %3307  ;;  %v3326_v55 = vmul.f32 %v3319_v39, %v14562_v4 }
 0x33e   :  { %v3320_v32 = vsel %vm399_vm4, %v3308_v60, %v3312_v15 }
 0x33f   :  { %4268 = vrot.lane.b32.xlu1 %v10008_v57, %s7538_s24  ;;  %4487 = vrot.lane.b32.xlu0 %v10008_v57, %s7539_s25  ;;  %v3330_v8 = vmul.f32 %v3320_v32, %v14562_v4 }
 0x340   :  { %3992 = vrot.lane.b32.xlu2 %v10008_v57, %s7536_s0 }
 0x341   :  { %6845 = vmatmul.msk.bf16.gmra.mxu0 %vm715_vm8, %v7127_v54  ;;  %v3339_v13 = vpack.c.bf16 %v3330_v8, %v3326_v55 }
 0x342   :  { %6849 = vmatmul.msk.bf16.gmra.mxu2 %vm715_vm8, %v7127_v54 }
 0x343   :  { %6851 = vmatmul.msk.bf16.gmra.mxu3 %vm715_vm8, %v7127_v54  ;;  %v3169_v54 = vsel %vm336_vm3, %v3163_v28, %v3167_v14  ;;  %v10102_v28 = vsel %vm1947_vm10, %v1931_v7, %v1963_v46  ;;  %v10133_v14 = vpop.f32.mrf.mxu1 }
 0x344   :  { %v3182_v38 = vmul.f32 %v3169_v54, %v14553_v63  ;;  %14556 = vst [vmem:[#allocation50_spill] sm:$0xff] %v10102_v28  ;;  %v1933_v54 = vadd.f32 %v14559_v3, %v1893_v2 }
 0x346   :  { %v3191_v21 = vpack.c.bf16 %v3182_v38, %v3178_v20  ;;  %v1965_v40 = vmul.f32 0.2, %v1933_v54  ;;  %vm1949_vm12 = vcmp.ge.f32.partialorder %v1933_v54, 0.0  ;;  %v3316_v38 = vpop.permute.xlu2 %3315  ;;  %v1880_v20 = vpop.f32.mrf.mxu3 }
 0x347   :  { %4471 = vrot.lane.b32.xlu1 %v10033_v36, %s7539_s25  ;;  %4781 = vrot.lane.b32.xlu0 %v10033_v36, %s7540_s30  ;;  %v3318_v25 = vsel %vm399_vm4, %v3312_v15, %v3316_v38 }
 0x348   :  { %4252 = vrot.lane.b32.xlu2 %v10033_v36, %s7538_s24  ;;  %v10157_v27 = vsel %vm1949_vm12, %v1933_v54, %v1965_v40 }
 0x349   :  { %6866 = vmatmul.msk.bf16.vlgmr.msra.gmra.mxu1 %vm715_vm8, %v7128_v30  ;;  %14563 = vst [vmem:[#allocation46_spill] sm:$0xff] %v10157_v27 }
 0x34a   :  { %3235 = vmatpush.bf16.msra.mxu1 %v3190_v1  ;;  %v1861_v1 = vpop.f32.mrf.mxu2 }
 0x34b   :  { %v1895_v46 = vadd.f32 %v1861_v1, %v14561_v47 }
 0x34d   :  { %v1935_v44 = vadd.f32 %v14559_v3, %v1895_v46  ;;  %v14566_v46 = vld [vmem:[#allocation16_spill] sm:$0xff] }
 0x34e   :  { %v10192_v15 = vpop.permute.xlu2 %3454  ;;  %v10198_v8 = vpop.f32.mrf.mxu3 }
 0x34f   :  { %3878 = vrot.lane.b32.xlu1 %v10095_v62, %s7537_s19  ;;  %4024 = vrot.lane.b32.xlu0 %v10095_v62, %s7536_s0  ;;  %vm1951_vm13 = vcmp.ge.f32.partialorder %v1935_v44, 0.0 }
 0x350   :  { %3862 = vrot.lane.b32.xlu2 %v10102_v28, %s7537_s19 }
 0x351   :  { %6864 = vmatmul.msk.bf16.vlgmr.msra.gmra.mxu0 %vm715_vm8, %v7128_v30 }
 0x352   :  { %6868 = vmatmul.msk.bf16.vlgmr.msra.gmra.mxu2 %vm715_vm8, %v7128_v30  ;;  %3216 = vmatpush.bf16.msra.mxu0 %v3189_v58  ;;  %v1967_v58 = vmul.f32 0.2, %v1935_v44 }
 0x353   :  { %3254 = vmatpush.bf16.msra.mxu2 %v3191_v21  ;;  %6870 = vmatmul.msk.bf16.vlgmr.msra.gmra.mxu3 %vm715_vm8, %v7128_v30  ;;  %v1966_v30 = vmul.f32 0.2, %v1934_v17  ;;  %v3314_v21 = vpop.permute.xlu1 %3313 }
 0x354   :  { %3273 = vmatpush.bf16.msra.mxu3 %v3192_v6  ;;  %v3317_v6 = vsel %vm399_vm4, %v3310_v41, %v3314_v21  ;;  %v3323_v2 = vsel %vm399_vm4, %v3314_v21, %v10117_v16  ;;  %v14564_v41 = vld [vmem:[#allocation27_spill] sm:$0xff]  ;;  %v10183_v54 = vsel %vm1951_vm13, %v1935_v44, %v1967_v58  ;;  %v14567_v44 = vld [vmem:[#allocation28_spill] sm:$0xff] }
 0x355   :  { %v10135_v7 = vsel %vm1950_vm11, %v1934_v17, %v1966_v30  ;;  %v3322_v17 = vsel %vm399_vm4, %v10110_v5, %v3308_v60  ;;  %v10177_v30 = vpop.f32.mrf.mxu2  ;;  %v3327_v1 = vmul.f32 %v3317_v6, %v14564_v41  ;;  %14565 = vst [vmem:[#allocation57_spill] sm:$0xff] %v10183_v54  ;;  %v3324_v60 = vsel %vm399_vm4, %v3316_v38, %v10110_v5  ;;  %v14569_v5 = vld [vmem:[#allocation41_spill] sm:$0xff] }
 0x356   :  { %14560 = vst [vmem:[#allocation53_spill] sm:$0xff] %v10135_v7  ;;  %v3329_v32 = vmul.f32 %v3322_v17, %v14566_v46  ;;  %v3331_v40 = vmul.f32 %v3318_v25, %v14564_v41  ;;  %v3332_v21 = vmul.f32 %v3324_v60, %v14567_v44  ;;  %v7131_v60 = vld [vmem:[%s13810_s6 + $0x48] sm:$0xff] }
 0x357   :  { %4008 = vrot.lane.b32.xlu1 %v10102_v28, %s7536_s0  ;;  %4284 = vrot.lane.b32.xlu0 %v10102_v28, %s7538_s24 }
 0x358   :  { %4300 = vrot.lane.b32.xlu2 %v10095_v62, %s7538_s24  ;;  %v3340_v38 = vpack.c.bf16 %v3331_v40, %v3327_v1 }
 0x359   :  { %6867 = vmatmul.msk.bf16.gmra.mxu1 %vm715_vm8, %v7129_v34 }
 0x35b   :  { %v10215_v17 = vpop.permute.xlu1 %3452 }
 0x35f   :  { %4519 = vrot.lane.b32.xlu1 %v10095_v62, %s7539_s25  ;;  %3994 = vrot.lane.b32.xlu0 %v10135_v7, %s7536_s0 }
 0x360   :  { %4503 = vrot.lane.b32.xlu2 %v10102_v28, %s7539_s25 }
 0x361   :  { %6865 = vmatmul.msk.bf16.gmra.mxu0 %vm715_vm8, %v7129_v34 }
 0x362   :  { %6869 = vmatmul.msk.bf16.gmra.mxu2 %vm715_vm8, %v7129_v34 }
 0x363   :  { %6871 = vmatmul.msk.bf16.gmra.mxu3 %vm715_vm8, %v7129_v34  ;;  %v1896_v34 = vadd.f32 %v1880_v20, %v9831_v22  ;;  %v3321_v22 = vsel %vm399_vm4, %v10117_v16, %v3306_v61  ;;  %v3328_v20 = vmul.f32 %v3323_v2, %v14567_v44  ;;  %v14568_v16 = vld [vmem:[#allocation45_spill] sm:$0xff]  ;;  %v14571_v2 = vld [vmem:[#allocation63_spill] sm:$0xff] }
 0x364   :  { %v1184_v61 = vadd.f32 %v14569_v5, %v14568_v16 }
 0x365   :  { %v1936_v47 = vadd.f32 %v14559_v3, %v1896_v34  ;;  %v3325_v3 = vmul.f32 %v3321_v22, %v14566_v46  ;;  %v3341_v25 = vpack.c.bf16 %v3332_v21, %v3328_v20  ;;  %v10219_v22 = vpop.permute.xlu0 %3450  ;;  %v14578_v46 = vld [vmem:[#allocation66_spill] sm:$0xff] }
 0x366   :  { %v10160_v52 = vpop.f32.mrf.mxu1 }
 0x367   :  { %3848 = vrot.lane.b32.xlu1 %v10135_v7, %s7537_s19  ;;  %4254 = vrot.lane.b32.xlu0 %v10157_v27, %s7538_s24  ;;  %v1968_v6 = vmul.f32 0.2, %v1936_v47  ;;  %v3338_v34 = vpack.c.bf16 %v3329_v32, %v3325_v3  ;;  %vm1952_vm14 = vcmp.ge.f32.partialorder %v1936_v47, 0.0  ;;  %v14572_v32 = vld [vmem:[#allocation69_spill] sm:$0xff]  ;;  %v14575_v3 = vld [vmem:[#allocation58_spill] sm:$0xff] }
 0x368   :  { %3832 = vrot.lane.b32.xlu2 %v10157_v27, %s7537_s19 }
 0x369   :  { %6886 = vmatmul.msk.bf16.vlgmr.msrb.gmra.mxu1 %vm715_vm8, %v7130_v9  ;;  %v10228_v5 = vsel %vm1952_vm14, %v1936_v47, %v1968_v6 }
 0x36a   :  { %3384 = vmatpush.bf16.msrb.mxu1 %v3339_v13  ;;  %v14570_v13 = vld [vmem:[#allocation42_spill] sm:$0xff]  ;;  %14573 = vst [vmem:[#allocation38_spill] sm:$0xff] %v10228_v5 }
 0x36b   :  { %v1301_v58 = vadd.f32 %v14570_v13, %v1184_v61  ;;  %v3461_v13 = vpop.permute.xlu2 %3460 }
 0x36d   :  { %v1450_v1 = vadd.f32 %v14571_v2, %v1301_v58  ;;  %v14576_v58 = vld [vmem:[#allocation47_spill] sm:$0xff] }
 0x36e   :  { %v10196_v39 = vpop.f32.mrf.mxu1  ;;  %v10210_v55 = vpop.f32.mrf.mxu0 }
 0x36f   :  { %3978 = vrot.lane.b32.xlu1 %v10157_v27, %s7536_s0  ;;  %3864 = vrot.lane.b32.xlu0 %v10183_v54, %s7537_s19  ;;  %v1599_v16 = vadd.f32 %v14572_v32, %v1450_v1  ;;  %v3459_v1 = vpop.permute.xlu1 %3458 }
 0x370   :  { %4270 = vrot.lane.b32.xlu2 %v10135_v7, %s7538_s24 }
 0x371   :  { %6884 = vmatmul.msk.bf16.vlgmr.msrb.gmra.mxu0 %vm715_vm8, %v7130_v9  ;;  %v1748_v21 = vadd.f32 %v9836_v0, %v1599_v16  ;;  %v3457_v16 = vpop.permute.xlu0 %3456 }
 0x372   :  { %6888 = vmatmul.msk.bf16.vlgmr.msrb.gmra.mxu2 %vm715_vm8, %v7130_v9  ;;  %3365 = vmatpush.bf16.msrb.mxu0 %v3338_v34 }
 0x373   :  { %3403 = vmatpush.bf16.msrb.mxu2 %v3340_v38  ;;  %6890 = vmatmul.msk.bf16.vlgmr.msrb.gmra.mxu3 %vm715_vm8, %v7130_v9  ;;  %v14574_v9 = vld [vmem:[#allocation51_spill] sm:$0xff]  ;;  %v1897_v34 = vadd.f32 %v1825_v35, %v1748_v21 }
 0x374   :  { %3422 = vmatpush.bf16.msrb.mxu3 %v3341_v25  ;;  %v1185_v38 = vadd.f32 %v14575_v3, %v14574_v9  ;;  %v14577_v25 = vld [vmem:[#allocation60_spill] sm:$0xff] }
 0x375   :  { %v10221_v40 = vpop.f32.mrf.mxu2  ;;  %v14579_v3 = vld [vmem:[#allocation36_spill] sm:$0xff] }
 0x376   :  { %v10230_v20 = vpop.f32.mrf.mxu1  ;;  %v10234_v61 = vpop.f32.mrf.mxu3  ;;  %v1302_v6 = vadd.f32 %v14576_v58, %v1185_v38  ;;  %v1937_v0 = vadd.f32 %v14579_v3, %v1897_v34  ;;  %v14580_v34 = vld [vmem:[#allocation29_spill] sm:$0xff] }
 0x377   :  { %4489 = vrot.lane.b32.xlu1 %v10135_v7, %s7539_s25  ;;  %4302 = vrot.lane.b32.xlu0 %v10228_v5, %s7538_s24  ;;  %v10243_v47 = vpop.f32.mrf.mxu0  ;;  %v3465_v33 = vpop.permute.xlu1 %3464 }
 0x378   :  { %4473 = vrot.lane.b32.xlu2 %v10157_v27, %s7539_s25  ;;  %v1451_v2 = vadd.f32 %v14577_v25, %v1302_v6  ;;  %v1969_v58 = vmul.f32 0.2, %v1937_v0  ;;  %v10270_v6 = vpop.permute.xlu2 %3599  ;;  %vm1953_vm15 = vcmp.ge.f32.partialorder %v1937_v0, 0.0 }
 0x379   :  { %6887 = vmatmul.msk.bf16.gmra.mxu1 %vm715_vm8, %v7131_v60 }
 0x37a   :  { %v1600_v9 = vadd.f32 %v14578_v46, %v1451_v2  ;;  %v3468_v46 = vsel %vm462_vm6, %v10192_v15, %v3459_v1  ;;  %v10285_v48 = vsel %vm1953_vm15, %v1937_v0, %v1969_v58  ;;  %v14586_v0 = vld [vmem:[#allocation40_spill] sm:$0xff] }
 0x37b   :  { %v3475_v25 = vmul.f32 %v3468_v46, %v14580_v34  ;;  %14583 = vst [vmem:[#allocation52_spill] sm:$0xff] %v10285_v48  ;;  %v14584_v46 = vld [vmem:[#allocation56_spill] sm:$0xff] }
 0x37c   :  { %v1749_v35 = vadd.f32 %v9822_v12, %v1600_v9  ;;  %v3469_v12 = vsel %vm462_vm6, %v3457_v16, %v3461_v13  ;;  %v7132_v9 = vld [vmem:[%s13810_s6 + $0x50] sm:$0xff]  ;;  %v1187_v31 = vadd.f32 %v14585_v43, %v14584_v46 }
 0x37d   :  { %v10248_v32 = vpop.f32.mrf.mxu2  ;;  %v3479_v63 = vmul.f32 %v3469_v12, %v14580_v34  ;;  %v3463_v12 = vpop.permute.xlu0 %3462  ;;  %v14587_v43 = vld [vmem:[#allocation44_spill] sm:$0xff] }
 0x37e   :  { %v10252_v41 = vpop.f32.mrf.mxu1  ;;  %v10256_v44 = vpop.f32.mrf.mxu3  ;;  %v1898_v21 = vadd.f32 %v10133_v14, %v1749_v35  ;;  %v14581_v14 = vld [vmem:[#allocation48_spill] sm:$0xff]  ;;  %v14582_v35 = vld [vmem:[#allocation54_spill] sm:$0xff] }
 0x37f   :  { %4026 = vrot.lane.b32.xlu1 %v10228_v5, %s7536_s0  ;;  %4505 = vrot.lane.b32.xlu0 %v10183_v54, %s7539_s25  ;;  %v10263_v38 = vpop.f32.mrf.mxu0  ;;  %v1186_v4 = vadd.f32 %v14582_v35, %v14581_v14  ;;  %v3488_v58 = vpack.c.bf16 %v3479_v63, %v3475_v25  ;;  %v14588_v35 = vld [vmem:[#allocation62_spill] sm:$0xff]  ;;  %v3471_v63 = vsel %vm462_vm6, %v10215_v17, %v3457_v16 }
 0x380   :  { %3880 = vrot.lane.b32.xlu2 %v10228_v5, %s7537_s19  ;;  %v1938_v10 = vadd.f32 %v14579_v3, %v1898_v21  ;;  %v3466_v25 = vsel %vm462_vm6, %v3459_v1, %v3463_v12  ;;  %v3470_v16 = vsel %vm462_vm6, %v10219_v22, %v10192_v15  ;;  %v3478_v18 = vmul.f32 %v3471_v63, %v14594_v56 }
 0x381   :  { %6885 = vmatmul.msk.bf16.gmra.mxu0 %vm715_vm8, %v7131_v60  ;;  %v1303_v21 = vadd.f32 %v14586_v0, %v1186_v4  ;;  %v14590_v0 = vld [vmem:[#allocation30_spill] sm:$0xff] }
 0x382   :  { %6889 = vmatmul.msk.bf16.gmra.mxu2 %vm715_vm8, %v7131_v60  ;;  %v1970_v34 = vmul.f32 0.2, %v1938_v10  ;;  %vm1954_vm9 = vcmp.ge.f32.partialorder %v1938_v10, 0.0 }
 0x383   :  { %6891 = vmatmul.msk.bf16.gmra.mxu3 %vm715_vm8, %v7131_v60  ;;  %v1452_v46 = vadd.f32 %v14588_v35, %v1303_v21 }
 0x384   :  { %v10329_v1 = vsel %vm1954_vm9, %v1938_v10, %v1970_v34  ;;  %v3474_v34 = vmul.f32 %v3470_v16, %v14594_v56 }
 0x385   :  { %v10276_v2 = vpop.f32.mrf.mxu2  ;;  %14593 = vst [vmem:[#allocation61_spill] sm:$0xff] %v10329_v1 }
 0x386   :  { %v2689_v59 = vpop.f32.mrf.mxu1  ;;  %v10295_v23 = vpop.f32.mrf.mxu3 }
 0x387   :  { %v10291_v60 = vadd.f32 %v2689_v59, %v10160_v52  ;;  %4286 = vrot.lane.b32.xlu1 %v10183_v54, %s7538_s24  ;;  %3834 = vrot.lane.b32.xlu0 %v10285_v48, %s7537_s19  ;;  %v10302_v14 = vpop.f32.mrf.mxu0  ;;  %v1304_v59 = vadd.f32 %v14587_v43, %v1187_v31  ;;  %v3467_v52 = vsel %vm462_vm6, %v3461_v13, %v3465_v33  ;;  %v10315_v31 = vpop.permute.xlu2 %3605 }
 0x388   :  { %4010 = vrot.lane.b32.xlu2 %v10183_v54, %s7536_s0  ;;  %v3473_v13 = vsel %vm462_vm6, %v3465_v33, %v10215_v17  ;;  %v3480_v21 = vmul.f32 %v3467_v52, %v14590_v0  ;;  %v3472_v33 = vsel %vm462_vm6, %v3463_v12, %v10219_v22  ;;  %v3476_v17 = vmul.f32 %v3466_v25, %v14590_v0 }
 0x389   :  { %6906 = vmatmul.msk.bf16.vlgmr.msra.gmra.mxu1 %vm715_vm8, %v7132_v9  ;;  %v1453_v4 = vadd.f32 %v14589_v42, %v1304_v59  ;;  %v14592_v59 = vld [vmem:[#allocation70_spill] sm:$0xff]  ;;  %v3477_v63 = vmul.f32 %v3472_v33, %v14595_v37 }
 0x38a   :  { %3533 = vmatpush.bf16.msra.mxu1 %v3488_v58  ;;  %v14591_v58 = vld [vmem:[#allocation68_spill] sm:$0xff]  ;;  %v3489_v12 = vpack.c.bf16 %v3480_v21, %v3476_v17 }
 0x38b   :  { %v1601_v42 = vadd.f32 %v14591_v58, %v1452_v46  ;;  %v1602_v35 = vadd.f32 %v14592_v59, %v1453_v4  ;;  %v3481_v46 = vmul.f32 %v3473_v13, %v14595_v37  ;;  %v3487_v58 = vpack.c.bf16 %v3478_v18, %v3474_v34  ;;  %v7133_v18 = vld [vmem:[%s13810_s6 + $0x58] sm:$0xff] }
 0x38d   :  { %v10321_v43 = vpop.f32.mrf.mxu2  ;;  %v1750_v10 = vadd.f32 %v9899_v26, %v1601_v42  ;;  %v1751_v22 = vadd.f32 %v9869_v53, %v1602_v35  ;;  %v10358_v53 = vpop.permute.xlu0 %3601  ;;  %v3490_v21 = vpack.c.bf16 %v3481_v46, %v3477_v63 }
 0x38e   :  { %v2691_v52 = vpop.f32.mrf.mxu1  ;;  %v10342_v15 = vpop.f32.mrf.mxu3 }
 0x38f   :  { %v10338_v4 = vadd.f32 %v2691_v52, %v10196_v39  ;;  %3996 = vrot.lane.b32.xlu1 %v10329_v1, %s7536_s0  ;;  %4272 = vrot.lane.b32.xlu0 %v10329_v1, %s7538_s24  ;;  %v2670_v39 = vpop.f32.mrf.mxu0  ;;  %v1899_v13 = vadd.f32 %v10177_v30, %v1750_v10  ;;  %v1900_v26 = vadd.f32 %v10198_v8, %v1751_v22  ;;  %v10361_v42 = vpop.permute.xlu1 %3603 }
 0x390   :  { %4521 = vrot.lane.b32.xlu2 %v10228_v5, %s7539_s25  ;;  %v10354_v25 = vadd.f32 %v2670_v39, %v10210_v55  ;;  %v10372_v35 = vpop.permute.xlu2 %3611 }
 0x391   :  { %6904 = vmatmul.msk.bf16.vlgmr.msra.gmra.mxu0 %vm715_vm8, %v7132_v9  ;;  %v1939_v30 = vadd.f32 %v14579_v3, %v1899_v13  ;;  %v1940_v8 = vadd.f32 %v14579_v3, %v1900_v26 }
 0x392   :  { %6908 = vmatmul.msk.bf16.vlgmr.msra.gmra.mxu2 %vm715_vm8, %v7132_v9  ;;  %3514 = vmatpush.bf16.msra.mxu0 %v3487_v58 }
 0x393   :  { %3552 = vmatpush.bf16.msra.mxu2 %v3489_v12  ;;  %6910 = vmatmul.msk.bf16.vlgmr.msra.gmra.mxu3 %vm715_vm8, %v7132_v9  ;;  %v1972_v52 = vmul.f32 0.2, %v1940_v8  ;;  %vm1955_vm10 = vcmp.ge.f32.partialorder %v1939_v30, 0.0  ;;  %vm1956_vm11 = vcmp.ge.f32.partialorder %v1940_v8, 0.0 }
 0x394   :  { %3571 = vmatpush.bf16.msra.mxu3 %v3490_v21 }
 0x395   :  { %v2708_v59 = vpop.f32.mrf.mxu2  ;;  %v3608_v46 = vpop.permute.xlu0 %3607  ;;  %v10395_v34 = vsel %vm1956_vm11, %v1940_v8, %v1972_v52 }
 0x396   :  { %v10365_v55 = vadd.f32 %v2708_v59, %v10221_v40  ;;  %v2694_v16 = vpop.f32.mrf.mxu1  ;;  %v2727_v40 = vpop.f32.mrf.mxu3  ;;  %14597 = vst [vmem:[#allocation67_spill] sm:$0xff] %v10395_v34  ;;  %v3617_v21 = vsel %vm525_vm7, %v10361_v42, %v3608_v46 }
 0x397   :  { %v10375_v33 = vadd.f32 %v2694_v16, %v10230_v20  ;;  %4256 = vrot.lane.b32.xlu1 %v10285_v48, %s7538_s24  ;;  %4475 = vrot.lane.b32.xlu0 %v10285_v48, %s7539_s25  ;;  %v10382_v9 = vadd.f32 %v2727_v40, %v10234_v61  ;;  %v2672_v3 = vpop.f32.mrf.mxu0  ;;  %v1971_v20 = vmul.f32 0.2, %v1939_v30  ;;  %v3610_v12 = vpop.permute.xlu1 %3609 }
 0x398   :  { %3850 = vrot.lane.b32.xlu2 %v10329_v1, %s7537_s19  ;;  %v10388_v17 = vadd.f32 %v2672_v3, %v10243_v47  ;;  %v10404_v13 = vpop.permute.xlu2 %3753 }
 0x399   :  { %6907 = vmatmul.msk.bf16.gmra.mxu1 %vm715_vm8, %v7133_v18  ;;  %v10393_v61 = vsel %vm1955_vm10, %v1939_v30, %v1971_v20 }
 0x39a   :  { %14596 = vst [vmem:[#allocation59_spill] sm:$0xff] %v10393_v61 }
 0x39d   :  { %v2710_v10 = vpop.f32.mrf.mxu2  ;;  %v3614_v40 = vpop.permute.xlu0 %3613 }
 0x39e   :  { %v10391_v22 = vadd.f32 %v2710_v10, %v10248_v32  ;;  %v2696_v39 = vpop.f32.mrf.mxu1  ;;  %v2729_v47 = vpop.f32.mrf.mxu3 }
 0x39f   :  { %v10398_v63 = vadd.f32 %v2696_v39, %v10252_v41  ;;  %3866 = vrot.lane.b32.xlu1 %v10393_v61, %s7537_s19  ;;  %3882 = vrot.lane.b32.xlu0 %v10395_v34, %s7537_s19  ;;  %v10407_v32 = vadd.f32 %v2729_v47, %v10256_v44  ;;  %v2675_v26 = vpop.f32.mrf.mxu0  ;;  %v3618_v41 = vsel %vm525_vm7, %v10315_v31, %v3610_v12  ;;  %v14598_v44 = vld [vmem:[#allocation32_spill] sm:$0xff] }
 0x3a0   :  { %3980 = vrot.lane.b32.xlu2 %v10285_v48, %s7536_s0  ;;  %v10415_v58 = vadd.f32 %v2675_v26, %v10263_v38  ;;  %v3628_v59 = vmul.f32 %v3618_v41, %v14598_v44  ;;  %v7134_v38 = vld [vmem:[%s13810_s6 + $0x60] sm:$0xff]  ;;  %v3624_v16 = vmul.f32 %v3617_v21, %v14598_v44  ;;  %v3616_v39 = vsel %vm525_vm7, %v3610_v12, %v3614_v40  ;;  %v10449_v47 = vpop.permute.xlu2 %3828 }
 0x3a1   :  { %6905 = vmatmul.msk.bf16.gmra.mxu0 %vm715_vm8, %v7133_v18  ;;  %14599 = vst [vmem:[#allocation65_spill] sm:$0xff] %v10449_v47  ;;  %v3615_v26 = vsel %vm525_vm7, %v3608_v46, %v10372_v35  ;;  %v3622_v12 = vsel %vm525_vm7, %v3614_v40, %v10358_v53  ;;  %v14601_v46 = vld [vmem:[#allocation25_spill] sm:$0xff] }
 0x3a2   :  { %6909 = vmatmul.msk.bf16.gmra.mxu2 %vm715_vm8, %v7133_v18 }
 0x3a3   :  { %6911 = vmatmul.msk.bf16.gmra.mxu3 %vm715_vm8, %v7133_v18 }
 0x3a5   :  { %v2713_v30 = vpop.f32.mrf.mxu2 }
 0x3a6   :  { %v10425_v8 = vadd.f32 %v2713_v30, %v10276_v2  ;;  %v2822_v3 = vpop.f32.mrf.mxu1  ;;  %v2732_v52 = vpop.f32.mrf.mxu3  ;;  %v3637_v2 = vpack.c.bf16 %v3628_v59, %v3624_v16  ;;  %v3620_v59 = vsel %vm525_vm7, %v10358_v53, %v10315_v31 }
 0x3a7   :  { %v10432_v20 = vadd.f32 %v2822_v3, %v10291_v60  ;;  %4304 = vrot.lane.b32.xlu1 %v10395_v34, %s7538_s24  ;;  %4012 = vrot.lane.b32.xlu0 %v10393_v61, %s7536_s0  ;;  %v10439_v18 = vadd.f32 %v2732_v52, %v10295_v23  ;;  %v2677_v10 = vpop.f32.mrf.mxu0  ;;  %v3619_v23 = vsel %vm525_vm7, %v10270_v6, %v10361_v42  ;;  %v14602_v52 = vld [vmem:[#allocation34_spill] sm:$0xff] }
 0x3a8   :  { %4491 = vrot.lane.b32.xlu2 %v10329_v1, %s7539_s25  ;;  %v10446_v60 = vadd.f32 %v2677_v10, %v10302_v14  ;;  %v14600_v14 = vld [vmem:[#allocation33_spill] sm:$0xff]  ;;  %v3621_v42 = vsel %vm525_vm7, %v10372_v35, %v10270_v6  ;;  %v3623_v16 = vmul.f32 %v3619_v23, %v14601_v46 }
 0x3a9   :  { %6926 = vmatmul.msk.bf16.vlgmr.msrb.gmra.mxu1 %vm715_vm8, %v7134_v38  ;;  %v3629_v41 = vmul.f32 %v3616_v39, %v14600_v14  ;;  %v3625_v40 = vmul.f32 %v3615_v26, %v14600_v14  ;;  %v3626_v39 = vmul.f32 %v3621_v42, %v14602_v52 }
 0x3aa   :  { %3682 = vmatpush.bf16.msrb.mxu1 %v3637_v2  ;;  %v3630_v2 = vmul.f32 %v3622_v12, %v14602_v52  ;;  %v10491_v12 = vpop.permute.xlu2 %3844 }
 0x3ab   :  { %v3638_v6 = vpack.c.bf16 %v3629_v41, %v3625_v40  ;;  %14603 = vst [vmem:[#allocation74_spill] sm:$0xff] %v10491_v12 }
 0x3ac   :  { %v3639_v26 = vpack.c.bf16 %v3630_v2, %v3626_v39 }
 0x3ad   :  { %v2715_v21 = vpop.f32.mrf.mxu2 }
 0x3ae   :  { %v10467_v30 = vadd.f32 %v2715_v21, %v10321_v43  ;;  %v2824_v3 = vpop.f32.mrf.mxu1  ;;  %v2734_v31 = vpop.f32.mrf.mxu3  ;;  %v3627_v43 = vmul.f32 %v3620_v59, %v14601_v46 }
 0x3af   :  { %v10477_v10 = vadd.f32 %v2824_v3, %v10338_v4  ;;  %4507 = vrot.lane.b32.xlu1 %v10393_v61, %s7539_s25  ;;  %4817 = vrot.lane.b32.xlu0 %v10393_v61, %s7540_s30  ;;  %v2735_v53 = vadd.f32 %v2734_v31, %v10342_v15  ;;  %v2803_v35 = vpop.f32.mrf.mxu0 }
 0x3b0   :  { %4028 = vrot.lane.b32.xlu2 %v10395_v34, %s7536_s0  ;;  %v2870_v4 = vadd.f32 %v2803_v35, %v10354_v25  ;;  %v3636_v23 = vpack.c.bf16 %v3627_v43, %v3623_v16  ;;  %v7135_v25 = vld [vmem:[%s13810_s6 + $0x68] sm:$0xff] }
 0x3b1   :  { %6924 = vmatmul.msk.bf16.vlgmr.msrb.gmra.mxu0 %vm715_vm8, %v7134_v38 }
 0x3b2   :  { %6928 = vmatmul.msk.bf16.vlgmr.msrb.gmra.mxu2 %vm715_vm8, %v7134_v38  ;;  %3663 = vmatpush.bf16.msrb.mxu0 %v3636_v23  ;;  %v10513_v3 = vpop.permute.xlu2 %3974 }
 0x3b3   :  { %3701 = vmatpush.bf16.msrb.mxu2 %v3638_v6  ;;  %6930 = vmatmul.msk.bf16.vlgmr.msrb.gmra.mxu3 %vm715_vm8, %v7134_v38  ;;  %14604 = vst [vmem:[#allocation72_spill] sm:$0xff] %v10513_v3 }
 0x3b4   :  { %3720 = vmatpush.bf16.msrb.mxu3 %v3639_v26 }
 0x3b5   :  { %v2841_v41 = vpop.f32.mrf.mxu2 }
 0x3b6   :  { %v2872_v15 = vadd.f32 %v2841_v41, %v10365_v55  ;;  %v2827_v21 = vpop.f32.mrf.mxu1  ;;  %v2860_v42 = vpop.f32.mrf.mxu3 }
 0x3b7   :  { %v2879_v59 = vadd.f32 %v2827_v21, %v10375_v33  ;;  %4523 = vrot.lane.b32.xlu1 %v10395_v34, %s7539_s25  ;;  %4813 = vrot.lane.b32.xlu0 %v10102_v28, %s7540_s30  ;;  %v2873_v38 = vadd.f32 %v2860_v42, %v10382_v9  ;;  %v2805_v16 = vpop.f32.mrf.mxu0 }
 0x3b8   :  { %4288 = vrot.lane.b32.xlu2 %v10393_v61, %s7538_s24  ;;  %v10507_v55 = vadd.f32 %v2805_v16, %v10388_v17 }
 0x3b9   :  { %6927 = vmatmul.msk.bf16.gmra.mxu1 %vm715_vm8, %v7135_v25 }
 0x3ba   :  { %v10540_v23 = vpop.permute.xlu2 %4485 }
 0x3bb   :  { %14605 = vst [vmem:[#allocation71_spill] sm:$0xff] %v10540_v23 }
 0x3bd   :  { %v2843_v40 = vpop.f32.mrf.mxu2 }
 0x3be   :  { %v10511_v33 = vadd.f32 %v2843_v40, %v10391_v22  ;;  %v2829_v2 = vpop.f32.mrf.mxu1  ;;  %v2862_v9 = vpop.f32.mrf.mxu3 }
 0x3bf   :  { %v10516_v31 = vadd.f32 %v2829_v2, %v10398_v63  ;;  %4783 = vrot.lane.b32.xlu1 %v10157_v27, %s7540_s30  ;;  %4799 = vrot.lane.b32.xlu0 %v10135_v7, %s7540_s30  ;;  %v10523_v17 = vadd.f32 %v2862_v9, %v10407_v32  ;;  %v2808_v43 = vpop.f32.mrf.mxu0  ;;  %v7136_v32 = vld [vmem:[%s13810_s6 + $0x70] sm:$0xff] }
 0x3c0   :  { %4785 = vrot.lane.b32.xlu2 %v10285_v48, %s7540_s30  ;;  %v2878_v22 = vadd.f32 %v2808_v43, %v10415_v58 }
 0x3c1   :  { %6925 = vmatmul.msk.bf16.gmra.mxu0 %vm715_vm8, %v7135_v25 }
 0x3c2   :  { %6929 = vmatmul.msk.bf16.gmra.mxu2 %vm715_vm8, %v7135_v25  ;;  %v10561_v40 = vpop.permute.xlu2 %4779 }
 0x3c3   :  { %6931 = vmatmul.msk.bf16.gmra.mxu3 %vm715_vm8, %v7135_v25  ;;  %14608 = vst [vmem:[#allocation45_spill] sm:$0xff] %v10561_v40 }
 0x3c5   :  { %v2846_v63 = vpop.f32.mrf.mxu2 }
 0x3c6   :  { %v2880_v6 = vadd.f32 %v2846_v63, %v10425_v8  ;;  %v2971_v35 = vpop.f32.mrf.mxu1  ;;  %v2865_v58 = vpop.f32.mrf.mxu3 }
 0x3c7   :  { %v3020_v39 = vadd.f32 %v2971_v35, %v10432_v20  ;;  %4831 = vrot.lane.b32.xlu1 %v10228_v5, %s7540_s30  ;;  %4797 = vrot.lane.b32.xlu0 %v10008_v57, %s7540_s30  ;;  %v2881_v26 = vadd.f32 %v2865_v58, %v10439_v18  ;;  %v2810_v41 = vpop.f32.mrf.mxu0 }
 0x3c8   :  { %4815 = vrot.lane.b32.xlu2 %v10183_v54, %s7540_s30  ;;  %v10546_v8 = vadd.f32 %v2810_v41, %v10446_v60 }
 0x3c9   :  { %6946 = vmatmul.msk.bf16.vlgmr.msra.gmra.mxu1 %vm715_vm8, %v7136_v32 }
 0x3cd   :  { %v2848_v20 = vpop.f32.mrf.mxu2 }
 0x3ce   :  { %v10550_v25 = vadd.f32 %v2848_v20, %v10467_v30  ;;  %v10552_v21 = vpop.f32.mrf.mxu1  ;;  %v2867_v42 = vpop.f32.mrf.mxu3 }
 0x3cf   :  { %4827 = vrot.lane.b32.xlu1 %v9950_v29, %s7540_s30  ;;  %v10556_v18 = vadd.f32 %v2867_v42, %v2735_v53  ;;  %v2952_v16 = vpop.f32.mrf.mxu0  ;;  %v10564_v30 = vpop.permute.xlu1 %3749  ;;  %v7137_v53 = vld [vmem:[%s13810_s6 + $0x78] sm:$0xff] }
 0x3d0   :  { %14606 = vst [vmem:[#allocation39_spill] sm:$0xff] %v10550_v25  ;;  %4833 = vrot.lane.b32.xlu2 %v10395_v34, %s7540_s30  ;;  %v3019_v60 = vadd.f32 %v2952_v16, %v2870_v4 }
 0x3d1   :  { %14607 = vst [vmem:[#allocation73_spill] sm:$0xff] %v10556_v18  ;;  %6944 = vmatmul.msk.bf16.vlgmr.msra.gmra.mxu0 %vm715_vm8, %v7136_v32 }
 0x3d2   :  { %6948 = vmatmul.msk.bf16.vlgmr.msra.gmra.mxu2 %vm715_vm8, %v7136_v32 }
 0x3d3   :  { %6950 = vmatmul.msk.bf16.vlgmr.msra.gmra.mxu3 %vm715_vm8, %v7136_v32  ;;  %v10577_v32 = vpop.permute.xlu2 %4022 }
 0x3d4   :  { %14609 = vst [vmem:[#allocation41_spill] sm:$0xff] %v10577_v32 }
 0x3d5   :  { %v2990_v2 = vpop.f32.mrf.mxu2 }
 0x3d6   :  { %v3021_v9 = vadd.f32 %v2990_v2, %v2872_v15  ;;  %v2976_v43 = vpop.f32.mrf.mxu1  ;;  %v3009_v4 = vpop.f32.mrf.mxu3 }
 0x3d7   :  { %v3028_v63 = vadd.f32 %v2976_v43, %v2879_v59  ;;  %4801 = vrot.lane.b32.xlu1 %v10329_v1, %s7540_s30  ;;  %v3022_v35 = vadd.f32 %v3009_v4, %v2873_v38  ;;  %v10572_v58 = vpop.f32.mrf.mxu0  ;;  %v10581_v41 = vpop.permute.xlu1 %3761  ;;  %v7138_v4 = vld [vmem:[%s13810_s6 + $0x80] sm:$0xff] }
 0x3d8   :  { %4811 = vrot.lane.b32.xlu2 %v9977_v24, %s7540_s30  ;;  %14610 = vst [vmem:[#allocation42_spill] sm:$0xff] %v10581_v41  ;;  %v10589_v38 = vpop.permute.xlu0 %3757 }
 0x3d9   :  { %6947 = vmatmul.msk.bf16.gmra.mxu1 %vm715_vm8, %v7137_v53 }
 0x3db   :  { %v10597_v46 = vpop.permute.xlu2 %4282 }
 0x3dc   :  { %14611 = vst [vmem:[#allocation63_spill] sm:$0xff] %v10597_v46 }
 0x3dd   :  { %v10579_v15 = vpop.f32.mrf.mxu2 }
 0x3de   :  { %v10583_v20 = vpop.f32.mrf.mxu1  ;;  %v10585_v59 = vpop.f32.mrf.mxu3 }
 0x3df   :  { %v2957_v42 = vpop.f32.mrf.mxu0  ;;  %v10599_v56 = vpop.permute.xlu1 %3990 }
 0x3e0   :  { %4829 = vrot.lane.b32.xlu2 %v10095_v62, %s7540_s30  ;;  %v3027_v16 = vadd.f32 %v2957_v42, %v2878_v22  ;;  %14612 = vst [vmem:[#allocation69_spill] sm:$0xff] %v10599_v56 }
 0x3e1   :  { %6945 = vmatmul.msk.bf16.gmra.mxu0 %vm715_vm8, %v7137_v53 }
 0x3e2   :  { %6949 = vmatmul.msk.bf16.gmra.mxu2 %vm715_vm8, %v7137_v53 }
 0x3e3   :  { %6951 = vmatmul.msk.bf16.gmra.mxu3 %vm715_vm8, %v7137_v53 }
 0x3e5   :  { %v2995_v2 = vpop.f32.mrf.mxu2 }
 0x3e6   :  { %v3029_v43 = vadd.f32 %v2995_v2, %v2880_v6  ;;  %v3088_v44 = vpop.f32.mrf.mxu1  ;;  %v3014_v52 = vpop.f32.mrf.mxu3 }
 0x3e7   :  { %v3137_v14 = vadd.f32 %v3088_v44, %v3020_v39  ;;  %v3030_v22 = vadd.f32 %v3014_v52, %v2881_v26  ;;  %v10601_v42 = vpop.f32.mrf.mxu0  ;;  %v10606_v6 = vpop.permute.xlu0 %4266 }
 0x3e8   :  { %4795 = vrot.lane.b32.xlu2 %v9907_v51, %s7540_s30  ;;  %14613 = vst [vmem:[#allocation51_spill] sm:$0xff] %v10606_v6  ;;  %v10614_v44 = vpop.permute.xlu2 %3992  ;;  %v10617_v52 = vpop.permute.xlu1 %4250 }
 0x3e9   :  { %6966 = vmatmul.msk.bf16.vlgmr.msrb.gmra.mxu1 %vm715_vm8, %v7138_v4  ;;  %14616 = vst [vmem:[#allocation60_spill] sm:$0xff] %v10614_v44 }
 0x3ea   :  { %14617 = vst [vmem:[#allocation66_spill] sm:$0xff] %v10617_v52 }
 0x3ed   :  { %v10608_v53 = vpop.f32.mrf.mxu2 }
 0x3ee   :  { %14614 = vst [vmem:[#allocation58_spill] sm:$0xff] %v10608_v53  ;;  %v10610_v2 = vpop.f32.mrf.mxu1  ;;  %v10612_v37 = vpop.f32.mrf.mxu3 }
 0x3ef   :  { %14615 = vst [vmem:[#allocation47_spill] sm:$0xff] %v10612_v37  ;;  %v3069_v39 = vpop.f32.mrf.mxu0  ;;  %v10621_v40 = vpop.permute.xlu0 %4469 }
 0x3f0   :  { %v3136_v0 = vadd.f32 %v3069_v39, %v3019_v60  ;;  %14618 = vst [vmem:[#allocation36_spill] sm:$0xff] %v10621_v40  ;;  %v10629_v32 = vpop.permute.xlu2 %4252  ;;  %v10631_v52 = vpop.permute.xlu1 %3860 }
 0x3f1   :  { %6964 = vmatmul.msk.bf16.vlgmr.msrb.gmra.mxu0 %vm715_vm8, %v7138_v4  ;;  %14619 = vst [vmem:[#allocation48_spill] sm:$0xff] %v10629_v32 }
 0x3f2   :  { %6968 = vmatmul.msk.bf16.vlgmr.msrb.gmra.mxu2 %vm715_vm8, %v7138_v4  ;;  %14620 = vst [vmem:[#allocation54_spill] sm:$0xff] %v10631_v52 }
 0x3f3   :  { %6970 = vmatmul.msk.bf16.vlgmr.msrb.gmra.mxu3 %vm715_vm8, %v7138_v4 }
 0x3f5   :  { %v3107_v26 = vpop.f32.mrf.mxu2 }
 0x3f6   :  { %v3138_v46 = vadd.f32 %v3107_v26, %v3021_v9  ;;  %v3093_v45 = vpop.f32.mrf.mxu1  ;;  %v3126_v49 = vpop.f32.mrf.mxu3 }
 0x3f7   :  { %v3145_v44 = vadd.f32 %v3093_v45, %v3028_v63  ;;  %v3139_v60 = vadd.f32 %v3126_v49, %v3022_v35  ;;  %v10626_v39 = vpop.f32.mrf.mxu0  ;;  %v10637_v9 = vpop.permute.xlu0 %3876 }
 0x3f8   :  { %14621 = vst [vmem:[#allocation56_spill] sm:$0xff] %v10637_v9  ;;  %v10643_v49 = vpop.permute.xlu2 %3862  ;;  %v10646_v32 = vpop.permute.xlu1 %4298 }
 0x3f9   :  { %6967 = vmatmul.msk.bf16.gmra.mxu1 %vm715_vm8, %v7139_v19  ;;  %14622 = vst [vmem:[#allocation43_spill] sm:$0xff] %v10643_v49 }
 0x3fa   :  { %14623 = vst [vmem:[#allocation40_spill] sm:$0xff] %v10646_v32 }
 0x3fd   :  { %v10633_v4 = vpop.f32.mrf.mxu2 }
 0x3fe   :  { %v10635_v6 = vpop.f32.mrf.mxu1  ;;  %v10639_v26 = vpop.f32.mrf.mxu3 }
 0x3ff   :  { %v3074_v40 = vpop.f32.mrf.mxu0 }
 0x400   :  { %v3144_v45 = vadd.f32 %v3074_v40, %v3027_v16  ;;  %v10652_v40 = vpop.permute.xlu0 %4006  ;;  %v10656_v50 = vpop.permute.xlu2 %4300 }
 0x401   :  { %6965 = vmatmul.msk.bf16.gmra.mxu0 %vm715_vm8, %v7139_v19  ;;  %14625 = vst [vmem:[#allocation62_spill] sm:$0xff] %v10652_v40 }
 0x402   :  { %6969 = vmatmul.msk.bf16.gmra.mxu2 %vm715_vm8, %v7139_v19  ;;  %14627 = vst [vmem:[#allocation68_spill] sm:$0xff] %v10656_v50 }
 0x403   :  { %6971 = vmatmul.msk.bf16.gmra.mxu3 %vm715_vm8, %v7139_v19  ;;  %v10662_v19 = vpop.permute.xlu1 %4501 }
 0x404   :  { %14629 = vst [vmem:[#allocation78_spill] sm:$0xff] %v10662_v19 }
 0x405   :  { %v3112_v63 = vpop.f32.mrf.mxu2 }
 0x406   :  { %v3146_v35 = vadd.f32 %v3112_v63, %v3029_v43  ;;  %v3237_v52 = vpop.f32.mrf.mxu1  ;;  %v3131_v9 = vpop.f32.mrf.mxu3 }
 0x407   :  { %v10648_v23 = vadd.f32 %v3237_v52, %v3137_v14  ;;  %v3147_v3 = vadd.f32 %v3131_v9, %v3030_v22  ;;  %v10650_v56 = vpop.f32.mrf.mxu0 }
 0x408   :  { %14624 = vst [vmem:[#allocation44_spill] sm:$0xff] %v10650_v56  ;;  %v10666_v14 = vpop.permute.xlu0 %4517  ;;  %v10670_v12 = vpop.permute.xlu2 %4503 }
 0x409   :  { %14630 = vst [vmem:[#allocation79_spill] sm:$0xff] %v10666_v14 }
 0x40a   :  { %14631 = vst [vmem:[#allocation80_spill] sm:$0xff] %v10670_v12 }
 0x40b   :  { %v10676_v1 = vpop.permute.xlu1 %3830 }
 0x40c   :  { %14632 = vst [vmem:[#allocation81_spill] sm:$0xff] %v10676_v1 }
 0x40d   :  { %v10654_v16 = vpop.f32.mrf.mxu2 }
 0x40e   :  { %14626 = vst [vmem:[#allocation64_spill] sm:$0xff] %v10654_v16  ;;  %v10658_v49 = vpop.f32.mrf.mxu1  ;;  %v10660_v47 = vpop.f32.mrf.mxu3 }
 0x40f   :  { %14628 = vst [vmem:[#allocation70_spill] sm:$0xff] %v10660_v47  ;;  %v3218_v43 = vpop.f32.mrf.mxu0 }
 0x410   :  { %v10664_v63 = vadd.f32 %v3218_v43, %v3136_v0  ;;  %v10680_v0 = vpop.permute.xlu0 %3846 }
 0x411   :  { %14633 = vst [vmem:[#allocation82_spill] sm:$0xff] %v10680_v0 }
 0x415   :  { %v3256_v22 = vpop.f32.mrf.mxu2 }
 0x416   :  { %v10668_v52 = vadd.f32 %v3256_v22, %v3138_v46  ;;  %v3242_v9 = vpop.f32.mrf.mxu1  ;;  %v3275_v40 = vpop.f32.mrf.mxu3 }
 0x417   :  { %v3294_v32 = vadd.f32 %v3242_v9, %v3145_v44  ;;  %v10672_v50 = vadd.f32 %v3275_v40, %v3139_v60  ;;  %v10674_v51 = vpop.f32.mrf.mxu0  ;;  %v10686_v44 = vpop.permute.xlu2 %3832 }
 0x418   :  { %14634 = vst [vmem:[#allocation83_spill] sm:$0xff] %v10686_v44  ;;  %v10688_v9 = vpop.permute.xlu1 %4268  ;;  %v10690_v57 = vpop.permute.xlu0 %3976 }
 0x419   :  { %14635 = vst [vmem:[#allocation84_spill] sm:$0xff] %v10688_v9 }
 0x41a   :  { %14636 = vst [vmem:[#allocation85_spill] sm:$0xff] %v10690_v57 }
 0x41d   :  { %v10678_v19 = vpop.f32.mrf.mxu2 }
 0x41e   :  { %v10682_v43 = vpop.f32.mrf.mxu1  ;;  %v10684_v14 = vpop.f32.mrf.mxu3 }
 0x41f   :  { %v3223_v46 = vpop.f32.mrf.mxu0  ;;  %v10694_v0 = vpop.permute.xlu2 %4270 }
 0x420   :  { %v3293_v22 = vadd.f32 %v3223_v46, %v3144_v45  ;;  %14638 = vst [vmem:[#allocation87_spill] sm:$0xff] %v10694_v0  ;;  %v10698_v36 = vpop.permute.xlu1 %4471 }
 0x421   :  { %14640 = vst [vmem:[#allocation89_spill] sm:$0xff] %v10698_v36 }
 0x425   :  { %v3261_v60 = vpop.f32.mrf.mxu2 }
 0x426   :  { %v3295_v40 = vadd.f32 %v3261_v60, %v3146_v35  ;;  %v3386_v12 = vpop.f32.mrf.mxu1  ;;  %v3280_v1 = vpop.f32.mrf.mxu3 }
 0x427   :  { %v3296_v62 = vadd.f32 %v3280_v1, %v3147_v3  ;;  %v10692_v29 = vpop.f32.mrf.mxu0  ;;  %v10706_v35 = vpop.permute.xlu0 %4487 }
 0x428   :  { %14637 = vst [vmem:[#allocation86_spill] sm:$0xff] %v10692_v29  ;;  %v10710_v9 = vpop.permute.xlu2 %4473  ;;  %v10714_v0 = vpop.permute.xlu1 %3878 }
 0x429   :  { %14642 = vst [vmem:[#allocation91_spill] sm:$0xff] %v10706_v35 }
 0x42a   :  { %14643 = vst [vmem:[#allocation92_spill] sm:$0xff] %v10710_v9 }
 0x42b   :  { %14644 = vst [vmem:[#allocation93_spill] sm:$0xff] %v10714_v0 }
 0x42d   :  { %v10696_v24 = vpop.f32.mrf.mxu2 }
 0x42e   :  { %14639 = vst [vmem:[#allocation88_spill] sm:$0xff] %v10696_v24  ;;  %v10700_v45 = vpop.f32.mrf.mxu1  ;;  %v10702_v46 = vpop.f32.mrf.mxu3 }
 0x42f   :  { %14641 = vst [vmem:[#allocation90_spill] sm:$0xff] %v10702_v46  ;;  %v10704_v44 = vpop.f32.mrf.mxu0  ;;  %v10718_v36 = vpop.permute.xlu0 %4781 }
 0x430   :  { %14645 = vst [vmem:[#allocation94_spill] sm:$0xff] %v10718_v36  ;;  %v10726_v35 = vpop.permute.xlu2 %3880  ;;  %v10728_v27 = vpop.permute.xlu1 %4008 }
 0x431   :  { %14646 = vst [vmem:[#allocation95_spill] sm:$0xff] %v10726_v35 }
 0x432   :  { %14647 = vst [vmem:[#allocation96_spill] sm:$0xff] %v10728_v27 }
 0x435   :  { %v10708_v60 = vpop.f32.mrf.mxu2 }
 0x436   :  { %v3391_v1 = vpop.f32.mrf.mxu1  ;;  %v10712_v57 = vpop.f32.mrf.mxu3 }
 0x437   :  { %v3443_v3 = vadd.f32 %v3391_v1, %v3294_v32  ;;  %v10716_v7 = vpop.f32.mrf.mxu0  ;;  %v10730_v1 = vpop.permute.xlu0 %4024 }
 0x438   :  { %14648 = vst [vmem:[#allocation97_spill] sm:$0xff] %v10730_v1  ;;  %v10734_v46 = vpop.permute.xlu2 %4010  ;;  %v10736_v47 = vpop.permute.xlu1 %4519 }
 0x439   :  { %14650 = vst [vmem:[#allocation99_spill] sm:$0xff] %v10734_v46 }
 0x43a   :  { %14651 = vst [vmem:[#allocation100_spill] sm:$0xff] %v10736_v47 }
 0x43d   :  { %v10720_v5 = vpop.f32.mrf.mxu2 }
 0x43e   :  { %v10722_v61 = vpop.f32.mrf.mxu1  ;;  %v10724_v28 = vpop.f32.mrf.mxu3 }
 0x43f   :  { %v3372_v48 = vpop.f32.mrf.mxu0 }
 0x440   :  { %v3442_v9 = vadd.f32 %v3372_v48, %v3293_v22  ;;  %v10742_v48 = vpop.permute.xlu0 %4284  ;;  %v10746_v1 = vpop.permute.xlu2 %4521 }
 0x441   :  { %14653 = vst [vmem:[#allocation102_spill] sm:$0xff] %v10742_v48 }
 0x442   :  { %14655 = vst [vmem:[#allocation104_spill] sm:$0xff] %v10746_v1 }
 0x445   :  { %v3410_v32 = vpop.f32.mrf.mxu2 }
 0x446   :  { %v3444_v0 = vadd.f32 %v3410_v32, %v3295_v40  ;;  %v3535_v11 = vpop.f32.mrf.mxu1  ;;  %v3429_v34 = vpop.f32.mrf.mxu3 }
 0x447   :  { %v3445_v54 = vadd.f32 %v3429_v34, %v3296_v62  ;;  %v10732_v36 = vpop.f32.mrf.mxu0  ;;  %v10748_v32 = vpop.permute.xlu1 %3848 }
 0x448   :  { %14649 = vst [vmem:[#allocation98_spill] sm:$0xff] %v10732_v36  ;;  %v10754_v47 = vpop.permute.xlu0 %3994  ;;  %v10758_v24 = vpop.permute.xlu2 %3850 }
 0x449   :  { %14656 = vst [vmem:[#allocation105_spill] sm:$0xff] %v10748_v32 }
 0x44a   :  { %14657 = vst [vmem:[#allocation106_spill] sm:$0xff] %v10754_v47 }
 0x44b   :  { %14658 = vst [vmem:[#allocation107_spill] sm:$0xff] %v10758_v24 }
 0x44d   :  { %v10738_v37 = vpop.f32.mrf.mxu2 }
 0x44e   :  { %14652 = vst [vmem:[#allocation101_spill] sm:$0xff] %v10738_v37  ;;  %v10740_v35 = vpop.f32.mrf.mxu1  ;;  %v10744_v22 = vpop.f32.mrf.mxu3 }
 0x44f   :  { %14654 = vst [vmem:[#allocation103_spill] sm:$0xff] %v10744_v22  ;;  %v3516_v27 = vpop.f32.mrf.mxu0  ;;  %v10764_v1 = vpop.permute.xlu1 %3978 }
 0x450   :  { %14660 = vst [vmem:[#allocation109_spill] sm:$0xff] %v10764_v1  ;;  %v10773_v29 = vpop.permute.xlu2 %3980 }
 0x455   :  { %v3554_v40 = vpop.f32.mrf.mxu2 }
 0x456   :  { %v3540_v62 = vpop.f32.mrf.mxu1  ;;  %v3573_v46 = vpop.f32.mrf.mxu3 }
 0x457   :  { %v10750_v34 = vadd.f32 %v3540_v62, %v3443_v3  ;;  %v10752_v18 = vpop.f32.mrf.mxu0  ;;  %v10768_v3 = vpop.permute.xlu0 %4254  ;;  %v3435_v62 = vadd.f32 %v3386_v12, %v10648_v23  ;;  %v3434_v23 = vadd.f32 %v10704_v44, %v10664_v63 }
 0x458   :  { %14661 = vst [vmem:[#allocation110_spill] sm:$0xff] %v10768_v3 }
 0x459   :  { %v3584_v25 = vadd.f32 %v3535_v11, %v3435_v62 }
 0x45d   :  { %v10756_v37 = vpop.f32.mrf.mxu2 }
 0x45e   :  { %v10760_v48 = vpop.f32.mrf.mxu1  ;;  %v10762_v22 = vpop.f32.mrf.mxu3 }
 0x45f   :  { %14659 = vst [vmem:[#allocation108_spill] sm:$0xff] %v10760_v48  ;;  %v3521_v16 = vpop.f32.mrf.mxu0  ;;  %v10784_v11 = vpop.permute.xlu0 %3864 }
 0x460   :  { %v10766_v32 = vadd.f32 %v3521_v16, %v3442_v9  ;;  %v10780_v9 = vpop.permute.xlu1 %4489  ;;  %14663 = vst [vmem:[#allocation112_spill] sm:$0xff] %v10784_v11 }
 0x461   :  { %14662 = vst [vmem:[#allocation111_spill] sm:$0xff] %v10780_v9 }
 0x465   :  { %v3559_v53 = vpop.f32.mrf.mxu2 }
 0x466   :  { %v10771_v47 = vadd.f32 %v3559_v53, %v3444_v0  ;;  %v3684_v41 = vpop.f32.mrf.mxu1  ;;  %v3578_v24 = vpop.f32.mrf.mxu3 }
 0x467   :  { %v3733_v36 = vadd.f32 %v3684_v41, %v3584_v25  ;;  %v10775_v56 = vadd.f32 %v3578_v24, %v3445_v54  ;;  %v10777_v48 = vpop.f32.mrf.mxu0  ;;  %v3583_v24 = vadd.f32 %v3516_v27, %v3434_v23  ;;  %v3436_v41 = vadd.f32 %v10708_v60, %v10668_v52  ;;  %v10798_v0 = vpop.permute.xlu2 %4491 }
 0x468   :  { %14665 = vst [vmem:[#allocation114_spill] sm:$0xff] %v10798_v0  ;;  %v10801_v44 = vpop.permute.xlu1 %4026  ;;  %v10803_v11 = vpop.permute.xlu0 %4302  ;;  %v3437_v27 = vadd.f32 %v10712_v57, %v10672_v50 }
 0x469   :  { %v3765_v16 = vadd.f32 %v10564_v30, %v3733_v36  ;;  %v3585_v62 = vadd.f32 %v3554_v40, %v3436_v41  ;;  %14666 = vst [vmem:[#allocation115_spill] sm:$0xff] %v10801_v44  ;;  %v14850_v44 = vld [vmem:[#allocation79_spill] sm:$0xff] }
 0x46a   :  { %14667 = vst [vmem:[#allocation116_spill] sm:$0xff] %v10803_v11  ;;  %v3586_v40 = vadd.f32 %v3573_v46, %v3437_v27 }
 0x46b   :  { %vm3781_vm12 = vcmp.ge.f32.partialorder %v3765_v16, 0.0  ;;  %v3797_v1 = vmul.f32 0.2, %v3765_v16 }
 0x46d   :  { %v10782_v12 = vpop.f32.mrf.mxu2  ;;  %v10788_v25 = vsel %vm3781_vm12, %v3765_v16, %v3797_v1 }
 0x46e   :  { %14664 = vst [vmem:[#allocation113_spill] sm:$0xff] %v10788_v25  ;;  %3998 = vrot.lane.b32.xlu2 %v10788_v25, %s7536_s0  ;;  %3852 = vrot.lane.b32.xlu0 %v10788_v25, %s7537_s19  ;;  %v10794_v36 = vpop.f32.mrf.mxu3 }
 0x46f   :  { %v3665_v54 = vpop.f32.mrf.mxu0  ;;  %v10816_v41 = vpop.permute.xlu2 %4028 }
 0x470   :  { %v3732_v53 = vadd.f32 %v3665_v54, %v3583_v24  ;;  %14669 = vst [vmem:[#allocation118_spill] sm:$0xff] %v10816_v41  ;;  %v10818_v50 = vpop.permute.xlu1 %4286  ;;  %v10827_v46 = vpop.permute.xlu0 %4505 }
 0x471   :  { %14670 = vst [vmem:[#allocation119_spill] sm:$0xff] %v10818_v50 }
 0x472   :  { %v3764_v63 = vadd.f32 %v10564_v30, %v3732_v53  ;;  %14672 = vst [vmem:[#allocation121_spill] sm:$0xff] %v10827_v46  ;;  %v14845_v46 = vld [vmem:[#allocation3_spill] sm:$0xff] }
 0x474   :  { %vm3780_vm13 = vcmp.ge.f32.partialorder %v3764_v63, 0.0  ;;  %v3796_v16 = vmul.f32 0.2, %v3764_v63 }
 0x475   :  { %v3703_v1 = vpop.f32.mrf.mxu2 }
 0x476   :  { %v3734_v9 = vadd.f32 %v3703_v1, %v3585_v62  ;;  %v10807_v23 = vsel %vm3780_vm13, %v3764_v63, %v3796_v16  ;;  %v3722_v60 = vpop.f32.mrf.mxu3 }
 0x477   :  { %14668 = vst [vmem:[#allocation117_spill] sm:$0xff] %v10807_v23  ;;  %3836 = vrot.lane.b32.xlu1 %v10807_v23, %s7537_s19  ;;  %4258 = vrot.lane.b32.xlu2 %v10807_v23, %s7538_s24  ;;  %v3735_v54 = vadd.f32 %v3722_v60, %v3586_v40  ;;  %v10831_v62 = vpop.permute.xlu2 %4288  ;;  %v3024_v60 = vadd.f32 %v10552_v21, %v10477_v10  ;;  %v3686_v21 = vpop.f32.mrf.mxu1 }
 0x478   :  { %v3766_v52 = vadd.f32 %v10564_v30, %v3734_v9  ;;  %3982 = vrot.lane.b32.xlu0 %v10807_v23, %s7536_s0  ;;  %14673 = vst [vmem:[#allocation122_spill] sm:$0xff] %v10831_v62  ;;  %v10835_v1 = vpop.permute.xlu1 %3996  ;;  %v3023_v40 = vadd.f32 %v10572_v58, %v10507_v55  ;;  %v3667_v58 = vpop.f32.mrf.mxu0 }
 0x479   :  { %v3767_v9 = vadd.f32 %v10564_v30, %v3735_v54  ;;  %v10843_v30 = vpop.permute.xlu0 %3834  ;;  %v3141_v54 = vadd.f32 %v10610_v2, %v3024_v60 }
 0x47a   :  { %v3798_v24 = vmul.f32 0.2, %v3766_v52  ;;  %vm3782_vm14 = vcmp.ge.f32.partialorder %v3766_v52, 0.0  ;;  %14675 = vst [vmem:[#allocation124_spill] sm:$0xff] %v10843_v30  ;;  %v14855_v30 = vld [vmem:[#allocation89_spill] sm:$0xff] }
 0x47b   :  { %v3799_v53 = vmul.f32 0.2, %v3767_v9  ;;  %vm3783_vm15 = vcmp.ge.f32.partialorder %v3767_v9, 0.0 }
 0x47c   :  { %v10820_v57 = vsel %vm3782_vm14, %v3766_v52, %v3798_v24 }
 0x47d   :  { %14671 = vst [vmem:[#allocation120_spill] sm:$0xff] %v10820_v57  ;;  %v10833_v63 = vsel %vm3783_vm15, %v3767_v9, %v3799_v53  ;;  %v3140_v9 = vadd.f32 %v10626_v39, %v3023_v40 }
 0x47e   :  { %14674 = vst [vmem:[#allocation123_spill] sm:$0xff] %v10833_v63 }
 0x47f   :  { %4274 = vrot.lane.b32.xlu1 %v10788_v25, %s7538_s24  ;;  %3868 = vrot.lane.b32.xlu2 %v10820_v57, %s7537_s19  ;;  %v10845_v16 = vpop.permute.xlu2 %4785  ;;  %v3289_v62 = vadd.f32 %v10674_v51, %v3140_v9 }
 0x480   :  { %4493 = vrot.lane.b32.xlu0 %v10788_v25, %s7539_s25  ;;  %14676 = vst [vmem:[#allocation125_spill] sm:$0xff] %v10845_v16  ;;  %v10853_v27 = vpop.permute.xlu1 %4256  ;;  %v3290_v16 = vadd.f32 %v10658_v49, %v3141_v54 }
 0x481   :  { %14677 = vst [vmem:[#allocation126_spill] sm:$0xff] %v10853_v27  ;;  %v10855_v52 = vpop.permute.xlu0 %4272  ;;  %v3438_v55 = vadd.f32 %v10716_v7, %v3289_v62 }
 0x482   :  { %14678 = vst [vmem:[#allocation127_spill] sm:$0xff] %v10855_v52  ;;  %v3439_v10 = vadd.f32 %v10700_v45, %v3290_v16  ;;  %v14839_v52 = vld [vmem:[#allocation10_spill] sm:$0xff] }
 0x483   :  { %v3587_v39 = vadd.f32 %v10752_v18, %v3438_v55 }
 0x484   :  { %v3588_v2 = vadd.f32 %v10740_v35, %v3439_v10  ;;  %v3025_v35 = vadd.f32 %v10579_v15, %v10511_v33  ;;  %v3705_v33 = vpop.f32.mrf.mxu2  ;;  %v3026_v15 = vadd.f32 %v10585_v59, %v10523_v17 }
 0x485   :  { %v3736_v49 = vadd.f32 %v3667_v58, %v3587_v39 }
 0x486   :  { %v3737_v51 = vadd.f32 %v3686_v21, %v3588_v2  ;;  %v3142_v54 = vadd.f32 %v10633_v4, %v3025_v35  ;;  %v3143_v39 = vadd.f32 %v10639_v26, %v3026_v15 }
 0x487   :  { %4477 = vrot.lane.b32.xlu1 %v10807_v23, %s7539_s25  ;;  %4306 = vrot.lane.b32.xlu2 %v10833_v63, %s7538_s24  ;;  %v10867_v24 = vpop.permute.xlu2 %4815  ;;  %v3768_v16 = vadd.f32 %v10404_v13, %v3736_v49 }
 0x488   :  { %4787 = vrot.lane.b32.xlu0 %v10807_v23, %s7540_s30  ;;  %14679 = vst [vmem:[#allocation128_spill] sm:$0xff] %v10867_v24  ;;  %v10871_v53 = vpop.permute.xlu1 %3866  ;;  %v3769_v62 = vadd.f32 %v10404_v13, %v3737_v51  ;;  %v3291_v9 = vadd.f32 %v10678_v19, %v3142_v54  ;;  %v3292_v51 = vadd.f32 %v10684_v14, %v3143_v39 }
 0x489   :  { %14680 = vst [vmem:[#allocation129_spill] sm:$0xff] %v10871_v53  ;;  %v10875_v0 = vpop.permute.xlu0 %4475  ;;  %v3800_v40 = vmul.f32 0.2, %v3768_v16  ;;  %vm3784_vm10 = vcmp.ge.f32.partialorder %v3768_v16, 0.0  ;;  %v14825_v53 = vld [vmem:[#allocation4_spill] sm:$0xff] }
 0x48a   :  { %14681 = vst [vmem:[#allocation130_spill] sm:$0xff] %v10875_v0  ;;  %v3801_v60 = vmul.f32 0.2, %v3769_v62  ;;  %vm3785_vm9 = vcmp.ge.f32.partialorder %v3769_v62, 0.0  ;;  %v3440_v2 = vadd.f32 %v10720_v5, %v3291_v9 }
 0x48b   :  { %v10909_v21 = vsel %vm3784_vm10, %v3768_v16, %v3800_v40 }
 0x48c   :  { %v10907_v55 = vsel %vm3785_vm9, %v3769_v62, %v3801_v60  ;;  %14687 = vst [vmem:[#allocation136_spill] sm:$0xff] %v10909_v21  ;;  %v3589_v4 = vadd.f32 %v10756_v37, %v3440_v2  ;;  %v3441_v62 = vadd.f32 %v10724_v28, %v3292_v51  ;;  %v3724_v37 = vpop.f32.mrf.mxu3  ;;  %v3708_v24 = vpop.f32.mrf.mxu2 }
 0x48d   :  { %14686 = vst [vmem:[#allocation135_spill] sm:$0xff] %v10907_v55 }
 0x48e   :  { %v3738_v5 = vadd.f32 %v3705_v33, %v3589_v4  ;;  %v3590_v59 = vadd.f32 %v10762_v22, %v3441_v62 }
 0x48f   :  { %5006 = vrot.lane.b32.xlu1 %v10807_v23, %s7541_s13  ;;  %4509 = vrot.lane.b32.xlu2 %v10820_v57, %s7539_s25  ;;  %v10887_v45 = vpop.permute.xlu2 %4833 }
 0x490   :  { %4803 = vrot.lane.b32.xlu0 %v10788_v25, %s7540_s30  ;;  %14682 = vst [vmem:[#allocation131_spill] sm:$0xff] %v10887_v45  ;;  %v10889_v7 = vpop.permute.xlu1 %4304  ;;  %v3770_v16 = vadd.f32 %v10404_v13, %v3738_v5  ;;  %v3739_v14 = vadd.f32 %v3724_v37, %v3590_v59  ;;  %v3689_v5 = vpop.f32.mrf.mxu1  ;;  %v14731_v45 = vld [vmem:[#allocation98_spill] sm:$0xff] }
 0x491   :  { %14683 = vst [vmem:[#allocation132_spill] sm:$0xff] %v10889_v7  ;;  %v10897_v18 = vpop.permute.xlu0 %3882  ;;  %v3670_v59 = vpop.f32.mrf.mxu0 }
 0x492   :  { %14684 = vst [vmem:[#allocation133_spill] sm:$0xff] %v10897_v18  ;;  %v3802_v26 = vmul.f32 0.2, %v3770_v16  ;;  %vm3786_vm11 = vcmp.ge.f32.partialorder %v3770_v16, 0.0  ;;  %v3771_v60 = vadd.f32 %v10404_v13, %v3739_v14 }
 0x494   :  { %v10942_v28 = vsel %vm3786_vm11, %v3770_v16, %v3802_v26  ;;  %v3803_v54 = vmul.f32 0.2, %v3771_v60  ;;  %vm3787_vm12 = vcmp.ge.f32.partialorder %v3771_v60, 0.0  ;;  %v3741_v16 = vadd.f32 %v3689_v5, %v10750_v34 }
 0x495   :  { %14693 = vst [vmem:[#allocation142_spill] sm:$0xff] %v10942_v28 }
 0x496   :  { %v10957_v2 = vsel %vm3787_vm12, %v3771_v60, %v3803_v54  ;;  %v3773_v37 = vadd.f32 %v10589_v38, %v3741_v16  ;;  %v3740_v54 = vadd.f32 %v3670_v59, %v10766_v32 }
 0x497   :  { %3884 = vrot.lane.b32.xlu1 %v10833_v63, %s7537_s19  ;;  %4525 = vrot.lane.b32.xlu2 %v10833_v63, %s7539_s25  ;;  %v10905_v10 = vpop.permute.xlu2 %4811  ;;  %14697 = vst [vmem:[#allocation146_spill] sm:$0xff] %v10957_v2 }
 0x498   :  { %4030 = vrot.lane.b32.xlu0 %v10833_v63, %s7536_s0  ;;  %14685 = vst [vmem:[#allocation134_spill] sm:$0xff] %v10905_v10  ;;  %v10911_v58 = vpop.permute.xlu1 %4507  ;;  %v3805_v60 = vmul.f32 0.2, %v3773_v37  ;;  %vm3789_vm13 = vcmp.ge.f32.partialorder %v3773_v37, 0.0  ;;  %v3772_v16 = vadd.f32 %v10589_v38, %v3740_v54 }
 0x499   :  { %14688 = vst [vmem:[#allocation137_spill] sm:$0xff] %v10911_v58  ;;  %v10923_v19 = vpop.permute.xlu0 %4012 }
 0x49a   :  { %14689 = vst [vmem:[#allocation138_spill] sm:$0xff] %v10923_v19  ;;  %v11006_v5 = vsel %vm3789_vm13, %v3773_v37, %v3805_v60  ;;  %v3804_v32 = vmul.f32 0.2, %v3772_v16  ;;  %vm3788_vm14 = vcmp.ge.f32.partialorder %v3772_v16, 0.0 }
 0x49b   :  { %14707 = vst [vmem:[#allocation156_spill] sm:$0xff] %v11006_v5 }
 0x49c   :  { %v11021_v37 = vsel %vm3788_vm14, %v3772_v16, %v3804_v32  ;;  %vm4126_vm14 = vcmask 523264  }
 0x49d   :  { %14710 = vst [vmem:[#allocation159_spill] sm:$0xff] %v11021_v37 }
 0x49f   :  { %4014 = vrot.lane.b32.xlu1 %v10820_v57, %s7536_s0  ;;  %4819 = vrot.lane.b32.xlu2 %v10820_v57, %s7540_s30  ;;  %v10927_v49 = vpop.permute.xlu2 %4829 }
 0x4a0   :  { %4290 = vrot.lane.b32.xlu0 %v10820_v57, %s7538_s24  ;;  %14690 = vst [vmem:[#allocation139_spill] sm:$0xff] %v10927_v49  ;;  %v10937_v17 = vpop.permute.xlu1 %4523 }
 0x4a1   :  { %14691 = vst [vmem:[#allocation140_spill] sm:$0xff] %v10937_v17  ;;  %v10940_v35 = vpop.permute.xlu0 %4817  ;;  %v14746_v17 = vld [vmem:[#allocation101_spill] sm:$0xff] }
 0x4a2   :  { %14692 = vst [vmem:[#allocation141_spill] sm:$0xff] %v10940_v35 }
 0x4a7   :  { %4835 = vrot.lane.b32.xlu1 %v10833_v63, %s7540_s30  ;;  %5054 = vrot.lane.b32.xlu2 %v10833_v63, %s7541_s13  ;;  %v10951_v40 = vpop.permute.xlu2 %4795 }
 0x4a8   :  { %5038 = vrot.lane.b32.xlu0 %v10820_v57, %s7541_s13  ;;  %14694 = vst [vmem:[#allocation143_spill] sm:$0xff] %v10951_v40  ;;  %v10953_v22 = vpop.permute.xlu1 %4783 }
 0x4a9   :  { %14695 = vst [vmem:[#allocation144_spill] sm:$0xff] %v10953_v22  ;;  %v10955_v9 = vpop.permute.xlu0 %4813 }
 0x4aa   :  { %14696 = vst [vmem:[#allocation145_spill] sm:$0xff] %v10955_v9  ;;  %v3727_v9 = vpop.f32.mrf.mxu3 }
 0x4ab   :  { %v3743_v40 = vadd.f32 %v3727_v9, %v10775_v56  ;;  %v3742_v56 = vadd.f32 %v3708_v24, %v10771_v47 }
 0x4af   :  { %3854 = vrot.lane.b32.xlu1 %v10907_v55, %s7537_s19  ;;  %3838 = vrot.lane.b32.xlu2 %v10909_v21, %s7537_s19 }
 0x4b0   :  { %4000 = vrot.lane.b32.xlu0 %v10907_v55, %s7536_s0  ;;  %v10967_v33 = vpop.permute.xlu1 %4831 }
 0x4b1   :  { %14698 = vst [vmem:[#allocation147_spill] sm:$0xff] %v10967_v33  ;;  %v10973_v15 = vpop.permute.xlu0 %4799  ;;  %v3775_v33 = vadd.f32 %v10589_v38, %v3743_v40  ;;  %v3774_v40 = vadd.f32 %v10589_v38, %v3742_v56 }
 0x4b2   :  { %14699 = vst [vmem:[#allocation148_spill] sm:$0xff] %v10973_v15 }
 0x4b3   :  { %v3807_v9 = vmul.f32 0.2, %v3775_v33  ;;  %vm3791_vm15 = vcmp.ge.f32.partialorder %v3775_v33, 0.0  ;;  %vm3790_vm9 = vcmp.ge.f32.partialorder %v3774_v40, 0.0 }
 0x4b7   :  { %3984 = vrot.lane.b32.xlu1 %v10909_v21, %s7536_s0  ;;  %4276 = vrot.lane.b32.xlu2 %v10907_v55, %s7538_s24 }
 0x4b8   :  { %4260 = vrot.lane.b32.xlu0 %v10909_v21, %s7538_s24  ;;  %v10979_v39 = vpop.permute.xlu1 %4827 }
 0x4b9   :  { %14701 = vst [vmem:[#allocation150_spill] sm:$0xff] %v10979_v39  ;;  %v10989_v62 = vpop.permute.xlu0 %4797 }
 0x4ba   :  { %14703 = vst [vmem:[#allocation152_spill] sm:$0xff] %v10989_v62 }
 0x4bf   :  { %4495 = vrot.lane.b32.xlu1 %v10907_v55, %s7539_s25  ;;  %4479 = vrot.lane.b32.xlu2 %v10909_v21, %s7539_s25 }
 0x4c0   :  { %3870 = vrot.lane.b32.xlu0 %v10942_v28, %s7537_s19  ;;  %v10999_v26 = vpop.permute.xlu1 %4801 }
 0x4c1   :  { %14704 = vst [vmem:[#allocation153_spill] sm:$0xff] %v10999_v26  ;;  %v11063_v26 = vsel %vm3791_vm15, %v3775_v33, %v3807_v9  ;;  %v3806_v33 = vmul.f32 0.2, %v3774_v40 }
 0x4c2   :  { %14720 = vst [vmem:[#allocation169_spill] sm:$0xff] %v11063_v26 }
 0x4c7   :  { %4789 = vrot.lane.b32.xlu1 %v10909_v21, %s7540_s30  ;;  %5008 = vrot.lane.b32.xlu2 %v10909_v21, %s7541_s13 }
 0x4c8   :  { %4308 = vrot.lane.b32.xlu0 %v10957_v2, %s7538_s24  ;;  %v10965_v13 = vpop.permute.xlu2 %3998 }
 0x4cf   :  { %4805 = vrot.lane.b32.xlu1 %v10907_v55, %s7540_s30  ;;  %3886 = vrot.lane.b32.xlu2 %v10957_v2, %s7537_s19 }
 0x4d0   :  { %4511 = vrot.lane.b32.xlu0 %v10942_v28, %s7539_s25 }
 0x4d1   :  { %v10977_v4 = vpop.permute.xlu2 %4258 }
 0x4d2   :  { %14700 = vst [vmem:[#allocation149_spill] sm:$0xff] %v10977_v4 }
 0x4d7   :  { %4032 = vrot.lane.b32.xlu1 %v10957_v2, %s7536_s0  ;;  %4016 = vrot.lane.b32.xlu2 %v10942_v28, %s7536_s0 }
 0x4d8   :  { %4527 = vrot.lane.b32.xlu0 %v10957_v2, %s7539_s25 }
 0x4d9   :  { %v10987_v51 = vpop.permute.xlu2 %3868 }
 0x4da   :  { %14702 = vst [vmem:[#allocation151_spill] sm:$0xff] %v10987_v51  ;;  %v14785_v51 = vld [vmem:[#allocation59_spill] sm:$0xff] }
 0x4df   :  { %4292 = vrot.lane.b32.xlu1 %v10942_v28, %s7538_s24  ;;  %4837 = vrot.lane.b32.xlu2 %v10957_v2, %s7540_s30 }
 0x4e0   :  { %4821 = vrot.lane.b32.xlu0 %v10942_v28, %s7540_s30  ;;  %v11004_v34 = vpop.permute.xlu0 %3852 }
 0x4e1   :  { %v11001_v14 = vpop.permute.xlu2 %4306  ;;  %14706 = vst [vmem:[#allocation155_spill] sm:$0xff] %v11004_v34 }
 0x4e2   :  { %14705 = vst [vmem:[#allocation154_spill] sm:$0xff] %v11001_v14  ;;  %v3710_v14 = vpop.f32.mrf.mxu2 }
 0x4e7   :  { %5040 = vrot.lane.b32.xlu1 %v10942_v28, %s7541_s13  ;;  %3856 = vrot.lane.b32.xlu2 %v11006_v5, %s7537_s19 }
 0x4e8   :  { %5056 = vrot.lane.b32.xlu0 %v10957_v2, %s7541_s13 }
 0x4e9   :  { %v11015_v39 = vpop.permute.xlu1 %3836  ;;  %v11017_v49 = vpop.permute.xlu2 %4509 }
 0x4ea   :  { %14708 = vst [vmem:[#allocation157_spill] sm:$0xff] %v11015_v39  ;;  %v11019_v59 = vpop.permute.xlu0 %3982 }
 0x4eb   :  { %14709 = vst [vmem:[#allocation158_spill] sm:$0xff] %v11017_v49 }
 0x4ef   :  { %4002 = vrot.lane.b32.xlu1 %v11006_v5, %s7536_s0  ;;  %3986 = vrot.lane.b32.xlu2 %v11021_v37, %s7536_s0 }
 0x4f0   :  { %3840 = vrot.lane.b32.xlu0 %v11021_v37, %s7537_s19 }
 0x4f1   :  { %v11029_v60 = vpop.permute.xlu1 %4274  ;;  %v11031_v54 = vpop.permute.xlu2 %4525 }
 0x4f2   :  { %14711 = vst [vmem:[#allocation160_spill] sm:$0xff] %v11029_v60  ;;  %v11033_v62 = vpop.permute.xlu0 %4493 }
 0x4f3   :  { %14712 = vst [vmem:[#allocation161_spill] sm:$0xff] %v11031_v54  ;;  %v14732_v54 = vld [vmem:[#allocation42_spill] sm:$0xff] }
 0x4f4   :  { %14713 = vst [vmem:[#allocation162_spill] sm:$0xff] %v11033_v62 }
 0x4f7   :  { %4262 = vrot.lane.b32.xlu1 %v11021_v37, %s7538_s24  ;;  %4497 = vrot.lane.b32.xlu2 %v11006_v5, %s7539_s25 }
 0x4f8   :  { %4278 = vrot.lane.b32.xlu0 %v11006_v5, %s7538_s24 }
 0x4f9   :  { %v11041_v16 = vpop.permute.xlu1 %4477  ;;  %v11043_v32 = vpop.permute.xlu2 %4819 }
 0x4fa   :  { %14714 = vst [vmem:[#allocation163_spill] sm:$0xff] %v11041_v16  ;;  %v11046_v10 = vpop.permute.xlu0 %4787  ;;  %v14753_v16 = vld [vmem:[#allocation90_spill] sm:$0xff] }
 0x4fb   :  { %14715 = vst [vmem:[#allocation164_spill] sm:$0xff] %v11043_v32  ;;  %v14730_v32 = vld [vmem:[#allocation86_spill] sm:$0xff] }
 0x4fc   :  { %14716 = vst [vmem:[#allocation165_spill] sm:$0xff] %v11046_v10 }
 0x4ff   :  { %4791 = vrot.lane.b32.xlu1 %v11021_v37, %s7540_s30  ;;  %5010 = vrot.lane.b32.xlu2 %v11021_v37, %s7541_s13 }
 0x500   :  { %4481 = vrot.lane.b32.xlu0 %v11021_v37, %s7539_s25 }
 0x501   :  { %v11055_v22 = vpop.permute.xlu1 %5006  ;;  %v11057_v15 = vpop.permute.xlu2 %5054 }
 0x502   :  { %14717 = vst [vmem:[#allocation166_spill] sm:$0xff] %v11055_v22  ;;  %v11060_v10 = vpop.permute.xlu0 %4803  ;;  %v3032_v22 = vadd.f32 %v10583_v20, %v10516_v31  ;;  %v3691_v31 = vpop.f32.mrf.mxu1  ;;  %v3031_v20 = vadd.f32 %v10601_v42, %v10546_v8 }
 0x503   :  { %14718 = vst [vmem:[#allocation167_spill] sm:$0xff] %v11057_v15  ;;  %v3672_v42 = vpop.f32.mrf.mxu0 }
 0x504   :  { %14719 = vst [vmem:[#allocation168_spill] sm:$0xff] %v11060_v10  ;;  %v3149_v38 = vadd.f32 %v10635_v6, %v3032_v22  ;;  %v11082_v10 = vsel %vm3790_vm9, %v3774_v40, %v3806_v33  ;;  %v14725_v6 = vld [vmem:[#allocation108_spill] sm:$0xff] }
 0x505   :  { %14724 = vst [vmem:[#allocation173_spill] sm:$0xff] %v11082_v10  ;;  %v14728_v40 = vld [vmem:[#allocation44_spill] sm:$0xff] }
 0x506   :  { %v3298_v9 = vadd.f32 %v10682_v43, %v3149_v38  ;;  %v3148_v38 = vadd.f32 %v14728_v40, %v3031_v20 }
 0x507   :  { %5026 = vrot.lane.b32.xlu1 %v11006_v5, %s7541_s13  ;;  %4034 = vrot.lane.b32.xlu2 %v11063_v26, %s7536_s0 }
 0x508   :  { %4807 = vrot.lane.b32.xlu0 %v11006_v5, %s7540_s30  ;;  %v3447_v15 = vadd.f32 %v10722_v61, %v3298_v9  ;;  %v3297_v35 = vadd.f32 %v14730_v32, %v3148_v38 }
 0x509   :  { %v11073_v47 = vpop.permute.xlu1 %3884  ;;  %v11075_v24 = vpop.permute.xlu2 %3838 }
 0x50a   :  { %14721 = vst [vmem:[#allocation170_spill] sm:$0xff] %v11073_v47  ;;  %v11078_v56 = vpop.permute.xlu0 %4030  ;;  %v3596_v22 = vadd.f32 %v14725_v6, %v3447_v15  ;;  %v3446_v49 = vadd.f32 %v14731_v45, %v3297_v35  ;;  %v14783_v47 = vld [vmem:[#allocation52_spill] sm:$0xff] }
 0x50b   :  { %14722 = vst [vmem:[#allocation171_spill] sm:$0xff] %v11075_v24  ;;  %v14847_v24 = vld [vmem:[#allocation63_spill] sm:$0xff] }
 0x50c   :  { %14723 = vst [vmem:[#allocation172_spill] sm:$0xff] %v11078_v56  ;;  %v3745_v33 = vadd.f32 %v3691_v31, %v3596_v22  ;;  %v3595_v15 = vadd.f32 %v10777_v48, %v3446_v49 }
 0x50e   :  { %v3777_v8 = vadd.f32 %v14732_v54, %v3745_v33  ;;  %v3744_v45 = vadd.f32 %v3672_v42, %v3595_v15  ;;  %v14741_v42 = vld [vmem:[#allocation58_spill] sm:$0xff] }
 0x50f   :  { %3872 = vrot.lane.b32.xlu1 %v11082_v10, %s7537_s19  ;;  %4294 = vrot.lane.b32.xlu2 %v11082_v10, %s7538_s24 }
 0x510   :  { %3888 = vrot.lane.b32.xlu0 %v11063_v26, %s7537_s19  ;;  %v3809_v32 = vmul.f32 0.2, %v3777_v8  ;;  %vm3793_vm10 = vcmp.ge.f32.partialorder %v3777_v8, 0.0  ;;  %v3776_v22 = vadd.f32 %v14732_v54, %v3744_v45 }
 0x511   :  { %v11093_v43 = vpop.permute.xlu1 %4014  ;;  %v11095_v61 = vpop.permute.xlu2 %4276 }
 0x512   :  { %14726 = vst [vmem:[#allocation108_spill] sm:$0xff] %v11093_v43  ;;  %v11098_v9 = vpop.permute.xlu0 %4290  ;;  %v11116_v6 = vsel %vm3793_vm10, %v3777_v8, %v3809_v32  ;;  %v3808_v40 = vmul.f32 0.2, %v3776_v22  ;;  %vm3792_vm11 = vcmp.ge.f32.partialorder %v3776_v22, 0.0  ;;  %v14740_v8 = vld [vmem:[#allocation39_spill] sm:$0xff] }
 0x513   :  { %14727 = vst [vmem:[#allocation174_spill] sm:$0xff] %v11095_v61  ;;  %v3033_v15 = vadd.f32 %v14741_v42, %v14740_v8  ;;  %v14747_v8 = vld [vmem:[#allocation73_spill] sm:$0xff]  ;;  %v14748_v42 = vld [vmem:[#allocation47_spill] sm:$0xff] }
 0x514   :  { %14729 = vst [vmem:[#allocation44_spill] sm:$0xff] %v11098_v9  ;;  %v11131_v33 = vsel %vm3792_vm11, %v3776_v22, %v3808_v40  ;;  %v14745_v40 = vld [vmem:[#allocation88_spill] sm:$0xff]  ;;  %v3034_v58 = vadd.f32 %v14748_v42, %v14747_v8  ;;  %v3729_v42 = vpop.f32.mrf.mxu3 }
 0x515   :  { %14736 = vst [vmem:[#allocation175_spill] sm:$0xff] %v11116_v6 }
 0x516   :  { %14739 = vst [vmem:[#allocation178_spill] sm:$0xff] %v11131_v33 }
 0x517   :  { %4310 = vrot.lane.b32.xlu1 %v11063_v26, %s7538_s24  ;;  %4839 = vrot.lane.b32.xlu2 %v11063_v26, %s7540_s30 }
 0x518   :  { %4018 = vrot.lane.b32.xlu0 %v11082_v10, %s7536_s0 }
 0x519   :  { %v11110_v31 = vpop.permute.xlu1 %4835  ;;  %v11112_v20 = vpop.permute.xlu2 %4479 }
 0x51a   :  { %14733 = vst [vmem:[#allocation86_spill] sm:$0xff] %v11110_v31  ;;  %v11114_v35 = vpop.permute.xlu0 %5038 }
 0x51b   :  { %14734 = vst [vmem:[#allocation98_spill] sm:$0xff] %v11112_v20  ;;  %v14754_v20 = vld [vmem:[#allocation103_spill] sm:$0xff] }
 0x51c   :  { %14735 = vst [vmem:[#allocation42_spill] sm:$0xff] %v11114_v35 }
 0x51f   :  { %4513 = vrot.lane.b32.xlu1 %v11082_v10, %s7539_s25  ;;  %4004 = vrot.lane.b32.xlu2 %v11116_v6, %s7536_s0 }
 0x520   :  { %4529 = vrot.lane.b32.xlu0 %v11063_v26, %s7539_s25 }
 0x521   :  { %v11125_v48 = vpop.permute.xlu1 %3854  ;;  %v11127_v49 = vpop.permute.xlu2 %5008 }
 0x522   :  { %14737 = vst [vmem:[#allocation176_spill] sm:$0xff] %v11125_v48  ;;  %v11129_v38 = vpop.permute.xlu0 %4000  ;;  %v14848_v48 = vld [vmem:[#allocation43_spill] sm:$0xff] }
 0x523   :  { %14738 = vst [vmem:[#allocation177_spill] sm:$0xff] %v11127_v49  ;;  %v14743_v49 = vld [vmem:[#allocation64_spill] sm:$0xff] }
 0x524   :  { %v3150_v31 = vadd.f32 %v14743_v49, %v3033_v15 }
 0x526   :  { %v3299_v35 = vadd.f32 %v14745_v40, %v3150_v31 }
 0x527   :  { %5042 = vrot.lane.b32.xlu1 %v11082_v10, %s7541_s13  ;;  %4264 = vrot.lane.b32.xlu2 %v11131_v33, %s7538_s24 }
 0x528   :  { %4823 = vrot.lane.b32.xlu0 %v11082_v10, %s7540_s30  ;;  %v3448_v9 = vadd.f32 %v14746_v17, %v3299_v35  ;;  %v14751_v17 = vld [vmem:[#allocation70_spill] sm:$0xff] }
 0x529   :  { %v11141_v32 = vpop.permute.xlu1 %3984  ;;  %v11143_v45 = vpop.permute.xlu2 %3886  ;;  %v3151_v35 = vadd.f32 %v14751_v17, %v3034_v58 }
 0x52a   :  { %14742 = vst [vmem:[#allocation39_spill] sm:$0xff] %v11143_v45  ;;  %v11146_v22 = vpop.permute.xlu0 %4260  ;;  %v3597_v7 = vadd.f32 %v10782_v12, %v3448_v9 }
 0x52b   :  { %14744 = vst [vmem:[#allocation58_spill] sm:$0xff] %v11146_v22  ;;  %v3300_v62 = vadd.f32 %v14753_v16, %v3151_v35 }
 0x52c   :  { %v3746_v15 = vadd.f32 %v3710_v14, %v3597_v7 }
 0x52d   :  { %v3449_v45 = vadd.f32 %v14754_v20, %v3300_v62 }
 0x52e   :  { %v3778_v8 = vadd.f32 %v14732_v54, %v3746_v15 }
 0x52f   :  { %3842 = vrot.lane.b32.xlu1 %v11131_v33, %s7537_s19  ;;  %4793 = vrot.lane.b32.xlu2 %v11131_v33, %s7540_s30  ;;  %v3598_v12 = vadd.f32 %v10794_v36, %v3449_v45 }
 0x530   :  { %5058 = vrot.lane.b32.xlu0 %v11063_v26, %s7541_s13  ;;  %v3810_v14 = vmul.f32 0.2, %v3778_v8  ;;  %vm3794_vm12 = vcmp.ge.f32.partialorder %v3778_v8, 0.0 }
 0x531   :  { %v11159_v49 = vpop.permute.xlu1 %4495  ;;  %v11161_v31 = vpop.permute.xlu2 %4016  ;;  %v3747_v62 = vadd.f32 %v3729_v42, %v3598_v12 }
 0x532   :  { %14749 = vst [vmem:[#allocation64_spill] sm:$0xff] %v11159_v49  ;;  %v11164_v40 = vpop.permute.xlu0 %3870  ;;  %v11182_v9 = vsel %vm3794_vm12, %v3778_v8, %v3810_v14 }
 0x533   :  { %14750 = vst [vmem:[#allocation88_spill] sm:$0xff] %v11161_v31  ;;  %v3779_v20 = vadd.f32 %v14732_v54, %v3747_v62 }
 0x534   :  { %14752 = vst [vmem:[#allocation101_spill] sm:$0xff] %v11164_v40 }
 0x535   :  { %14758 = vst [vmem:[#allocation90_spill] sm:$0xff] %v11182_v9  ;;  %v3811_v17 = vmul.f32 0.2, %v3779_v20  ;;  %vm3795_vm13 = vcmp.ge.f32.partialorder %v3779_v20, 0.0 }
 0x537   :  { %4280 = vrot.lane.b32.xlu1 %v11116_v6, %s7538_s24  ;;  %5028 = vrot.lane.b32.xlu2 %v11116_v6, %s7541_s13  ;;  %v11197_v15 = vsel %vm3795_vm13, %v3779_v20, %v3811_v17 }
 0x538   :  { %3858 = vrot.lane.b32.xlu0 %v11116_v6, %s7537_s19  ;;  %14762 = vst [vmem:[#allocation181_spill] sm:$0xff] %v11197_v15 }
 0x539   :  { %v11176_v7 = vpop.permute.xlu1 %4789  ;;  %v11178_v58 = vpop.permute.xlu2 %4837 }
 0x53a   :  { %14755 = vst [vmem:[#allocation73_spill] sm:$0xff] %v11176_v7  ;;  %v11180_v16 = vpop.permute.xlu0 %4308  ;;  %v14771_v7 = vld [vmem:[#allocation57_spill] sm:$0xff] }
 0x53b   :  { %14756 = vst [vmem:[#allocation47_spill] sm:$0xff] %v11178_v58 }
 0x53c   :  { %14757 = vst [vmem:[#allocation70_spill] sm:$0xff] %v11180_v16  ;;  %v14779_v16 = vld [vmem:[#allocation46_spill] sm:$0xff] }
 0x53f   :  { %4483 = vrot.lane.b32.xlu1 %v11131_v33, %s7539_s25  ;;  %3874 = vrot.lane.b32.xlu2 %v11182_v9, %s7537_s19 }
 0x540   :  { %3988 = vrot.lane.b32.xlu0 %v11131_v33, %s7536_s0 }
 0x541   :  { %v11191_v36 = vpop.permute.xlu1 %4805  ;;  %v11193_v45 = vpop.permute.xlu2 %3856 }
 0x542   :  { %14759 = vst [vmem:[#allocation103_spill] sm:$0xff] %v11191_v36  ;;  %v11195_v35 = vpop.permute.xlu0 %4511 }
 0x543   :  { %14760 = vst [vmem:[#allocation179_spill] sm:$0xff] %v11193_v45 }
 0x544   :  { %14761 = vst [vmem:[#allocation180_spill] sm:$0xff] %v11195_v35 }
 0x547   :  { %4809 = vrot.lane.b32.xlu1 %v11116_v6, %s7540_s30  ;;  %4312 = vrot.lane.b32.xlu2 %v11197_v15, %s7538_s24 }
 0x548   :  { %4499 = vrot.lane.b32.xlu0 %v11116_v6, %s7539_s25 }
 0x549   :  { %v11205_v54 = vpop.permute.xlu1 %4032  ;;  %v11207_v8 = vpop.permute.xlu2 %3986 }
 0x54a   :  { %14763 = vst [vmem:[#allocation182_spill] sm:$0xff] %v11205_v54  ;;  %v11209_v42 = vpop.permute.xlu0 %4527 }
 0x54b   :  { %14764 = vst [vmem:[#allocation183_spill] sm:$0xff] %v11209_v42 }
 0x54f   :  { %3890 = vrot.lane.b32.xlu1 %v11197_v15, %s7537_s19  ;;  %4515 = vrot.lane.b32.xlu2 %v11182_v9, %s7539_s25 }
 0x550   :  { %5012 = vrot.lane.b32.xlu0 %v11131_v33, %s7541_s13 }
 0x551   :  { %v11217_v12 = vpop.permute.xlu1 %4292  ;;  %v11219_v14 = vpop.permute.xlu2 %4497 }
 0x552   :  { %14765 = vst [vmem:[#allocation184_spill] sm:$0xff] %v11217_v12  ;;  %v11221_v62 = vpop.permute.xlu0 %4821  ;;  %v14778_v12 = vld [vmem:[#allocation75_spill] sm:$0xff] }
 0x553   :  { %14766 = vst [vmem:[#allocation185_spill] sm:$0xff] %v11219_v14 }
 0x554   :  { %14767 = vst [vmem:[#allocation186_spill] sm:$0xff] %v11221_v62 }
 0x557   :  { %4020 = vrot.lane.b32.xlu1 %v11182_v9, %s7536_s0  ;;  %5044 = vrot.lane.b32.xlu2 %v11182_v9, %s7541_s13 }
 0x558   :  { %4036 = vrot.lane.b32.xlu0 %v11197_v15, %s7536_s0 }
 0x559   :  { %v11229_v20 = vpop.permute.xlu1 %5040  ;;  %v11231_v17 = vpop.permute.xlu2 %5010 }
 0x55a   :  { %14768 = vst [vmem:[#allocation187_spill] sm:$0xff] %v11229_v20  ;;  %v11233_v58 = vpop.permute.xlu0 %5056 }
 0x55b   :  { %14769 = vst [vmem:[#allocation188_spill] sm:$0xff] %v11231_v17  ;;  %v14774_v17 = vld [vmem:[#allocation67_spill] sm:$0xff] }
 0x55c   :  { %14770 = vst [vmem:[#allocation189_spill] sm:$0xff] %v11233_v58 }
 0x55f   :  { %4531 = vrot.lane.b32.xlu1 %v11197_v15, %s7539_s25  ;;  %5034 = vrot.lane.b32.xlu2 %v14771_v7, %s7541_s13 }
 0x560   :  { %4296 = vrot.lane.b32.xlu0 %v11182_v9, %s7538_s24 }
 0x561   :  { %v11241_v36 = vpop.permute.xlu1 %4002  ;;  %v11243_v62 = vpop.permute.xlu2 %4034 }
 0x562   :  { %14772 = vst [vmem:[#allocation190_spill] sm:$0xff] %v11243_v62  ;;  %v11245_v42 = vpop.permute.xlu0 %3840  ;;  %v14824_v62 = vld [vmem:[#allocation62_spill] sm:$0xff] }
 0x563   :  { %14773 = vst [vmem:[#allocation191_spill] sm:$0xff] %v11245_v42 }
 0x567   :  { %4825 = vrot.lane.b32.xlu1 %v11182_v9, %s7540_s30  ;;  %5052 = vrot.lane.b32.xlu2 %v14774_v17, %s7541_s13  ;;  %v14835_v17 = vld [vmem:[#allocation82_spill] sm:$0xff] }
 0x568   :  { %4841 = vrot.lane.b32.xlu0 %v11197_v15, %s7540_s30 }
 0x569   :  { %v11253_v58 = vpop.permute.xlu1 %4262  ;;  %v11255_v20 = vpop.permute.xlu2 %4294 }
 0x56a   :  { %14775 = vst [vmem:[#allocation192_spill] sm:$0xff] %v11253_v58  ;;  %v11257_v35 = vpop.permute.xlu0 %4278 }
 0x56b   :  { %14776 = vst [vmem:[#allocation193_spill] sm:$0xff] %v11255_v20  ;;  %v14784_v20 = vld [vmem:[#allocation50_spill] sm:$0xff] }
 0x56c   :  { %14777 = vst [vmem:[#allocation194_spill] sm:$0xff] %v11257_v35 }
 0x56f   :  { %5060 = vrot.lane.b32.xlu1 %v11197_v15, %s7541_s13  ;;  %4998 = vrot.lane.b32.xlu2 %v14778_v12, %s7541_s13 }
 0x570   :  { %5002 = vrot.lane.b32.xlu0 %v14779_v16, %s7541_s13 }
 0x571   :  { %v11265_v49 = vpop.permute.xlu1 %4791  ;;  %v11267_v40 = vpop.permute.xlu2 %4839 }
 0x572   :  { %14780 = vst [vmem:[#allocation195_spill] sm:$0xff] %v11265_v49  ;;  %v11269_v14 = vpop.permute.xlu0 %4481  ;;  %v14788_v49 = vld [vmem:[#allocation38_spill] sm:$0xff] }
 0x573   :  { %14781 = vst [vmem:[#allocation196_spill] sm:$0xff] %v11267_v40  ;;  %v14789_v40 = vld [vmem:[#allocation53_spill] sm:$0xff] }
 0x574   :  { %14782 = vst [vmem:[#allocation197_spill] sm:$0xff] %v11269_v14 }
 0x577   :  { %5004 = vrot.lane.b32.xlu1 %v14783_v47, %s7541_s13  ;;  %5032 = vrot.lane.b32.xlu2 %v14784_v20, %s7541_s13  ;;  %v14819_v20 = vld [vmem:[#allocation66_spill] sm:$0xff] }
 0x578   :  { %5036 = vrot.lane.b32.xlu0 %v14785_v51, %s7541_s13  ;;  %v14826_v47 = vld [vmem:[#allocation6_spill] sm:$0xff] }
 0x579   :  { %v11277_v18 = vpop.permute.xlu1 %5026  ;;  %v11279_v4 = vpop.permute.xlu2 %4004 }
 0x57a   :  { %14786 = vst [vmem:[#allocation198_spill] sm:$0xff] %v11277_v18  ;;  %v11281_v60 = vpop.permute.xlu0 %4807  ;;  %v14793_v18 = vld [vmem:[#allocation49_spill] sm:$0xff] }
 0x57b   :  { %14787 = vst [vmem:[#allocation199_spill] sm:$0xff] %v11281_v60 }
 0x57f   :  { %5050 = vrot.lane.b32.xlu1 %v14788_v49, %s7541_s13  ;;  %5018 = vrot.lane.b32.xlu2 %v14789_v40, %s7541_s13  ;;  %v14815_v40 = vld [vmem:[#allocation36_spill] sm:$0xff]  ;;  %v14837_v49 = vld [vmem:[#allocation9_spill] sm:$0xff] }
 0x580   :  { %5022 = vrot.lane.b32.xlu0 %v10788_v25, %s7541_s13  ;;  %v14852_v25 = vld [vmem:[#allocation48_spill] sm:$0xff] }
 0x581   :  { %v11289_v14 = vpop.permute.xlu1 %3872  ;;  %v11291_v22 = vpop.permute.xlu2 %4264 }
 0x582   :  { %14790 = vst [vmem:[#allocation200_spill] sm:$0xff] %v11289_v14  ;;  %v11293_v61 = vpop.permute.xlu0 %3888  ;;  %v14797_v14 = vld [vmem:[#allocation77_spill] sm:$0xff] }
 0x583   :  { %14791 = vst [vmem:[#allocation201_spill] sm:$0xff] %v11291_v22  ;;  %v14804_v22 = vld [vmem:[#allocation61_spill] sm:$0xff] }
 0x584   :  { %14792 = vst [vmem:[#allocation202_spill] sm:$0xff] %v11293_v61 }
 0x587   :  { %5024 = vrot.lane.b32.xlu1 %v10907_v55, %s7541_s13  ;;  %5231 = vrot.lane.b32.xlu2 %v11131_v33, %s7542_s16  ;;  %v14798_v55 = vld [vmem:[#allocation76_spill] sm:$0xff] }
 0x588   :  { %5000 = vrot.lane.b32.xlu0 %v14793_v18, %s7541_s13  ;;  %v14821_v18 = vld [vmem:[#allocation41_spill] sm:$0xff] }
 0x589   :  { %v11301_v60 = vpop.permute.xlu1 %4310  ;;  %v11303_v43 = vpop.permute.xlu2 %4793 }
 0x58a   :  { %14794 = vst [vmem:[#allocation203_spill] sm:$0xff] %v11301_v60  ;;  %v11305_v58 = vpop.permute.xlu0 %4018  ;;  %v14802_v60 = vld [vmem:[#allocation55_spill] sm:$0xff] }
 0x58b   :  { %14795 = vst [vmem:[#allocation204_spill] sm:$0xff] %v11303_v43  ;;  %v14803_v43 = vld [vmem:[#allocation37_spill] sm:$0xff] }
 0x58c   :  { %14796 = vst [vmem:[#allocation205_spill] sm:$0xff] %v11305_v58  ;;  %v14813_v58 = vld [vmem:[#allocation72_spill] sm:$0xff] }
 0x58d   :  { %v4062_v19 = vsel %vm112_vm0, %v14821_v18, %v14813_v58 }
 0x58f   :  { %5030 = vrot.lane.b32.xlu1 %v14797_v14, %s7541_s13  ;;  %5277 = vrot.lane.b32.xlu2 %v11063_v26, %s7542_s16 }
 0x590   :  { %5046 = vrot.lane.b32.xlu0 %v14798_v55, %s7541_s13 }
 0x591   :  { %v11313_v61 = vpop.permute.xlu1 %4513  ;;  %v11315_v33 = vpop.permute.xlu2 %5028 }
 0x592   :  { %14799 = vst [vmem:[#allocation206_spill] sm:$0xff] %v11313_v61  ;;  %v11317_v35 = vpop.permute.xlu0 %4529 }
 0x593   :  { %14800 = vst [vmem:[#allocation207_spill] sm:$0xff] %v11315_v33  ;;  %v14808_v33 = vld [vmem:[#allocation35_spill] sm:$0xff] }
 0x594   :  { %14801 = vst [vmem:[#allocation208_spill] sm:$0xff] %v11317_v35  ;;  %v14814_v35 = vld [vmem:[#allocation71_spill] sm:$0xff] }
 0x597   :  { %5048 = vrot.lane.b32.xlu1 %v14802_v60, %s7541_s13  ;;  %5016 = vrot.lane.b32.xlu2 %v14803_v43, %s7541_s13  ;;  %v14812_v43 = vld [vmem:[#allocation69_spill] sm:$0xff]  ;;  %v14818_v60 = vld [vmem:[#allocation51_spill] sm:$0xff] }
 0x598   :  { %5020 = vrot.lane.b32.xlu0 %v14804_v22, %s7541_s13  ;;  %v4330_v14 = vsel %vm175_vm2, %v14819_v20, %v14818_v60  ;;  %v14820_v22 = vld [vmem:[#allocation56_spill] sm:$0xff] }
 0x599   :  { %v11325_v54 = vpop.permute.xlu1 %5042  ;;  %v11327_v26 = vpop.permute.xlu2 %3874 }
 0x59a   :  { %14805 = vst [vmem:[#allocation209_spill] sm:$0xff] %v11325_v54  ;;  %v11329_v31 = vpop.permute.xlu0 %4823  ;;  %v4549_v54 = vsel %vm238_vm5, %v14815_v40, %v14814_v35 }
 0x59b   :  { %14806 = vst [vmem:[#allocation210_spill] sm:$0xff] %v11327_v26  ;;  %v14809_v26 = vld [vmem:[#allocation74_spill] sm:$0xff] }
 0x59c   :  { %14807 = vst [vmem:[#allocation211_spill] sm:$0xff] %v11329_v31 }
 0x59f   :  { %5229 = vrot.lane.b32.xlu1 %v11021_v37, %s7542_s16  ;;  %5257 = vrot.lane.b32.xlu2 %v10820_v57, %s7542_s16  ;;  %v14810_v57 = vld [vmem:[#allocation65_spill] sm:$0xff] }
 0x5a0   :  { %5261 = vrot.lane.b32.xlu0 %v11082_v10, %s7542_s16  ;;  %v3908_v61 = vsel %vm59_vm1, %v14810_v57, %v14809_v26  ;;  %v4054_v10 = vsel %vm112_vm0, %v14813_v58, %v14812_v43  ;;  %v3916_v55 = vsel %vm59_vm1, %v14820_v22, %v14810_v57  ;;  %v4046_v58 = vsel %vm112_vm0, %v14812_v43, %v14824_v62  ;;  %v14831_v43 = vld [vmem:[#allocation8_spill] sm:$0xff] }
 0x5a1   :  { %v11359_v12 = vpop.permute.xlu1 %3842  ;;  %v11361_v31 = vpop.permute.xlu2 %4312  ;;  %v11396_v37 = vmul.f32 %v3908_v61, %v14825_v53  ;;  %v11399_v0 = vmul.f32 %v4054_v10, %v14826_v47  ;;  %v11412_v34 = vmul.f32 %v3916_v55, %v14831_v43  ;;  %v14836_v10 = vld [vmem:[#allocation81_spill] sm:$0xff] }
 0x5a2   :  { %14816 = vst [vmem:[#allocation74_spill] sm:$0xff] %v11359_v12  ;;  %v11377_v6 = vpop.permute.xlu0 %5058  ;;  %v14844_v55 = vld [vmem:[#allocation85_spill] sm:$0xff]  ;;  %v14860_v12 = vld [vmem:[#allocation78_spill] sm:$0xff] }
 0x5a3   :  { %14817 = vst [vmem:[#allocation65_spill] sm:$0xff] %v11361_v31  ;;  %v14823_v31 = vld [vmem:[#allocation54_spill] sm:$0xff]  ;;  %v4533_v11 = vsel %vm238_vm5, %v14860_v12, %v14850_v44 }
 0x5a4   :  { %14822 = vst [vmem:[#allocation2_spill] sm:$0xff] %v11377_v6  ;;  %v3892_v7 = vsel %vm59_vm1, %v14823_v31, %v14820_v22  ;;  %v3900_v57 = vsel %vm59_vm1, %v14809_v26, %v14823_v31  ;;  %v14827_v22 = vld [vmem:[#allocation19_spill] sm:$0xff]  ;;  %v4038_v26 = vsel %vm112_vm0, %v14824_v62, %v14821_v18  ;;  %v14829_v31 = vld [vmem:[#allocation14_spill] sm:$0xff]  ;;  %v14833_v6 = vld [vmem:[#allocation5_spill] sm:$0xff] }
 0x5a5   :  { %v11402_v41 = vmul.f32 %v4549_v54, %v14827_v22  ;;  %v11409_v39 = vmul.f32 %v4330_v14, %v14829_v31  ;;  %14832 = vst [vmem:[#allocation71_spill] sm:$0xff] %v11412_v34  ;;  %v11415_v61 = vmul.f32 %v4062_v19, %v14833_v6  ;;  %v3909_v54 = vsel %vm59_vm1, %v14836_v10, %v14835_v17  ;;  %v14841_v18 = vld [vmem:[#allocation7_spill] sm:$0xff]  ;;  %v14843_v62 = vld [vmem:[#allocation60_spill] sm:$0xff] }
 0x5a6   :  { %v11422_v27 = vmul.f32 %v3900_v57, %v14837_v49  ;;  %v11425_v50 = vmul.f32 %v3892_v7, %v14839_v52  ;;  %v11428_v14 = vmul.f32 %v4046_v58, %v14841_v18  ;;  %v4055_v19 = vsel %vm112_vm0, %v14844_v55, %v14843_v62  ;;  %v14849_v58 = vld [vmem:[#allocation40_spill] sm:$0xff] }
 0x5a7   :  { %14828 = vst [vmem:[#allocation69_spill] sm:$0xff] %v11402_v41  ;;  %v11435_v5 = vmul.f32 %v4038_v26, %v14845_v46  ;;  %v4322_v57 = vsel %vm175_vm2, %v14818_v60, %v14847_v24  ;;  %v3901_v7 = vsel %vm59_vm1, %v14835_v17, %v14848_v48  ;;  %5263 = vrot.lane.b32.xlu1 %v11182_v9, %s7542_s16  ;;  %v14899_v41 = vld [vmem:[#allocation142_spill] sm:$0xff] }
 0x5a8   :  { %14830 = vst [vmem:[#allocation72_spill] sm:$0xff] %v11409_v39  ;;  %5275 = vrot.lane.b32.xlu2 %v10957_v2, %s7542_s16  ;;  %v4314_v26 = vsel %vm175_vm2, %v14847_v24, %v14849_v58  ;;  %v4338_v60 = vsel %vm175_vm2, %v14849_v58, %v14819_v20  ;;  %v4557_v17 = vsel %vm238_vm5, %v14850_v44, %v14815_v40  ;;  %v14851_v24 = vld [vmem:[#allocation84_spill] sm:$0xff]  ;;  %v14854_v40 = vld [vmem:[#allocation91_spill] sm:$0xff] }
 0x5a9   :  { %14834 = vst [vmem:[#allocation36_spill] sm:$0xff] %v11415_v61  ;;  %v11462_v9 = vmul.f32 %v3909_v54, %v14825_v53  ;;  %5279 = vrot.lane.b32.xlu0 %v11197_v15, %s7542_s16  ;;  %v11467_v2 = vmul.f32 %v4055_v19, %v14826_v47  ;;  %v4331_v63 = vsel %vm175_vm2, %v14852_v25, %v14851_v24  ;;  %v14853_v20 = vld [vmem:[#allocation68_spill] sm:$0xff]  ;;  %v11481_v42 = vpop.permute.xlu1 %4280  ;;  %v11483_v15 = vpop.permute.xlu2 %4515  ;;  %v14858_v19 = vld [vmem:[#allocation15_spill] sm:$0xff] }
 0x5aa   :  { %14838 = vst [vmem:[#allocation51_spill] sm:$0xff] %v11422_v27  ;;  %v4339_v58 = vsel %vm175_vm2, %v14853_v20, %v14852_v25  ;;  %v4550_v54 = vsel %vm238_vm5, %v14855_v30, %v14854_v40  ;;  %v11486_v45 = vmul.f32 %v4322_v57, %v14858_v19  ;;  %v4541_v25 = vsel %vm238_vm5, %v14814_v35, %v14860_v12  ;;  %v11499_v3 = vpop.permute.xlu0 %3858  ;;  %v14865_v57 = vld [vmem:[#allocation12_spill] sm:$0xff]  ;;  %v14938_v61 = vld [vmem:[#allocation155_spill] sm:$0xff] }
 0x5ab   :  { %14840 = vst [vmem:[#allocation66_spill] sm:$0xff] %v11425_v50  ;;  %v11497_v53 = vmul.f32 %v3901_v7, %v14837_v49  ;;  %v11505_v28 = vmul.f32 %v4314_v26, %v14865_v57  ;;  %v14869_v44 = vld [vmem:[#allocation80_spill] sm:$0xff]  ;;  %v11515_v35 = vmul.f32 %v4331_v63, %v14829_v31  ;;  %v11521_v7 = vmul.f32 %v4550_v54, %v14827_v22  ;;  %v14873_v26 = vld [vmem:[#allocation97_spill] sm:$0xff]  ;;  %v14901_v50 = vld [vmem:[#allocation110_spill] sm:$0xff] }
 0x5ac   :  { %14842 = vst [vmem:[#allocation56_spill] sm:$0xff] %v11428_v14  ;;  %v4542_v21 = vsel %vm238_vm5, %v14854_v40, %v14869_v44  ;;  %v14879_v54 = vld [vmem:[#allocation93_spill] sm:$0xff] }
 0x5ad   :  { %14846 = vst [vmem:[#allocation41_spill] sm:$0xff] %v11435_v5 }
 0x5ae   :  { %14856 = vst [vmem:[#allocation54_spill] sm:$0xff] %v11481_v42  ;;  %v14863_v42 = vld [vmem:[#allocation13_spill] sm:$0xff] }
 0x5af   :  { %14857 = vst [vmem:[#allocation62_spill] sm:$0xff] %v11483_v15  ;;  %v11502_v15 = vmul.f32 %v4338_v60, %v14863_v42  ;;  %v11518_v12 = vmul.f32 %v4339_v58, %v14863_v42  ;;  %v4063_v60 = vsel %vm112_vm0, %v14873_v26, %v14844_v55  ;;  %v3893_v55 = vsel %vm59_vm1, %v14848_v48, %v14879_v54  ;;  %v14881_v58 = vld [vmem:[#allocation96_spill] sm:$0xff] }
 0x5b0   :  { %14859 = vst [vmem:[#allocation82_spill] sm:$0xff] %v11486_v45  ;;  %v14867_v45 = vld [vmem:[#allocation18_spill] sm:$0xff]  ;;  %v11551_v63 = vmul.f32 %v4063_v60, %v14833_v6  ;;  %v4047_v48 = vsel %vm112_vm0, %v14843_v62, %v14881_v58  ;;  %5014 = vrot.lane.b32.xlu1 %v14808_v33, %s7541_s13  ;;  %5221 = vrot.lane.b32.xlu2 %v14779_v16, %s7542_s16 }
 0x5b1   :  { %14861 = vst [vmem:[#allocation81_spill] sm:$0xff] %v11497_v53  ;;  %v11508_v51 = vmul.f32 %v4557_v17, %v14867_v45  ;;  %v14874_v17 = vld [vmem:[#allocation20_spill] sm:$0xff]  ;;  %5225 = vrot.lane.b32.xlu0 %v10807_v23, %s7542_s16  ;;  %v11591_v62 = vpop.permute.xlu1 %4483  ;;  %v11593_v16 = vpop.permute.xlu2 %5044 }
 0x5b2   :  { %14862 = vst [vmem:[#allocation60_spill] sm:$0xff] %v11499_v3  ;;  %v11528_v49 = vmul.f32 %v4541_v25, %v14874_v17  ;;  %v14876_v3 = vld [vmem:[#allocation17_spill] sm:$0xff]  ;;  %v11538_v40 = vmul.f32 %v4542_v21, %v14874_v17  ;;  %v4039_v21 = vsel %vm112_vm0, %v14881_v58, %v14873_v26  ;;  %v11581_v25 = vmul.f32 %v3893_v55, %v14839_v52  ;;  %v14889_v58 = vld [vmem:[#allocation100_spill] sm:$0xff] }
 0x5b3   :  { %14864 = vst [vmem:[#allocation85_spill] sm:$0xff] %v11502_v15  ;;  %v4060_v26 = vsel %vm112_vm0, %v11207_v8, %v11241_v36  ;;  %v11599_v55 = vmul.f32 %v4039_v21, %v14845_v46  ;;  %v14894_v23 = vld [vmem:[#allocation136_spill] sm:$0xff] }
 0x5b4   :  { %14866 = vst [vmem:[#allocation63_spill] sm:$0xff] %v11505_v28  ;;  %v4095_v33 = vmul.f32 %v4060_v26, %v14826_v47  ;;  %v14898_v26 = vld [vmem:[#allocation83_spill] sm:$0xff]  ;;  %v14907_v28 = vld [vmem:[#allocation112_spill] sm:$0xff] }
 0x5b5   :  { %14868 = vst [vmem:[#allocation43_spill] sm:$0xff] %v11508_v51  ;;  %v11531_v51 = vmul.f32 %v4533_v11, %v14876_v3  ;;  %v3917_v11 = vsel %vm59_vm1, %v14879_v54, %v14836_v10  ;;  %v14882_v10 = vld [vmem:[#allocation102_spill] sm:$0xff] }
 0x5b6   :  { %14870 = vst [vmem:[#allocation40_spill] sm:$0xff] %v11515_v35  ;;  %v4323_v60 = vsel %vm175_vm2, %v14851_v24, %v14882_v10  ;;  %v11578_v54 = vmul.f32 %v3917_v11, %v14831_v43  ;;  %v4315_v24 = vsel %vm175_vm2, %v14882_v10, %v14853_v20  ;;  %v11596_v11 = vmul.f32 %v4047_v48, %v14841_v18  ;;  %v11605_v10 = vpop.permute.xlu0 %3988 }
 0x5b7   :  { %14871 = vst [vmem:[#allocation79_spill] sm:$0xff] %v11518_v12  ;;  %v4558_v20 = vsel %vm238_vm5, %v14889_v58, %v14855_v30  ;;  %v11610_v15 = vmul.f32 %v4323_v60, %v14858_v19  ;;  %v4059_v48 = vsel %vm112_vm0, %v11141_v32, %v11129_v38  ;;  %v4061_v21 = vsel %vm112_vm0, %v11605_v10, %v11279_v4  ;;  %v14897_v12 = vld [vmem:[#allocation105_spill] sm:$0xff] }
 0x5b8   :  { %14872 = vst [vmem:[#allocation84_spill] sm:$0xff] %v11521_v7  ;;  %v4534_v60 = vsel %vm238_vm5, %v14869_v44, %v14889_v58  ;;  %v4058_v30 = vsel %vm112_vm0, %v11019_v59, %v10965_v13  ;;  %v4091_v44 = vmul.f32 %v4059_v48, %v14826_v47  ;;  %5227 = vrot.lane.b32.xlu1 %v14894_v23, %s7542_s16  ;;  %v14895_v48 = vld [vmem:[#allocation59_spill] sm:$0xff] }
 0x5b9   :  { %14875 = vst [vmem:[#allocation48_spill] sm:$0xff] %v11528_v49  ;;  %v4099_v49 = vmul.f32 %v4061_v21, %v14826_v47  ;;  %v11648_v21 = vmul.f32 %v4534_v60, %v14876_v3  ;;  %5255 = vrot.lane.b32.xlu2 %v14895_v48, %s7542_s16  ;;  %v3910_v60 = vsel %vm59_vm1, %v14898_v26, %v14897_v12  ;;  %v14900_v7 = vld [vmem:[#allocation87_spill] sm:$0xff]  ;;  %v11694_v53 = vpop.permute.xlu2 %5034 }
 0x5ba   :  { %14877 = vst [vmem:[#allocation68_spill] sm:$0xff] %v11531_v51  ;;  %5259 = vrot.lane.b32.xlu0 %v14899_v41, %s7542_s16  ;;  %v4332_v48 = vsel %vm175_vm2, %v14901_v50, %v14900_v7  ;;  %v11681_v41 = vpop.permute.xlu1 %4809  ;;  %v14911_v23 = vld [vmem:[#allocation99_spill] sm:$0xff] }
 0x5bb   :  { %14878 = vst [vmem:[#allocation91_spill] sm:$0xff] %v11538_v40  ;;  %v11632_v40 = vmul.f32 %v4558_v20, %v14867_v45  ;;  %v4118_v58 = vpack.c.bf16 %v4099_v49, %v4095_v33  ;;  %v4087_v20 = vmul.f32 %v4058_v30, %v14826_v47  ;;  %v14902_v49 = vld [vmem:[#allocation95_spill] sm:$0xff] }
 0x5bc   :  { %14880 = vst [vmem:[#allocation89_spill] sm:$0xff] %v11551_v63  ;;  %v3918_v33 = vsel %vm59_vm1, %v14902_v49, %v14898_v26  ;;  %v3902_v26 = vsel %vm59_vm1, %v14897_v12, %v14907_v28  ;;  %v14918_v12 = vld [vmem:[#allocation9_spill] sm:$0xff] }
 0x5bd   :  { %14883 = vst [vmem:[#allocation78_spill] sm:$0xff] %v11578_v54  ;;  %4148 = vmatpush.bf16.msra.mxu1 %v4118_v58  ;;  %v14910_v54 = vld [vmem:[#allocation4_spill] sm:$0xff]  ;;  %v14912_v58 = vld [vmem:[#allocation111_spill] sm:$0xff]  ;;  %v11724_v5 = vmul.f32 %v3918_v33, %v14831_v43  ;;  %v11727_v51 = vmul.f32 %v3902_v26, %v14918_v12  ;;  %v14939_v63 = vld [vmem:[#allocation157_spill] sm:$0xff] }
 0x5be   :  { %14884 = vst [vmem:[#allocation80_spill] sm:$0xff] %v11581_v25  ;;  %v14904_v25 = vld [vmem:[#allocation109_spill] sm:$0xff]  ;;  %v11696_v34 = vpop.permute.xlu0 %4499  ;;  %v11699_v39 = vmul.f32 %v3910_v60, %v14910_v54  ;;  %v14923_v33 = vld [vmem:[#allocation191_spill] sm:$0xff] }
 0x5bf   :  { %14885 = vst [vmem:[#allocation97_spill] sm:$0xff] %v11591_v62 }
 0x5c0   :  { %14886 = vst [vmem:[#allocation93_spill] sm:$0xff] %v11593_v16  ;;  %v11623_v16 = vmul.f32 %v4315_v24, %v14865_v57  ;;  %v4057_v24 = vsel %vm112_vm0, %v10773_v29, %v10835_v1 }
 0x5c1   :  { %14887 = vst [vmem:[#allocation96_spill] sm:$0xff] %v11596_v11  ;;  %v4083_v27 = vmul.f32 %v4057_v24, %v14826_v47  ;;  %v11712_v24 = vmul.f32 %v4332_v48, %v14829_v31  ;;  %v14937_v11 = vld [vmem:[#allocation126_spill] sm:$0xff] }
 0x5c2   :  { %14888 = vst [vmem:[#allocation102_spill] sm:$0xff] %v11599_v55  ;;  %v14927_v55 = vld [vmem:[#allocation123_spill] sm:$0xff] }
 0x5c3   :  { %14890 = vst [vmem:[#allocation100_spill] sm:$0xff] %v11610_v15  ;;  %v14903_v15 = vld [vmem:[#allocation106_spill] sm:$0xff]  ;;  %5273 = vrot.lane.b32.xlu1 %v14927_v55, %s7542_s16  ;;  %v14934_v55 = vld [vmem:[#allocation121_spill] sm:$0xff] }
 0x5c4   :  { %14891 = vst [vmem:[#allocation212_spill] sm:$0xff] %v11623_v16  ;;  %v4056_v30 = vsel %vm112_vm0, %v14904_v25, %v14903_v15  ;;  %v3894_v16 = vsel %vm59_vm1, %v14907_v28, %v14902_v49  ;;  %v4048_v49 = vsel %vm112_vm0, %v14903_v15, %v14911_v23  ;;  %v14916_v15 = vld [vmem:[#allocation74_spill] sm:$0xff] }
 0x5c5   :  { %14892 = vst [vmem:[#allocation213_spill] sm:$0xff] %v11632_v40  ;;  %v14913_v40 = vld [vmem:[#allocation92_spill] sm:$0xff]  ;;  %v11730_v48 = vmul.f32 %v3894_v16, %v14839_v52 }
 0x5c6   :  { %14893 = vst [vmem:[#allocation214_spill] sm:$0xff] %v11648_v21  ;;  %v4551_v28 = vsel %vm238_vm5, %v14913_v40, %v14912_v58 }
 0x5c7   :  { %14905 = vst [vmem:[#allocation105_spill] sm:$0xff] %v11681_v41  ;;  %v4114_v41 = vpack.c.bf16 %v4091_v44, %v4087_v20  ;;  %v4079_v44 = vmul.f32 %v4056_v30, %v14826_v47  ;;  %v14914_v20 = vld [vmem:[#allocation116_spill] sm:$0xff]  ;;  %v11737_v47 = vmul.f32 %v4048_v49, %v14841_v18  ;;  %v11740_v21 = vmul.f32 %v4551_v28, %v14827_v22  ;;  %v14928_v28 = vld [vmem:[#allocation113_spill] sm:$0xff] }
 0x5c8   :  { %14908 = vst [vmem:[#allocation83_spill] sm:$0xff] %v11694_v53  ;;  %v4340_v60 = vsel %vm175_vm2, %v14914_v20, %v14901_v50  ;;  %v14915_v53 = vld [vmem:[#allocation60_spill] sm:$0xff]  ;;  %5241 = vrot.lane.b32.xlu2 %v14928_v28, %s7542_s16 }
 0x5c9   :  { %14909 = vst [vmem:[#allocation87_spill] sm:$0xff] %v11696_v34  ;;  %v3915_v35 = vsel %vm59_vm1, %v14916_v15, %v14915_v53  ;;  %4149 = vmatpush.bf16.msra.mxu1 %v4114_v41  ;;  %v14921_v30 = vld [vmem:[#allocation104_spill] sm:$0xff]  ;;  %v14922_v41 = vld [vmem:[#allocation179_spill] sm:$0xff]  ;;  %v11747_v16 = vmul.f32 %v4340_v60, %v14863_v42 }
 0x5ca   :  { %14917 = vst [vmem:[#allocation110_spill] sm:$0xff] %v11724_v5  ;;  %v4559_v50 = vsel %vm238_vm5, %v14921_v30, %v14913_v40  ;;  %v3914_v26 = vsel %vm59_vm1, %v14923_v33, %v14922_v41  ;;  %v14926_v5 = vld [vmem:[#allocation124_spill] sm:$0xff]  ;;  %v3953_v49 = vmul.f32 %v3915_v35, %v14910_v54  ;;  %v11813_v34 = vld [vmem:[%s13811_s7 + $0x8] sm:$0xff] }
 0x5cb   :  { %14919 = vst [vmem:[#allocation95_spill] sm:$0xff] %v11727_v51  ;;  %v4110_v51 = vpack.c.bf16 %v4083_v27, %v4079_v44  ;;  %v11759_v14 = vmul.f32 %v4559_v50, %v14867_v45  ;;  %v14930_v27 = vld [vmem:[#allocation115_spill] sm:$0xff]  ;;  %v14931_v60 = vld [vmem:[#allocation176_spill] sm:$0xff]  ;;  %v3949_v28 = vmul.f32 %v3914_v26, %v14910_v54  ;;  %v11784_v45 = vpop.permute.xlu1 %3890  ;;  %v14941_v26 = vld [vmem:[#allocation118_spill] sm:$0xff] }
 0x5cc   :  { %14920 = vst [vmem:[#allocation106_spill] sm:$0xff] %v11730_v48  ;;  %v14925_v48 = vld [vmem:[#allocation107_spill] sm:$0xff]  ;;  %v4040_v44 = vsel %vm112_vm0, %v14911_v23, %v14930_v27  ;;  %v14933_v35 = vld [vmem:[#allocation156_spill] sm:$0xff]  ;;  %v4064_v50 = vsel %vm112_vm0, %v14930_v27, %v14904_v25  ;;  %v4543_v23 = vsel %vm238_vm5, %v14912_v58, %v14934_v55  ;;  %v11799_v58 = vpop.permute.xlu0 %5012 }
 0x5cd   :  { %14924 = vst [vmem:[#allocation109_spill] sm:$0xff] %v11747_v16  ;;  %v3911_v40 = vsel %vm59_vm1, %v14926_v5, %v14925_v48  ;;  %v14932_v16 = vld [vmem:[#allocation171_spill] sm:$0xff]  ;;  %5245 = vrot.lane.b32.xlu0 %v14933_v35, %s7542_s16  ;;  %4150 = vmatpush.bf16.msra.mxu1 %v4110_v51 }
 0x5ce   :  { %14929 = vst [vmem:[#allocation112_spill] sm:$0xff] %v11759_v14  ;;  %v3913_v42 = vsel %vm59_vm1, %v14932_v16, %v14931_v60  ;;  %v4535_v14 = vsel %vm238_vm5, %v14934_v55, %v14921_v30  ;;  %v14935_v51 = vld [vmem:[#allocation119_spill] sm:$0xff]  ;;  %v3937_v25 = vmul.f32 %v3911_v40, %v14910_v54  ;;  %v3912_v55 = vsel %vm59_vm1, %v14939_v63, %v14938_v61  ;;  %v14943_v16 = vld [vmem:[#allocation130_spill] sm:$0xff]  ;;  %v11824_v61 = vpop.permute.xlu2 %5052 }
 0x5cf   :  { %v4324_v35 = vsel %vm175_vm2, %v14900_v7, %v14935_v51  ;;  %v14936_v27 = vld [vmem:[#allocation127_spill] sm:$0xff]  ;;  %14940 = vst [vmem:[#allocation99_spill] sm:$0xff] %v11799_v58  ;;  %v4065_v60 = vsel %vm112_vm0, %v14941_v26, %v10773_v29  ;;  %v14942_v7 = vld [vmem:[#allocation114_spill] sm:$0xff]  ;;  %v3945_v62 = vmul.f32 %v3913_v42, %v14910_v54  ;;  %v11816_v58 = vmul.f32 %v4064_v50, %v14833_v6 }
 0x5d0   :  { %v4333_v30 = vsel %vm175_vm2, %v14937_v11, %v14936_v27  ;;  %v4552_v40 = vsel %vm238_vm5, %v14943_v16, %v14942_v7  ;;  %v3971_v11 = vpack.c.bf16 %v3953_v49, %v3949_v28  ;;  %v11819_v63 = vmul.f32 %v4040_v44, %v14845_v46  ;;  %14945 = vst [vmem:[#allocation92_spill] sm:$0xff] %v11824_v61  ;;  %v14964_v16 = vld [vmem:[#allocation174_spill] sm:$0xff] }
 0x5d1   :  { %v11822_v29 = vmul.f32 %v4543_v23, %v14874_v17  ;;  %v14946_v42 = vpack.c.bf16 %v11467_v2, %v11399_v0  ;;  %v11830_v49 = vmul.f32 %v4535_v14, %v14876_v3  ;;  %v11836_v28 = vsel %vm175_vm2, %v14935_v51, %v14914_v20 }
 0x5d2   :  { %v11839_v44 = vmul.f32 %v4324_v35, %v14858_v19  ;;  %v3941_v50 = vmul.f32 %v3912_v55, %v14910_v54  ;;  %v11843_v23 = vmul.f32 %v4333_v30, %v14829_v31  ;;  %v11846_v0 = vmul.f32 %v4065_v60, %v14833_v6  ;;  %v14950_v35 = vld [vmem:[#allocation190_spill] sm:$0xff]  ;;  %v14951_v60 = vld [vmem:[#allocation175_spill] sm:$0xff]  ;;  %v14953_v30 = vld [vmem:[#allocation205_spill] sm:$0xff] }
 0x5d3   :  { %14944 = vst [vmem:[#allocation111_spill] sm:$0xff] %v11822_v29  ;;  %4151 = vmatpush.bf16.msra.mxu1 %v14946_v42  ;;  %v11849_v2 = vmul.f32 %v4552_v40, %v14827_v22  ;;  %v3963_v14 = vpack.c.bf16 %v3937_v25, %v11699_v39  ;;  %v14949_v42 = vld [vmem:[#allocation129_spill] sm:$0xff]  ;;  %5247 = vrot.lane.b32.xlu1 %v14951_v60, %s7542_s16  ;;  %v14952_v39 = vld [vmem:[#allocation138_spill] sm:$0xff]  ;;  %v14956_v40 = vld [vmem:[#allocation172_spill] sm:$0xff]  ;;  %v4021_v61 = vpop.permute.xlu1 %4020 }
 0x5d4   :  { %14947 = vst [vmem:[#allocation116_spill] sm:$0xff] %v11830_v49  ;;  %v11856_v20 = vsel %vm59_vm1, %v14925_v48, %v14949_v42  ;;  %v3967_v51 = vpack.c.bf16 %v3945_v62, %v3941_v50  ;;  %v4041_v25 = vsel %vm112_vm0, %v14952_v39, %v14941_v26  ;;  %v4049_v48 = vsel %vm112_vm0, %v10835_v1, %v14952_v39  ;;  %v14954_v55 = vld [vmem:[#allocation49_spill] sm:$0xff]  ;;  %v14955_v62 = vld [vmem:[#allocation52_spill] sm:$0xff]  ;;  %v14958_v39 = vld [vmem:[#allocation182_spill] sm:$0xff]  ;;  %v4037_v3 = vpop.permute.xlu0 %4036 }
 0x5d5   :  { %14948 = vst [vmem:[#allocation60_spill] sm:$0xff] %v11839_v44  ;;  %5219 = vrot.lane.b32.xlu2 %v14954_v55, %s7542_s16  ;;  %5223 = vrot.lane.b32.xlu0 %v14955_v62, %s7542_s16  ;;  %v4066_v26 = vsel %vm112_vm0, %v14956_v40, %v11019_v59  ;;  %v14957_v50 = vld [vmem:[#allocation88_spill] sm:$0xff]  ;;  %v4044_v54 = vsel %vm112_vm0, %v14953_v30, %v14950_v35  ;;  %v14960_v62 = vld [vmem:[#allocation201_spill] sm:$0xff] }
 0x5d6   :  { %6979 = vmatmul.msk.bf16.vlgmr.msra.gmra.mxu1 %vm4126_vm14, %v11813_v34  ;;  %v4051_v1 = vsel %vm112_vm0, %v11129_v38, %v14957_v50  ;;  %v4067_v59 = vsel %vm112_vm0, %v14958_v39, %v11141_v32  ;;  %v14959_v38 = vld [vmem:[#allocation54_spill] sm:$0xff]  ;;  %v4069_v32 = vsel %vm112_vm0, %v4037_v3, %v11605_v10  ;;  %v4097_v44 = vmul.f32 %v4044_v54, %v14845_v46 }
 0x5d7   :  { %4212 = vmatpush.bf16.msrb.mxu1 %v3971_v11  ;;  %v4068_v11 = vsel %vm112_vm0, %v14950_v35, %v11207_v8  ;;  %v4052_v8 = vsel %vm112_vm0, %v11241_v36, %v14953_v30  ;;  %v4043_v36 = vsel %vm112_vm0, %v14957_v50, %v14958_v39  ;;  %v4337_v49 = vsel %vm175_vm2, %v14960_v62, %v14959_v38  ;;  %v14962_v39 = vld [vmem:[#allocation192_spill] sm:$0xff]  ;;  %v14965_v54 = vld [vmem:[#allocation58_spill] sm:$0xff] }
 0x5d8   :  { %v4094_v55 = vmul.f32 %v4068_v11, %v14833_v6  ;;  %v4053_v50 = vsel %vm112_vm0, %v11279_v4, %v4021_v61  ;;  %v4096_v35 = vmul.f32 %v4052_v8, %v14841_v18  ;;  %v4045_v30 = vsel %vm112_vm0, %v4021_v61, %v4037_v3  ;;  %v14961_v11 = vld [vmem:[#allocation194_spill] sm:$0xff] }
 0x5d9   :  { %v4336_v29 = vsel %vm175_vm2, %v14962_v39, %v14961_v11  ;;  %v4098_v4 = vmul.f32 %v4069_v32, %v14833_v6  ;;  %v4101_v8 = vmul.f32 %v4045_v30, %v14845_v46  ;;  %v4375_v10 = vmul.f32 %v4337_v49, %v14829_v31  ;;  %v11938_v39 = vpop.permute.xlu2 %4998  ;;  %v14967_v49 = vld [vmem:[#allocation57_spill] sm:$0xff] }
 0x5da   :  { %v4335_v32 = vsel %vm175_vm2, %v14965_v54, %v14964_v16  ;;  %v4092_v30 = vmul.f32 %v4051_v1, %v14841_v18  ;;  %14966 = vst [vmem:[#allocation74_spill] sm:$0xff] %v11938_v39  ;;  %v4090_v17 = vmul.f32 %v4067_v59, %v14833_v6  ;;  %v4093_v38 = vmul.f32 %v4043_v36, %v14845_v46  ;;  %v14971_v36 = vld [vmem:[#allocation38_spill] sm:$0xff]  ;;  %v14997_v39 = vld [vmem:[#allocation89_spill] sm:$0xff] }
 0x5db   :  { %4213 = vmatpush.bf16.msrb.mxu1 %v3967_v51  ;;  %v4100_v51 = vmul.f32 %v4053_v50, %v14841_v18  ;;  %v14963_v50 = vld [vmem:[#allocation108_spill] sm:$0xff]  ;;  %v4117_v11 = vpack.c.bf16 %v4098_v4, %v4094_v55  ;;  %5253 = vrot.lane.b32.xlu1 %v14967_v49, %s7542_s16  ;;  %v4086_v1 = vmul.f32 %v4066_v26, %v14833_v6  ;;  %v11957_v4 = vpop.permute.xlu1 %4531 }
 0x5dc   :  { %v4042_v61 = vsel %vm112_vm0, %v14963_v50, %v14956_v40  ;;  %v4050_v3 = vsel %vm112_vm0, %v10965_v13, %v14963_v50  ;;  %v4120_v40 = vpack.c.bf16 %v4101_v8, %v4097_v44  ;;  %v4371_v13 = vmul.f32 %v4336_v29, %v14829_v31  ;;  %v14970_v44 = vld [vmem:[#allocation76_spill] sm:$0xff]  ;;  %v14972_v8 = vld [vmem:[#allocation133_spill] sm:$0xff] }
 0x5dd   :  { %v4119_v60 = vpack.c.bf16 %v4100_v51, %v4096_v35  ;;  %v14969_v35 = vld [vmem:[#allocation149_spill] sm:$0xff]  ;;  %v4088_v55 = vmul.f32 %v4050_v3, %v14841_v18  ;;  %5265 = vrot.lane.b32.xlu2 %v14970_v44, %s7542_s16  ;;  %5269 = vrot.lane.b32.xlu0 %v14971_v36, %s7542_s16  ;;  %v4089_v29 = vmul.f32 %v4042_v61, %v14845_v46  ;;  %v15001_v36 = vld [vmem:[#allocation56_spill] sm:$0xff] }
 0x5de   :  { %v4367_v59 = vmul.f32 %v4335_v32, %v14829_v31  ;;  %4134 = vmatpush.bf16.msra.mxu0 %v4117_v11  ;;  %4176 = vmatpush.bf16.msra.mxu3 %v4120_v40  ;;  %v3895_v26 = vsel %vm59_vm1, %v14949_v42, %v14972_v8  ;;  %v3919_v50 = vsel %vm59_vm1, %v14972_v8, %v14926_v5  ;;  %v11971_v11 = vpop.permute.xlu0 %4296  ;;  %v11982_v5 = vld [vmem:[%s13811_s7] sm:$0xff] }
 0x5df   :  { %4214 = vmatpush.bf16.msrb.mxu1 %v3963_v14  ;;  %4162 = vmatpush.bf16.msra.mxu2 %v4119_v60  ;;  %v14968_v14 = vld [vmem:[#allocation160_spill] sm:$0xff]  ;;  %v4394_v60 = vpack.c.bf16 %v4375_v10, %v4371_v13  ;;  %v4084_v3 = vmul.f32 %v4049_v48, %v14841_v18  ;;  %v14973_v61 = vpack.c.bf16 %v11462_v9, %v11396_v37 }
 0x5e0   :  { %v4334_v51 = vsel %vm175_vm2, %v14969_v35, %v14968_v14  ;;  %v4115_v10 = vpack.c.bf16 %v4092_v30, %v4088_v55  ;;  %v4085_v32 = vmul.f32 %v4041_v25, %v14845_v46  ;;  %v4113_v42 = vpack.c.bf16 %v4090_v17, %v4086_v1  ;;  %v14976_v30 = vld [vmem:[#allocation67_spill] sm:$0xff]  ;;  %v14977_v55 = vld [vmem:[#allocation200_spill] sm:$0xff] }
 0x5e1   :  { %v4363_v40 = vmul.f32 %v4334_v51, %v14829_v31  ;;  %v4116_v13 = vpack.c.bf16 %v4093_v38, %v4089_v29  ;;  %v11977_v6 = vmul.f32 %v11836_v28, %v14865_v57  ;;  %v4109_v37 = vpack.c.bf16 %v11846_v0, %v11816_v58  ;;  %v14974_v28 = vld [vmem:[#allocation122_spill] sm:$0xff]  ;;  %v14994_v31 = vld [vmem:[#allocation157_spill] sm:$0xff] }
 0x5e2   :  { %v4386_v9 = vpack.c.bf16 %v11843_v23, %v11712_v24  ;;  %v11992_v25 = vmul.f32 %v11856_v20, %v14918_v12  ;;  %v4325_v48 = vsel %vm175_vm2, %v14936_v27, %v14974_v28  ;;  %4135 = vmatpush.bf16.msra.mxu0 %v4113_v42  ;;  %v11999_v58 = vmul.f32 %v3919_v50, %v14831_v43  ;;  %v14975_v23 = vld [vmem:[#allocation210_spill] sm:$0xff]  ;;  %v14983_v50 = vld [vmem:[#allocation135_spill] sm:$0xff] }
 0x5e3   :  { %4215 = vmatpush.bf16.msrb.mxu1 %v14973_v61  ;;  %4163 = vmatpush.bf16.msra.mxu2 %v4115_v10  ;;  %v4390_v38 = vpack.c.bf16 %v4367_v59, %v4363_v40  ;;  %v12002_v24 = vmul.f32 %v3895_v26, %v14839_v52  ;;  %v3907_v0 = vsel %vm59_vm1, %v14915_v53, %v14975_v23  ;;  %v14978_v29 = vld [vmem:[#allocation202_spill] sm:$0xff]  ;;  %v12032_v59 = vpop.permute.xlu2 %5032  ;;  %v14985_v61 = vld [vmem:[#allocation155_spill] sm:$0xff] }
 0x5e4   :  { %4177 = vmatpush.bf16.msra.mxu3 %v4116_v13  ;;  %v3923_v20 = vsel %vm59_vm1, %v11784_v45, %v14916_v15  ;;  %v3899_v27 = vsel %vm59_vm1, %v14975_v23, %v11784_v45  ;;  %5271 = vrot.lane.b32.xlu1 %v14976_v30, %s7542_s16  ;;  %v4111_v51 = vpack.c.bf16 %v4084_v3, %v11737_v47  ;;  %v14980_v47 = vld [vmem:[#allocation61_spill] sm:$0xff]  ;;  %v14984_v3 = vld [vmem:[#allocation151_spill] sm:$0xff] }
 0x5e5   :  { %v4112_v1 = vpack.c.bf16 %v4085_v32, %v11819_v63  ;;  %v3906_v53 = vsel %vm59_vm1, %v14922_v41, %v14977_v55  ;;  %v3898_v15 = vsel %vm59_vm1, %v14977_v55, %v14978_v29  ;;  %v3922_v45 = vsel %vm59_vm1, %v14978_v29, %v14923_v33  ;;  %14979 = vst [vmem:[#allocation104_spill] sm:$0xff] %v12032_v59  ;;  %v14981_v41 = vld [vmem:[#allocation87_spill] sm:$0xff]  ;;  %v12046_v33 = vpop.permute.xlu1 %4825  ;;  %v14986_v32 = vld [vmem:[#allocation170_spill] sm:$0xff]  ;;  %v14998_v59 = vld [vmem:[#allocation36_spill] sm:$0xff] }
 0x5e6   :  { %6987 = vmatmul.msk.bf16.vlgmr.msrb.gmra.mxu1 %vm4126_vm14, %v11982_v5  ;;  %5239 = vrot.lane.b32.xlu2 %v14980_v47, %s7542_s16  ;;  %v3954_v63 = vmul.f32 %v3907_v0, %v14918_v12  ;;  %v3952_v26 = vmul.f32 %v3923_v20, %v14831_v43  ;;  %v3904_v10 = vsel %vm59_vm1, %v14985_v61, %v14984_v3  ;;  %v12057_v13 = vpop.permute.xlu0 %4841  ;;  %v14990_v0 = vld [vmem:[#allocation185_spill] sm:$0xff] }
 0x5e7   :  { %4423 = vmatpush.bf16.msra.mxu1 %v4394_v60  ;;  %v14982_v60 = vld [vmem:[#allocation97_spill] sm:$0xff]  ;;  %5243 = vrot.lane.b32.xlu0 %v14983_v50, %s7542_s16  ;;  %v3896_v40 = vsel %vm59_vm1, %v14984_v3, %v14986_v32  ;;  %v3955_v42 = vmul.f32 %v3899_v27, %v14839_v52  ;;  %14987 = vst [vmem:[#allocation179_spill] sm:$0xff] %v12057_v13  ;;  %v15006_v13 = vld [vmem:[#allocation162_spill] sm:$0xff] }
 0x5e8   :  { %v4556_v8 = vsel %vm238_vm5, %v14982_v60, %v14981_v41  ;;  %4136 = vmatpush.bf16.msra.mxu0 %v4109_v37  ;;  %4164 = vmatpush.bf16.msra.mxu2 %v4111_v51  ;;  %v14989_v37 = vld [vmem:[#allocation39_spill] sm:$0xff]  ;;  %v14991_v20 = vld [vmem:[#allocation197_spill] sm:$0xff]  ;;  %v3950_v29 = vmul.f32 %v3906_v53, %v14918_v12  ;;  %v3948_v3 = vmul.f32 %v3922_v45, %v14831_v43  ;;  %v14996_v45 = vld [vmem:[#allocation98_spill] sm:$0xff] }
 0x5e9   :  { %4178 = vmatpush.bf16.msra.mxu3 %v4112_v1  ;;  %v4555_v55 = vsel %vm238_vm5, %v14991_v20, %v14990_v0  ;;  %v14992_v27 = vld [vmem:[#allocation101_spill] sm:$0xff]  ;;  %v14993_v1 = vld [vmem:[#allocation176_spill] sm:$0xff]  ;;  %v4594_v17 = vmul.f32 %v4556_v8, %v14827_v22  ;;  %v3920_v53 = vsel %vm59_vm1, %v14986_v32, %v14994_v31  ;;  %v14999_v44 = vpack.c.bf16 %v14997_v39, %v14998_v59  ;;  %v15003_v31 = vld [vmem:[#allocation102_spill] sm:$0xff] }
 0x5ea   :  { %v3897_v51 = vsel %vm59_vm1, %v14992_v27, %v14989_v37  ;;  %v3905_v61 = vsel %vm59_vm1, %v14993_v1, %v14992_v27  ;;  %v3970_v18 = vpack.c.bf16 %v3952_v26, %v3948_v3  ;;  %v4590_v8 = vmul.f32 %v4555_v55, %v14827_v22  ;;  %v15000_v1 = vld [vmem:[#allocation96_spill] sm:$0xff]  ;;  %v15004_v32 = vld [vmem:[#allocation41_spill] sm:$0xff] }
 0x5eb   :  { %4424 = vmatpush.bf16.msra.mxu1 %v4390_v38  ;;  %v14988_v38 = vld [vmem:[#allocation171_spill] sm:$0xff]  ;;  %v15002_v30 = vpack.c.bf16 %v15000_v1, %v15001_v36  ;;  %v15005_v49 = vpack.c.bf16 %v15003_v31, %v15004_v32  ;;  %v3946_v39 = vmul.f32 %v3905_v61, %v14918_v12  ;;  %v3940_v59 = vmul.f32 %v3920_v53, %v14831_v43  ;;  %v15013_v61 = vld [vmem:[#allocation126_spill] sm:$0xff] }
 0x5ec   :  { %v3921_v23 = vsel %vm59_vm1, %v14989_v37, %v14988_v38  ;;  %v3951_v38 = vmul.f32 %v3898_v15, %v14839_v52  ;;  %v3972_v37 = vpack.c.bf16 %v3954_v63, %v3950_v29  ;;  %4137 = vmatpush.bf16.msra.mxu0 %v14999_v44  ;;  %v15007_v63 = vld [vmem:[#allocation163_spill] sm:$0xff]  ;;  %v3947_v44 = vmul.f32 %v3897_v51, %v14839_v52  ;;  %v12125_v51 = vpop.permute.xlu2 %5018  ;;  %v15018_v31 = vld [vmem:[#allocation110_spill] sm:$0xff] }
 0x5ed   :  { %v3944_v15 = vmul.f32 %v3921_v23, %v14831_v43  ;;  %4165 = vmatpush.bf16.msra.mxu2 %v15002_v30  ;;  %4179 = vmatpush.bf16.msra.mxu3 %v15005_v49  ;;  %v4553_v26 = vsel %vm238_vm5, %v15007_v63, %v15006_v13  ;;  %v4613_v30 = vpack.c.bf16 %v4594_v17, %v4590_v8  ;;  %v15009_v23 = vld [vmem:[#allocation72_spill] sm:$0xff]  ;;  %v15014_v53 = vld [vmem:[#allocation75_spill] sm:$0xff] }
 0x5ee   :  { %v3973_v27 = vpack.c.bf16 %v3955_v42, %v3951_v38  ;;  %v15008_v42 = vld [vmem:[#allocation40_spill] sm:$0xff]  ;;  %v12110_v55 = vmul.f32 %v4325_v48, %v14858_v19  ;;  %v3942_v29 = vmul.f32 %v3904_v10, %v14918_v12  ;;  %v3943_v3 = vmul.f32 %v3896_v40, %v14839_v52  ;;  %v12129_v40 = vpop.permute.xlu0 %5002  ;;  %5217 = vrot.lane.b32.xlu1 %v15014_v53, %s7542_s16  ;;  %v15080_v12 = vld [vmem:[#allocation79_spill] sm:$0xff] }
 0x5ef   :  { %4425 = vmatpush.bf16.msra.mxu1 %v4386_v9  ;;  %v14995_v9 = vld [vmem:[#allocation64_spill] sm:$0xff]  ;;  %v15010_v49 = vpack.c.bf16 %v15008_v42, %v15009_v23  ;;  %6978 = vmatmul.msk.bf16.vlgmr.msra.gmra.mxu0 %vm4126_vm14, %v11813_v34  ;;  %v4582_v48 = vmul.f32 %v4553_v26, %v14827_v22  ;;  %v3966_v10 = vpack.c.bf16 %v3944_v15, %v3940_v59  ;;  %v15017_v15 = vld [vmem:[#allocation77_spill] sm:$0xff] }
 0x5f0   :  { %v4554_v46 = vsel %vm238_vm5, %v14996_v45, %v14995_v9  ;;  %4198 = vmatpush.bf16.msrb.mxu0 %v3970_v18  ;;  %6980 = vmatmul.msk.bf16.vlgmr.msra.gmra.mxu2 %vm4126_vm14, %v11813_v34  ;;  %v15011_v18 = vld [vmem:[#allocation132_spill] sm:$0xff]  ;;  %15012 = vst [vmem:[#allocation191_spill] sm:$0xff] %v12129_v40  ;;  %v3969_v8 = vpack.c.bf16 %v3947_v44, %v3943_v3 }
 0x5f1   :  { %4226 = vmatpush.bf16.msrb.mxu2 %v3972_v37  ;;  %v4586_v36 = vmul.f32 %v4554_v46, %v14827_v22  ;;  %4240 = vmatpush.bf16.msrb.mxu3 %v3973_v27  ;;  %v12118_v46 = vpop.permute.xlu1 %5060  ;;  %v4317_v17 = vsel %vm175_vm2, %v14974_v28, %v15011_v18  ;;  %v4341_v38 = vsel %vm175_vm2, %v15011_v18, %v15013_v61  ;;  %v15015_v28 = vld [vmem:[#allocation173_spill] sm:$0xff]  ;;  %v12150_v26 = vld [vmem:[%s13811_s7 + $0x10] sm:$0xff] }
 0x5f2   :  { %6981 = vmatmul.msk.bf16.vlgmr.msra.gmra.mxu3 %vm4126_vm14, %v11813_v34  ;;  %5480 = vrot.lane.b32.xlu2 %v15015_v28, %s7543_s20  ;;  %v3968_v37 = vpack.c.bf16 %v3946_v39, %v3942_v29  ;;  %v15016_v27 = vld [vmem:[#allocation137_spill] sm:$0xff]  ;;  %v3962_v32 = vpack.c.bf16 %v11999_v58, %v15018_v31  ;;  %v12166_v23 = vmul.f32 %v4317_v17, %v14865_v57  ;;  %v15024_v3 = vld [vmem:[#allocation20_spill] sm:$0xff]  ;;  %v15027_v17 = vld [vmem:[#allocation194_spill] sm:$0xff] }
 0x5f3   :  { %4426 = vmatpush.bf16.msra.mxu1 %v15010_v49  ;;  %v4544_v34 = vsel %vm238_vm5, %v14942_v7, %v15016_v27  ;;  %5249 = vrot.lane.b32.xlu0 %v15017_v15, %s7542_s16  ;;  %v4609_v1 = vpack.c.bf16 %v4586_v36, %v4582_v48  ;;  %v15019_v39 = vld [vmem:[#allocation65_spill] sm:$0xff]  ;;  %v15020_v7 = vld [vmem:[#allocation54_spill] sm:$0xff]  ;;  %v15021_v36 = vld [vmem:[#allocation95_spill] sm:$0xff] }
 0x5f4   :  { %4199 = vmatpush.bf16.msrb.mxu0 %v3966_v10  ;;  %v4345_v44 = vsel %vm175_vm2, %v15019_v39, %v14960_v62  ;;  %v4329_v59 = vsel %vm175_vm2, %v15020_v7, %v11971_v11  ;;  %v3964_v58 = vpack.c.bf16 %v11992_v25, %v15021_v36  ;;  %v4321_v62 = vsel %vm175_vm2, %v11971_v11, %v15019_v39  ;;  %v15023_v49 = vld [vmem:[#allocation106_spill] sm:$0xff]  ;;  %v15026_v10 = vld [vmem:[#allocation193_spill] sm:$0xff]  ;;  %v15031_v31 = vld [vmem:[#allocation184_spill] sm:$0xff] }
 0x5f5   :  { %4227 = vmatpush.bf16.msrb.mxu2 %v3968_v37  ;;  %4241 = vmatpush.bf16.msrb.mxu3 %v3969_v8  ;;  %v3965_v29 = vpack.c.bf16 %v12002_v24, %v15023_v49  ;;  %v12175_v18 = vmul.f32 %v4544_v34, %v15024_v3  ;;  %v15025_v25 = vld [vmem:[#allocation70_spill] sm:$0xff]  ;;  %v4328_v61 = vsel %vm175_vm2, %v15027_v17, %v15026_v10  ;;  %v15029_v37 = vld [vmem:[#allocation203_spill] sm:$0xff]  ;;  %v15036_v17 = vld [vmem:[#allocation181_spill] sm:$0xff] }
 0x5f6   :  { %v4343_v48 = vsel %vm175_vm2, %v15025_v25, %v14965_v54  ;;  %v4320_v24 = vsel %vm175_vm2, %v15026_v10, %v15029_v37  ;;  %v4376_v34 = vmul.f32 %v4329_v59, %v14858_v19  ;;  %6997 = vmatmul.msk.bf16.vlgmr.msra.gmra.mxu1 %vm4126_vm14, %v12150_v26  ;;  %v15030_v54 = vld [vmem:[#allocation154_spill] sm:$0xff]  ;;  %v4327_v39 = vsel %vm175_vm2, %v14964_v16, %v15031_v31 }
 0x5f7   :  { %4642 = vmatpush.bf16.msrb.mxu1 %v4613_v30  ;;  %v15022_v30 = vld [vmem:[#allocation13_spill] sm:$0xff]  ;;  %v4377_v7 = vmul.f32 %v4321_v62, %v14865_v57  ;;  %v4372_v36 = vmul.f32 %v4328_v61, %v14858_v19  ;;  %v12221_v62 = vpop.permute.xlu0 %5036  ;;  %v4373_v10 = vmul.f32 %v4320_v24, %v14865_v57  ;;  %v15042_v24 = vld [vmem:[#allocation130_spill] sm:$0xff] }
 0x5f8   :  { %v12163_v42 = vmul.f32 %v4341_v38, %v15022_v30  ;;  %v15028_v38 = vld [vmem:[#allocation192_spill] sm:$0xff]  ;;  %v4374_v8 = vmul.f32 %v4345_v44, %v15022_v30  ;;  %4200 = vmatpush.bf16.msrb.mxu0 %v3962_v32 }
 0x5f9   :  { %v4344_v11 = vsel %vm175_vm2, %v15029_v37, %v15028_v38  ;;  %4228 = vmatpush.bf16.msrb.mxu2 %v3964_v58  ;;  %4242 = vmatpush.bf16.msrb.mxu3 %v3965_v29  ;;  %v12206_v44 = vpop.permute.xlu1 %5004  ;;  %v15033_v32 = vld [vmem:[#allocation44_spill] sm:$0xff]  ;;  %v15034_v58 = vpack.c.bf16 %v11849_v2, %v11740_v21  ;;  %v4366_v29 = vmul.f32 %v4343_v48, %v15022_v30  ;;  %v12234_v38 = vpop.permute.xlu2 %5231  ;;  %v15038_v37 = vld [vmem:[#allocation55_spill] sm:$0xff] }
 0x5fa   :  { %15032 = vst [vmem:[#allocation107_spill] sm:$0xff] %v12206_v44  ;;  %v4318_v59 = vsel %vm175_vm2, %v15033_v32, %v15030_v54  ;;  %v4370_v16 = vmul.f32 %v4344_v11, %v15022_v30  ;;  %v4326_v49 = vsel %vm175_vm2, %v14968_v14, %v15033_v32  ;;  %5498 = vrot.lane.b32.xlu2 %v15036_v17, %s7543_s20  ;;  %v15039_v14 = vld [vmem:[#allocation78_spill] sm:$0xff]  ;;  %v15040_v11 = vld [vmem:[#allocation71_spill] sm:$0xff] }
 0x5fb   :  { %4643 = vmatpush.bf16.msrb.mxu1 %v4609_v1  ;;  %v4342_v1 = vsel %vm175_vm2, %v15030_v54, %v14969_v35  ;;  %v4319_v35 = vsel %vm175_vm2, %v15031_v31, %v15025_v25  ;;  %v15035_v25 = vld [vmem:[#allocation50_spill] sm:$0xff]  ;;  %v4368_v21 = vmul.f32 %v4327_v39, %v14858_v19  ;;  %v4395_v61 = vpack.c.bf16 %v4376_v34, %v4372_v36  ;;  %v15043_v54 = vld [vmem:[#allocation140_spill] sm:$0xff]  ;;  %v15044_v39 = vld [vmem:[#allocation81_spill] sm:$0xff] }
 0x5fc   :  { %5251 = vrot.lane.b32.xlu1 %v15035_v25, %s7542_s16  ;;  %v4393_v2 = vpack.c.bf16 %v4374_v8, %v4370_v16  ;;  %15037 = vst [vmem:[#allocation124_spill] sm:$0xff] %v12234_v38  ;;  %5267 = vrot.lane.b32.xlu0 %v15038_v37, %s7542_s16  ;;  %v15041_v48 = vpack.c.bf16 %v15039_v14, %v15040_v11  ;;  %v15045_v8 = vld [vmem:[#allocation51_spill] sm:$0xff]  ;;  %v15047_v36 = vld [vmem:[#allocation80_spill] sm:$0xff]  ;;  %v15048_v16 = vld [vmem:[#allocation66_spill] sm:$0xff] }
 0x5fd   :  { %v4560_v31 = vsel %vm238_vm5, %v15043_v54, %v15042_v24  ;;  %v4369_v32 = vmul.f32 %v4319_v35, %v14865_v57  ;;  %v15046_v34 = vpack.c.bf16 %v15044_v39, %v15045_v8  ;;  %v15049_v22 = vpack.c.bf16 %v15047_v36, %v15048_v16  ;;  %v15050_v11 = vld [vmem:[#allocation156_spill] sm:$0xff]  ;;  %v15053_v39 = vld [vmem:[#allocation69_spill] sm:$0xff] }
 0x5fe   :  { %4201 = vmatpush.bf16.msrb.mxu0 %v15041_v48  ;;  %v4362_v52 = vmul.f32 %v4342_v1, %v15022_v30  ;;  %v4364_v14 = vmul.f32 %v4326_v49, %v14858_v19  ;;  %v15051_v48 = vld [vmem:[#allocation175_spill] sm:$0xff]  ;;  %v4365_v35 = vmul.f32 %v4318_v59, %v14865_v57  ;;  %v15055_v1 = vld [vmem:[#allocation60_spill] sm:$0xff]  ;;  %v15056_v8 = vld [vmem:[#allocation109_spill] sm:$0xff]  ;;  %v4388_v36 = vpack.c.bf16 %v12166_v23, %v11977_v6 }
 0x5ff   :  { %4644 = vmatpush.bf16.msrb.mxu1 %v15034_v58  ;;  %v4396_v58 = vpack.c.bf16 %v4377_v7, %v4373_v10  ;;  %4229 = vmatpush.bf16.msrb.mxu2 %v15046_v34  ;;  %v4704_v24 = vpack.c.bf16 %v15051_v48, %v15050_v11  ;;  %v4536_v7 = vsel %vm238_vm5, %v15016_v27, %v15043_v54  ;;  %v15052_v10 = vld [vmem:[#allocation84_spill] sm:$0xff]  ;;  %v15057_v27 = vld [vmem:[#allocation18_spill] sm:$0xff]  ;;  %v15061_v23 = vld [vmem:[#allocation113_spill] sm:$0xff] }
 0x600   :  { %4243 = vmatpush.bf16.msrb.mxu3 %v15049_v22  ;;  %v15054_v22 = vpack.c.bf16 %v15052_v10, %v15053_v39  ;;  %v4387_v49 = vpack.c.bf16 %v12110_v55, %v15055_v1  ;;  %v4385_v34 = vpack.c.bf16 %v12163_v42, %v15056_v8  ;;  %v12271_v54 = vmul.f32 %v4560_v31, %v15057_v27  ;;  %v15068_v1 = vld [vmem:[#allocation206_spill] sm:$0xff]  ;;  %v15125_v48 = vld [vmem:[#allocation169_spill] sm:$0xff] }
 0x601   :  { %v4392_v59 = vpack.c.bf16 %v4369_v32, %v4365_v35  ;;  %6986 = vmatmul.msk.bf16.vlgmr.msrb.gmra.mxu0 %vm4126_vm14, %v11982_v5  ;;  %v12277_v55 = vpop.permute.xlu1 %5050  ;;  %v4564_v6 = vsel %vm238_vm5, %v11957_v4, %v14982_v60  ;;  %v4700_v31 = vpack.c.bf16 %v14983_v50, %v15061_v23  ;;  %v12290_v32 = vpop.permute.xlu0 %5022  ;;  %v15065_v35 = vld [vmem:[#allocation183_spill] sm:$0xff] }
 0x602   :  { %4409 = vmatpush.bf16.msra.mxu0 %v4393_v2  ;;  %v4389_v2 = vpack.c.bf16 %v4366_v29, %v4362_v52  ;;  %6988 = vmatmul.msk.bf16.vlgmr.msrb.gmra.mxu2 %vm4126_vm14, %v11982_v5  ;;  %15058 = vst [vmem:[#allocation115_spill] sm:$0xff] %v12277_v55  ;;  %v15059_v52 = vld [vmem:[#allocation111_spill] sm:$0xff]  ;;  %v15117_v55 = vld [vmem:[#allocation93_spill] sm:$0xff] }
 0x603   :  { %4437 = vmatpush.bf16.msra.mxu2 %v4395_v61  ;;  %4645 = vmatpush.bf16.msrb.mxu1 %v15054_v22  ;;  %v4391_v61 = vpack.c.bf16 %v4368_v21, %v4364_v14  ;;  %v15060_v21 = vld [vmem:[#allocation17_spill] sm:$0xff]  ;;  %v15063_v14 = vld [vmem:[#allocation62_spill] sm:$0xff]  ;;  %v15075_v29 = vld [vmem:[#allocation199_spill] sm:$0xff] }
 0x604   :  { %4451 = vmatpush.bf16.msra.mxu3 %v4396_v58  ;;  %v12282_v42 = vmul.f32 %v4536_v7, %v15060_v21  ;;  %v15062_v58 = vld [vmem:[#allocation180_spill] sm:$0xff]  ;;  %v4540_v60 = vsel %vm238_vm5, %v15063_v14, %v11957_v4  ;;  %v15064_v7 = vld [vmem:[#allocation53_spill] sm:$0xff] }
 0x605   :  { %v4546_v16 = vsel %vm238_vm5, %v14995_v9, %v15062_v58  ;;  %5237 = vrot.lane.b32.xlu1 %v15064_v7, %s7542_s16  ;;  %v4538_v10 = vsel %vm238_vm5, %v15062_v58, %v15065_v35  ;;  %v4562_v9 = vsel %vm238_vm5, %v15065_v35, %v14996_v45  ;;  %6989 = vmatmul.msk.bf16.vlgmr.msrb.gmra.mxu3 %vm4126_vm14, %v11982_v5  ;;  %v15067_v4 = vld [vmem:[#allocation117_spill] sm:$0xff]  ;;  %v12344_v58 = vpop.permute.xlu2 %5277  ;;  %v15073_v35 = vld [vmem:[#allocation158_spill] sm:$0xff] }
 0x606   :  { %4410 = vmatpush.bf16.msra.mxu0 %v4389_v2  ;;  %5444 = vrot.lane.b32.xlu2 %v15067_v4, %s7543_s20  ;;  %v12325_v22 = vld [vmem:[%s13811_s7 + $0x18] sm:$0xff]  ;;  %v4547_v45 = vsel %vm238_vm5, %v14990_v0, %v15068_v1  ;;  %v4593_v5 = vmul.f32 %v4564_v6, %v15057_v27  ;;  %v15069_v2 = vld [vmem:[#allocation159_spill] sm:$0xff]  ;;  %v4596_v8 = vmul.f32 %v4540_v60, %v15060_v21 }
 0x607   :  { %4733 = vmatpush.bf16.msra.mxu1 %v4704_v24  ;;  %4438 = vmatpush.bf16.msra.mxu2 %v4391_v61  ;;  %v4548_v24 = vsel %vm238_vm5, %v14981_v41, %v15063_v14  ;;  %v15066_v41 = vld [vmem:[#allocation208_spill] sm:$0xff]  ;;  %15071 = vst [vmem:[#allocation121_spill] sm:$0xff] %v12344_v58  ;;  %v15072_v14 = vld [vmem:[#allocation161_spill] sm:$0xff] }
 0x608   :  { %4452 = vmatpush.bf16.msra.mxu3 %v4392_v59  ;;  %v4563_v39 = vsel %vm238_vm5, %v15066_v41, %v14991_v20  ;;  %v4539_v20 = vsel %vm238_vm5, %v15068_v1, %v15066_v41  ;;  %5448 = vrot.lane.b32.xlu0 %v15069_v2, %s7543_s20  ;;  %v4595_v61 = vmul.f32 %v4548_v24, %v15024_v3  ;;  %v15070_v59 = vld [vmem:[#allocation105_spill] sm:$0xff]  ;;  %v15074_v1 = vld [vmem:[#allocation211_spill] sm:$0xff] }
 0x609   :  { %v4858_v0 = vsel %vm336_vm3, %v15070_v59, %v12046_v33  ;;  %v4537_v6 = vsel %vm238_vm5, %v15073_v35, %v15072_v14  ;;  %v4561_v24 = vsel %vm238_vm5, %v15072_v14, %v15007_v63  ;;  %v4589_v60 = vmul.f32 %v4563_v39, %v15057_v27  ;;  %7007 = vmatmul.msk.bf16.vlgmr.msrb.gmra.mxu1 %vm4126_vm14, %v12325_v22 }
 0x60a   :  { %4411 = vmatpush.bf16.msra.mxu0 %v4385_v34  ;;  %v4591_v34 = vmul.f32 %v4547_v45, %v15024_v3  ;;  %v4592_v41 = vmul.f32 %v4539_v20, %v15060_v21  ;;  %v4857_v57 = vsel %vm336_vm3, %v15075_v29, %v15074_v1  ;;  %v4588_v63 = vmul.f32 %v4538_v10, %v15060_v21  ;;  %v12374_v45 = vpop.permute.xlu1 %5024  ;;  %v15078_v20 = vld [vmem:[#allocation186_spill] sm:$0xff]  ;;  %v15083_v10 = vld [vmem:[#allocation100_spill] sm:$0xff] }
 0x60b   :  { %4734 = vmatpush.bf16.msra.mxu1 %v4700_v31  ;;  %4439 = vmatpush.bf16.msra.mxu2 %v4387_v49  ;;  %v4545_v31 = vsel %vm238_vm5, %v15006_v13, %v15073_v35  ;;  %v4587_v49 = vmul.f32 %v4546_v16, %v15024_v3  ;;  %v4585_v13 = vmul.f32 %v4562_v9, %v15057_v27  ;;  %v15079_v35 = vld [vmem:[#allocation103_spill] sm:$0xff]  ;;  %v15081_v9 = vld [vmem:[#allocation85_spill] sm:$0xff] }
 0x60c   :  { %4453 = vmatpush.bf16.msra.mxu3 %v4388_v36  ;;  %v4612_v39 = vpack.c.bf16 %v4593_v5, %v4589_v60  ;;  %v15076_v36 = vld [vmem:[#allocation23_spill] sm:$0xff]  ;;  %v15077_v16 = vpack.c.bf16 %v14980_v47, %v15064_v7  ;;  %v4856_v19 = vsel %vm336_vm3, %v15079_v35, %v15078_v20  ;;  %v4614_v30 = vpack.c.bf16 %v4595_v61, %v4591_v34  ;;  %v15084_v5 = vld [vmem:[#allocation82_spill] sm:$0xff]  ;;  %v12386_v60 = vpop.permute.xlu0 %5000  ;;  %v15088_v47 = vld [vmem:[#allocation141_spill] sm:$0xff] }
 0x60d   :  { %v4904_v14 = vmul.f32 %v4858_v0, %v15076_v36  ;;  %v4615_v43 = vpack.c.bf16 %v4596_v8, %v4592_v41  ;;  %v15082_v23 = vpack.c.bf16 %v15080_v12, %v15081_v9  ;;  %v15085_v0 = vpack.c.bf16 %v15083_v10, %v15084_v5  ;;  %15086 = vst [vmem:[#allocation119_spill] sm:$0xff] %v12386_v60  ;;  %v15089_v8 = vld [vmem:[#allocation212_spill] sm:$0xff]  ;;  %v15090_v34 = vld [vmem:[#allocation63_spill] sm:$0xff] }
 0x60e   :  { %v4581_v38 = vmul.f32 %v4561_v24, %v15057_v27  ;;  %v4900_v61 = vmul.f32 %v4857_v57, %v15076_v36  ;;  %v15091_v41 = vpack.c.bf16 %v15089_v8, %v15090_v34  ;;  %v4584_v12 = vmul.f32 %v4537_v6, %v15060_v21  ;;  %v15092_v9 = vld [vmem:[#allocation164_spill] sm:$0xff]  ;;  %v15094_v57 = vld [vmem:[#allocation178_spill] sm:$0xff]  ;;  %v15096_v6 = vld [vmem:[#allocation153_spill] sm:$0xff] }
 0x60f   :  { %4735 = vmatpush.bf16.msra.mxu1 %v15077_v16  ;;  %4412 = vmatpush.bf16.msra.mxu0 %v15082_v23  ;;  %v15087_v16 = vld [vmem:[#allocation131_spill] sm:$0xff]  ;;  %v4583_v23 = vmul.f32 %v4545_v31, %v15024_v3  ;;  %v15093_v10 = vld [vmem:[#allocation168_spill] sm:$0xff]  ;;  %v4896_v24 = vmul.f32 %v4856_v19, %v15076_v36  ;;  %v15095_v8 = vld [vmem:[#allocation142_spill] sm:$0xff]  ;;  %v4854_v31 = vsel %vm336_vm3, %v15096_v6, %v15088_v47 }
 0x610   :  { %4440 = vmatpush.bf16.msra.mxu2 %v15085_v0  ;;  %v4846_v7 = vsel %vm336_vm3, %v15088_v47, %v15087_v16  ;;  %4454 = vmatpush.bf16.msra.mxu3 %v15091_v41  ;;  %v4855_v5 = vsel %vm336_vm3, %v15093_v10, %v15092_v9  ;;  %v4923_v0 = vpack.c.bf16 %v4904_v14, %v4900_v61  ;;  %v15097_v34 = vld [vmem:[#allocation90_spill] sm:$0xff]  ;;  %v15101_v61 = vld [vmem:[#allocation125_spill] sm:$0xff]  ;;  %v15104_v21 = vld [vmem:[#allocation11_spill] sm:$0xff] }
 0x611   :  { %5450 = vrot.lane.b32.xlu1 %v15094_v57, %s7543_s20  ;;  %5478 = vrot.lane.b32.xlu2 %v15095_v8, %s7543_s20  ;;  %v4610_v19 = vpack.c.bf16 %v4587_v49, %v4583_v23  ;;  %v4611_v14 = vpack.c.bf16 %v4588_v63, %v4584_v12  ;;  %v4870_v27 = vsel %vm336_vm3, %v15087_v16, %v15101_v61  ;;  %v12433_v63 = vpop.permute.xlu2 %5016  ;;  %v15107_v16 = vld [vmem:[#allocation112_spill] sm:$0xff]  ;;  %v15108_v23 = vld [vmem:[#allocation147_spill] sm:$0xff] }
 0x612   :  { %5482 = vrot.lane.b32.xlu0 %v15097_v34, %s7543_s20  ;;  %v4892_v47 = vmul.f32 %v4855_v5, %v15076_v36  ;;  %v12427_v58 = vmul.f32 %v4846_v7, %v15104_v21  ;;  %15106 = vst [vmem:[#allocation127_spill] sm:$0xff] %v12433_v63  ;;  %v4604_v12 = vpack.c.bf16 %v12271_v54, %v15107_v16  ;;  %v15111_v54 = vld [vmem:[#allocation22_spill] sm:$0xff]  ;;  %v15114_v60 = vld [vmem:[#allocation143_spill] sm:$0xff] }
 0x613   :  { %4628 = vmatpush.bf16.msrb.mxu0 %v4612_v39  ;;  %v4608_v39 = vpack.c.bf16 %v4585_v13, %v4581_v38  ;;  %v15102_v38 = vld [vmem:[#allocation148_spill] sm:$0xff]  ;;  %v4888_v7 = vmul.f32 %v4854_v31, %v15076_v36  ;;  %6998 = vmatmul.msk.bf16.vlgmr.msra.gmra.mxu2 %vm4126_vm14, %v12150_v26  ;;  %v15113_v16 = vld [vmem:[#allocation134_spill] sm:$0xff] }
 0x614   :  { %4656 = vmatpush.bf16.msrb.mxu2 %v4614_v30  ;;  %4670 = vmatpush.bf16.msrb.mxu3 %v4615_v43  ;;  %v15098_v30 = vld [vmem:[#allocation37_spill] sm:$0xff]  ;;  %v15099_v43 = vld [vmem:[#allocation35_spill] sm:$0xff]  ;;  %v15103_v13 = vld [vmem:[#allocation144_spill] sm:$0xff]  ;;  %v4851_v31 = vsel %vm336_vm3, %v15114_v60, %v15113_v16 }
 0x615   :  { %v15100_v41 = vpack.c.bf16 %v15098_v30, %v15099_v43  ;;  %v4861_v3 = vsel %vm336_vm3, %v15103_v13, %v15102_v38  ;;  %6996 = vmatmul.msk.bf16.vlgmr.msra.gmra.mxu0 %vm4126_vm14, %v12150_v26  ;;  %6999 = vmatmul.msk.bf16.vlgmr.msra.gmra.mxu3 %vm4126_vm14, %v12150_v26 }
 0x617   :  { %4736 = vmatpush.bf16.msra.mxu1 %v15100_v41  ;;  %4629 = vmatpush.bf16.msrb.mxu0 %v4608_v39  ;;  %v15105_v41 = vld [vmem:[#allocation128_spill] sm:$0xff]  ;;  %v12446_v39 = vpop.permute.xlu1 %5030 }
 0x618   :  { %v4853_v49 = vsel %vm336_vm3, %v15102_v38, %v15105_v41  ;;  %4657 = vmatpush.bf16.msrb.mxu2 %v4610_v19  ;;  %4671 = vmatpush.bf16.msrb.mxu3 %v4611_v14  ;;  %v4845_v5 = vsel %vm336_vm3, %v15105_v41, %v15108_v23  ;;  %15109 = vst [vmem:[#allocation118_spill] sm:$0xff] %v12446_v39  ;;  %v15110_v19 = vld [vmem:[#allocation24_spill] sm:$0xff]  ;;  %v12460_v41 = vpop.permute.xlu0 %5046 }
 0x619   :  { %v12449_v14 = vmul.f32 %v4870_v27, %v15110_v19  ;;  %v12452_v38 = vmul.f32 %v4861_v3, %v15111_v54  ;;  %15116 = vst [vmem:[#allocation129_spill] sm:$0xff] %v12460_v41  ;;  %v4884_v40 = vmul.f32 %v4853_v49, %v15076_v36  ;;  %v4869_v27 = vsel %vm336_vm3, %v15108_v23, %v15103_v13  ;;  %v15118_v3 = vld [vmem:[#allocation207_spill] sm:$0xff]  ;;  %v15121_v41 = vld [vmem:[#allocation94_spill] sm:$0xff] }
 0x61a   :  { %v5077_v44 = vsel %vm399_vm4, %v15118_v3, %v15117_v55  ;;  %v12472_v39 = vmul.f32 %v4845_v5, %v15104_v21  ;;  %v15122_v23 = vpack.c.bf16 %v12175_v18, %v15059_v52  ;;  %v15123_v5 = vld [vmem:[#allocation209_spill] sm:$0xff]  ;;  %5496 = vrot.lane.b32.xlu1 %v15125_v48, %s7543_s20  ;;  %5464 = vrot.lane.b32.xlu2 %v15050_v11, %s7543_s20 }
 0x61b   :  { %4952 = vmatpush.bf16.msrb.mxu1 %v4923_v0  ;;  %v4919_v0 = vpack.c.bf16 %v4896_v24, %v4892_v47  ;;  %15112 = vst [vmem:[#allocation114_spill] sm:$0xff] %v12452_v38  ;;  %v15115_v24 = vld [vmem:[#allocation116_spill] sm:$0xff]  ;;  %4630 = vmatpush.bf16.msrb.mxu0 %v4604_v12  ;;  %v4876_v12 = vmul.f32 %v4851_v31, %v15076_v36  ;;  %v15127_v38 = vld [vmem:[#allocation26_spill] sm:$0xff]  ;;  %v15128_v31 = vld [vmem:[#allocation187_spill] sm:$0xff] }
 0x61c   :  { %v4607_v47 = vpack.c.bf16 %v12282_v42, %v15115_v24  ;;  %v15119_v42 = vld [vmem:[#allocation145_spill] sm:$0xff]  ;;  %v15120_v24 = vld [vmem:[#allocation152_spill] sm:$0xff]  ;;  %4658 = vmatpush.bf16.msrb.mxu2 %v15122_v23  ;;  %v4915_v50 = vpack.c.bf16 %v4888_v7, %v4884_v40  ;;  %v5123_v18 = vmul.f32 %v5077_v44, %v15127_v38  ;;  %5233 = vrot.lane.b32.xlu0 %v15099_v43, %s7542_s16  ;;  %v12508_v40 = vld [vmem:[%s13811_s7 + $0x20] sm:$0xff] }
 0x61d   :  { %v4852_v49 = vsel %vm336_vm3, %v15120_v24, %v15119_v42  ;;  %v4860_v13 = vsel %vm336_vm3, %v15121_v41, %v15120_v24  ;;  %v15126_v24 = vld [vmem:[#allocation139_spill] sm:$0xff]  ;;  %v4703_v52 = vpack.c.bf16 %v15094_v57, %v15069_v2  ;;  %v5075_v44 = vsel %vm399_vm4, %v12374_v45, %v15128_v31  ;;  %v15129_v11 = vld [vmem:[#allocation213_spill] sm:$0xff]  ;;  %7017 = vmatmul.msk.bf16.vlgmr.msra.gmra.mxu1 %vm4126_vm14, %v12508_v40 }
 0x61e   :  { %4672 = vmatpush.bf16.msrb.mxu3 %v4607_v47  ;;  %v4844_v26 = vsel %vm336_vm3, %v15119_v42, %v15126_v24  ;;  %v4880_v7 = vmul.f32 %v4852_v49, %v15076_v36  ;;  %v15130_v47 = vld [vmem:[#allocation43_spill] sm:$0xff]  ;;  %v4705_v2 = vpack.c.bf16 %v15097_v34, %v15015_v28  ;;  %v4868_v57 = vsel %vm336_vm3, %v15126_v24, %v15121_v41  ;;  %v15133_v36 = vld [vmem:[#allocation48_spill] sm:$0xff]  ;;  %v15136_v34 = vld [vmem:[#allocation42_spill] sm:$0xff] }
 0x61f   :  { %4953 = vmatpush.bf16.msrb.mxu1 %v4919_v0  ;;  %v15124_v0 = vld [vmem:[#allocation198_spill] sm:$0xff]  ;;  %v15131_v42 = vpack.c.bf16 %v15129_v11, %v15130_v47  ;;  %v15132_v23 = vld [vmem:[#allocation91_spill] sm:$0xff]  ;;  %v5074_v41 = vsel %vm399_vm4, %v12290_v32, %v15136_v34 }
 0x620   :  { %v5076_v63 = vsel %vm399_vm4, %v15124_v0, %v15123_v5  ;;  %v15134_v43 = vpack.c.bf16 %v15132_v23, %v15133_v36  ;;  %v15135_v11 = vld [vmem:[#allocation150_spill] sm:$0xff]  ;;  %v4911_v36 = vpack.c.bf16 %v4880_v7, %v4876_v12  ;;  %v12550_v23 = vpop.permute.xlu0 %5020  ;;  %v12556_v12 = vmul.f32 %v4844_v26, %v15104_v21 }
 0x621   :  { %4631 = vmatpush.bf16.msrb.mxu0 %v15131_v42  ;;  %v5119_v49 = vmul.f32 %v5076_v63, %v15127_v38  ;;  %v4843_v28 = vsel %vm336_vm3, %v15113_v16, %v15135_v11  ;;  %v15137_v24 = vld [vmem:[#allocation214_spill] sm:$0xff]  ;;  %v15138_v63 = vld [vmem:[#allocation68_spill] sm:$0xff]  ;;  %v12573_v26 = vmul.f32 %v4860_v13, %v15111_v54 }
 0x622   :  { %4659 = vmatpush.bf16.msrb.mxu2 %v15134_v43  ;;  %v15139_v47 = vpack.c.bf16 %v15137_v24, %v15138_v63  ;;  %v12541_v43 = vpop.permute.xlu1 %5048  ;;  %v15142_v16 = vld [vmem:[#allocation136_spill] sm:$0xff]  ;;  %v12553_v24 = vmul.f32 %v4869_v27, %v15110_v19  ;;  %v5073_v27 = vsel %vm399_vm4, %v12550_v23, %v12221_v62  ;;  %5235 = vrot.lane.b32.xlu1 %v15098_v30, %s7542_s16  ;;  %v15147_v63 = vld [vmem:[#allocation83_spill] sm:$0xff] }
 0x623   :  { %4954 = vmatpush.bf16.msrb.mxu1 %v4915_v50  ;;  %v4706_v50 = vpack.c.bf16 %v15036_v17, %v15125_v48  ;;  %15140 = vst [vmem:[#allocation190_spill] sm:$0xff] %v12541_v43  ;;  %v5115_v17 = vmul.f32 %v5075_v44, %v15127_v38  ;;  %v12544_v48 = vpop.permute.xlu2 %5257  ;;  %v4699_v42 = vpack.c.bf16 %v15142_v16, %v15067_v4  ;;  %v15144_v44 = vld [vmem:[#allocation120_spill] sm:$0xff] }
 0x624   :  { %4673 = vmatpush.bf16.msrb.mxu3 %v15139_v47  ;;  %15141 = vst [vmem:[#allocation138_spill] sm:$0xff] %v12544_v48  ;;  %v5111_v4 = vmul.f32 %v5074_v41, %v15127_v38  ;;  %v5072_v47 = vsel %vm399_vm4, %v12125_v51, %v15147_v63  ;;  %v15148_v13 = vld [vmem:[#allocation52_spill] sm:$0xff]  ;;  %5446 = vrot.lane.b32.xlu0 %v15142_v16, %s7543_s20  ;;  %v15157_v48 = vld [vmem:[#allocation57_spill] sm:$0xff] }
 0x625   :  { %4719 = vmatpush.bf16.msra.mxu0 %v4703_v52  ;;  %v5142_v52 = vpack.c.bf16 %v5123_v18, %v5119_v49  ;;  %v15143_v18 = vld [vmem:[#allocation45_spill] sm:$0xff]  ;;  %v12565_v49 = vmul.f32 %v4868_v57, %v15110_v19  ;;  %v15146_v57 = vld [vmem:[#allocation146_spill] sm:$0xff]  ;;  %5442 = vrot.lane.b32.xlu2 %v15148_v13, %s7543_s20  ;;  %v5107_v30 = vmul.f32 %v5073_v27, %v15127_v38 }
 0x626   :  { %4747 = vmatpush.bf16.msra.mxu2 %v4705_v2  ;;  %v4867_v7 = vsel %vm336_vm3, %v15135_v11, %v15143_v18  ;;  %v4701_v2 = vpack.c.bf16 %v15095_v8, %v15144_v44  ;;  %v15145_v8 = vld [vmem:[#allocation123_spill] sm:$0xff]  ;;  %v5103_v27 = vmul.f32 %v5072_v47, %v15127_v38  ;;  %7006 = vmatmul.msk.bf16.vlgmr.msrb.gmra.mxu0 %vm4126_vm14, %v12325_v22 }
 0x627   :  { %4955 = vmatpush.bf16.msrb.mxu1 %v4911_v36  ;;  %v4702_v11 = vpack.c.bf16 %v15146_v57, %v15145_v8  ;;  %v12583_v41 = vmul.f32 %v4867_v7, %v15110_v19  ;;  %v4859_v36 = vsel %vm336_vm3, %v15143_v18, %v15114_v60  ;;  %v15150_v7 = vld [vmem:[#allocation179_spill] sm:$0xff]  ;;  %v15151_v60 = vld [vmem:[#allocation165_spill] sm:$0xff]  ;;  %7008 = vmatmul.msk.bf16.vlgmr.msrb.gmra.mxu2 %vm4126_vm14, %v12325_v22 }
 0x628   :  { %4761 = vmatpush.bf16.msra.mxu3 %v4706_v50  ;;  %v12576_v50 = vmul.f32 %v4843_v28, %v15104_v21  ;;  %v5138_v28 = vpack.c.bf16 %v5115_v17, %v5111_v4  ;;  %v4862_v17 = vsel %vm336_vm3, %v15101_v61, %v15096_v6  ;;  %v4863_v16 = vsel %vm336_vm3, %v15151_v60, %v15093_v10  ;;  %v15154_v4 = vld [vmem:[#allocation195_spill] sm:$0xff]  ;;  %v15155_v61 = vld [vmem:[#allocation196_spill] sm:$0xff] }
 0x629   :  { %4720 = vmatpush.bf16.msra.mxu0 %v4699_v42  ;;  %v4865_v6 = vsel %vm336_vm3, %v15154_v4, %v15075_v29  ;;  %v4849_v10 = vsel %vm336_vm3, %v15074_v1, %v15155_v61  ;;  %v4873_v1 = vsel %vm336_vm3, %v15155_v61, %v15154_v4  ;;  %v15165_v61 = vld [vmem:[#allocation38_spill] sm:$0xff]  ;;  %v5134_v43 = vpack.c.bf16 %v5107_v30, %v5103_v27 }
 0x62a   :  { %4748 = vmatpush.bf16.msra.mxu2 %v4701_v2  ;;  %v4850_v2 = vsel %vm336_vm3, %v12046_v33, %v15150_v7  ;;  %v15152_v33 = vld [vmem:[#allocation46_spill] sm:$0xff]  ;;  %7009 = vmatmul.msk.bf16.vlgmr.msrb.gmra.mxu3 %vm4126_vm14, %v12325_v22 }
 0x62b   :  { %5171 = vmatpush.bf16.msra.mxu1 %v5142_v52  ;;  %v15149_v52 = vld [vmem:[#allocation204_spill] sm:$0xff]  ;;  %v15153_v18 = vpack.c.bf16 %v15148_v13, %v15152_v33  ;;  %v12635_v13 = vpop.permute.xlu1 %5229  ;;  %v12669_v33 = vpop.permute.xlu2 %5275  ;;  %5476 = vrot.lane.b32.xlu1 %v15144_v44, %s7543_s20 }
 0x62c   :  { %v4866_v42 = vsel %vm336_vm3, %v15149_v52, %v15070_v59  ;;  %4762 = vmatpush.bf16.msra.mxu3 %v4702_v11  ;;  %v4874_v59 = vsel %vm336_vm3, %v15150_v7, %v15149_v52  ;;  %v15156_v11 = vld [vmem:[#allocation59_spill] sm:$0xff]  ;;  %15159 = vst [vmem:[#allocation205_spill] sm:$0xff] %v12635_v13  ;;  %v4905_v7 = vmul.f32 %v4850_v2, %v15104_v21 }
 0x62d   :  { %4721 = vmatpush.bf16.msra.mxu0 %v15153_v18  ;;  %v15158_v52 = vpack.c.bf16 %v15156_v11, %v15157_v48  ;;  %v4903_v47 = vmul.f32 %v4866_v42, %v15111_v54  ;;  %v12649_v18 = vpop.permute.xlu0 %5261  ;;  %v4906_v4 = vmul.f32 %v4874_v59, %v15110_v19  ;;  %v15164_v42 = vld [vmem:[#allocation67_spill] sm:$0xff]  ;;  %v4899_v48 = vmul.f32 %v4865_v6, %v15111_v54 }
 0x62e   :  { %15161 = vst [vmem:[#allocation172_spill] sm:$0xff] %v12649_v18  ;;  %v15166_v2 = vpack.c.bf16 %v15164_v42, %v15165_v61  ;;  %v4902_v6 = vmul.f32 %v4873_v1, %v15110_v19  ;;  %5488 = vrot.lane.b32.xlu2 %v15165_v61, %s7543_s20  ;;  %5492 = vrot.lane.b32.xlu0 %v15145_v8, %s7543_s20  ;;  %v15170_v1 = vld [vmem:[#allocation76_spill] sm:$0xff]  ;;  %v12705_v8 = vld [vmem:[%s13811_s7 + $0x28] sm:$0xff]  ;;  %v15174_v61 = vld [vmem:[#allocation189_spill] sm:$0xff] }
 0x62f   :  { %5172 = vmatpush.bf16.msra.mxu1 %v5138_v28  ;;  %4749 = vmatpush.bf16.msra.mxu2 %v15158_v52  ;;  %v15160_v28 = vld [vmem:[#allocation73_spill] sm:$0xff]  ;;  %v15162_v52 = vld [vmem:[#allocation86_spill] sm:$0xff] }
 0x630   :  { %v4864_v29 = vsel %vm336_vm3, %v15160_v28, %v15079_v35  ;;  %v4847_v11 = vsel %vm336_vm3, %v15092_v9, %v15162_v52  ;;  %v15163_v35 = vld [vmem:[#allocation47_spill] sm:$0xff]  ;;  %4763 = vmatpush.bf16.msra.mxu3 %v15166_v2  ;;  %v4901_v9 = vmul.f32 %v4849_v10, %v15104_v21  ;;  %v4871_v30 = vsel %vm336_vm3, %v15162_v52, %v15151_v60 }
 0x631   :  { %v4848_v13 = vsel %vm336_vm3, %v15078_v20, %v15163_v35  ;;  %v4872_v18 = vsel %vm336_vm3, %v15163_v35, %v15160_v28  ;;  %v15167_v20 = vld [vmem:[#allocation49_spill] sm:$0xff]  ;;  %v4895_v27 = vmul.f32 %v4864_v29, %v15111_v54  ;;  %v15169_v10 = vpack.c.bf16 %v15035_v25, %v15017_v15  ;;  %7027 = vmatmul.msk.bf16.vlgmr.msrb.gmra.mxu1 %vm4126_vm14, %v12705_v8 }
 0x632   :  { %v15168_v59 = vpack.c.bf16 %v15167_v20, %v15014_v53  ;;  %v4897_v22 = vmul.f32 %v4848_v13, %v15104_v21  ;;  %v4922_v28 = vpack.c.bf16 %v4903_v47, %v4899_v48  ;;  %v4924_v35 = vpack.c.bf16 %v4905_v7, %v4901_v9 }
 0x633   :  { %4750 = vmatpush.bf16.msra.mxu2 %v15169_v10  ;;  %v12693_v60 = vmul.f32 %v4859_v36, %v15111_v54  ;;  %v4898_v29 = vmul.f32 %v4872_v18, %v15110_v19  ;;  %v4925_v44 = vpack.c.bf16 %v4906_v4, %v4902_v6  ;;  %v15171_v52 = vpack.c.bf16 %v15038_v37, %v15170_v1  ;;  %v15173_v18 = vld [vmem:[#allocation167_spill] sm:$0xff]  ;;  %v15177_v6 = vld [vmem:[#allocation28_spill] sm:$0xff] }
 0x634   :  { %4722 = vmatpush.bf16.msra.mxu0 %v15168_v59  ;;  %5173 = vmatpush.bf16.msra.mxu1 %v5134_v43  ;;  %v4887_v48 = vmul.f32 %v4862_v17, %v15111_v54  ;;  %v4891_v13 = vmul.f32 %v4863_v16, %v15111_v54  ;;  %v4893_v47 = vmul.f32 %v4847_v11, %v15104_v21  ;;  %v12712_v17 = vpop.permute.xlu1 %5263  ;;  %v15172_v11 = vld [vmem:[#allocation166_spill] sm:$0xff] }
 0x635   :  { %4764 = vmatpush.bf16.msra.mxu3 %v15171_v52  ;;  %v4894_v36 = vmul.f32 %v4871_v30, %v15110_v19  ;;  %v4916_v7 = vpack.c.bf16 %v12427_v58, %v12472_v39  ;;  %v4917_v43 = vpack.c.bf16 %v12449_v14, %v12553_v24  ;;  %v4912_v16 = vpack.c.bf16 %v12556_v12, %v12576_v50  ;;  %v12724_v39 = vpop.permute.xlu0 %5279 }
 0x636   :  { %v5090_v4 = vsel %vm399_vm4, %v15173_v18, %v15172_v11  ;;  %v5067_v2 = vsel %vm399_vm4, %v15128_v31, %v15174_v61  ;;  %v4918_v9 = vpack.c.bf16 %v4895_v27, %v4891_v13  ;;  %v4920_v58 = vpack.c.bf16 %v4897_v22, %v4893_v47  ;;  %v15175_v31 = vld [vmem:[#allocation99_spill] sm:$0xff]  ;;  %5494 = vrot.lane.b32.xlu1 %v15146_v57, %s7543_s20 }
 0x637   :  { %4966 = vmatpush.bf16.msrb.mxu2 %v4924_v35  ;;  %v5066_v14 = vsel %vm399_vm4, %v15136_v34, %v15173_v18  ;;  %v4921_v24 = vpack.c.bf16 %v4898_v29, %v4894_v36  ;;  %v4910_v12 = vpack.c.bf16 %v12573_v26, %v12693_v60  ;;  %v4913_v50 = vpack.c.bf16 %v12565_v49, %v12583_v41  ;;  %v15176_v34 = vld [vmem:[#allocation114_spill] sm:$0xff]  ;;  %v15178_v26 = vld [vmem:[#allocation27_spill] sm:$0xff]  ;;  %v15179_v49 = vld [vmem:[#allocation177_spill] sm:$0xff]  ;;  %v12768_v60 = vpop.permute.xlu2 %5221 }
 0x638   :  { %4938 = vmatpush.bf16.msrb.mxu0 %v4922_v28  ;;  %v5085_v59 = vsel %vm399_vm4, %v15175_v31, %v15118_v3  ;;  %v5069_v30 = vsel %vm399_vm4, %v15117_v55, %v12118_v46  ;;  %v4914_v27 = vpack.c.bf16 %v4887_v48, %v15176_v34  ;;  %v12746_v10 = vmul.f32 %v5090_v4, %v15177_v6  ;;  %v15180_v28 = vld [vmem:[#allocation188_spill] sm:$0xff]  ;;  %v15182_v57 = vld [vmem:[#allocation175_spill] sm:$0xff]  ;;  %v15183_v29 = vld [vmem:[#allocation2_spill] sm:$0xff] }
 0x639   :  { %4980 = vmatpush.bf16.msrb.mxu3 %v4925_v44  ;;  %v12749_v22 = vmul.f32 %v5067_v2, %v15178_v26  ;;  %v5093_v3 = vsel %vm399_vm4, %v12118_v46, %v15175_v31  ;;  %v12758_v55 = vmul.f32 %v5066_v14, %v15178_v26  ;;  %v5091_v41 = vsel %vm399_vm4, %v15174_v61, %v15179_v49  ;;  %v15181_v46 = vld [vmem:[#allocation135_spill] sm:$0xff]  ;;  %v15184_v48 = vld [vmem:[#allocation16_spill] sm:$0xff] }
 0x63a   :  { %v5084_v35 = vsel %vm399_vm4, %v15180_v28, %v15124_v0  ;;  %5462 = vrot.lane.b32.xlu2 %v15181_v46, %s7543_s20  ;;  %5466 = vrot.lane.b32.xlu0 %v15182_v57, %s7543_s20  ;;  %v5068_v44 = vsel %vm399_vm4, %v15123_v5, %v15183_v29  ;;  %v5092_v52 = vsel %vm399_vm4, %v15183_v29, %v15180_v28  ;;  %v15185_v36 = vld [vmem:[#allocation104_spill] sm:$0xff]  ;;  %v15186_v18 = vld [vmem:[#allocation127_spill] sm:$0xff] }
 0x63b   :  { %4967 = vmatpush.bf16.msrb.mxu2 %v4920_v58  ;;  %v5122_v0 = vmul.f32 %v5085_v59, %v15184_v48  ;;  %v5124_v13 = vmul.f32 %v5069_v30, %v15178_v26  ;;  %v5125_v47 = vmul.f32 %v5093_v3, %v15177_v6  ;;  %v5071_v4 = vsel %vm399_vm4, %v15186_v18, %v15185_v36 }
 0x63c   :  { %4939 = vmatpush.bf16.msrb.mxu0 %v4918_v9  ;;  %v5083_v5 = vsel %vm399_vm4, %v15179_v49, %v12374_v45  ;;  %v5117_v61 = vmul.f32 %v5091_v41, %v15177_v6  ;;  %v5118_v2 = vmul.f32 %v5084_v35, %v15184_v48  ;;  %v5015_v9 = vpop.permute.xlu1 %5014  ;;  %v5139_v58 = vpack.c.bf16 %v12749_v22, %v12758_v55  ;;  %v15189_v55 = vld [vmem:[#allocation115_spill] sm:$0xff] }
 0x63d   :  { %4981 = vmatpush.bf16.msrb.mxu3 %v4921_v24  ;;  %7016 = vmatmul.msk.bf16.vlgmr.msra.gmra.mxu0 %vm4126_vm14, %v12508_v40  ;;  %v5120_v14 = vmul.f32 %v5068_v44, %v15178_v26  ;;  %v5121_v24 = vmul.f32 %v5092_v52, %v15177_v6  ;;  %v5082_v45 = vsel %vm399_vm4, %v15172_v11, %v12290_v32  ;;  %v12810_v31 = vpop.permute.xlu0 %5225  ;;  %v15188_v32 = vld [vmem:[#allocation107_spill] sm:$0xff]  ;;  %v15194_v44 = vld [vmem:[#allocation74_spill] sm:$0xff] }
 0x63e   :  { %7018 = vmatmul.msk.bf16.vlgmr.msra.gmra.mxu2 %vm4126_vm14, %v12508_v40  ;;  %v5141_v59 = vpack.c.bf16 %v5122_v0, %v5118_v2  ;;  %v5099_v30 = vmul.f32 %v5071_v4, %v15127_v38  ;;  %v5114_v34 = vmul.f32 %v5083_v5, %v15184_v48  ;;  %v5081_v11 = vsel %vm399_vm4, %v15188_v32, %v12550_v23  ;;  %v15190_v35 = vld [vmem:[#allocation191_spill] sm:$0xff] }
 0x63f   :  { %4968 = vmatpush.bf16.msrb.mxu2 %v4916_v7  ;;  %v15187_v7 = vld [vmem:[#allocation118_spill] sm:$0xff]  ;;  %v5143_v22 = vpack.c.bf16 %v5124_v13, %v5120_v14  ;;  %v5144_v3 = vpack.c.bf16 %v5125_v47, %v5121_v24  ;;  %v5064_v49 = vsel %vm399_vm4, %v15147_v63, %v15189_v55  ;;  %v5110_v41 = vmul.f32 %v5082_v45, %v15184_v48  ;;  %v15197_v45 = vld [vmem:[#allocation129_spill] sm:$0xff] }
 0x640   :  { %4940 = vmatpush.bf16.msrb.mxu0 %v4914_v27  ;;  %v5080_v46 = vsel %vm399_vm4, %v15190_v35, %v12125_v51  ;;  %v5088_v23 = vsel %vm399_vm4, %v15189_v55, %v15190_v35  ;;  %7019 = vmatmul.msk.bf16.vlgmr.msra.gmra.mxu3 %vm4126_vm14, %v12508_v40  ;;  %v5140_v63 = vpack.c.bf16 %v5117_v61, %v12746_v10  ;;  %v15192_v51 = vld [vmem:[#allocation46_spill] sm:$0xff]  ;;  %v12847_v10 = vpop.permute.xlu2 %5255  ;;  %v15196_v61 = vld [vmem:[#allocation119_spill] sm:$0xff] }
 0x641   :  { %4982 = vmatpush.bf16.msrb.mxu3 %v4917_v43  ;;  %v5070_v43 = vsel %vm399_vm4, %v5015_v9, %v15187_v7  ;;  %5440 = vrot.lane.b32.xlu1 %v15192_v51, %s7543_s20  ;;  %v5137_v57 = vpack.c.bf16 %v5114_v34, %v5110_v41  ;;  %v5104_v29 = vmul.f32 %v5064_v49, %v15178_v26  ;;  %v15195_v47 = vld [vmem:[#allocation190_spill] sm:$0xff]  ;;  %v15198_v34 = vld [vmem:[#allocation121_spill] sm:$0xff] }
 0x642   :  { %v5095_v27 = vmul.f32 %v5070_v43, %v15127_v38  ;;  %5468 = vrot.lane.b32.xlu2 %v15017_v15, %s7543_s20  ;;  %v5078_v52 = vsel %vm399_vm4, %v15194_v44, %v5015_v9  ;;  %v5102_v0 = vmul.f32 %v5080_v46, %v15184_v48  ;;  %v5105_v13 = vmul.f32 %v5088_v23, %v15177_v6  ;;  %v15202_v46 = vld [vmem:[#allocation124_spill] sm:$0xff] }
 0x643   :  { %4969 = vmatpush.bf16.msrb.mxu2 %v4912_v16  ;;  %v15191_v16 = vld [vmem:[#allocation92_spill] sm:$0xff]  ;;  %v5063_v4 = vsel %vm399_vm4, %v15185_v36, %v15195_v47  ;;  %v5079_v2 = vsel %vm399_vm4, %v15196_v61, %v15186_v18  ;;  %v5087_v9 = vsel %vm399_vm4, %v15195_v47, %v15196_v61  ;;  %v5288_v36 = vsel %vm462_vm6, %v12712_v17, %v12724_v39 }
 0x644   :  { %4941 = vmatpush.bf16.msrb.mxu0 %v4910_v12  ;;  %v5130_v28 = vpack.c.bf16 %v5099_v30, %v5095_v27  ;;  %v5065_v12 = vsel %vm399_vm4, %v12221_v62, %v15191_v16  ;;  %v5089_v40 = vsel %vm399_vm4, %v15191_v16, %v15188_v32  ;;  %v15193_v62 = vld [vmem:[#allocation57_spill] sm:$0xff]  ;;  %v12862_v5 = vpop.permute.xlu1 %5227  ;;  %v5062_v18 = vsel %vm399_vm4, %v15187_v7, %v15197_v45  ;;  %v15199_v27 = vld [vmem:[#allocation172_spill] sm:$0xff] }
 0x645   :  { %4983 = vmatpush.bf16.msrb.mxu3 %v4913_v50  ;;  %v5106_v50 = vmul.f32 %v5081_v11, %v15184_v48  ;;  %5472 = vrot.lane.b32.xlu0 %v15193_v62, %s7543_s20  ;;  %v5108_v15 = vmul.f32 %v5065_v12, %v15178_v26  ;;  %v12877_v14 = vpop.permute.xlu0 %5259  ;;  %v5109_v24 = vmul.f32 %v5089_v40, %v15177_v6  ;;  %v15200_v11 = vld [vmem:[#allocation30_spill] sm:$0xff]  ;;  %v15203_v12 = vld [vmem:[#allocation59_spill] sm:$0xff] }
 0x646   :  { %5174 = vmatpush.bf16.msra.mxu1 %v5130_v28  ;;  %v5094_v43 = vmul.f32 %v5078_v52, %v15184_v48  ;;  %v5086_v30 = vsel %vm399_vm4, %v15197_v45, %v15194_v44  ;;  %v5098_v32 = vmul.f32 %v5079_v2, %v15184_v48  ;;  %v5101_v7 = vmul.f32 %v5087_v9, %v15177_v6  ;;  %v15201_v28 = vld [vmem:[#allocation205_spill] sm:$0xff] }
 0x647   :  { %5185 = vmatpush.bf16.msra.mxu2 %v5143_v22  ;;  %v5287_v22 = vsel %vm462_vm6, %v15199_v27, %v15198_v34  ;;  %v5343_v55 = vmul.f32 %v5288_v36, %v15200_v11  ;;  %v5136_v49 = vpack.c.bf16 %v5109_v24, %v5105_v13  ;;  %v5096_v41 = vmul.f32 %v5062_v18, %v15178_v26  ;;  %v15206_v24 = vld [vmem:[#allocation113_spill] sm:$0xff]  ;;  %v15207_v18 = vld [vmem:[#allocation35_spill] sm:$0xff] }
 0x648   :  { %5157 = vmatpush.bf16.msra.mxu0 %v5141_v59  ;;  %v5133_v59 = vpack.c.bf16 %v5106_v50, %v5102_v0  ;;  %v5311_v35 = vsel %vm462_vm6, %v15198_v34, %v15201_v28  ;;  %v5312_v23 = vsel %vm462_vm6, %v12724_v39, %v15202_v46  ;;  %v5339_v16 = vmul.f32 %v5287_v22, %v15200_v11  ;;  %v5242_v0 = vpop.permute.xlu2 %5241 }
 0x649   :  { %5199 = vmatpush.bf16.msra.mxu3 %v5144_v3  ;;  %v5135_v3 = vpack.c.bf16 %v5108_v15, %v5104_v29  ;;  %5474 = vrot.lane.b32.xlu1 %v15203_v12, %s7543_s20  ;;  %v5129_v50 = vpack.c.bf16 %v5098_v32, %v5094_v43  ;;  %v5286_v39 = vsel %vm462_vm6, %v12877_v14, %v12669_v33 }
 0x64a   :  { %5486 = vrot.lane.b32.xlu2 %v15038_v37, %s7543_s20  ;;  %v5362_v62 = vpack.c.bf16 %v5343_v55, %v5339_v16  ;;  %v5310_v37 = vsel %vm462_vm6, %v12669_v33, %v12862_v5  ;;  %v5335_v15 = vmul.f32 %v5286_v39, %v15200_v11  ;;  %v5301_v16 = vsel %vm462_vm6, %v12810_v31, %v5242_v0 }
 0x64b   :  { %5186 = vmatpush.bf16.msra.mxu2 %v5139_v58  ;;  %v5100_v58 = vmul.f32 %v5063_v4, %v15178_v26 }
 0x64c   :  { %5158 = vmatpush.bf16.msra.mxu0 %v5137_v57  ;;  %v15204_v57 = vld [vmem:[#allocation31_spill] sm:$0xff]  ;;  %v5274_v52 = vpop.permute.xlu1 %5273 }
 0x64d   :  { %5200 = vmatpush.bf16.msra.mxu3 %v5140_v63  ;;  %v5097_v63 = vmul.f32 %v5086_v30, %v15177_v6  ;;  %5490 = vrot.lane.b32.xlu0 %v15164_v42, %s7543_s20  ;;  %v5131_v51 = vpack.c.bf16 %v5100_v58, %v5096_v41  ;;  %v5340_v40 = vmul.f32 %v5311_v35, %v15204_v57  ;;  %v15205_v42 = vld [vmem:[#allocation138_spill] sm:$0xff]  ;;  %v5246_v4 = vpop.permute.xlu0 %5245 }
 0x64e   :  { %v5344_v29 = vmul.f32 %v5312_v23, %v15204_v57  ;;  %v5285_v13 = vsel %vm462_vm6, %v15205_v42, %v5274_v52  ;;  %v5309_v47 = vsel %vm462_vm6, %v5274_v52, %v12810_v31  ;;  %7026 = vmatmul.msk.bf16.vlgmr.msrb.gmra.mxu0 %vm4126_vm14, %v12705_v8  ;;  %7028 = vmatmul.msk.bf16.vlgmr.msrb.gmra.mxu2 %vm4126_vm14, %v12705_v8 }
 0x64f   :  { %5187 = vmatpush.bf16.msra.mxu2 %v5135_v3  ;;  %v5132_v44 = vpack.c.bf16 %v5101_v7, %v5097_v63  ;;  %v5331_v33 = vmul.f32 %v5285_v13, %v15200_v11  ;;  %v5332_v61 = vmul.f32 %v5309_v47, %v15204_v57  ;;  %v5336_v9 = vmul.f32 %v5310_v37, %v15204_v57  ;;  %v15209_v3 = vld [vmem:[#allocation29_spill] sm:$0xff] }
 0x650   :  { %5159 = vmatpush.bf16.msra.mxu0 %v5133_v59  ;;  %v5363_v2 = vpack.c.bf16 %v5344_v29, %v5340_v40  ;;  %7029 = vmatmul.msk.bf16.vlgmr.msrb.gmra.mxu3 %vm4126_vm14, %v12705_v8  ;;  %v5295_v43 = vsel %vm462_vm6, %v5246_v4, %v15199_v27  ;;  %v5303_v59 = vsel %vm462_vm6, %v15201_v28, %v5246_v4  ;;  %v7146_v8 = vld [vmem:[%s13811_s7 + $0x30] sm:$0xff]  ;;  %v15208_v27 = vld [vmem:[#allocation21_spill] sm:$0xff] }
 0x651   :  { %5201 = vmatpush.bf16.msra.mxu3 %v5136_v49  ;;  %v5358_v36 = vpack.c.bf16 %v5335_v15, %v5331_v33  ;;  %5460 = vrot.lane.b32.xlu1 %v15206_v24, %s7543_s20  ;;  %v5359_v45 = vpack.c.bf16 %v5336_v9, %v5332_v61  ;;  %v5337_v22 = vmul.f32 %v5303_v59, %v15208_v27  ;;  %v12968_v49 = vpop.permute.xlu2 %5219  ;;  %v15211_v4 = vld [vmem:[#allocation61_spill] sm:$0xff] }
 0x652   :  { %5452 = vrot.lane.b32.xlu2 %v15207_v18, %s7543_s20  ;;  %7037 = vmatmul.msk.bf16.vlgmr.msra.gmra.mxu1 %vm4126_vm14, %v7146_v8  ;;  %v5338_v32 = vmul.f32 %v5295_v43, %v15209_v3  ;;  %v5293_v63 = vsel %vm462_vm6, %v5242_v0, %v15205_v42 }
 0x653   :  { %5188 = vmatpush.bf16.msra.mxu2 %v5131_v51  ;;  %v5330_v31 = vmul.f32 %v5293_v63, %v15209_v3 }
 0x654   :  { %5160 = vmatpush.bf16.msra.mxu0 %v5129_v50  ;;  %v5248_v30 = vpop.permute.xlu1 %5247 }
 0x655   :  { %5202 = vmatpush.bf16.msra.mxu3 %v5132_v44  ;;  %5436 = vrot.lane.b32.xlu0 %v15014_v53, %s7543_s20  ;;  %v5296_v58 = vsel %vm462_vm6, %v5248_v30, %v12712_v17  ;;  %v5304_v53 = vsel %vm462_vm6, %v15202_v46, %v5248_v30  ;;  %v12961_v34 = vpop.permute.xlu0 %5223  ;;  %v5329_v44 = vmul.f32 %v5301_v16, %v15208_v27 }
 0x656   :  { %v5341_v7 = vmul.f32 %v5304_v53, %v15208_v27  ;;  %v5342_v55 = vmul.f32 %v5296_v58, %v15209_v3 }
 0x657   :  { %5404 = vmatpush.bf16.msrb.mxu2 %v5362_v62 }
 0x658   :  { %v5360_v17 = vpack.c.bf16 %v5341_v7, %v5337_v22  ;;  %v5361_v41 = vpack.c.bf16 %v5342_v55, %v5338_v32 }
 0x659   :  { %5418 = vmatpush.bf16.msrb.mxu3 %v5363_v2  ;;  %5438 = vrot.lane.b32.xlu1 %v15167_v20, %s7543_s20  ;;  %v5266_v46 = vpop.permute.xlu2 %5265  ;;  %v15210_v20 = vld [vmem:[#allocation53_spill] sm:$0xff] }
 0x65a   :  { %5376 = vmatpush.bf16.msrb.mxu0 %v5360_v17  ;;  %5390 = vmatpush.bf16.msrb.mxu1 %v5361_v41  ;;  %v15212_v2 = vld [vmem:[#allocation37_spill] sm:$0xff] }
 0x65b   :  { %5405 = vmatpush.bf16.msrb.mxu2 %v5358_v36  ;;  %v4153_v36 = vpop.f32.mrf.mxu1  ;;  %v13049_v17 = vld [vmem:[%s13811_s7 + $0x38] sm:$0xff] }
 0x65c   :  { %v12974_v28 = vpop.permute.xlu1 %5253 }
 0x65d   :  { %5419 = vmatpush.bf16.msrb.mxu3 %v5359_v45  ;;  %5470 = vrot.lane.b32.xlu0 %v15035_v25, %s7543_s20  ;;  %v5270_v35 = vpop.permute.xlu0 %5269 }
 0x65e   :  { %7036 = vmatmul.msk.bf16.vlgmr.msra.gmra.mxu0 %vm4126_vm14, %v7146_v8  ;;  %7038 = vmatmul.msk.bf16.vlgmr.msra.gmra.mxu2 %vm4126_vm14, %v7146_v8  ;;  %v5283_v25 = vsel %vm462_vm6, %v12974_v28, %v5270_v35  ;;  %v5307_v23 = vsel %vm462_vm6, %v5270_v35, %v12768_v60 }
 0x65f   :  { %v5323_v39 = vmul.f32 %v5283_v25, %v15200_v11  ;;  %v5324_v51 = vmul.f32 %v5307_v23, %v15204_v57 }
 0x660   :  { %7039 = vmatmul.msk.bf16.vlgmr.msra.gmra.mxu3 %vm4126_vm14, %v7146_v8 }
 0x661   :  { %5484 = vrot.lane.b32.xlu1 %v15170_v1, %s7543_s20  ;;  %v5240_v61 = vpop.permute.xlu2 %5239 }
 0x662   :  { %v5292_v55 = vsel %vm462_vm6, %v5240_v61, %v12847_v10  ;;  %v5300_v35 = vsel %vm462_vm6, %v12961_v34, %v5240_v61 }
 0x663   :  { %v13051_v41 = vpop.f32.mrf.mxu1  ;;  %v5326_v63 = vmul.f32 %v5292_v55, %v15209_v3 }
 0x664   :  { %v5272_v1 = vpop.permute.xlu1 %5271 }
 0x665   :  { %5456 = vrot.lane.b32.xlu0 %v15210_v20, %s7543_s20  ;;  %v5284_v12 = vsel %vm462_vm6, %v12847_v10, %v5272_v1  ;;  %v5308_v50 = vsel %vm462_vm6, %v5272_v1, %v12961_v34  ;;  %v5244_v62 = vpop.permute.xlu0 %5243  ;;  %v5325_v1 = vmul.f32 %v5300_v35, %v15208_v27 }
 0x666   :  { %v5327_v40 = vmul.f32 %v5284_v12, %v15200_v11  ;;  %v5328_v29 = vmul.f32 %v5308_v50, %v15204_v57  ;;  %v5294_v52 = vsel %vm462_vm6, %v5244_v62, %v12877_v14  ;;  %v5302_v0 = vsel %vm462_vm6, %v12862_v5, %v5244_v62 }
 0x667   :  { %v5333_v37 = vmul.f32 %v5302_v0, %v15208_v27  ;;  %v5334_v42 = vmul.f32 %v5294_v52, %v15209_v3 }
 0x668   :  { %v5354_v13 = vpack.c.bf16 %v5327_v40, %v5323_v39  ;;  %v5355_v47 = vpack.c.bf16 %v5328_v29, %v5324_v51 }
 0x669   :  { %5458 = vrot.lane.b32.xlu1 %v15211_v4, %s7543_s20  ;;  %v5356_v15 = vpack.c.bf16 %v5333_v37, %v5329_v44  ;;  %v5357_v33 = vpack.c.bf16 %v5334_v42, %v5330_v31  ;;  %v13023_v9 = vpop.permute.xlu2 %5480 }
 0x66a   :  { %5406 = vmatpush.bf16.msrb.mxu2 %v5354_v13  ;;  %5420 = vmatpush.bf16.msrb.mxu3 %v5355_v47 }
 0x66b   :  { %5377 = vmatpush.bf16.msrb.mxu0 %v5356_v15  ;;  %5391 = vmatpush.bf16.msrb.mxu1 %v5357_v33 }
 0x66c   :  { %v13019_v5 = vpop.permute.xlu1 %5217  ;;  %v4139_v51 = vpop.f32.mrf.mxu0 }
 0x66d   :  { %5454 = vrot.lane.b32.xlu0 %v15212_v2, %s7543_s20  ;;  %v13021_v14 = vpop.permute.xlu0 %5249  ;;  %v5305_v24 = vsel %vm462_vm6, %v5266_v46, %v13019_v5 }
 0x66e   :  { %v5281_v45 = vsel %vm462_vm6, %v13021_v14, %v5266_v46  ;;  %v5316_v30 = vmul.f32 %v5305_v24, %v15204_v57 }
 0x66f   :  { %v5315_v58 = vmul.f32 %v5281_v45, %v15200_v11 }
 0x671   :  { %v5499_v46 = vpop.permute.xlu2 %5498 }
 0x673   :  { %v4167_v20 = vpop.f32.mrf.mxu2 }
 0x674   :  { %v13031_v18 = vpop.permute.xlu1 %5251  ;;  %v13082_v0 = vpop.f32.mrf.mxu0 }
 0x675   :  { %v5268_v43 = vpop.permute.xlu0 %5267  ;;  %v4181_v23 = vpop.f32.mrf.mxu3 }
 0x676   :  { %v5282_v59 = vsel %vm462_vm6, %v13031_v18, %v5268_v43  ;;  %v5306_v8 = vsel %vm462_vm6, %v5268_v43, %v12968_v49  ;;  %v15213_v43 = vld [vmem:[#allocation34_spill] sm:$0xff] }
 0x677   :  { %v5319_v53 = vmul.f32 %v5282_v59, %v15200_v11  ;;  %v5320_v22 = vmul.f32 %v5306_v8, %v15204_v57  ;;  %v15214_v8 = vld [vmem:[#allocation33_spill] sm:$0xff] }
 0x679   :  { %v5350_v32 = vpack.c.bf16 %v5319_v53, %v5315_v58  ;;  %v5351_v7 = vpack.c.bf16 %v5320_v22, %v5316_v30  ;;  %v13076_v31 = vpop.permute.xlu2 %5444 }
 0x67b   :  { %5407 = vmatpush.bf16.msrb.mxu2 %v5350_v32  ;;  %5421 = vmatpush.bf16.msrb.mxu3 %v5351_v7  ;;  %v13072_v29 = vpop.f32.mrf.mxu2 }
 0x67c   :  { %v5238_v25 = vpop.permute.xlu1 %5237 }
 0x67d   :  { %v5291_v10 = vsel %vm462_vm6, %v5238_v25, %v12974_v28  ;;  %v5299_v16 = vsel %vm462_vm6, %v12768_v60, %v5238_v25  ;;  %v13066_v50 = vpop.permute.xlu0 %5448  ;;  %v4217_v60 = vpop.f32.mrf.mxu1 }
 0x67e   :  { %v5321_v34 = vmul.f32 %v5299_v16, %v15208_v27  ;;  %v5322_v12 = vmul.f32 %v5291_v10, %v15209_v3  ;;  %7049 = vmatmul.msk.bf16.vlgmr.msrb.gmra.mxu3 %vm4126_vm14, %v13049_v17  ;;  %7048 = vmatmul.msk.bf16.vlgmr.msrb.gmra.mxu2 %vm4126_vm14, %v13049_v17  ;;  %v4218_v40 = vadd.f32 %v4217_v60, %v4153_v36  ;;  %v13074_v62 = vpop.f32.mrf.mxu3  ;;  %v4203_v7 = vpop.f32.mrf.mxu0 }
 0x67f   :  { %v4204_v55 = vadd.f32 %v4203_v7, %v4139_v51 }
 0x680   :  { %v5352_v39 = vpack.c.bf16 %v5325_v1, %v5321_v34  ;;  %v5353_v28 = vpack.c.bf16 %v5326_v63, %v5322_v12 }
 0x681   :  { %v13098_v45 = vpop.permute.xlu2 %5478 }
 0x682   :  { %5378 = vmatpush.bf16.msrb.mxu0 %v5352_v39  ;;  %5392 = vmatpush.bf16.msrb.mxu1 %v5353_v28 }
 0x684   :  { %v13078_v44 = vpop.permute.xlu1 %5450 }
 0x685   :  { %v13080_v52 = vpop.permute.xlu0 %5482  ;;  %v13084_v37 = vpop.f32.mrf.mxu1  ;;  %v5531_v47 = vsel %vm525_vm7, %v5499_v46, %v13078_v44 }
 0x686   :  { %v4231_v42 = vpop.f32.mrf.mxu2  ;;  %v5507_v4 = vsel %vm525_vm7, %v13080_v52, %v5499_v46  ;;  %v5563_v59 = vmul.f32 %v5531_v47, %v15213_v43 }
 0x687   :  { %v4232_v13 = vadd.f32 %v4231_v42, %v4167_v20  ;;  %v5562_v30 = vmul.f32 %v5507_v4, %v15214_v8 }
 0x688   :  { %v4245_v33 = vpop.f32.mrf.mxu3 }
 0x689   :  { %v4246_v24 = vadd.f32 %v4245_v33, %v4181_v23  ;;  %v5465_v28 = vpop.permute.xlu2 %5464 }
 0x68c   :  { %v5497_v15 = vpop.permute.xlu1 %5496 }
 0x68d   :  { %v5506_v61 = vsel %vm525_vm7, %v13023_v9, %v5497_v15  ;;  %v5530_v2 = vsel %vm525_vm7, %v5497_v15, %v13066_v50  ;;  %v4428_v35 = vpop.f32.mrf.mxu1 }
 0x68e   :  { %v5234_v36 = vpop.permute.xlu0 %5233  ;;  %v5558_v58 = vmul.f32 %v5506_v61, %v15214_v8  ;;  %v5559_v53 = vmul.f32 %v5530_v2, %v15213_v43  ;;  %v13104_v46 = vpop.f32.mrf.mxu2  ;;  %v4462_v20 = vadd.f32 %v4428_v35, %v4218_v40 }
 0x68f   :  { %v5289_v25 = vsel %vm462_vm6, %v5234_v36, %v13021_v14  ;;  %v5297_v23 = vsel %vm462_vm6, %v13019_v5, %v5234_v36  ;;  %v13126_v40 = vpop.f32.mrf.mxu0 }
 0x690   :  { %v5581_v22 = vpack.c.bf16 %v5562_v30, %v5558_v58  ;;  %v5582_v32 = vpack.c.bf16 %v5563_v59, %v5559_v53  ;;  %v13112_v10 = vpop.f32.mrf.mxu3  ;;  %v5313_v12 = vmul.f32 %v5297_v23, %v15208_v27  ;;  %v5314_v14 = vmul.f32 %v5289_v25, %v15209_v3 }
 0x691   :  { %v13146_v53 = vpop.permute.xlu2 %5442  ;;  %v4248_v26 = vadd.f32 %v13112_v10, %v13074_v62 }
 0x692   :  { %5623 = vmatpush.bf16.msra.mxu2 %v5581_v22  ;;  %5637 = vmatpush.bf16.msra.mxu3 %v5582_v32 }
 0x694   :  { %v5236_v63 = vpop.permute.xlu1 %5235 }
 0x695   :  { %v5290_v16 = vsel %vm462_vm6, %v5236_v63, %v13031_v18  ;;  %v5298_v1 = vsel %vm462_vm6, %v12968_v49, %v5236_v63  ;;  %v13128_v18 = vpop.f32.mrf.mxu1 }
 0x696   :  { %v13120_v34 = vpop.permute.xlu0 %5446  ;;  %v5317_v39 = vmul.f32 %v5298_v1, %v15208_v27  ;;  %v5318_v5 = vmul.f32 %v5290_v16, %v15209_v3  ;;  %v4442_v42 = vpop.f32.mrf.mxu2  ;;  %v15215_v16 = vld [vmem:[#allocation32_spill] sm:$0xff] }
 0x697   :  { %v4463_v49 = vadd.f32 %v4442_v42, %v4232_v13  ;;  %v4414_v61 = vpop.f32.mrf.mxu0 }
 0x698   :  { %v5348_v51 = vpack.c.bf16 %v5317_v39, %v5313_v12  ;;  %v5349_v60 = vpack.c.bf16 %v5318_v5, %v5314_v14  ;;  %v4456_v4 = vpop.f32.mrf.mxu3  ;;  %v4461_v2 = vadd.f32 %v4414_v61, %v4204_v55  ;;  %v15216_v12 = vld [vmem:[#allocation25_spill] sm:$0xff] }
 0x699   :  { %v4464_v33 = vadd.f32 %v4456_v4, %v4246_v24  ;;  %v5522_v24 = vsel %vm525_vm7, %v13066_v50, %v5465_v28 }
 0x69a   :  { %5379 = vmatpush.bf16.msrb.mxu0 %v5348_v51  ;;  %5393 = vmatpush.bf16.msrb.mxu1 %v5349_v60  ;;  %v5556_v14 = vmul.f32 %v5522_v24, %v15216_v12 }
 0x69d   :  { %v13130_v47 = vpop.permute.xlu1 %5476  ;;  %7046 = vmatmul.msk.bf16.vlgmr.msrb.gmra.mxu0 %vm4126_vm14, %v13049_v17  ;;  %7047 = vmatmul.msk.bf16.vlgmr.msrb.gmra.mxu1 %vm4126_vm14, %v13049_v17  ;;  %v4647_v36 = vpop.f32.mrf.mxu1  ;;  %v5514_v17 = vsel %vm525_vm7, %v5465_v28, %v13023_v9 }
 0x69e   :  { %v13136_v59 = vpop.f32.mrf.mxu2  ;;  %v13144_v58 = vadd.f32 %v4647_v36, %v4462_v20  ;;  %v5557_v1 = vmul.f32 %v5514_v17, %v15215_v16  ;;  %v5489_v36 = vpop.permute.xlu2 %5488 }
 0x69f   :  { %v13176_v60 = vpop.f32.mrf.mxu0 }
 0x6a0   :  { %v5493_v15 = vpop.permute.xlu0 %5492  ;;  %v13154_v32 = vpop.f32.mrf.mxu3 }
 0x6a1   :  { %v5504_v13 = vsel %vm525_vm7, %v13130_v47, %v5493_v15  ;;  %v5528_v30 = vsel %vm525_vm7, %v5493_v15, %v13076_v31 }
 0x6a2   :  { %v5550_v7 = vmul.f32 %v5504_v13, %v15214_v8  ;;  %v5551_v55 = vmul.f32 %v5528_v30, %v15213_v43 }
 0x6a7   :  { %v4633_v17 = vpop.f32.mrf.mxu0 }
 0x6a8   :  { %v5495_v22 = vpop.permute.xlu1 %5494  ;;  %v13182_v24 = vadd.f32 %v4633_v17, %v4461_v2  ;;  %v7547_v17 = vmov 4  }
 0x6a9   :  { %v5505_v35 = vsel %vm525_vm7, %v13098_v45, %v5495_v22  ;;  %v5529_v20 = vsel %vm525_vm7, %v5495_v22, %v13120_v34  ;;  %7515 = vset.pattern.permute.xlu1 %v7547_v17  ;;  %7516 = vset.pattern.permute.xlu2 %v7547_v17 }
 0x6aa   :  { %v5554_v25 = vmul.f32 %v5505_v35, %v15214_v8  ;;  %v5555_v50 = vmul.f32 %v5529_v20, %v15213_v43  ;;  %v5463_v20 = vpop.permute.xlu2 %5462 }
 0x6ac   :  { %v5467_v9 = vpop.permute.xlu0 %5466  ;;  %v5577_v28 = vpack.c.bf16 %v5554_v25, %v5550_v7  ;;  %v5578_v51 = vpack.c.bf16 %v5555_v50, %v5551_v55 }
 0x6ad   :  { %v5515_v23 = vsel %vm525_vm7, %v5467_v9, %v13080_v52  ;;  %v5523_v63 = vsel %vm525_vm7, %v13078_v44, %v5467_v9  ;;  %v4661_v52 = vpop.f32.mrf.mxu2  ;;  %v4675_v15 = vpop.f32.mrf.mxu3 }
 0x6ae   :  { %v5560_v39 = vmul.f32 %v5523_v63, %v15216_v12  ;;  %v5561_v5 = vmul.f32 %v5515_v23, %v15215_v16  ;;  %5624 = vmatpush.bf16.msra.mxu2 %v5577_v28  ;;  %5638 = vmatpush.bf16.msra.mxu3 %v5578_v51  ;;  %v13178_v44 = vadd.f32 %v4661_v52, %v4463_v49 }
 0x6af   :  { %v13180_v61 = vadd.f32 %v4675_v15, %v4464_v33 }
 0x6b0   :  { %v5579_v42 = vpack.c.bf16 %v5560_v39, %v5556_v14  ;;  %v5580_v4 = vpack.c.bf16 %v5561_v5, %v5557_v1  ;;  %v5513_v1 = vsel %vm525_vm7, %v5463_v20, %v13098_v45  ;;  %v5521_v14 = vsel %vm525_vm7, %v13120_v34, %v5463_v20 }
 0x6b1   :  { %v5552_v45 = vmul.f32 %v5521_v14, %v15216_v12 }
 0x6b2   :  { %5595 = vmatpush.bf16.msra.mxu0 %v5579_v42  ;;  %5609 = vmatpush.bf16.msra.mxu1 %v5580_v4  ;;  %v5553_v42 = vmul.f32 %v5513_v1, %v15215_v16  ;;  %v5469_v52 = vpop.permute.xlu2 %5468 }
 0x6b3   :  { %v5441_v13 = vpop.permute.xlu1 %5440 }
 0x6b4   :  { %v5526_v22 = vsel %vm525_vm7, %v5489_v36, %v5441_v13 }
 0x6b5   :  { %v5543_v9 = vmul.f32 %v5526_v22, %v15213_v43  ;;  %v7534_v22 = vld [vmem:[%s13805_s9 + $0x8] sm:$0xff] }
 0x6b6   :  { %5660 = vperm.xlu2 %7516, %v7534_v22  }
 0x6b7   :  { %v5473_v30 = vpop.permute.xlu0 %5472 }
 0x6b8   :  { %v5502_v7 = vsel %vm525_vm7, %v5473_v30, %v5489_v36 }
 0x6b9   :  { %v5542_v2 = vmul.f32 %v5502_v7, %v15214_v8 }
 0x6bb   :  { %v5475_v55 = vpop.permute.xlu1 %5474 }
 0x6bf   :  { %v5491_v35 = vpop.permute.xlu0 %5490 }
 0x6c0   :  { %v5503_v49 = vsel %vm525_vm7, %v5475_v55, %v5491_v35  ;;  %v5527_v33 = vsel %vm525_vm7, %v5491_v35, %v13146_v53  ;;  %v5487_v35 = vpop.permute.xlu2 %5486 }
 0x6c1   :  { %v5546_v25 = vmul.f32 %v5503_v49, %v15214_v8  ;;  %v5547_v50 = vmul.f32 %v5527_v33, %v15213_v43 }
 0x6c3   :  { %v5573_v23 = vpack.c.bf16 %v5546_v25, %v5542_v2  ;;  %v5574_v63 = vpack.c.bf16 %v5547_v50, %v5543_v9  ;;  %v5461_v39 = vpop.permute.xlu1 %5460 }
 0x6c4   :  { %v5512_v5 = vsel %vm525_vm7, %v5461_v39, %v13130_v47  ;;  %v5520_v28 = vsel %vm525_vm7, %v13076_v31, %v5461_v39  ;;  %v7533_v31 = vld [vmem:[%s13805_s9] sm:$0xff] }
 0x6c5   :  { %5625 = vmatpush.bf16.msra.mxu2 %v5573_v23  ;;  %5639 = vmatpush.bf16.msra.mxu3 %v5574_v63  ;;  %v5548_v4 = vmul.f32 %v5520_v28, %v15216_v12  ;;  %v5549_v34 = vmul.f32 %v5512_v5, %v15215_v16  ;;  %v7148_v28 = vld [vmem:[%s13811_s7 + $0x40] sm:$0xff] }
 0x6c6   :  { %5656 = vperm.xlu1 %7515, %v7533_v31  }
 0x6c7   :  { %v5437_v51 = vpop.permute.xlu0 %5436  ;;  %v5575_v15 = vpack.c.bf16 %v5552_v45, %v5548_v4  ;;  %v5576_v36 = vpack.c.bf16 %v5553_v42, %v5549_v34 }
 0x6c8   :  { %v5453_v45 = vpop.permute.xlu2 %5452 }
 0x6c9   :  { %5596 = vmatpush.bf16.msra.mxu0 %v5575_v15  ;;  %5610 = vmatpush.bf16.msra.mxu1 %v5576_v36 }
 0x6cb   :  { %v5439_v47 = vpop.permute.xlu1 %5438 }
 0x6cc   :  { %v5525_v20 = vsel %vm525_vm7, %v5487_v35, %v5439_v47 }
 0x6cd   :  { %v5539_v50 = vmul.f32 %v5525_v20, %v15213_v43 }
 0x6cf   :  { %v5471_v7 = vpop.permute.xlu0 %5470 }
 0x6d0   :  { %v5501_v49 = vsel %vm525_vm7, %v5471_v7, %v5487_v35 }
 0x6d1   :  { %v5538_v23 = vmul.f32 %v5501_v49, %v15214_v8 }
 0x6d3   :  { %v5485_v33 = vpop.permute.xlu1 %5484 }
 0x6d4   :  { %v5500_v9 = vsel %vm525_vm7, %v5469_v52, %v5485_v33  ;;  %v5524_v2 = vsel %vm525_vm7, %v5485_v33, %v5437_v51 }
 0x6d5   :  { %v5534_v63 = vmul.f32 %v5500_v9, %v15214_v8  ;;  %v5535_v1 = vmul.f32 %v5524_v2, %v15213_v43 }
 0x6d7   :  { %v5457_v25 = vpop.permute.xlu0 %5456  ;;  %v5569_v14 = vpack.c.bf16 %v5538_v23, %v5534_v63  ;;  %v5570_v39 = vpack.c.bf16 %v5539_v50, %v5535_v1  ;;  %v4677_v50 = vpop.f32.mrf.mxu3 }
 0x6d8   :  { %v5518_v5 = vsel %vm525_vm7, %v5441_v13, %v5457_v25  ;;  %v5510_v42 = vsel %vm525_vm7, %v5457_v25, %v5473_v30  ;;  %v13265_v23 = vpop.f32.mrf.mxu2 }
 0x6d9   :  { %5626 = vmatpush.bf16.msra.mxu2 %v5569_v14  ;;  %5640 = vmatpush.bf16.msra.mxu3 %v5570_v39  ;;  %v5540_v4 = vmul.f32 %v5518_v5, %v15216_v12  ;;  %v5541_v15 = vmul.f32 %v5510_v42, %v15215_v16 }
 0x6db   :  { %v5459_v34 = vpop.permute.xlu1 %5458 }
 0x6dc   :  { %v5511_v36 = vsel %vm525_vm7, %v5459_v34, %v5475_v55  ;;  %v5519_v13 = vsel %vm525_vm7, %v13146_v53, %v5459_v34  ;;  %7058 = vmatmul.msk.bf16.vlgmr.msra.gmra.mxu2 %vm4126_vm14, %v7148_v28  ;;  %7059 = vmatmul.msk.bf16.vlgmr.msra.gmra.mxu3 %vm4126_vm14, %v7148_v28  ;;  %v5508_v55 = vsel %vm525_vm7, %v5453_v45, %v5469_v52  ;;  %v13263_v52 = vpop.f32.mrf.mxu0 }
 0x6dd   :  { %v5544_v30 = vmul.f32 %v5519_v13, %v15216_v12  ;;  %v5545_v31 = vmul.f32 %v5511_v36, %v15215_v16  ;;  %v5516_v53 = vsel %vm525_vm7, %v5437_v51, %v5453_v45  ;;  %v5533_v2 = vmul.f32 %v5508_v55, %v15215_v16  ;;  %v4649_v51 = vpop.f32.mrf.mxu1 }
 0x6de   :  { %v5532_v25 = vmul.f32 %v5516_v53, %v15216_v12 }
 0x6df   :  { %v5455_v17 = vpop.permute.xlu0 %5454  ;;  %v5571_v33 = vpack.c.bf16 %v5544_v30, %v5540_v4  ;;  %v5572_v9 = vpack.c.bf16 %v5545_v31, %v5541_v15  ;;  %v4766_v14 = vpop.f32.mrf.mxu3 }
 0x6e0   :  { %v5509_v22 = vsel %vm525_vm7, %v5455_v17, %v5471_v7  ;;  %v5517_v35 = vsel %vm525_vm7, %v5439_v47, %v5455_v17  ;;  %v4752_v39 = vpop.f32.mrf.mxu2 }
 0x6e1   :  { %v5536_v20 = vmul.f32 %v5517_v35, %v15216_v12  ;;  %v5537_v49 = vmul.f32 %v5509_v22, %v15215_v16  ;;  %5597 = vmatpush.bf16.msra.mxu0 %v5571_v33  ;;  %5611 = vmatpush.bf16.msra.mxu1 %v5572_v9 }
 0x6e3   :  { %v5567_v7 = vpack.c.bf16 %v5536_v20, %v5532_v25  ;;  %v5568_v47 = vpack.c.bf16 %v5537_v49, %v5533_v2 }
 0x6e4   :  { %v4724_v1 = vpop.f32.mrf.mxu0 }
 0x6e5   :  { %5598 = vmatpush.bf16.msra.mxu0 %v5567_v7  ;;  %5612 = vmatpush.bf16.msra.mxu1 %v5568_v47  ;;  %v4738_v63 = vpop.f32.mrf.mxu1  ;;  %v4220_v7 = vadd.f32 %v13084_v37, %v13051_v41  ;;  %v4771_v43 = vadd.f32 %v4724_v1, %v13182_v24  ;;  %v4773_v41 = vadd.f32 %v4752_v39, %v13178_v44 }
 0x6e6   :  { %v4772_v12 = vadd.f32 %v4738_v63, %v13144_v58  ;;  %v4774_v58 = vadd.f32 %v4766_v14, %v13180_v61 }
 0x6e7   :  { %v4768_v45 = vpop.f32.mrf.mxu3  ;;  %v4466_v16 = vadd.f32 %v13128_v18, %v4220_v7  ;;  %v4468_v18 = vadd.f32 %v13154_v32, %v4248_v26 }
 0x6e8   :  { %7056 = vmatmul.msk.bf16.vlgmr.msra.gmra.mxu0 %vm4126_vm14, %v7148_v28  ;;  %7057 = vmatmul.msk.bf16.vlgmr.msra.gmra.mxu1 %vm4126_vm14, %v7148_v28  ;;  %v13269_v4 = vpop.f32.mrf.mxu2 }
 0x6e9   :  { %v4685_v11 = vadd.f32 %v4649_v51, %v4466_v16 }
 0x6ec   :  { %v13267_v42 = vpop.f32.mrf.mxu0 }
 0x6ed   :  { %v4740_v5 = vpop.f32.mrf.mxu1 }
 0x6ee   :  { %v4776_v6 = vadd.f32 %v4740_v5, %v4685_v11  ;;  %v4206_v11 = vadd.f32 %v13126_v40, %v13082_v0 }
 0x6ef   :  { %v4985_v36 = vpop.f32.mrf.mxu3 }
 0x6f0   :  { %v4971_v28 = vpop.f32.mrf.mxu2  ;;  %v4993_v10 = vadd.f32 %v4985_v36, %v4774_v58 }
 0x6f1   :  { %v4992_v51 = vadd.f32 %v4971_v28, %v4773_v41 }
 0x6f4   :  { %v4943_v15 = vpop.f32.mrf.mxu0 }
 0x6f5   :  { %v4957_v34 = vpop.f32.mrf.mxu1  ;;  %v4990_v38 = vadd.f32 %v4943_v15, %v4771_v43  ;;  %v4687_v43 = vadd.f32 %v4677_v50, %v4468_v18 }
 0x6f6   :  { %v4991_v57 = vadd.f32 %v4957_v34, %v4772_v12 }
 0x6f7   :  { %v13273_v30 = vpop.f32.mrf.mxu3  ;;  %v4778_v39 = vadd.f32 %v4768_v45, %v4687_v43 }
 0x6f8   :  { %v13275_v31 = vpop.f32.mrf.mxu2 }
 0x6fc   :  { %v13271_v17 = vpop.f32.mrf.mxu0 }
 0x6fd   :  { %v4959_v13 = vpop.f32.mrf.mxu1 }
 0x6fe   :  { %v4995_v12 = vadd.f32 %v4959_v13, %v4776_v6  ;;  %v4465_v6 = vadd.f32 %v13176_v60, %v4206_v11 }
 0x6ff   :  { %v5204_v55 = vpop.f32.mrf.mxu3 }
 0x700   :  { %v5190_v53 = vpop.f32.mrf.mxu2  ;;  %v5212_v15 = vadd.f32 %v5204_v55, %v4993_v10  ;;  %v4684_v45 = vadd.f32 %v13263_v52, %v4465_v6 }
 0x701   :  { %v5211_v61 = vadd.f32 %v5190_v53, %v4992_v51 }
 0x704   :  { %v5162_v35 = vpop.f32.mrf.mxu0 }
 0x705   :  { %v5176_v22 = vpop.f32.mrf.mxu1  ;;  %v5209_v63 = vadd.f32 %v5162_v35, %v4990_v38  ;;  %v4234_v38 = vadd.f32 %v13104_v46, %v13072_v29 }
 0x706   :  { %v5210_v37 = vadd.f32 %v5176_v22, %v4991_v57 }
 0x707   :  { %v13279_v33 = vpop.f32.mrf.mxu3  ;;  %v4467_v40 = vadd.f32 %v13136_v59, %v4234_v38 }
 0x708   :  { %v13281_v9 = vpop.f32.mrf.mxu2 }
 0x709   :  { %v4686_v53 = vadd.f32 %v13265_v23, %v4467_v40 }
 0x70c   :  { %v13277_v49 = vpop.f32.mrf.mxu0 }
 0x70d   :  { %v5178_v20 = vpop.f32.mrf.mxu1 }
 0x70e   :  { %v5214_v44 = vadd.f32 %v5178_v20, %v4995_v12 }
 0x70f   :  { %v5423_v47 = vpop.f32.mrf.mxu3 }
 0x710   :  { %v5409_v8 = vpop.f32.mrf.mxu2  ;;  %v5431_v46 = vadd.f32 %v5423_v47, %v5212_v15  ;;  %v5661_v36 = vpop.permute.xlu2 %5660 }
 0x711   :  { %v5430_v50 = vadd.f32 %v5409_v8, %v5211_v61 }
 0x717   :  { %v5425_v7 = vpop.f32.mrf.mxu3 }
 0x718   :  { %v13295_v24 = vpop.f32.mrf.mxu2 }
 0x71a   :  { %v5381_v2 = vpop.f32.mrf.mxu0  ;;  %v5395_v25 = vpop.f32.mrf.mxu1 }
 0x71b   :  { %v5429_v1 = vadd.f32 %v5395_v25, %v5210_v37  ;;  %v5428_v34 = vadd.f32 %v5381_v2, %v5209_v63  ;;  %v4775_v2 = vadd.f32 %v13267_v42, %v4684_v45 }
 0x71d   :  { %v4994_v42 = vadd.f32 %v13271_v17, %v4775_v2 }
 0x722   :  { %v13288_v3 = vpop.f32.mrf.mxu0  ;;  %v5397_v27 = vpop.f32.mrf.mxu1 }
 0x723   :  { %v5433_v28 = vadd.f32 %v5397_v27, %v5214_v44  ;;  %v4997_v27 = vadd.f32 %v13273_v30, %v4778_v39  ;;  %v4777_v30 = vadd.f32 %v13269_v4, %v4686_v53  ;;  %v5213_v4 = vadd.f32 %v13277_v49, %v4994_v42 }
 0x725   :  { %v5216_v25 = vadd.f32 %v13279_v33, %v4997_v27  ;;  %v4996_v63 = vadd.f32 %v13275_v31, %v4777_v30  ;;  %v5432_v17 = vadd.f32 %v13288_v3, %v5213_v4  ;;  %v15217_v27 = vld [vmem:[#allocation7_spill] sm:$0xff] }
 0x727   :  { %v5435_v23 = vadd.f32 %v5425_v7, %v5216_v25  ;;  %v5215_v7 = vadd.f32 %v13281_v9, %v4996_v63  ;;  %v15220_v25 = vld [vmem:[#allocation3_spill] sm:$0xff] }
 0x729   :  { %v5434_v49 = vadd.f32 %v13295_v24, %v5215_v7 }
 0x738   :  { %v5657_v57 = vpop.permute.xlu1 %5656 }
 0x75f   :  { %v5642_v5 = vpop.f32.mrf.mxu3 }
 0x760   :  { %v5650_v35 = vadd.f32 %v5642_v5, %v5431_v46 }
 0x762   :  { %v5666_v47 = vadd.f32 %v5657_v57, %v5650_v35 }
 0x764   :  { %v5682_v18 = vmul.f32 0.2, %v5666_v47  ;;  %vm5674_vm12 = vcmp.ge.f32.partialorder %v5666_v47, 0.0 }
 0x765   :  { %v5600_v21 = vpop.f32.mrf.mxu0  ;;  %v5614_v16 = vpop.f32.mrf.mxu1 }
 0x766   :  { %v5648_v62 = vadd.f32 %v5614_v16, %v5429_v1  ;;  %v5647_v26 = vadd.f32 %v5600_v21, %v5428_v34  ;;  %v5628_v21 = vpop.f32.mrf.mxu2  ;;  %v13330_v16 = vsel %vm5674_vm12, %v5666_v47, %v5682_v18 }
 0x767   :  { %v5649_v22 = vadd.f32 %v5628_v21, %v5430_v50  ;;  %v5644_v37 = vpop.f32.mrf.mxu3 }
 0x768   :  { %v5664_v32 = vadd.f32 %v5657_v57, %v5648_v62  ;;  %v5663_v13 = vadd.f32 %v5657_v57, %v5647_v26  ;;  %v5654_v58 = vadd.f32 %v5644_v37, %v5435_v23 }
 0x769   :  { %v5665_v8 = vadd.f32 %v5657_v57, %v5649_v22  ;;  %v15218_v22 = vld [vmem:[#allocation6_spill] sm:$0xff] }
 0x76a   :  { %vm5672_vm15 = vcmp.ge.f32.partialorder %v5664_v32, 0.0  ;;  %v5680_v14 = vmul.f32 0.2, %v5664_v32  ;;  %v5679_v55 = vmul.f32 0.2, %v5663_v13  ;;  %vm5671_vm9 = vcmp.ge.f32.partialorder %v5663_v13, 0.0 }
 0x76b   :  { %v5681_v33 = vmul.f32 0.2, %v5665_v8  ;;  %vm5673_vm11 = vcmp.ge.f32.partialorder %v5665_v8, 0.0  ;;  %v5670_v12 = vadd.f32 %v5661_v36, %v5654_v58  ;;  %v15221_v58 = vld [vmem:[#allocation9_spill] sm:$0xff] }
 0x76c   :  { %v13302_v0 = vsel %vm5672_vm15, %v5664_v32, %v5680_v14  ;;  %v13314_v41 = vsel %vm5671_vm9, %v5663_v13, %v5679_v55 }
 0x76d   :  { %5699 = vrot.lane.b32.xlu2 %v13302_v0, %s7537_s19  ;;  %5736 = vrot.lane.b32.xlu0 %v13302_v0, %s7536_s0  ;;  %v5616_v29 = vpop.f32.mrf.mxu1  ;;  %v13328_v1 = vsel %vm5673_vm11, %v5665_v8, %v5681_v33  ;;  %v5602_v51 = vpop.f32.mrf.mxu0  ;;  %v5686_v34 = vmul.f32 0.2, %v5670_v12  ;;  %vm5678_vm13 = vcmp.ge.f32.partialorder %v5670_v12, 0.0  ;;  %vm6571_vm11 = vsmask.f32 3328 }
 0x76e   :  { %v5652_v60 = vadd.f32 %v5616_v29, %v5433_v28  ;;  %v5630_v31 = vpop.f32.mrf.mxu2  ;;  %v5651_v62 = vadd.f32 %v5602_v51, %v5432_v17 }
 0x76f   :  { %v5653_v11 = vadd.f32 %v5630_v31, %v5434_v49  ;;  %v13341_v9 = vsel %vm5678_vm13, %v5670_v12, %v5686_v34 }
 0x770   :  { %v5668_v59 = vadd.f32 %v5661_v36, %v5652_v60  ;;  %v5667_v43 = vadd.f32 %v5661_v36, %v5651_v62 }
 0x771   :  { %v5669_v57 = vadd.f32 %v5661_v36, %v5653_v11  ;;  %v7060_v11 = vld [vmem:[%s13812_s8 + $0x4] sm:$0xf] }
 0x772   :  { %vm5676_vm10 = vcmp.ge.f32.partialorder %v5668_v59, 0.0  ;;  %v5684_v20 = vmul.f32 0.2, %v5668_v59  ;;  %v5683_v3 = vmul.f32 0.2, %v5667_v43  ;;  %vm5675_vm14 = vcmp.ge.f32.partialorder %v5667_v43, 0.0 }
 0x773   :  { %v5685_v10 = vmul.f32 0.2, %v5669_v57  ;;  %vm5677_vm15 = vcmp.ge.f32.partialorder %v5669_v57, 0.0 }
 0x774   :  { %v13316_v52 = vsel %vm5676_vm10, %v5668_v59, %v5684_v20  ;;  %v13349_v24 = vsel %vm5675_vm14, %v5667_v43, %v5683_v3  ;;  %v15219_v20 = vld [vmem:[#allocation5_spill] sm:$0xff]  ;;  %vm6570_vm10 = vcmask 1043459   ;;  %vm6556_vm14 = vcmask 1041408  }
 0x775   :  { %5738 = vrot.lane.b32.xlu1 %v13316_v52, %s7536_s0  ;;  %5695 = vrot.lane.b32.xlu2 %v13314_v41, %s7537_s19  ;;  %v13351_v26 = vsel %vm5677_vm15, %v5669_v57, %v5685_v10  ;;  %vm6572_vm13 = vmand %vm6570_vm10, %vm6571_vm11 }
 0x776   :  { %5732 = vrot.lane.b32.xlu0 %v13314_v41, %s7536_s0 }
 0x77d   :  { %5744 = vrot.lane.b32.xlu1 %v13330_v16, %s7536_s0  ;;  %5740 = vrot.lane.b32.xlu2 %v13328_v1, %s7536_s0 }
 0x77e   :  { %5701 = vrot.lane.b32.xlu0 %v13316_v52, %s7537_s19 }
 0x785   :  { %5703 = vrot.lane.b32.xlu1 %v13328_v1, %s7537_s19  ;;  %5746 = vrot.lane.b32.xlu2 %v13341_v9, %s7536_s0 }
 0x786   :  { %5707 = vrot.lane.b32.xlu0 %v13330_v16, %s7537_s19 }
 0x78d   :  { %5886 = vrot.lane.b32.xlu2 %v13316_v52, %s7538_s24  ;;  %5734 = vrot.lane.b32.xlu1 %v13349_v24, %s7536_s0 }
 0x78e   :  { %5742 = vrot.lane.b32.xlu0 %v13351_v26, %s7536_s0 }
 0x795   :  { %5705 = vrot.lane.b32.xlu2 %v13351_v26, %s7537_s19  ;;  %5884 = vrot.lane.b32.xlu1 %v13302_v0, %s7538_s24 }
 0x796   :  { %5697 = vrot.lane.b32.xlu0 %v13349_v24, %s7537_s19 }
 0x79d   :  { %5892 = vrot.lane.b32.xlu2 %v13330_v16, %s7538_s24  ;;  %5880 = vrot.lane.b32.xlu1 %v13314_v41, %s7538_s24 }
 0x79e   :  { %5888 = vrot.lane.b32.xlu0 %v13328_v1, %s7538_s24 }
 0x7a5   :  { %5882 = vrot.lane.b32.xlu2 %v13349_v24, %s7538_s24  ;;  %5709 = vrot.lane.b32.xlu1 %v13341_v9, %s7537_s19 }
 0x7a6   :  { %5981 = vrot.lane.b32.xlu0 %v13302_v0, %s7539_s25 }
 0x7ad   :  { %5985 = vrot.lane.b32.xlu2 %v13328_v1, %s7539_s25  ;;  %5983 = vrot.lane.b32.xlu1 %v13316_v52, %s7539_s25 }
 0x7ae   :  { %5894 = vrot.lane.b32.xlu0 %v13341_v9, %s7538_s24 }
 0x7b5   :  { %5991 = vrot.lane.b32.xlu2 %v13341_v9, %s7539_s25  ;;  %5890 = vrot.lane.b32.xlu1 %v13351_v26, %s7538_s24 }
 0x7b6   :  { %5977 = vrot.lane.b32.xlu0 %v13314_v41, %s7539_s25 }
 0x7bd   :  { %6139 = vrot.lane.b32.xlu2 %v13314_v41, %s7540_s30  ;;  %5989 = vrot.lane.b32.xlu1 %v13330_v16, %s7539_s25 }
 0x7be   :  { %5987 = vrot.lane.b32.xlu0 %v13351_v26, %s7539_s25 }
 0x7c5   :  { %6143 = vrot.lane.b32.xlu2 %v13302_v0, %s7540_s30  ;;  %5979 = vrot.lane.b32.xlu1 %v13349_v24, %s7539_s25 }
 0x7c6   :  { %6141 = vrot.lane.b32.xlu0 %v13349_v24, %s7540_s30 }
 0x7c7   :  { %v13401_v32 = vpop.permute.xlu2 %5699 }
 0x7cd   :  { %6238 = vrot.lane.b32.xlu2 %v13349_v24, %s7541_s13  ;;  %6147 = vrot.lane.b32.xlu1 %v13328_v1, %s7540_s30 }
 0x7ce   :  { %6151 = vrot.lane.b32.xlu0 %v13330_v16, %s7540_s30 }
 0x7cf   :  { %v13409_v38 = vpop.permute.xlu2 %5695 }
 0x7d0   :  { %v5715_v43 = vsel %vm59_vm1, %v13409_v38, %v13401_v32 }
 0x7d5   :  { %6149 = vrot.lane.b32.xlu2 %v13351_v26, %s7540_s30  ;;  %6236 = vrot.lane.b32.xlu1 %v13314_v41, %s7541_s13 }
 0x7d6   :  { %6145 = vrot.lane.b32.xlu0 %v13316_v52, %s7540_s30 }
 0x7d7   :  { %v5741_v44 = vpop.permute.xlu2 %5740 }
 0x7dd   :  { %6248 = vrot.lane.b32.xlu2 %v13330_v16, %s7541_s13  ;;  %6240 = vrot.lane.b32.xlu1 %v13302_v0, %s7541_s13 }
 0x7de   :  { %6244 = vrot.lane.b32.xlu0 %v13328_v1, %s7541_s13 }
 0x7df   :  { %v5737_v61 = vpop.permute.xlu0 %5736  ;;  %v5747_v14 = vpop.permute.xlu2 %5746 }
 0x7e0   :  { %v5750_v46 = vsel %vm112_vm0, %v5737_v61, %v5741_v44 }
 0x7e1   :  { %v5758_v36 = vmul.f32 %v5750_v46, %v15217_v27 }
 0x7e5   :  { %6242 = vrot.lane.b32.xlu2 %v13316_v52, %s7541_s13  ;;  %6153 = vrot.lane.b32.xlu1 %v13341_v9, %s7540_s30 }
 0x7e6   :  { %6333 = vrot.lane.b32.xlu0 %v13314_v41, %s7542_s16 }
 0x7e7   :  { %v5739_v6 = vpop.permute.xlu1 %5738  ;;  %v13429_v39 = vpop.permute.xlu2 %5886 }
 0x7e8   :  { %v5733_v5 = vpop.permute.xlu0 %5732 }
 0x7e9   :  { %v5752_v50 = vsel %vm112_vm0, %v5733_v5, %v5737_v61  ;;  %v15222_v61 = vld [vmem:[#allocation4_spill] sm:$0xff] }
 0x7ea   :  { %v5757_v35 = vmul.f32 %v5752_v50, %v15218_v22 }
 0x7ed   :  { %6341 = vrot.lane.b32.xlu2 %v13328_v1, %s7542_s16  ;;  %6335 = vrot.lane.b32.xlu1 %v13349_v24, %s7542_s16 }
 0x7ee   :  { %6250 = vrot.lane.b32.xlu0 %v13341_v9, %s7541_s13 }
 0x7ef   :  { %v5745_v15 = vpop.permute.xlu1 %5744  ;;  %v13437_v28 = vpop.permute.xlu2 %5705 }
 0x7f0   :  { %v5702_v13 = vpop.permute.xlu0 %5701  ;;  %v5748_v60 = vsel %vm112_vm0, %v5741_v44, %v5745_v15  ;;  %v5754_v45 = vsel %vm112_vm0, %v5745_v15, %v5733_v5 }
 0x7f1   :  { %v5756_v2 = vmul.f32 %v5754_v45, %v15219_v20  ;;  %v5759_v8 = vmul.f32 %v5748_v60, %v15220_v25  ;;  %v5714_v23 = vsel %vm59_vm1, %v5702_v13, %v13437_v28  ;;  %v15223_v60 = vld [vmem:[#allocation14_spill] sm:$0xff] }
 0x7f2   :  { %v5725_v17 = vmul.f32 %v5714_v23, %v15221_v58 }
 0x7f5   :  { %6347 = vrot.lane.b32.xlu2 %v13341_v9, %s7542_s16  ;;  %6246 = vrot.lane.b32.xlu1 %v13351_v26, %s7541_s13 }
 0x7f6   :  { %6337 = vrot.lane.b32.xlu0 %v13302_v0, %s7542_s16 }
 0x7f7   :  { %v13445_v40 = vpop.permute.xlu1 %5703  ;;  %v13447_v21 = vpop.permute.xlu2 %5892 }
 0x7f8   :  { %v13449_v29 = vpop.permute.xlu0 %5707  ;;  %v5713_v55 = vsel %vm59_vm1, %v13401_v32, %v13445_v40 }
 0x7f9   :  { %v5721_v63 = vmul.f32 %v5713_v55, %v15221_v58  ;;  %v5727_v55 = vld [vmem:[%s13812_s8] sm:$0xf] }
 0x7fb   :  { %v5730_v62 = vpack.c.bf16 %v5725_v17, %v5721_v63  ;;  %v15226_v63 = vld [vmem:[#allocation13_spill] sm:$0xff] }
 0x7fd   :  { %6430 = vrot.lane.b32.xlu2 %v13314_v41, %s7543_s20  ;;  %6345 = vrot.lane.b32.xlu1 %v13330_v16, %s7542_s16 }
 0x7fe   :  { %6343 = vrot.lane.b32.xlu0 %v13351_v26, %s7542_s16 }
 0x7ff   :  { %v13471_v59 = vpop.permute.xlu2 %5882  ;;  %v5735_v53 = vpop.permute.xlu1 %5734 }
 0x800   :  { %v5743_v47 = vpop.permute.xlu0 %5742  ;;  %v5753_v30 = vsel %vm112_vm0, %v5735_v53, %v5739_v6  ;;  %v5755_v37 = vsel %vm112_vm0, %v5747_v14, %v5735_v53  ;;  %v5901_v5 = vsel %vm175_vm2, %v13471_v59, %v13429_v39 }
 0x801   :  { %v5749_v42 = vsel %vm112_vm0, %v5743_v47, %v5747_v14  ;;  %v5751_v33 = vsel %vm112_vm0, %v5739_v6, %v5743_v47  ;;  %v5760_v18 = vmul.f32 %v5755_v37, %v15219_v20  ;;  %v5761_v7 = vmul.f32 %v5753_v30, %v15218_v22  ;;  %v15225_v47 = vld [vmem:[#allocation10_spill] sm:$0xff] }
 0x802   :  { %v5762_v4 = vmul.f32 %v5751_v33, %v15217_v27  ;;  %v5763_v12 = vmul.f32 %v5749_v42, %v15220_v25  ;;  %v5720_v14 = vmul.f32 %v5715_v43, %v15222_v61  ;;  %v5909_v45 = vmul.f32 %v5901_v5, %v15223_v60  ;;  %v15224_v25 = vld [vmem:[#allocation8_spill] sm:$0xff]  ;;  %v15227_v43 = vld [vmem:[#allocation15_spill] sm:$0xff] }
 0x803   :  { %v5766_v51 = vpack.c.bf16 %v5760_v18, %v5756_v2  ;;  %v5767_v34 = vpack.c.bf16 %v5761_v7, %v5757_v35  ;;  %v5711_v22 = vsel %vm59_vm1, %v13445_v40, %v13449_v29  ;;  %v5717_v35 = vsel %vm59_vm1, %v13449_v29, %v13409_v38 }
 0x804   :  { %v5768_v31 = vpack.c.bf16 %v5762_v4, %v5758_v36  ;;  %v5769_v49 = vpack.c.bf16 %v5763_v12, %v5759_v8  ;;  %v5719_v8 = vmul.f32 %v5717_v35, %v15224_v25  ;;  %v5722_v38 = vmul.f32 %v5711_v22, %v15225_v47 }
 0x805   :  { %6440 = vrot.lane.b32.xlu2 %v13351_v26, %s7543_s20  ;;  %6339 = vrot.lane.b32.xlu1 %v13316_v52, %s7542_s16  ;;  %vm6560_vm0 = vsmask.f32 256 }
 0x806   :  { %5806 = vmatpush.bf16.msrb.mxu2 %v5768_v31  ;;  %5819 = vmatpush.bf16.msrb.mxu3 %v5769_v49 }
 0x807   :  { %6432 = vrot.lane.b32.xlu0 %v13349_v24, %s7543_s20  ;;  %5780 = vmatpush.bf16.msrb.mxu0 %v5766_v51  ;;  %v13505_v57 = vpop.permute.xlu2 %5985  ;;  %v5885_v3 = vpop.permute.xlu1 %5884 }
 0x808   :  { %5793 = vmatpush.bf16.msrb.mxu1 %v5767_v34  ;;  %v5698_v10 = vpop.permute.xlu0 %5697 }
 0x809   :  { %v5716_v44 = vsel %vm59_vm1, %v5698_v10, %v5702_v13  ;;  %7063 = vmatmul.msk.bf16.vlgmr.msrb.gmra.mxu2 %vm715_vm8, %v7060_v11  ;;  %7064 = vmatmul.msk.bf16.vlgmr.msrb.gmra.mxu3 %vm715_vm8, %v7060_v11 }
 0x80a   :  { %5861 = vmatpush.bf16.msra.mxu2 %v5730_v62  ;;  %v5724_v32 = vmul.f32 %v5716_v44, %v15222_v61  ;;  %7061 = vmatmul.msk.bf16.vlgmr.msrb.gmra.mxu0 %vm715_vm8, %v7060_v11 }
 0x80b   :  { %7062 = vmatmul.msk.bf16.vlgmr.msrb.gmra.mxu1 %vm715_vm8, %v7060_v11  ;;  %v7069_v11 = vld [vmem:[%s13812_s8 + $0x8] sm:$0xf] }
 0x80c   :  { %v5729_v6 = vpack.c.bf16 %v5724_v32, %v5720_v14 }
 0x80d   :  { %6434 = vrot.lane.b32.xlu2 %v13302_v0, %s7543_s20  ;;  %6438 = vrot.lane.b32.xlu1 %v13328_v1, %s7543_s20 }
 0x80e   :  { %5848 = vmatpush.bf16.msra.mxu1 %v5729_v6 }
 0x80f   :  { %6442 = vrot.lane.b32.xlu0 %v13330_v16, %s7543_s20  ;;  %v13525_v15 = vpop.permute.xlu2 %5991  ;;  %v5881_v13 = vpop.permute.xlu1 %5880 }
 0x810   :  { %v5889_v46 = vpop.permute.xlu0 %5888  ;;  %v5900_v50 = vsel %vm175_vm2, %v5881_v13, %v5885_v3 }
 0x811   :  { %v5905_v27 = vmul.f32 %v5900_v50, %v15223_v60  ;;  %v5896_v17 = vsel %vm175_vm2, %v5889_v46, %v13447_v21  ;;  %v5898_v31 = vsel %vm175_vm2, %v5885_v3, %v5889_v46 }
 0x813   :  { %v5915_v36 = vpack.c.bf16 %v5909_v45, %v5905_v27  ;;  %v15229_v45 = vld [vmem:[#allocation17_spill] sm:$0xff] }
 0x815   :  { %6444 = vrot.lane.b32.xlu1 %v13341_v9, %s7543_s20  ;;  %5941 = vmatpush.bf16.msrb.mxu1 %v5915_v36  ;;  %v15230_v36 = vld [vmem:[#allocation20_spill] sm:$0xff] }
 0x817   :  { %6436 = vrot.lane.b32.xlu0 %v13316_v52, %s7543_s20  ;;  %v5710_v53 = vpop.permute.xlu1 %5709  ;;  %v13553_v29 = vpop.permute.xlu2 %6139 }
 0x818   :  { %v5982_v20 = vpop.permute.xlu0 %5981  ;;  %v5712_v2 = vsel %vm59_vm1, %v13437_v28, %v5710_v53  ;;  %v5718_v40 = vsel %vm59_vm1, %v5710_v53, %v5698_v10  ;;  %v5902_v28 = vsel %vm175_vm2, %v13447_v21, %v5881_v13  ;;  %v5906_v10 = vmul.f32 %v5898_v31, %v15227_v43  ;;  %v15228_v21 = vld [vmem:[#allocation12_spill] sm:$0xff] }
 0x819   :  { %v5723_v30 = vmul.f32 %v5718_v40, %v15224_v25  ;;  %v5726_v37 = vmul.f32 %v5712_v2, %v15225_v47  ;;  %7067 = vmatmul.msk.bf16.vlgmr.msra.gmra.mxu2 %vm715_vm8, %v5727_v55  ;;  %v5904_v4 = vmul.f32 %v5902_v28, %v15226_v63  ;;  %v5907_v44 = vmul.f32 %v5896_v17, %v15228_v21 }
 0x81a   :  { %v6078_v2 = vpack.c.bf16 %v13351_v26, %v13328_v1  ;;  %v6079_v40 = vpack.c.bf16 %v13341_v9, %v13330_v16  ;;  %v15231_v16 = vld [vmem:[#allocation19_spill] sm:$0xff]  ;;  %v15232_v26 = vld [vmem:[#allocation18_spill] sm:$0xff]  ;;  %vm6562_vm1 = vcmask 1041409  }
 0x81b   :  { %v5728_v23 = vpack.c.bf16 %v5723_v30, %v5719_v8  ;;  %v5731_v42 = vpack.c.bf16 %v5726_v37, %v5722_v38  ;;  %7066 = vmatmul.msk.bf16.vlgmr.msra.gmra.mxu1 %vm715_vm8, %v5727_v55 }
 0x81d   :  { %5835 = vmatpush.bf16.msra.mxu0 %v5728_v23  ;;  %5874 = vmatpush.bf16.msra.mxu3 %v5731_v42 }
 0x81f   :  { %v5984_v33 = vpop.permute.xlu1 %5983  ;;  %v13569_v7 = vpop.permute.xlu2 %6143 }
 0x820   :  { %v5895_v18 = vpop.permute.xlu0 %5894  ;;  %7065 = vmatmul.msk.bf16.vlgmr.msra.gmra.mxu0 %vm715_vm8, %v5727_v55  ;;  %7068 = vmatmul.msk.bf16.vlgmr.msra.gmra.mxu3 %vm715_vm8, %v5727_v55 }
 0x821   :  { %v5903_v58 = vsel %vm175_vm2, %v5895_v18, %v13471_v59 }
 0x822   :  { %v5908_v12 = vmul.f32 %v5903_v58, %v15226_v63  ;;  %v6076_v58 = vpack.c.bf16 %v13349_v24, %v13314_v41 }
 0x824   :  { %v5914_v51 = vpack.c.bf16 %v5908_v12, %v5904_v4 }
 0x826   :  { %5928 = vmatpush.bf16.msrb.mxu0 %v5914_v51 }
 0x827   :  { %v5891_v49 = vpop.permute.xlu1 %5890  ;;  %v13589_v6 = vpop.permute.xlu2 %6238 }
 0x828   :  { %v5978_v34 = vpop.permute.xlu0 %5977  ;;  %v5897_v59 = vsel %vm175_vm2, %v5891_v49, %v5895_v18  ;;  %v5899_v62 = vsel %vm175_vm2, %v13429_v39, %v5891_v49  ;;  %v5995_v39 = vsel %vm238_vm5, %v5982_v20, %v13505_v57  ;;  %v15233_v49 = vld [vmem:[#allocation23_spill] sm:$0xff]  ;;  %vm6563_vm2 = vsmask.f32 1280 }
 0x829   :  { %v5910_v3 = vmul.f32 %v5899_v62, %v15227_v43  ;;  %v5911_v61 = vmul.f32 %v5897_v59, %v15228_v21  ;;  %v6003_v22 = vmul.f32 %v5995_v39, %v15230_v36  ;;  %v5997_v25 = vsel %vm238_vm5, %v5978_v34, %v5982_v20 }
 0x82a   :  { %v6002_v9 = vmul.f32 %v5997_v25, %v15231_v16  ;;  %v15235_v25 = vld [vmem:[#allocation28_spill] sm:$0xff] }
 0x82b   :  { %v5916_v14 = vpack.c.bf16 %v5910_v3, %v5906_v10  ;;  %v5917_v32 = vpack.c.bf16 %v5911_v61, %v5907_v44  ;;  %7071 = vmatmul.msk.bf16.vlgmr.msrb.gmra.mxu1 %vm715_vm8, %v7069_v11 }
 0x82d   :  { %5954 = vmatpush.bf16.msrb.mxu2 %v5916_v14  ;;  %5967 = vmatpush.bf16.msrb.mxu3 %v5917_v32 }
 0x82f   :  { %v5990_v5 = vpop.permute.xlu1 %5989  ;;  %v6150_v47 = vpop.permute.xlu2 %6149 }
 0x830   :  { %v5988_v13 = vpop.permute.xlu0 %5987  ;;  %v5993_v46 = vsel %vm238_vm5, %v13505_v57, %v5990_v5  ;;  %7070 = vmatmul.msk.bf16.vlgmr.msrb.gmra.mxu0 %vm715_vm8, %v7069_v11  ;;  %7072 = vmatmul.msk.bf16.vlgmr.msrb.gmra.mxu2 %vm715_vm8, %v7069_v11  ;;  %v5999_v8 = vsel %vm238_vm5, %v5990_v5, %v5978_v34 }
 0x831   :  { %v5994_v50 = vsel %vm238_vm5, %v5988_v13, %v13525_v15  ;;  %v5996_v60 = vsel %vm238_vm5, %v5984_v33, %v5988_v13  ;;  %v6004_v27 = vmul.f32 %v5993_v46, %v15229_v45  ;;  %7073 = vmatmul.msk.bf16.vlgmr.msrb.gmra.mxu3 %vm715_vm8, %v7069_v11  ;;  %v6001_v20 = vmul.f32 %v5999_v8, %v15232_v26 }
 0x832   :  { %v6007_v35 = vmul.f32 %v5996_v60, %v15230_v36  ;;  %v6008_v57 = vmul.f32 %v5994_v50, %v15229_v45  ;;  %v15234_v45 = vld [vmem:[#allocation11_spill] sm:$0xff] }
 0x834   :  { %v6013_v55 = vpack.c.bf16 %v6007_v35, %v6003_v22  ;;  %v6014_v53 = vpack.c.bf16 %v6008_v57, %v6004_v27 }
 0x836   :  { %6051 = vmatpush.bf16.msra.mxu2 %v6013_v55  ;;  %6064 = vmatpush.bf16.msra.mxu3 %v6014_v53  ;;  %v7084_v55 = vld [vmem:[%s13812_s8 + $0x14] sm:$0xf] }
 0x837   :  { %v5980_v38 = vpop.permute.xlu1 %5979  ;;  %v6249_v12 = vpop.permute.xlu2 %6248 }
 0x838   :  { %v6142_v30 = vpop.permute.xlu0 %6141  ;;  %v5998_v37 = vsel %vm238_vm5, %v5980_v38, %v5984_v33  ;;  %v6000_v1 = vsel %vm238_vm5, %v13525_v15, %v5980_v38  ;;  %v6077_v33 = vpack.c.bf16 %v13316_v52, %v13302_v0  ;;  %v7074_v15 = vld [vmem:[%s13812_s8 + $0xc] sm:$0xf]  ;;  %v6159_v0 = vsel %vm336_vm3, %v13553_v29, %v13569_v7  ;;  %vm13786_vm5 = vmand %vm6562_vm1, %vm6563_vm2 }
 0x839   :  { %v6005_v23 = vmul.f32 %v6000_v1, %v15232_v26  ;;  %v6006_v42 = vmul.f32 %v5998_v37, %v15231_v16  ;;  %v6163_v31 = vmul.f32 %v6159_v0, %v15111_v54 }
 0x83a   :  { %6116 = vmatpush.bf16.msrb.mxu2 %v6078_v2  ;;  %6129 = vmatpush.bf16.msrb.mxu3 %v6079_v40 }
 0x83b   :  { %v6011_v28 = vpack.c.bf16 %v6005_v23, %v6001_v20  ;;  %v6012_v18 = vpack.c.bf16 %v6006_v42, %v6002_v9  ;;  %v15236_v20 = vld [vmem:[#allocation26_spill] sm:$0xff] }
 0x83d   :  { %6025 = vmatpush.bf16.msra.mxu0 %v6011_v28  ;;  %6038 = vmatpush.bf16.msra.mxu1 %v6012_v18  ;;  %v15237_v28 = vld [vmem:[#allocation27_spill] sm:$0xff] }
 0x83f   :  { %v6148_v63 = vpop.permute.xlu1 %6147  ;;  %v6243_v11 = vpop.permute.xlu2 %6242 }
 0x840   :  { %v6152_v4 = vpop.permute.xlu0 %6151  ;;  %7075 = vmatmul.msk.bf16.vlgmr.msra.gmra.mxu0 %vm715_vm8, %v7074_v15  ;;  %7076 = vmatmul.msk.bf16.vlgmr.msra.gmra.mxu1 %vm715_vm8, %v7074_v15  ;;  %v6157_v41 = vsel %vm336_vm3, %v13569_v7, %v6148_v63  ;;  %v7079_v7 = vld [vmem:[%s13812_s8 + $0x10] sm:$0xf]  ;;  %v6257_v21 = vsel %vm399_vm4, %v13589_v6, %v6243_v11 }
 0x841   :  { %6090 = vmatpush.bf16.msrb.mxu0 %v6076_v58  ;;  %6103 = vmatpush.bf16.msrb.mxu1 %v6077_v33  ;;  %v6164_v34 = vmul.f32 %v6157_v41, %v15233_v49  ;;  %v6264_v61 = vmul.f32 %v6257_v21, %v15184_v48  ;;  %v6161_v39 = vsel %vm336_vm3, %v6152_v4, %v13553_v29 }
 0x842   :  { %7077 = vmatmul.msk.bf16.vlgmr.msra.gmra.mxu2 %vm715_vm8, %v7074_v15  ;;  %7078 = vmatmul.msk.bf16.vlgmr.msra.gmra.mxu3 %vm715_vm8, %v7074_v15  ;;  %v6155_v5 = vsel %vm336_vm3, %v6148_v63, %v6152_v4  ;;  %v6166_v60 = vmul.f32 %v6161_v39, %v15110_v19  ;;  %v7089_v63 = vld [vmem:[%s13812_s8 + $0x18] sm:$0xf] }
 0x843   :  { %v6165_v27 = vmul.f32 %v6155_v5, %v15234_v45  ;;  %v15241_v39 = vld [vmem:[#allocation29_spill] sm:$0xff] }
 0x847   :  { %v6237_v52 = vpop.permute.xlu1 %6236  ;;  %v6342_v57 = vpop.permute.xlu2 %6341 }
 0x848   :  { %v6146_v24 = vpop.permute.xlu0 %6145  ;;  %v6258_v53 = vsel %vm399_vm4, %v6249_v12, %v6237_v52 }
 0x849   :  { %v6158_v51 = vsel %vm336_vm3, %v6146_v24, %v6150_v47  ;;  %v6160_v17 = vsel %vm336_vm3, %v6142_v30, %v6146_v24  ;;  %v6263_v8 = vmul.f32 %v6258_v53, %v15235_v25 }
 0x84a   :  { %v6167_v59 = vmul.f32 %v6160_v17, %v15111_v54  ;;  %v6168_v62 = vmul.f32 %v6158_v51, %v15233_v49  ;;  %v15238_v51 = vld [vmem:[#allocation31_spill] sm:$0xff]  ;;  %v15239_v49 = vld [vmem:[#allocation30_spill] sm:$0xff] }
 0x84c   :  { %v6173_v43 = vpack.c.bf16 %v6167_v59, %v6163_v31  ;;  %v6174_v10 = vpack.c.bf16 %v6168_v62, %v6164_v34 }
 0x84e   :  { %6187 = vmatpush.bf16.msra.mxu0 %v6173_v43  ;;  %6200 = vmatpush.bf16.msra.mxu1 %v6174_v10  ;;  %v6527_v10 = vld [vmem:[%s13805_s9] sm:$0xff] }
 0x84f   :  { %v6241_v44 = vpop.permute.xlu1 %6240 }
 0x850   :  { %v6245_v3 = vpop.permute.xlu0 %6244  ;;  %v6256_v54 = vsel %vm399_vm4, %v6237_v52, %v6241_v44  ;;  %7080 = vmatmul.msk.bf16.vlgmr.msrb.gmra.mxu0 %vm715_vm8, %v7079_v7  ;;  %7081 = vmatmul.msk.bf16.vlgmr.msrb.gmra.mxu1 %vm715_vm8, %v7079_v7 }
 0x851   :  { %v6260_v14 = vmul.f32 %v6256_v54, %v15184_v48  ;;  %v6254_v37 = vsel %vm399_vm4, %v6241_v44, %v6245_v3  ;;  %v6252_v1 = vsel %vm399_vm4, %v6245_v3, %v6249_v12 }
 0x852   :  { %7082 = vmatmul.msk.bf16.vlgmr.msrb.gmra.mxu2 %vm715_vm8, %v7079_v7  ;;  %7083 = vmatmul.msk.bf16.vlgmr.msrb.gmra.mxu3 %vm715_vm8, %v7079_v7  ;;  %v6261_v23 = vmul.f32 %v6254_v37, %v15236_v20  ;;  %v6262_v18 = vmul.f32 %v6252_v1, %v15237_v28  ;;  %v7548_v7 = vmov 5  }
 0x853   :  { %v6270_v32 = vpack.c.bf16 %v6264_v61, %v6260_v14  ;;  %7517 = vset.pattern.permute.xlu1 %v7548_v7  ;;  %7518 = vset.pattern.permute.xlu0 %v7548_v7  ;;  %v15240_v14 = vld [vmem:[#allocation21_spill] sm:$0xff] }
 0x854   :  { %6530 = vperm.xlu1 %7517, %v6527_v10  }
 0x855   :  { %6284 = vmatpush.bf16.msrb.mxu0 %v6270_v32 }
 0x857   :  { %v6154_v13 = vpop.permute.xlu1 %6153 }
 0x858   :  { %v13671_v46 = vpop.permute.xlu0 %6333  ;;  %v6156_v50 = vsel %vm336_vm3, %v6150_v47, %v6154_v13  ;;  %v6162_v48 = vsel %vm336_vm3, %v6154_v13, %v6142_v30  ;;  %v6348_v30 = vpop.permute.xlu2 %6347  ;;  %vm6548_vm3 = vcmask 1040384  }
 0x859   :  { %v6169_v36 = vmul.f32 %v6156_v50, %v15234_v45  ;;  %v6170_v29 = vmul.f32 %v6162_v48, %v15110_v19 }
 0x85b   :  { %v6175_v22 = vpack.c.bf16 %v6169_v36, %v6165_v27  ;;  %v6176_v35 = vpack.c.bf16 %v6170_v29, %v6166_v60  ;;  %v7094_v27 = vld [vmem:[%s13812_s8 + $0x1c] sm:$0xf] }
 0x85d   :  { %6213 = vmatpush.bf16.msra.mxu2 %v6175_v22  ;;  %6226 = vmatpush.bf16.msra.mxu3 %v6176_v35 }
 0x85f   :  { %v6336_v2 = vpop.permute.xlu1 %6335 }
 0x860   :  { %v6251_v40 = vpop.permute.xlu0 %6250  ;;  %7085 = vmatmul.msk.bf16.vlgmr.msra.gmra.mxu0 %vm715_vm8, %v7084_v55  ;;  %7086 = vmatmul.msk.bf16.vlgmr.msra.gmra.mxu1 %vm715_vm8, %v7084_v55  ;;  %v6356_v4 = vsel %vm462_vm6, %v6348_v30, %v6336_v2  ;;  %v6431_v0 = vpop.permute.xlu2 %6430 }
 0x861   :  { %v6259_v19 = vsel %vm399_vm4, %v6251_v40, %v13589_v6  ;;  %v6364_v17 = vmul.f32 %v6356_v4, %v15238_v51 }
 0x862   :  { %7087 = vmatmul.msk.bf16.vlgmr.msra.gmra.mxu2 %vm715_vm8, %v7084_v55  ;;  %v6267_v47 = vmul.f32 %v6259_v19, %v15235_v25  ;;  %7088 = vmatmul.msk.bf16.vlgmr.msra.gmra.mxu3 %vm715_vm8, %v7084_v55 }
 0x864   :  { %v6273_v38 = vpack.c.bf16 %v6267_v47, %v6263_v8  ;;  %v15242_v47 = vld [vmem:[#allocation34_spill] sm:$0xff] }
 0x866   :  { %6323 = vmatpush.bf16.msrb.mxu3 %v6273_v38 }
 0x867   :  { %v6247_v16 = vpop.permute.xlu1 %6246 }
 0x868   :  { %v6338_v9 = vpop.permute.xlu0 %6337  ;;  %v6253_v6 = vsel %vm399_vm4, %v6247_v16, %v6251_v40  ;;  %v6255_v26 = vsel %vm399_vm4, %v6243_v11, %v6247_v16  ;;  %vm13782_vm4 = vmand %vm6548_vm3, %vm6560_vm0 }
 0x869   :  { %v6265_v42 = vmul.f32 %v6255_v26, %v15236_v20  ;;  %v6266_v58 = vmul.f32 %v6253_v6, %v15237_v28  ;;  %v6351_v21 = vsel %vm462_vm6, %v6338_v9, %v6342_v57  ;;  %v6353_v44 = vsel %vm462_vm6, %v13671_v46, %v6338_v9  ;;  %v15244_v6 = vld [vmem:[#allocation25_spill] sm:$0xff]  ;;  %v15245_v20 = vld [vmem:[#allocation32_spill] sm:$0xff] }
 0x86a   :  { %v6357_v32 = vmul.f32 %v6353_v44, %v15240_v14  ;;  %v6358_v5 = vmul.f32 %v6351_v21, %v15241_v39 }
 0x86b   :  { %v6271_v33 = vpack.c.bf16 %v6265_v42, %v6261_v23  ;;  %v6272_v15 = vpack.c.bf16 %v6266_v58, %v6262_v18 }
 0x86d   :  { %6297 = vmatpush.bf16.msrb.mxu1 %v6271_v33  ;;  %6310 = vmatpush.bf16.msrb.mxu2 %v6272_v15 }
 0x86f   :  { %v6346_v12 = vpop.permute.xlu1 %6345 }
 0x870   :  { %v6344_v41 = vpop.permute.xlu0 %6343  ;;  %v6349_v52 = vsel %vm462_vm6, %v6342_v57, %v6346_v12  ;;  %v6355_v24 = vsel %vm462_vm6, %v6346_v12, %v13671_v46  ;;  %7090 = vmatmul.msk.bf16.vlgmr.msrb.gmra.mxu0 %vm715_vm8, %v7089_v63  ;;  %7091 = vmatmul.msk.bf16.vlgmr.msrb.gmra.mxu1 %vm715_vm8, %v7089_v63  ;;  %v6441_v46 = vpop.permute.xlu2 %6440 }
 0x871   :  { %v6350_v31 = vsel %vm462_vm6, %v6344_v41, %v6348_v30  ;;  %v6359_v34 = vmul.f32 %v6349_v52, %v15239_v49  ;;  %v6360_v59 = vmul.f32 %v6355_v24, %v15238_v51  ;;  %v15243_v30 = vld [vmem:[#allocation33_spill] sm:$0xff] }
 0x872   :  { %7092 = vmatmul.msk.bf16.vlgmr.msrb.gmra.mxu2 %vm715_vm8, %v7089_v63  ;;  %v6363_v62 = vmul.f32 %v6350_v31, %v15239_v49  ;;  %7093 = vmatmul.msk.bf16.vlgmr.msrb.gmra.mxu3 %vm715_vm8, %v7089_v63 }
 0x873   :  { %v6370_v11 = vpack.c.bf16 %v6364_v17, %v6360_v59 }
 0x874   :  { %v6369_v43 = vpack.c.bf16 %v6363_v62, %v6359_v34 }
 0x875   :  { %6420 = vmatpush.bf16.msra.mxu3 %v6370_v11 }
 0x876   :  { %6407 = vmatpush.bf16.msra.mxu2 %v6369_v43 }
 0x877   :  { %v6340_v3 = vpop.permute.xlu1 %6339 }
 0x878   :  { %v6352_v54 = vsel %vm462_vm6, %v6340_v3, %v6344_v41  ;;  %v6354_v61 = vsel %vm462_vm6, %v6336_v2, %v6340_v3  ;;  %v6435_v22 = vpop.permute.xlu2 %6434  ;;  %v7099_v41 = vld [vmem:[%s13812_s8 + $0x20] sm:$0xf]  ;;  %vm6552_vm6 = vcmask 1042434  }
 0x879   :  { %v6433_v13 = vpop.permute.xlu0 %6432  ;;  %v6361_v50 = vmul.f32 %v6354_v61, %v15240_v14  ;;  %v6362_v48 = vmul.f32 %v6352_v54, %v15241_v39  ;;  %v6450_v55 = vsel %vm525_vm7, %v6431_v0, %v6435_v22 }
 0x87a   :  { %v6454_v26 = vmul.f32 %v6450_v55, %v15244_v6 }
 0x87b   :  { %v6367_v60 = vpack.c.bf16 %v6361_v50, %v6357_v32  ;;  %v6368_v45 = vpack.c.bf16 %v6362_v48, %v6358_v5 }
 0x87d   :  { %6381 = vmatpush.bf16.msra.mxu0 %v6367_v60  ;;  %6394 = vmatpush.bf16.msra.mxu1 %v6368_v45 }
 0x87f   :  { %v6439_v36 = vpop.permute.xlu1 %6438 }
 0x880   :  { %7095 = vmatmul.msk.bf16.vlgmr.msra.gmra.mxu0 %vm715_vm8, %v7094_v27  ;;  %7096 = vmatmul.msk.bf16.vlgmr.msra.gmra.mxu1 %vm715_vm8, %v7094_v27  ;;  %v6448_v53 = vsel %vm525_vm7, %v6435_v22, %v6439_v36 }
 0x881   :  { %v6443_v29 = vpop.permute.xlu0 %6442  ;;  %v6455_v23 = vmul.f32 %v6448_v53, %v15245_v20 }
 0x882   :  { %7097 = vmatmul.msk.bf16.vlgmr.msra.gmra.mxu2 %vm715_vm8, %v7094_v27  ;;  %7098 = vmatmul.msk.bf16.vlgmr.msra.gmra.mxu3 %vm715_vm8, %v7094_v27  ;;  %v6452_v35 = vsel %vm525_vm7, %v6443_v29, %v6431_v0  ;;  %v6446_v57 = vsel %vm525_vm7, %v6439_v36, %v6443_v29 }
 0x883   :  { %v6457_v38 = vmul.f32 %v6452_v35, %v15242_v47  ;;  %v6456_v37 = vmul.f32 %v6446_v57, %v15243_v30 }
 0x887   :  { %v6445_v2 = vpop.permute.xlu1 %6444  ;;  %v5782_v40 = vpop.f32.mrf.mxu0 }
 0x888   :  { %v6447_v19 = vsel %vm525_vm7, %v6441_v46, %v6445_v2  ;;  %v6453_v25 = vsel %vm525_vm7, %v6445_v2, %v6433_v13  ;;  %v5795_v8 = vpop.f32.mrf.mxu1 }
 0x889   :  { %v6437_v1 = vpop.permute.xlu0 %6436  ;;  %v6460_v16 = vmul.f32 %v6447_v19, %v15243_v30  ;;  %v6461_v9 = vmul.f32 %v6453_v25, %v15242_v47 }
 0x88a   :  { %v6449_v42 = vsel %vm525_vm7, %v6437_v1, %v6441_v46  ;;  %v6451_v28 = vsel %vm525_vm7, %v6433_v13, %v6437_v1  ;;  %vm6567_vm7 = vsmask.f32 2304 }
 0x88b   :  { %v6458_v18 = vmul.f32 %v6451_v28, %v15244_v6  ;;  %v6459_v58 = vmul.f32 %v6449_v42, %v15245_v20  ;;  %v6466_v33 = vpack.c.bf16 %v6460_v16, %v6456_v37  ;;  %v6467_v15 = vpack.c.bf16 %v6461_v9, %v6457_v38  ;;  %vm6568_vm9 = vmand %vm6552_vm6, %vm6567_vm7 }
 0x88c   :  { %v5808_v63 = vpop.f32.mrf.mxu2  ;;  %v5821_v4 = vpop.f32.mrf.mxu3 }
 0x88d   :  { %v6464_v12 = vpack.c.bf16 %v6458_v18, %v6454_v26  ;;  %v6465_v0 = vpack.c.bf16 %v6459_v58, %v6455_v23  ;;  %6504 = vmatpush.bf16.msrb.mxu2 %v6466_v33  ;;  %6517 = vmatpush.bf16.msrb.mxu3 %v6467_v15 }
 0x88f   :  { %6478 = vmatpush.bf16.msrb.mxu0 %v6464_v12  ;;  %6491 = vmatpush.bf16.msrb.mxu1 %v6465_v0  ;;  %v5784_v56 = vpop.f32.mrf.mxu0 }
 0x890   :  { %v5797_v52 = vpop.f32.mrf.mxu1 }
 0x892   :  { %7102 = vmatmul.msk.bf16.vlgmr.msrb.gmra.mxu2 %vm715_vm8, %v7099_v41  ;;  %7100 = vmatmul.msk.bf16.vlgmr.msrb.gmra.mxu0 %vm715_vm8, %v7099_v41 }
 0x893   :  { %7101 = vmatmul.msk.bf16.vlgmr.msrb.gmra.mxu1 %vm715_vm8, %v7099_v41  ;;  %7103 = vmatmul.msk.bf16.vlgmr.msrb.gmra.mxu3 %vm715_vm8, %v7099_v41  ;;  %vm6565_vm8 = vmor %vm13786_vm5, %vm13782_vm4 }
 0x894   :  { %v5810_v24 = vpop.f32.mrf.mxu2  ;;  %v5823_v51 = vpop.f32.mrf.mxu3  ;;  %vm6569_vm12 = vmor %vm6568_vm9, %vm6565_vm8 }
 0x895   :  { %vm6573_vm15 = vmor %vm6572_vm13, %vm6569_vm12 }
 0x898   :  { %v5850_v17 = vpop.f32.mrf.mxu1 }
 0x899   :  { %v5851_v31 = vadd.f32 %v5850_v17, %v5795_v8 }
 0x89c   :  { %v5863_v49 = vpop.f32.mrf.mxu2 }
 0x89d   :  { %v5837_v34 = vpop.f32.mrf.mxu0  ;;  %v5864_v59 = vadd.f32 %v5863_v49, %v5808_v63 }
 0x89e   :  { %v5838_v62 = vadd.f32 %v5837_v34, %v5782_v40 }
 0x8a0   :  { %v5852_v11 = vpop.f32.mrf.mxu1 }
 0x8a3   :  { %v5876_v43 = vpop.f32.mrf.mxu3 }
 0x8a4   :  { %v5877_v10 = vadd.f32 %v5876_v43, %v5821_v4  ;;  %v5865_v7 = vpop.f32.mrf.mxu2 }
 0x8a5   :  { %v5839_v21 = vpop.f32.mrf.mxu0 }
 0x8a8   :  { %v5943_v44 = vpop.f32.mrf.mxu1 }
 0x8a9   :  { %v5974_v3 = vadd.f32 %v5943_v44, %v5851_v31 }
 0x8ab   :  { %v5878_v54 = vpop.f32.mrf.mxu3 }
 0x8ad   :  { %v5930_v61 = vpop.f32.mrf.mxu0 }
 0x8ae   :  { %v5973_v14 = vadd.f32 %v5930_v61, %v5838_v62 }
 0x8b0   :  { %v5945_v32 = vpop.f32.mrf.mxu1 }
 0x8b3   :  { %v5956_v39 = vpop.f32.mrf.mxu2 }
 0x8b4   :  { %v5975_v5 = vadd.f32 %v5956_v39, %v5864_v59  ;;  %v5969_v13 = vpop.f32.mrf.mxu3 }
 0x8b5   :  { %v5976_v50 = vadd.f32 %v5969_v13, %v5877_v10  ;;  %v5932_v48 = vpop.f32.mrf.mxu0 }
 0x8bb   :  { %v5958_v46 = vpop.f32.mrf.mxu2 }
 0x8bc   :  { %v5971_v60 = vpop.f32.mrf.mxu3 }
 0x8bd   :  { %v6027_v45 = vpop.f32.mrf.mxu0  ;;  %v6040_v27 = vpop.f32.mrf.mxu1 }
 0x8be   :  { %v6070_v36 = vadd.f32 %v6027_v45, %v5973_v14  ;;  %v6071_v29 = vadd.f32 %v6040_v27, %v5974_v3 }
 0x8c5   :  { %v6053_v22 = vpop.f32.mrf.mxu2  ;;  %v6066_v57 = vpop.f32.mrf.mxu3 }
 0x8c6   :  { %v6072_v35 = vadd.f32 %v6053_v22, %v5975_v5  ;;  %v6029_v55 = vpop.f32.mrf.mxu0  ;;  %v6073_v53 = vadd.f32 %v6066_v57, %v5976_v50  ;;  %v6042_v2 = vpop.f32.mrf.mxu1 }
 0x8c7   :  { %v6531_v54 = vpop.permute.xlu1 %6530 }
 0x8cd   :  { %v6055_v40 = vpop.f32.mrf.mxu2  ;;  %v6068_v19 = vpop.f32.mrf.mxu3 }
 0x8ce   :  { %v6092_v25 = vpop.f32.mrf.mxu0  ;;  %v6105_v47 = vpop.f32.mrf.mxu1 }
 0x8cf   :  { %v6135_v8 = vadd.f32 %v6092_v25, %v6070_v36  ;;  %v6136_v38 = vadd.f32 %v6105_v47, %v6071_v29 }
 0x8d5   :  { %v6118_v30 = vpop.f32.mrf.mxu2  ;;  %v6131_v37 = vpop.f32.mrf.mxu3 }
 0x8d6   :  { %v6094_v1 = vpop.f32.mrf.mxu0  ;;  %v6107_v16 = vpop.f32.mrf.mxu1  ;;  %v6137_v7 = vadd.f32 %v6118_v30, %v6072_v35  ;;  %v6138_v61 = vadd.f32 %v6131_v37, %v6073_v53 }
 0x8dd   :  { %v6120_v9 = vpop.f32.mrf.mxu2  ;;  %v6133_v6 = vpop.f32.mrf.mxu3 }
 0x8de   :  { %v6189_v26 = vpop.f32.mrf.mxu0  ;;  %v6202_v20 = vpop.f32.mrf.mxu1 }
 0x8df   :  { %v6232_v59 = vadd.f32 %v6189_v26, %v6135_v8  ;;  %v6233_v62 = vadd.f32 %v6202_v20, %v6136_v38 }
 0x8e5   :  { %v6215_v23 = vpop.f32.mrf.mxu2  ;;  %v6228_v42 = vpop.f32.mrf.mxu3 }
 0x8e6   :  { %v6191_v28 = vpop.f32.mrf.mxu0  ;;  %v6204_v18 = vpop.f32.mrf.mxu1  ;;  %v6234_v14 = vadd.f32 %v6215_v23, %v6137_v7  ;;  %v6235_v50 = vadd.f32 %v6228_v42, %v6138_v61  ;;  %v6574_v23 = vld [vmem:[%s13813_s10] sm:$0xf] }
 0x8ed   :  { %v6217_v58 = vpop.f32.mrf.mxu2  ;;  %v6230_v33 = vpop.f32.mrf.mxu3 }
 0x8ee   :  { %v6286_v15 = vpop.f32.mrf.mxu0  ;;  %v6299_v63 = vpop.f32.mrf.mxu1 }
 0x8ef   :  { %v6329_v11 = vadd.f32 %v6286_v15, %v6232_v59  ;;  %v6330_v43 = vadd.f32 %v6299_v63, %v6233_v62 }
 0x8f5   :  { %v6312_v4 = vpop.f32.mrf.mxu2  ;;  %v6325_v12 = vpop.f32.mrf.mxu3 }
 0x8f6   :  { %v6288_v0 = vpop.f32.mrf.mxu0  ;;  %v6301_v41 = vpop.f32.mrf.mxu1  ;;  %v6331_v48 = vadd.f32 %v6312_v4, %v6234_v14  ;;  %v6332_v45 = vadd.f32 %v6325_v12, %v6235_v50 }
 0x8fd   :  { %v6314_v56 = vpop.f32.mrf.mxu2  ;;  %v6327_v52 = vpop.f32.mrf.mxu3 }
 0x8fe   :  { %v6383_v24 = vpop.f32.mrf.mxu0  ;;  %v6396_v51 = vpop.f32.mrf.mxu1 }
 0x8ff   :  { %v6426_v44 = vadd.f32 %v6383_v24, %v6329_v11  ;;  %v6427_v3 = vadd.f32 %v6396_v51, %v6330_v43 }
 0x905   :  { %v6409_v17 = vpop.f32.mrf.mxu2  ;;  %v6422_v31 = vpop.f32.mrf.mxu3 }
 0x906   :  { %v6385_v49 = vpop.f32.mrf.mxu0  ;;  %v6398_v34 = vpop.f32.mrf.mxu1  ;;  %v6428_v27 = vadd.f32 %v6409_v17, %v6331_v48  ;;  %v6429_v29 = vadd.f32 %v6422_v31, %v6332_v45 }
 0x90d   :  { %v6411_v10 = vpop.f32.mrf.mxu2  ;;  %v6424_v21 = vpop.f32.mrf.mxu3 }
 0x90f   :  { %v6480_v32 = vpop.f32.mrf.mxu0 }
 0x910   :  { %v6493_v39 = vpop.f32.mrf.mxu1  ;;  %v6523_v5 = vadd.f32 %v6480_v32, %v6426_v44 }
 0x911   :  { %v6524_v13 = vadd.f32 %v6493_v39, %v6427_v3 }
 0x912   :  { %v6533_v46 = vadd.f32 %v6531_v54, %v6523_v5 }
 0x913   :  { %v6534_v60 = vadd.f32 %v6531_v54, %v6524_v13 }
 0x914   :  { %7519 = vtanh.f32 %v6533_v46 }
 0x915   :  { %v6506_v36 = vpop.f32.mrf.mxu2  ;;  %7521 = vtanh.f32 %v6534_v60 }
 0x916   :  { %v6525_v22 = vadd.f32 %v6506_v36, %v6428_v27  ;;  %v6519_v35 = vpop.f32.mrf.mxu3 }
 0x917   :  { %v6526_v55 = vadd.f32 %v6519_v35, %v6429_v29  ;;  %v6482_v53 = vpop.f32.mrf.mxu0 }
 0x918   :  { %v6535_v57 = vadd.f32 %v6531_v54, %v6525_v22  ;;  %v6495_v2 = vpop.f32.mrf.mxu1 }
 0x919   :  { %v6536_v19 = vadd.f32 %v6531_v54, %v6526_v55 }
 0x91a   :  { %7523 = vtanh.f32 %v6535_v57  ;;  %v7520_v25 = vpop.eup %7519 }
 0x91b   :  { %v7522_v47 = vpop.eup %7521  ;;  %7525 = vtanh.f32 %v6536_v19 }
 0x91c   :  { %v6541_v38 = vpack.c.bf16 %v7522_v47, %v7520_v25 }
 0x91d   :  { %v6508_v30 = vpop.f32.mrf.mxu2 }
 0x91e   :  { %v6521_v37 = vpop.f32.mrf.mxu3  ;;  %v6545_v9 = vrot.slane %v6541_v38, 3 }
 0x920   :  { %v7524_v1 = vpop.eup %7523  ;;  %v6551_v42 = vsel %vm6548_vm3, %v6541_v38, %v6545_v9 }
 0x921   :  { %v7526_v16 = vpop.eup %7525 }
 0x922   :  { %v6542_v6 = vpack.c.bf16 %v7526_v16, %v7524_v1 }
 0x924   :  { %v6546_v26 = vrot.slane %v6542_v6, 6  ;;  %v6547_v20 = vrot.slane %v6542_v6, 1 }
 0x926   :  { %v6555_v28 = vsel %vm6552_vm6, %v6546_v26, %v6547_v20 }
 0x927   :  { %v6557_v18 = vsel %vm6556_vm14, %v6551_v42, %v6555_v28 }
 0x928   :  { %v6575_v58 = vsel %vm6573_vm15, %v6557_v18, %v6574_v23 }
 0x929   :  { %6576 = vst [vmem:[%s13813_s10] sm:$0xf] %v6575_v58 }

</bundles_post_ra>
